<compile_context>
chip_gen: v5e
topology: v5e:2x2
jax: 0.10.0
libtpu: 0.0.40
codegen_flags: <defaults>
</compile_context>

<pallas_src>
import functools
import math

import jax
import jax.numpy as jnp
from jax import lax
from jax.experimental import pallas as pl
from jax.experimental.pallas import tpu as pltpu

D_MODEL = 128
NHEAD = 4
DFF = 2048
GCN_HIDDEN = 128
ENC_LAYERS = 2
TDFF = 512                       # FFN reduction-chunk width (ff1 cols / ff2 rows per grid step)
VMEM_LIMIT = 32 * 1024 * 1024


# ----------------------------- in-kernel helpers -----------------------------

def _mm(a_bf16, b_bf16):
    """MXU matmul: bf16 operands, f32 accumulation."""
    return jnp.dot(a_bf16, b_bf16, preferred_element_type=jnp.float32)


def _layernorm(x, g, b, eps=1e-5):
    mu = jnp.mean(x, axis=-1, keepdims=True)
    var = jnp.mean(jnp.square(x - mu), axis=-1, keepdims=True)
    return (x - mu) * lax.rsqrt(var + eps) * g + b


def _softmax_rows(s):
    mx = jnp.max(s, axis=-1, keepdims=True)
    p = jnp.exp(s - mx)
    denom = jnp.sum(p, axis=-1, keepdims=True)
    return p * pl.reciprocal(denom, approx=True)


# ----------------------------- kernel 1: spatial (GCN + TransformerConv) -----------------------------

def _spatial_kernel(x_ref, a_hat_ref, ind_ref, gcn_w_ref, gcn_b_ref,
                    tc_w_ref, tc_b_ref, o_ref, *, heads, C):
    # GCNConv: relu( A_hat @ (X W) + b )
    xw = _mm(x_ref[...].astype(jnp.bfloat16), gcn_w_ref[...])                    # (N, 128)
    h = jnp.maximum(_mm(a_hat_ref[...].astype(jnp.bfloat16), xw.astype(jnp.bfloat16))
                    + gcn_b_ref[...], 0.0)
    h_bf = h.astype(jnp.bfloat16)                                                 # cast once

    # Fused q|k|v|skip projection: one (128, 3*H*C + C) matmul.
    proj = _mm(h_bf, tc_w_ref[...]) + tc_b_ref[...]
    proj_bf = proj.astype(jnp.bfloat16)                                           # cast once
    HC = heads * C
    ind = ind_ref[...]                              # (N,N) 0/1: ind[i,j]=1 iff edge j -> i
    scale = 1.0 / math.sqrt(C)

    acc = None
    for hd in range(heads):                         # static unroll; all operands in VMEM
        lo = hd * C
        qh = proj_bf[:, lo:lo + C]
        kh = proj_bf[:, HC + lo:HC + lo + C]
        vh = proj_bf[:, 2 * HC + lo:2 * HC + lo + C]
        s = lax.dot_general(qh, kh, (((1,), (1,)), ((), ())),
                            preferred_element_type=jnp.float32) * scale           # (N,N)
        s = jnp.where(ind > 0, s, -1e30)
        mx = jnp.max(s, axis=-1, keepdims=True)
        p = jnp.exp(s - mx) * ind                   # isolated nodes -> all-zero row (PyG semantics)
        denom = jnp.maximum(jnp.sum(p, axis=-1, keepdims=True), 1e-20)
        p = p * pl.reciprocal(denom, approx=True)
        oh = _mm(p.astype(jnp.bfloat16), vh)                                       # (N, C)
        acc = oh if acc is None else acc + oh
    agg = acc * (1.0 / heads)                       # head average (see TODO on concat=True)
    skip = proj[:, 3 * HC:3 * HC + C]               # root_weight skip path
    o_ref[...] = (agg + skip).astype(o_ref.dtype)


def spatial_forward(p, x, edge_index, out_channels, heads=NHEAD):
    N = x.shape[0]
    src, dst = edge_index[0], edge_index[1]
    # normalized adjacency + binary edge indicator: O(N^2) scalars, tiny XLA glue
    A = jnp.zeros((N, N), jnp.float32).at[dst, src].add(1.0)
    A_loop = jnp.minimum(A, 1.0) + jnp.eye(N, dtype=jnp.float32)
    deg = jnp.sum(A_loop, axis=1)
    dinv = lax.rsqrt(jnp.maximum(deg, 1e-12))
    A_hat = A_loop * dinv[:, None] * dinv[None, :]
    ind = (A > 0).astype(jnp.float32)
    return pl.pallas_call(
        functools.partial(_spatial_kernel, heads=heads, C=out_channels),
        out_shape=jax.ShapeDtypeStruct((N, out_channels), jnp.float32),
        in_specs=[pl.BlockSpec(memory_space=pltpu.MemorySpace.VMEM) for _ in range(7)],
        out_specs=pl.BlockSpec(memory_space=pltpu.MemorySpace.VMEM),
        compiler_params=pltpu.CompilerParams(vmem_limit_bytes=VMEM_LIMIT),
    )(x, A_hat, ind, p["gcn_w"], p["gcn_b"], p["tc_w"], p["tc_b"])


# ----------------------------- kernel 2: conv + encoder x2 + head (fully fused) -----------------------------

def _temporal_head_kernel(xc_ref, conv_w_ref, conv_b_ref,
                          in_w_ref, in_b_ref, out_w_ref, out_b_ref,
                          ln1_g_ref, ln1_b_ref,
                          ff1_w_ref, ff1_b_ref, ff2_w_ref, ff2_b_ref,
                          ln2_g_ref, ln2_b_ref,
                          enc_ng_ref, enc_nb_ref,
                          sp_ref, fc1_w_ref, fc1_b_ref,
                          fc2_w_ref, fc2_b_ref, fco_w_ref, fco_b_ref,
                          o_ref,
                          h_scr, x_scr, acc_scr,
                          *, B, T, nhead):
    l = pl.program_id(0)            # encoder layer
    c = pl.program_id(1)            # FFN reduction chunk
    n_layers = pl.num_programs(0)
    n_chunks = pl.num_programs(1)
    d = D_MODEL
    dh = d // nhead

    # ---- Conv1d(k=3, pad=1) + ReLU: one matmul on the im2col slab, first grid step only ----
    @pl.when((l == 0) & (c == 0))
    def _():
        xc = xc_ref[...].astype(jnp.bfloat16)                      # (B*T, 3F)
        h_scr[...] = jnp.maximum(_mm(xc, conv_w_ref[...]) + conv_b_ref[...], 0.0)

    # ---- multi-head self-attention + residual + LN1: once per layer (chunk 0) ----
    @pl.when(c == 0)
    def _():
        x = h_scr[...]                                             # (B*T, d) f32
        x_bf = x.astype(jnp.bfloat16)
        qkv = _mm(x_bf, in_w_ref[0]) + in_b_ref[0]                 # (B*T, 3d), single matmul
        qkv_bf = qkv.astype(jnp.bfloat16)                          # cast once (not per head)
        scale = 1.0 / math.sqrt(dh)
        for hd in range(nhead):
            qh = qkv_bf[:, hd * dh:(hd + 1) * dh].reshape(B, T, dh)
            kh = qkv_bf[:, d + hd * dh:d + (hd + 1) * dh].reshape(B, T, dh)
            vh = qkv_bf[:, 2 * d + hd * dh:2 * d + (hd + 1) * dh].reshape(B, T, dh)
            s = jnp.einsum('bqd,bkd->bqk', qh, kh,
                           preferred_element_type=jnp.float32) * scale
            pr = _softmax_rows(s)
            oh = jnp.einsum('bqk,bkd->bqd', pr.astype(jnp.bfloat16), vh,
                            preferred_element_type=jnp.float32)    # (B, T, dh)
            # stage per-head context along lanes -> single 128-deep out-projection matmul
            acc_scr[:, hd * dh:(hd + 1) * dh] = oh.reshape(B * T, dh)
        ctx = acc_scr[...].astype(jnp.bfloat16)                    # (B*T, d)
        attn = _mm(ctx, out_w_ref[0]) + out_b_ref[0]
        x_scr[...] = _layernorm(x + attn, ln1_g_ref[0], ln1_b_ref[0])
        acc_scr[...] = jnp.zeros_like(acc_scr)                     # reset: becomes FFN accumulator

    # ---- FFN reduction chunk (every step; weight tiles auto-pipelined by BlockSpec) ----
    xb = x_scr[...].astype(jnp.bfloat16)
    hc = jnp.maximum(_mm(xb, ff1_w_ref[0]) + ff1_b_ref[0], 0.0)    # (B*T, TDFF), never leaves VMEM
    acc_scr[...] += _mm(hc.astype(jnp.bfloat16), ff2_w_ref[0])

    # ---- residual + LN2 at the last chunk of each layer ----
    @pl.when(c == n_chunks - 1)
    def _():
        h_scr[...] = _layernorm(x_scr[...] + acc_scr[...] + ff2_b_ref[0],
                                ln2_g_ref[0], ln2_b_ref[0])

    # ---- final encoder LN (last timestep rows only - exact, LN is per-row) + MLP head ----
    @pl.when((l == n_layers - 1) & (c == n_chunks - 1))
    def _():
        temp = h_scr[...].reshape(B, T, d)[:, T - 1, :]            # (B, d)
        temp = _layernorm(temp, enc_ng_ref[...], enc_nb_ref[...])
        sp = sp_ref[...]                                           # (N, d), N == B
        w1 = fc1_w_ref[...]
        # concat([sp, temp]) @ fc1_w  ==  sp @ fc1_w[:d] + temp @ fc1_w[d:]
        z = jnp.maximum(_mm(sp.astype(jnp.bfloat16), w1[:d, :])
                        + _mm(temp.astype(jnp.bfloat16), w1[d:, :])
                        + fc1_b_ref[...], 0.0)
        z = jnp.maximum(_mm(z.astype(jnp.bfloat16), fc2_w_ref[...]) + fc2_b_ref[...], 0.0)
        # fc_out is zero-padded to 128 lanes -> lane-dense store; col 0 is the real output
        o_ref[...] = (_mm(z.astype(jnp.bfloat16), fco_w_ref[...]) + fco_b_ref[...]).astype(o_ref.dtype)


def temporal_head_forward(p, temporal_seq, spatial_out):
    B, T, F = temporal_seq.shape
    N = spatial_out.shape[0]
    assert N == B, "cat along dim=-1 requires spatial N == temporal batch B"
    # im2col for Conv1d(k=3, padding=1): tiny (B*T, 3F) slab built as XLA glue.
    xp = jnp.pad(temporal_seq, ((0, 0), (1, 1), (0, 0)))
    xc = jnp.concatenate([xp[:, 0:T, :], xp[:, 1:T + 1, :], xp[:, 2:T + 2, :]],
                         axis=-1).reshape(B * T, 3 * F)

    n_chunks = DFF // TDFF
    grid = (ENC_LAYERS, n_chunks)

    def per_layer(shape2d):
        return pl.BlockSpec((1,) + shape2d, lambda l, c: (l, 0, 0))

    def const(shape):
        return pl.BlockSpec(shape, lambda l, c: tuple(0 for _ in shape))

    in_specs = [
        const((B * T, 3 * F)),                                       # xc (im2col)
        const((3 * F, D_MODEL)),                                     # conv_w
        const((1, D_MODEL)),                                         # conv_b
        per_layer((D_MODEL, 3 * D_MODEL)),                           # in_w
        per_layer((1, 3 * D_MODEL)),                                 # in_b
        per_layer((D_MODEL, D_MODEL)),                               # out_w
        per_layer((1, D_MODEL)),                                     # out_b
        per_layer((1, D_MODEL)),                                     # ln1_g
        per_layer((1, D_MODEL)),                                     # ln1_b
        pl.BlockSpec((1, D_MODEL, TDFF), lambda l, c: (l, 0, c)),    # ff1_w (pipelined chunks)
        pl.BlockSpec((1, 1, TDFF), lambda l, c: (l, 0, c)),          # ff1_b
        pl.BlockSpec((1, TDFF, D_MODEL), lambda l, c: (l, c, 0)),    # ff2_w (pipelined chunks)
        per_layer((1, D_MODEL)),                                     # ff2_b
        per_layer((1, D_MODEL)),                                     # ln2_g
        per_layer((1, D_MODEL)),                                     # ln2_b
        const((1, D_MODEL)),                                         # enc_norm_g
        const((1, D_MODEL)),                                         # enc_norm_b
        const((N, D_MODEL)),                                         # spatial_out
        const((2 * D_MODEL, D_MODEL)),                               # fc1_w
        const((1, D_MODEL)),                                         # fc1_b
        const((D_MODEL, D_MODEL)),                                   # fc2_w (64 -> 128 padded)
        const((1, D_MODEL)),                                         # fc2_b
        const((D_MODEL, D_MODEL)),                                   # fco_w (padded, lane-dense)
        const((1, D_MODEL)),                                         # fco_b
    ]
    out_spec = pl.BlockSpec((N, D_MODEL), lambda l, c: (0, 0))

    out = pl.pallas_call(
        functools.partial(_temporal_head_kernel, B=B, T=T, nhead=NHEAD),
        out_shape=jax.ShapeDtypeStruct((N, D_MODEL), jnp.float32),
        grid_spec=pltpu.PrefetchScalarGridSpec(
            num_scalar_prefetch=0,
            grid=grid,
            in_specs=in_specs,
            out_specs=out_spec,
            scratch_shapes=[pltpu.VMEM((B * T, D_MODEL), jnp.float32),   # h  (hidden state)
                            pltpu.VMEM((B * T, D_MODEL), jnp.float32),   # x  (post-LN1)
                            pltpu.VMEM((B * T, D_MODEL), jnp.float32)],  # ctx staging / FFN acc
        ),
        compiler_params=pltpu.CompilerParams(
            dimension_semantics=("arbitrary", "arbitrary"),
            vmem_limit_bytes=VMEM_LIMIT),
    )(xc,
      p["conv_w"], p["conv_b"],
      p["in_w"], p["in_b"], p["out_w"], p["out_b"],
      p["ln1_g"], p["ln1_b"],
      p["ff1_w"], p["ff1_b"], p["ff2_w"], p["ff2_b"],
      p["ln2_g"], p["ln2_b"],
      p["enc_norm_g"], p["enc_norm_b"],
      spatial_out,
      p["fc1_w"], p["fc1_b"], p["fc2_w"], p["fc2_b"], p["fco_w"], p["fco_b"])
    return out[:, :1]         # real fc_out column; remaining lanes are zero padding


# ----------------------------- parameters -----------------------------

def _dense(key, shape, scale=0.05, dtype=jnp.bfloat16):
    return (scale * jax.random.normal(key, shape)).astype(dtype)


def init_params(key, node_features, out_channels, heads=NHEAD):
    assert out_channels == D_MODEL, "out_channels must equal d_model=128 for shape consistency"
    ks = iter(jax.random.split(key, 40))
    f32 = jnp.float32
    F = node_features
    HC = heads * out_channels
    p = {}
    # SpatialLayer: GCNConv(F,128) + TransformerConv(128, C, heads=4) with fused q|k|v|skip weights
    p["gcn_w"] = _dense(next(ks), (F, GCN_HIDDEN))
    p["gcn_b"] = _dense(next(ks), (1, GCN_HIDDEN), dtype=f32)
    p["tc_w"] = _dense(next(ks), (GCN_HIDDEN, 3 * HC + out_channels))
    p["tc_b"] = _dense(next(ks), (1, 3 * HC + out_channels), dtype=f32)
    # TemporalLayer: Conv1d(F, 128, k=3, pad=1) as an im2col (3F, 128) weight
    p["conv_w"] = _dense(next(ks), (3 * F, D_MODEL))
    p["conv_b"] = _dense(next(ks), (1, D_MODEL), dtype=f32)

    # 2 transformer-encoder layers; weights stacked on a leading layer axis
    def stack(shape, dtype=jnp.bfloat16):
        return jnp.stack([_dense(next(ks), shape, 0.05, dtype) for _ in range(ENC_LAYERS)])

    p["in_w"] = stack((D_MODEL, 3 * D_MODEL))
    p["in_b"] = stack((1, 3 * D_MODEL), dtype=f32)
    p["out_w"] = stack((D_MODEL, D_MODEL))
    p["out_b"] = stack((1, D_MODEL), dtype=f32)
    p["ff1_w"] = stack((D_MODEL, DFF))
    p["ff1_b"] = stack((1, DFF), dtype=f32)
    p["ff2_w"] = stack((DFF, D_MODEL))
    p["ff2_b"] = stack((1, D_MODEL), dtype=f32)
    p["ln1_g"] = jnp.ones((ENC_LAYERS, 1, D_MODEL), f32)
    p["ln1_b"] = jnp.zeros((ENC_LAYERS, 1, D_MODEL), f32)
    p["ln2_g"] = jnp.ones((ENC_LAYERS, 1, D_MODEL), f32)
    p["ln2_b"] = jnp.zeros((ENC_LAYERS, 1, D_MODEL), f32)
    p["enc_norm_g"] = jnp.ones((1, D_MODEL), f32)
    p["enc_norm_b"] = jnp.zeros((1, D_MODEL), f32)
    # CrossLayerInteraction; fc2 / fc_out zero-padded to 128 output lanes (lane-dense MXU/stores)
    p["fc1_w"] = _dense(next(ks), (2 * out_channels, 128))
    p["fc1_b"] = _dense(next(ks), (1, 128), dtype=f32)
    p["fc2_w"] = jnp.pad(_dense(next(ks), (128, 64)), ((0, 0), (0, 64)))
    p["fc2_b"] = jnp.pad(_dense(next(ks), (1, 64), dtype=f32), ((0, 0), (0, 64)))
    p["fco_w"] = jnp.pad(_dense(next(ks), (64, 1)), ((0, 64), (0, 127)))
    p["fco_b"] = jnp.pad(_dense(next(ks), (1, 1), dtype=f32), ((0, 0), (0, 127)))
    return p


# ----------------------------- model forward -----------------------------

def hstc_gtnn_forward(params, node_features, edge_index, temporal_seq, *, out_channels):
    spatial_out = spatial_forward(params, node_features, edge_index, out_channels)
    return temporal_head_forward(params, temporal_seq, spatial_out)


# ----------------------------- demo -----------------------------

if __name__ == "__main__":
    key = jax.random.PRNGKey(0)
    node_feat_dim = 16
    out_channels = 128      # equals d_model so all branch widths line up (see TODOs)
    num_nodes = 8           # also the temporal batch (cat along dim=-1 requires equality)
    seq_len = 8

    kx, kt, kp = jax.random.split(key, 3)
    node_features = jax.random.normal(kx, (num_nodes, node_feat_dim), jnp.float32)
    temporal_seq = jax.random.normal(kt, (num_nodes, seq_len, node_feat_dim), jnp.float32)

    # bidirectional ring graph -> every node has incoming edges
    idx = jnp.arange(num_nodes, dtype=jnp.int32)
    src = jnp.concatenate([idx, (idx + 1) % num_nodes])
    dst = jnp.concatenate([(idx + 1) % num_nodes, idx])
    edge_index = jnp.stack([src, dst], axis=0)

    params = init_params(kp, node_feat_dim, out_channels)
    fwd = jax.jit(functools.partial(hstc_gtnn_forward, out_channels=out_channels))
    out = fwd(params, node_features, edge_index, temporal_seq)
    jax.block_until_ready(out)
    assert out.shape == (num_nodes, 1) and out.dtype == jnp.float32
    print("KERNEL_OK")
</pallas_src>

<mosaic_0001>
module attributes {stable_mosaic.version = 11 : i64} {
  func.func @_spatial_kernel(%arg0: memref<8x16xf32, #tpu.memory_space<vmem>>, %arg1: memref<8x8xf32, #tpu.memory_space<vmem>>, %arg2: memref<8x8xf32, #tpu.memory_space<vmem>>, %arg3: memref<16x128xbf16, #tpu.memory_space<vmem>>, %arg4: memref<1x128xf32, #tpu.memory_space<vmem>>, %arg5: memref<128x1664xbf16, #tpu.memory_space<vmem>>, %arg6: memref<1x1664xf32, #tpu.memory_space<vmem>>, %arg7: memref<8x128xf32, #tpu.memory_space<vmem>>) attributes {dimension_semantics = [], scalar_prefetch = 0 : i64, scratch_operands = 0 : i64, tpu.core_type = #tpu.core_type<tc>} {
    %c0 = arith.constant 0 : index
    %c0_0 = arith.constant 0 : index
    %0 = vector.load %arg0[%c0, %c0_0] : memref<8x16xf32, #tpu.memory_space<vmem>>, vector<8x16xf32>
    %1 = arith.truncf %0 : vector<8x16xf32> to vector<8x16xbf16>
    %c0_1 = arith.constant 0 : index
    %c0_2 = arith.constant 0 : index
    %2 = vector.load %arg3[%c0_1, %c0_2] : memref<16x128xbf16, #tpu.memory_space<vmem>>, vector<16x128xbf16>
    %cst = arith.constant dense<0.000000e+00> : vector<8x128xf32>
    %3 = tpu.matmul %1, %2, %cst {dimension_numbers = #tpu.dot_dimension_numbers<[1], [0], [0], [1], [0, 0, 1, 1], [], []>} : vector<8x16xbf16>, vector<16x128xbf16>, vector<8x128xf32> -> vector<8x128xf32>
    %c0_3 = arith.constant 0 : index
    %c0_4 = arith.constant 0 : index
    %4 = vector.load %arg1[%c0_3, %c0_4] : memref<8x8xf32, #tpu.memory_space<vmem>>, vector<8x8xf32>
    %5 = arith.truncf %4 : vector<8x8xf32> to vector<8x8xbf16>
    %6 = arith.truncf %3 : vector<8x128xf32> to vector<8x128xbf16>
    %cst_5 = arith.constant dense<0.000000e+00> : vector<8x128xf32>
    %7 = tpu.matmul %5, %6, %cst_5 {dimension_numbers = #tpu.dot_dimension_numbers<[1], [0], [0], [1], [0, 0, 1, 1], [], []>} : vector<8x8xbf16>, vector<8x128xbf16>, vector<8x128xf32> -> vector<8x128xf32>
    %c0_6 = arith.constant 0 : index
    %c0_7 = arith.constant 0 : index
    %8 = vector.load %arg4[%c0_6, %c0_7] : memref<1x128xf32, #tpu.memory_space<vmem>>, vector<1x128xf32>
    %9 = vector.broadcast %8 : vector<1x128xf32> to vector<8x128xf32>
    %10 = arith.addf %7, %9 : vector<8x128xf32>
    %cst_8 = arith.constant 0.000000e+00 : f32
    %11 = vector.broadcast %cst_8 : f32 to vector<8x128xf32>
    %12 = arith.maximumf %10, %11 : vector<8x128xf32>
    %13 = arith.truncf %12 : vector<8x128xf32> to vector<8x128xbf16>
    %c0_9 = arith.constant 0 : index
    %c0_10 = arith.constant 0 : index
    %14 = vector.load %arg5[%c0_9, %c0_10] : memref<128x1664xbf16, #tpu.memory_space<vmem>>, vector<128x1664xbf16>
    %cst_11 = arith.constant dense<0.000000e+00> : vector<8x1664xf32>
    %15 = tpu.matmul %13, %14, %cst_11 {dimension_numbers = #tpu.dot_dimension_numbers<[1], [0], [0], [1], [0, 0, 1, 1], [], []>} : vector<8x128xbf16>, vector<128x1664xbf16>, vector<8x1664xf32> -> vector<8x1664xf32>
    %c0_12 = arith.constant 0 : index
    %c0_13 = arith.constant 0 : index
    %16 = vector.load %arg6[%c0_12, %c0_13] : memref<1x1664xf32, #tpu.memory_space<vmem>>, vector<1x1664xf32>
    %17 = vector.broadcast %16 : vector<1x1664xf32> to vector<8x1664xf32>
    %18 = arith.addf %15, %17 : vector<8x1664xf32>
    %19 = arith.truncf %18 : vector<8x1664xf32> to vector<8x1664xbf16>
    %c0_14 = arith.constant 0 : index
    %c0_15 = arith.constant 0 : index
    %20 = vector.load %arg2[%c0_14, %c0_15] : memref<8x8xf32, #tpu.memory_space<vmem>>, vector<8x8xf32>
    %21 = vector.extract_strided_slice %19 {offsets = [0, 0], sizes = [8, 128], strides = [1, 1]} : vector<8x1664xbf16> to vector<8x128xbf16>
    %22 = vector.extract_strided_slice %19 {offsets = [0, 512], sizes = [8, 128], strides = [1, 1]} : vector<8x1664xbf16> to vector<8x128xbf16>
    %23 = vector.extract_strided_slice %19 {offsets = [0, 1024], sizes = [8, 128], strides = [1, 1]} : vector<8x1664xbf16> to vector<8x128xbf16>
    %cst_16 = arith.constant dense<0.000000e+00> : vector<8x8xf32>
    %24 = tpu.matmul %21, %22, %cst_16 {dimension_numbers = #tpu.dot_dimension_numbers<[1], [1], [0], [0], [0, 0, 1, 0], [], []>} : vector<8x128xbf16>, vector<8x128xbf16>, vector<8x8xf32> -> vector<8x8xf32>
    %cst_17 = arith.constant 0.0883883461 : f32
    %25 = vector.broadcast %cst_17 : f32 to vector<8x8xf32>
    %26 = arith.mulf %24, %25 : vector<8x8xf32>
    %cst_18 = arith.constant 0.000000e+00 : f32
    %27 = vector.broadcast %cst_18 : f32 to vector<8x8xf32>
    %28 = arith.cmpf ogt, %20, %27 : vector<8x8xf32>
    %cst_19 = arith.constant -1.000000e+30 : f32
    %29 = vector.broadcast %cst_19 : f32 to vector<8x8xf32>
    %30 = arith.select %28, %26, %29 : vector<8x8xi1>, vector<8x8xf32>
    %cst_20 = arith.constant dense<0xFF800000> : vector<8xf32>
    %31 = vector.multi_reduction <maximumf>, %30, %cst_20 [1] : vector<8x8xf32> to vector<8xf32>
    %32 = vector.shape_cast %31 : vector<8xf32> to vector<8x1xf32>
    %33 = vector.broadcast %32 : vector<8x1xf32> to vector<8x8xf32>
    %34 = arith.subf %30, %33 : vector<8x8xf32>
    %35 = math.exp %34 : vector<8x8xf32>
    %36 = arith.mulf %35, %20 : vector<8x8xf32>
    %cst_21 = arith.constant dense<0.000000e+00> : vector<8xf32>
    %37 = vector.multi_reduction <add>, %36, %cst_21 [1] : vector<8x8xf32> to vector<8xf32>
    %38 = vector.shape_cast %37 : vector<8xf32> to vector<8x1xf32>
    %cst_22 = arith.constant 9.99999968E-21 : f32
    %39 = vector.broadcast %cst_22 : f32 to vector<8x1xf32>
    %40 = arith.maximumf %38, %39 : vector<8x1xf32>
    %41 = tpu.reciprocal %40 {approx = true} : vector<8x1xf32> -> vector<8x1xf32>
    %42 = vector.broadcast %41 : vector<8x1xf32> to vector<8x8xf32>
    %43 = arith.mulf %36, %42 : vector<8x8xf32>
    %44 = arith.truncf %43 : vector<8x8xf32> to vector<8x8xbf16>
    %cst_23 = arith.constant dense<0.000000e+00> : vector<8x128xf32>
    %45 = tpu.matmul %44, %23, %cst_23 {dimension_numbers = #tpu.dot_dimension_numbers<[1], [0], [0], [1], [0, 0, 1, 1], [], []>} : vector<8x8xbf16>, vector<8x128xbf16>, vector<8x128xf32> -> vector<8x128xf32>
    %46 = vector.extract_strided_slice %19 {offsets = [0, 128], sizes = [8, 128], strides = [1, 1]} : vector<8x1664xbf16> to vector<8x128xbf16>
    %47 = vector.extract_strided_slice %19 {offsets = [0, 640], sizes = [8, 128], strides = [1, 1]} : vector<8x1664xbf16> to vector<8x128xbf16>
    %48 = vector.extract_strided_slice %19 {offsets = [0, 1152], sizes = [8, 128], strides = [1, 1]} : vector<8x1664xbf16> to vector<8x128xbf16>
    %cst_24 = arith.constant dense<0.000000e+00> : vector<8x8xf32>
    %49 = tpu.matmul %46, %47, %cst_24 {dimension_numbers = #tpu.dot_dimension_numbers<[1], [1], [0], [0], [0, 0, 1, 0], [], []>} : vector<8x128xbf16>, vector<8x128xbf16>, vector<8x8xf32> -> vector<8x8xf32>
    %cst_25 = arith.constant 0.0883883461 : f32
    %50 = vector.broadcast %cst_25 : f32 to vector<8x8xf32>
    %51 = arith.mulf %49, %50 : vector<8x8xf32>
    %cst_26 = arith.constant 0.000000e+00 : f32
    %52 = vector.broadcast %cst_26 : f32 to vector<8x8xf32>
    %53 = arith.cmpf ogt, %20, %52 : vector<8x8xf32>
    %cst_27 = arith.constant -1.000000e+30 : f32
    %54 = vector.broadcast %cst_27 : f32 to vector<8x8xf32>
    %55 = arith.select %53, %51, %54 : vector<8x8xi1>, vector<8x8xf32>
    %cst_28 = arith.constant dense<0xFF800000> : vector<8xf32>
    %56 = vector.multi_reduction <maximumf>, %55, %cst_28 [1] : vector<8x8xf32> to vector<8xf32>
    %57 = vector.shape_cast %56 : vector<8xf32> to vector<8x1xf32>
    %58 = vector.broadcast %57 : vector<8x1xf32> to vector<8x8xf32>
    %59 = arith.subf %55, %58 : vector<8x8xf32>
    %60 = math.exp %59 : vector<8x8xf32>
    %61 = arith.mulf %60, %20 : vector<8x8xf32>
    %cst_29 = arith.constant dense<0.000000e+00> : vector<8xf32>
    %62 = vector.multi_reduction <add>, %61, %cst_29 [1] : vector<8x8xf32> to vector<8xf32>
    %63 = vector.shape_cast %62 : vector<8xf32> to vector<8x1xf32>
    %cst_30 = arith.constant 9.99999968E-21 : f32
    %64 = vector.broadcast %cst_30 : f32 to vector<8x1xf32>
    %65 = arith.maximumf %63, %64 : vector<8x1xf32>
    %66 = tpu.reciprocal %65 {approx = true} : vector<8x1xf32> -> vector<8x1xf32>
    %67 = vector.broadcast %66 : vector<8x1xf32> to vector<8x8xf32>
    %68 = arith.mulf %61, %67 : vector<8x8xf32>
    %69 = arith.truncf %68 : vector<8x8xf32> to vector<8x8xbf16>
    %cst_31 = arith.constant dense<0.000000e+00> : vector<8x128xf32>
    %70 = tpu.matmul %69, %48, %cst_31 {dimension_numbers = #tpu.dot_dimension_numbers<[1], [0], [0], [1], [0, 0, 1, 1], [], []>} : vector<8x8xbf16>, vector<8x128xbf16>, vector<8x128xf32> -> vector<8x128xf32>
    %71 = arith.addf %45, %70 : vector<8x128xf32>
    %72 = vector.extract_strided_slice %19 {offsets = [0, 256], sizes = [8, 128], strides = [1, 1]} : vector<8x1664xbf16> to vector<8x128xbf16>
    %73 = vector.extract_strided_slice %19 {offsets = [0, 768], sizes = [8, 128], strides = [1, 1]} : vector<8x1664xbf16> to vector<8x128xbf16>
    %74 = vector.extract_strided_slice %19 {offsets = [0, 1280], sizes = [8, 128], strides = [1, 1]} : vector<8x1664xbf16> to vector<8x128xbf16>
    %cst_32 = arith.constant dense<0.000000e+00> : vector<8x8xf32>
    %75 = tpu.matmul %72, %73, %cst_32 {dimension_numbers = #tpu.dot_dimension_numbers<[1], [1], [0], [0], [0, 0, 1, 0], [], []>} : vector<8x128xbf16>, vector<8x128xbf16>, vector<8x8xf32> -> vector<8x8xf32>
    %cst_33 = arith.constant 0.0883883461 : f32
    %76 = vector.broadcast %cst_33 : f32 to vector<8x8xf32>
    %77 = arith.mulf %75, %76 : vector<8x8xf32>
    %cst_34 = arith.constant 0.000000e+00 : f32
    %78 = vector.broadcast %cst_34 : f32 to vector<8x8xf32>
    %79 = arith.cmpf ogt, %20, %78 : vector<8x8xf32>
    %cst_35 = arith.constant -1.000000e+30 : f32
    %80 = vector.broadcast %cst_35 : f32 to vector<8x8xf32>
    %81 = arith.select %79, %77, %80 : vector<8x8xi1>, vector<8x8xf32>
    %cst_36 = arith.constant dense<0xFF800000> : vector<8xf32>
    %82 = vector.multi_reduction <maximumf>, %81, %cst_36 [1] : vector<8x8xf32> to vector<8xf32>
    %83 = vector.shape_cast %82 : vector<8xf32> to vector<8x1xf32>
    %84 = vector.broadcast %83 : vector<8x1xf32> to vector<8x8xf32>
    %85 = arith.subf %81, %84 : vector<8x8xf32>
    %86 = math.exp %85 : vector<8x8xf32>
    %87 = arith.mulf %86, %20 : vector<8x8xf32>
    %cst_37 = arith.constant dense<0.000000e+00> : vector<8xf32>
    %88 = vector.multi_reduction <add>, %87, %cst_37 [1] : vector<8x8xf32> to vector<8xf32>
    %89 = vector.shape_cast %88 : vector<8xf32> to vector<8x1xf32>
    %cst_38 = arith.constant 9.99999968E-21 : f32
    %90 = vector.broadcast %cst_38 : f32 to vector<8x1xf32>
    %91 = arith.maximumf %89, %90 : vector<8x1xf32>
    %92 = tpu.reciprocal %91 {approx = true} : vector<8x1xf32> -> vector<8x1xf32>
    %93 = vector.broadcast %92 : vector<8x1xf32> to vector<8x8xf32>
    %94 = arith.mulf %87, %93 : vector<8x8xf32>
    %95 = arith.truncf %94 : vector<8x8xf32> to vector<8x8xbf16>
    %cst_39 = arith.constant dense<0.000000e+00> : vector<8x128xf32>
    %96 = tpu.matmul %95, %74, %cst_39 {dimension_numbers = #tpu.dot_dimension_numbers<[1], [0], [0], [1], [0, 0, 1, 1], [], []>} : vector<8x8xbf16>, vector<8x128xbf16>, vector<8x128xf32> -> vector<8x128xf32>
    %97 = arith.addf %71, %96 : vector<8x128xf32>
    %98 = vector.extract_strided_slice %19 {offsets = [0, 384], sizes = [8, 128], strides = [1, 1]} : vector<8x1664xbf16> to vector<8x128xbf16>
    %99 = vector.extract_strided_slice %19 {offsets = [0, 896], sizes = [8, 128], strides = [1, 1]} : vector<8x1664xbf16> to vector<8x128xbf16>
    %100 = vector.extract_strided_slice %19 {offsets = [0, 1408], sizes = [8, 128], strides = [1, 1]} : vector<8x1664xbf16> to vector<8x128xbf16>
    %cst_40 = arith.constant dense<0.000000e+00> : vector<8x8xf32>
    %101 = tpu.matmul %98, %99, %cst_40 {dimension_numbers = #tpu.dot_dimension_numbers<[1], [1], [0], [0], [0, 0, 1, 0], [], []>} : vector<8x128xbf16>, vector<8x128xbf16>, vector<8x8xf32> -> vector<8x8xf32>
    %cst_41 = arith.constant 0.0883883461 : f32
    %102 = vector.broadcast %cst_41 : f32 to vector<8x8xf32>
    %103 = arith.mulf %101, %102 : vector<8x8xf32>
    %cst_42 = arith.constant 0.000000e+00 : f32
    %104 = vector.broadcast %cst_42 : f32 to vector<8x8xf32>
    %105 = arith.cmpf ogt, %20, %104 : vector<8x8xf32>
    %cst_43 = arith.constant -1.000000e+30 : f32
    %106 = vector.broadcast %cst_43 : f32 to vector<8x8xf32>
    %107 = arith.select %105, %103, %106 : vector<8x8xi1>, vector<8x8xf32>
    %cst_44 = arith.constant dense<0xFF800000> : vector<8xf32>
    %108 = vector.multi_reduction <maximumf>, %107, %cst_44 [1] : vector<8x8xf32> to vector<8xf32>
    %109 = vector.shape_cast %108 : vector<8xf32> to vector<8x1xf32>
    %110 = vector.broadcast %109 : vector<8x1xf32> to vector<8x8xf32>
    %111 = arith.subf %107, %110 : vector<8x8xf32>
    %112 = math.exp %111 : vector<8x8xf32>
    %113 = arith.mulf %112, %20 : vector<8x8xf32>
    %cst_45 = arith.constant dense<0.000000e+00> : vector<8xf32>
    %114 = vector.multi_reduction <add>, %113, %cst_45 [1] : vector<8x8xf32> to vector<8xf32>
    %115 = vector.shape_cast %114 : vector<8xf32> to vector<8x1xf32>
    %cst_46 = arith.constant 9.99999968E-21 : f32
    %116 = vector.broadcast %cst_46 : f32 to vector<8x1xf32>
    %117 = arith.maximumf %115, %116 : vector<8x1xf32>
    %118 = tpu.reciprocal %117 {approx = true} : vector<8x1xf32> -> vector<8x1xf32>
    %119 = vector.broadcast %118 : vector<8x1xf32> to vector<8x8xf32>
    %120 = arith.mulf %113, %119 : vector<8x8xf32>
    %121 = arith.truncf %120 : vector<8x8xf32> to vector<8x8xbf16>
    %cst_47 = arith.constant dense<0.000000e+00> : vector<8x128xf32>
    %122 = tpu.matmul %121, %100, %cst_47 {dimension_numbers = #tpu.dot_dimension_numbers<[1], [0], [0], [1], [0, 0, 1, 1], [], []>} : vector<8x8xbf16>, vector<8x128xbf16>, vector<8x128xf32> -> vector<8x128xf32>
    %123 = arith.addf %97, %122 : vector<8x128xf32>
    %cst_48 = arith.constant 2.500000e-01 : f32
    %124 = vector.broadcast %cst_48 : f32 to vector<8x128xf32>
    %125 = arith.mulf %123, %124 : vector<8x128xf32>
    %126 = vector.extract_strided_slice %18 {offsets = [0, 1536], sizes = [8, 128], strides = [1, 1]} : vector<8x1664xf32> to vector<8x128xf32>
    %127 = arith.addf %125, %126 : vector<8x128xf32>
    %c0_49 = arith.constant 0 : index
    %c0_50 = arith.constant 0 : index
    %128 = vector.load %arg7[%c0_49, %c0_50] : memref<8x128xf32, #tpu.memory_space<vmem>>, vector<8x128xf32>
    tpu.vector_store %arg7[%c0_49, %c0_50], %127 {strides = array<i32>} : memref<8x128xf32, #tpu.memory_space<vmem>>, vector<8x128xf32>,
    return
  }
}

module attributes {stable_mosaic.version = 11 : i64} {
  func.func @_temporal_head_kernel(%arg0: i32, %arg1: i32, %arg2: memref<64x48xf32, #tpu.memory_space<vmem>>, %arg3: memref<48x128xbf16, #tpu.memory_space<vmem>>, %arg4: memref<1x128xf32, #tpu.memory_space<vmem>>, %arg5: memref<1x128x384xbf16, #tpu.memory_space<vmem>>, %arg6: memref<1x1x384xf32, #tpu.memory_space<vmem>>, %arg7: memref<1x128x128xbf16, #tpu.memory_space<vmem>>, %arg8: memref<1x1x128xf32, #tpu.memory_space<vmem>>, %arg9: memref<1x1x128xf32, #tpu.memory_space<vmem>>, %arg10: memref<1x1x128xf32, #tpu.memory_space<vmem>>, %arg11: memref<1x128x512xbf16, #tpu.memory_space<vmem>>, %arg12: memref<1x1x512xf32, #tpu.memory_space<vmem>>, %arg13: memref<1x512x128xbf16, #tpu.memory_space<vmem>>, %arg14: memref<1x1x128xf32, #tpu.memory_space<vmem>>, %arg15: memref<1x1x128xf32, #tpu.memory_space<vmem>>, %arg16: memref<1x1x128xf32, #tpu.memory_space<vmem>>, %arg17: memref<1x128xf32, #tpu.memory_space<vmem>>, %arg18: memref<1x128xf32, #tpu.memory_space<vmem>>, %arg19: memref<8x128xf32, #tpu.memory_space<vmem>>, %arg20: memref<256x128xbf16, #tpu.memory_space<vmem>>, %arg21: memref<1x128xf32, #tpu.memory_space<vmem>>, %arg22: memref<128x128xbf16, #tpu.memory_space<vmem>>, %arg23: memref<1x128xf32, #tpu.memory_space<vmem>>, %arg24: memref<128x128xbf16, #tpu.memory_space<vmem>>, %arg25: memref<1x128xf32, #tpu.memory_space<vmem>>, %arg26: memref<8x128xf32, #tpu.memory_space<vmem>>, %arg27: memref<64x128xf32, #tpu.memory_space<vmem>>, %arg28: memref<64x128xf32, #tpu.memory_space<vmem>>, %arg29: memref<64x128xf32, #tpu.memory_space<vmem>>) attributes {dimension_semantics = [#tpu.dimension_semantics<arbitrary>, #tpu.dimension_semantics<arbitrary>], iteration_bounds = array<i64: 2, 4>, scalar_prefetch = 0 : i64, scratch_operands = 3 : i64, tpu.core_type = #tpu.core_type<tc>, window_params = [{pipeline_mode = #tpu.pipeline_mode<synchronous>, transform_indices = @transform_0, window_bounds = array<i64: 64, 48>}, {pipeline_mode = #tpu.pipeline_mode<synchronous>, transform_indices = @transform_1, window_bounds = array<i64: 48, 128>}, {pipeline_mode = #tpu.pipeline_mode<synchronous>, transform_indices = @transform_2, window_bounds = array<i64: 1, 128>}, {transform_indices = @transform_3, window_bounds = array<i64: 1, 128, 384>}, {transform_indices = @transform_4, window_bounds = array<i64: 1, 1, 384>}, {transform_indices = @transform_5, window_bounds = array<i64: 1, 128, 128>}, {transform_indices = @transform_6, window_bounds = array<i64: 1, 1, 128>}, {transform_indices = @transform_7, window_bounds = array<i64: 1, 1, 128>}, {transform_indices = @transform_8, window_bounds = array<i64: 1, 1, 128>}, {transform_indices = @transform_9, window_bounds = array<i64: 1, 128, 512>}, {transform_indices = @transform_10, window_bounds = array<i64: 1, 1, 512>}, {transform_indices = @transform_11, window_bounds = array<i64: 1, 512, 128>}, {transform_indices = @transform_12, window_bounds = array<i64: 1, 1, 128>}, {transform_indices = @transform_13, window_bounds = array<i64: 1, 1, 128>}, {transform_indices = @transform_14, window_bounds = array<i64: 1, 1, 128>}, {pipeline_mode = #tpu.pipeline_mode<synchronous>, transform_indices = @transform_15, window_bounds = array<i64: 1, 128>}, {pipeline_mode = #tpu.pipeline_mode<synchronous>, transform_indices = @transform_16, window_bounds = array<i64: 1, 128>}, {pipeline_mode = #tpu.pipeline_mode<synchronous>, transform_indices = @transform_17, window_bounds = array<i64: 8, 128>}, {pipeline_mode = #tpu.pipeline_mode<synchronous>, transform_indices = @transform_18, window_bounds = array<i64: 256, 128>}, {pipeline_mode = #tpu.pipeline_mode<synchronous>, transform_indices = @transform_19, window_bounds = array<i64: 1, 128>}, {pipeline_mode = #tpu.pipeline_mode<synchronous>, transform_indices = @transform_20, window_bounds = array<i64: 128, 128>}, {pipeline_mode = #tpu.pipeline_mode<synchronous>, transform_indices = @transform_21, window_bounds = array<i64: 1, 128>}, {pipeline_mode = #tpu.pipeline_mode<synchronous>, transform_indices = @transform_22, window_bounds = array<i64: 128, 128>}, {pipeline_mode = #tpu.pipeline_mode<synchronous>, transform_indices = @transform_23, window_bounds = array<i64: 1, 128>}, {pipeline_mode = #tpu.pipeline_mode<synchronous>, transform_indices = @transform_24, window_bounds = array<i64: 8, 128>}]} {
    %c0_i32 = arith.constant 0 : i32
    %0 = arith.cmpi eq, %arg0, %c0_i32 : i32
    %c0_i32_0 = arith.constant 0 : i32
    %1 = arith.cmpi eq, %arg1, %c0_i32_0 : i32
    %2 = arith.andi %0, %1 : i1
    %3 = arith.extui %2 : i1 to i32
    %c0_i32_1 = arith.constant 0 : i32
    %4 = arith.cmpi ne, %3, %c0_i32_1 : i32
    scf.if %4 {
      %c0_23 = arith.constant 0 : index
      %c0_24 = arith.constant 0 : index
      %34 = vector.load %arg2[%c0_23, %c0_24] : memref<64x48xf32, #tpu.memory_space<vmem>>, vector<64x48xf32>
      %35 = arith.truncf %34 : vector<64x48xf32> to vector<64x48xbf16>
      %c0_25 = arith.constant 0 : index
      %c0_26 = arith.constant 0 : index
      %36 = vector.load %arg3[%c0_25, %c0_26] : memref<48x128xbf16, #tpu.memory_space<vmem>>, vector<48x128xbf16>
      %cst_27 = arith.constant dense<0.000000e+00> : vector<64x128xf32>
      %37 = tpu.matmul %35, %36, %cst_27 {dimension_numbers = #tpu.dot_dimension_numbers<[1], [0], [0], [1], [0, 0, 1, 1], [], []>} : vector<64x48xbf16>, vector<48x128xbf16>, vector<64x128xf32> -> vector<64x128xf32>
      %c0_28 = arith.constant 0 : index
      %c0_29 = arith.constant 0 : index
      %38 = vector.load %arg4[%c0_28, %c0_29] : memref<1x128xf32, #tpu.memory_space<vmem>>, vector<1x128xf32>
      %39 = vector.broadcast %38 : vector<1x128xf32> to vector<64x128xf32>
      %40 = arith.addf %37, %39 : vector<64x128xf32>
      %cst_30 = arith.constant 0.000000e+00 : f32
      %41 = vector.broadcast %cst_30 : f32 to vector<64x128xf32>
      %42 = arith.maximumf %40, %41 : vector<64x128xf32>
      %c0_31 = arith.constant 0 : index
      %c0_32 = arith.constant 0 : index
      %43 = vector.load %arg27[%c0_31, %c0_32] : memref<64x128xf32, #tpu.memory_space<vmem>>, vector<64x128xf32>
      tpu.vector_store %arg27[%c0_31, %c0_32], %42 {strides = array<i32>} : memref<64x128xf32, #tpu.memory_space<vmem>>, vector<64x128xf32>,
    } else {
    }
    %c0_i32_2 = arith.constant 0 : i32
    %5 = arith.cmpi eq, %arg1, %c0_i32_2 : i32
    %6 = arith.extui %5 : i1 to i32
    %c0_i32_3 = arith.constant 0 : i32
    %7 = arith.cmpi ne, %6, %c0_i32_3 : i32
    scf.if %7 {
      %c0_23 = arith.constant 0 : index
      %c0_24 = arith.constant 0 : index
      %34 = vector.load %arg27[%c0_23, %c0_24] : memref<64x128xf32, #tpu.memory_space<vmem>>, vector<64x128xf32>
      %35 = arith.truncf %34 : vector<64x128xf32> to vector<64x128xbf16>
      %c0_25 = arith.constant 0 : index
      %c0_26 = arith.constant 0 : index
      %c0_27 = arith.constant 0 : index
      %36 = vector.load %arg5[%c0_25, %c0_26, %c0_27] : memref<1x128x384xbf16, #tpu.memory_space<vmem>>, vector<1x128x384xbf16>
      %37 = vector.shape_cast %36 : vector<1x128x384xbf16> to vector<128x384xbf16>
      %cst_28 = arith.constant dense<0.000000e+00> : vector<64x384xf32>
      %38 = tpu.matmul %35, %37, %cst_28 {dimension_numbers = #tpu.dot_dimension_numbers<[1], [0], [0], [1], [0, 0, 1, 1], [], []>} : vector<64x128xbf16>, vector<128x384xbf16>, vector<64x384xf32> -> vector<64x384xf32>
      %c0_29 = arith.constant 0 : index
      %c0_30 = arith.constant 0 : index
      %c0_31 = arith.constant 0 : index
      %39 = vector.load %arg6[%c0_29, %c0_30, %c0_31] : memref<1x1x384xf32, #tpu.memory_space<vmem>>, vector<1x1x384xf32>
      %40 = vector.shape_cast %39 : vector<1x1x384xf32> to vector<1x384xf32>
      %41 = vector.broadcast %40 : vector<1x384xf32> to vector<64x384xf32>
      %42 = arith.addf %38, %41 : vector<64x384xf32>
      %43 = arith.truncf %42 : vector<64x384xf32> to vector<64x384xbf16>
      %44 = vector.extract_strided_slice %43 {offsets = [0, 0], sizes = [64, 32], strides = [1, 1]} : vector<64x384xbf16> to vector<64x32xbf16>
      %45 = vector.shape_cast %44 : vector<64x32xbf16> to vector<8x8x32xbf16>
      %46 = vector.extract_strided_slice %43 {offsets = [0, 128], sizes = [64, 32], strides = [1, 1]} : vector<64x384xbf16> to vector<64x32xbf16>
      %47 = vector.shape_cast %46 : vector<64x32xbf16> to vector<8x8x32xbf16>
      %48 = vector.extract_strided_slice %43 {offsets = [0, 256], sizes = [64, 32], strides = [1, 1]} : vector<64x384xbf16> to vector<64x32xbf16>
      %49 = vector.shape_cast %48 : vector<64x32xbf16> to vector<8x8x32xbf16>
      "tpu.trace_start"() <{level = 10 : i32, message = "bqd,bkd->bqk"}> : () -> ()
      %cst_32 = arith.constant dense<0.000000e+00> : vector<8x8x8xf32>
      %50 = tpu.matmul %45, %47, %cst_32 {dimension_numbers = #tpu.dot_dimension_numbers<[2], [2], [1], [1], [0, 0, 0, 1, 1, 1], [0], [0]>} : vector<8x8x32xbf16>, vector<8x8x32xbf16>, vector<8x8x8xf32> -> vector<8x8x8xf32>
      "tpu.trace_stop"() : () -> ()
      %cst_33 = arith.constant 0.176776692 : f32
      %51 = vector.broadcast %cst_33 : f32 to vector<8x8x8xf32>
      %52 = arith.mulf %50, %51 : vector<8x8x8xf32>
      %cst_34 = arith.constant dense<0xFF800000> : vector<8x8xf32>
      %53 = vector.multi_reduction <maximumf>, %52, %cst_34 [2] : vector<8x8x8xf32> to vector<8x8xf32>
      %54 = vector.shape_cast %53 : vector<8x8xf32> to vector<8x8x1xf32>
      %55 = vector.broadcast %54 : vector<8x8x1xf32> to vector<8x8x8xf32>
      %56 = arith.subf %52, %55 : vector<8x8x8xf32>
      %57 = math.exp %56 : vector<8x8x8xf32>
      %cst_35 = arith.constant dense<0.000000e+00> : vector<8x8xf32>
      %58 = vector.multi_reduction <add>, %57, %cst_35 [2] : vector<8x8x8xf32> to vector<8x8xf32>
      %59 = vector.shape_cast %58 : vector<8x8xf32> to vector<8x8x1xf32>
      %60 = tpu.reciprocal %59 {approx = true} : vector<8x8x1xf32> -> vector<8x8x1xf32>
      %61 = vector.broadcast %60 : vector<8x8x1xf32> to vector<8x8x8xf32>
      %62 = arith.mulf %57, %61 : vector<8x8x8xf32>
      %63 = arith.truncf %62 : vector<8x8x8xf32> to vector<8x8x8xbf16>
      "tpu.trace_start"() <{level = 10 : i32, message = "bqk,bkd->bqd"}> : () -> ()
      %cst_36 = arith.constant dense<0.000000e+00> : vector<8x8x32xf32>
      %64 = tpu.matmul %63, %49, %cst_36 {dimension_numbers = #tpu.dot_dimension_numbers<[2], [1], [1], [2], [0, 0, 0, 1, 1, 2], [0], [0]>} : vector<8x8x8xbf16>, vector<8x8x32xbf16>, vector<8x8x32xf32> -> vector<8x8x32xf32>
      "tpu.trace_stop"() : () -> ()
      %65 = vector.shape_cast %64 : vector<8x8x32xf32> to vector<64x32xf32>
      %c0_37 = arith.constant 0 : index
      %c0_38 = arith.constant 0 : index
      %66 = vector.load %arg29[%c0_37, %c0_38] : memref<64x128xf32, #tpu.memory_space<vmem>>, vector<64x32xf32>
      tpu.vector_store %arg29[%c0_37, %c0_38], %65 {strides = array<i32>} : memref<64x128xf32, #tpu.memory_space<vmem>>, vector<64x32xf32>,
      %67 = vector.extract_strided_slice %43 {offsets = [0, 32], sizes = [64, 32], strides = [1, 1]} : vector<64x384xbf16> to vector<64x32xbf16>
      %68 = vector.shape_cast %67 : vector<64x32xbf16> to vector<8x8x32xbf16>
      %69 = vector.extract_strided_slice %43 {offsets = [0, 160], sizes = [64, 32], strides = [1, 1]} : vector<64x384xbf16> to vector<64x32xbf16>
      %70 = vector.shape_cast %69 : vector<64x32xbf16> to vector<8x8x32xbf16>
      %71 = vector.extract_strided_slice %43 {offsets = [0, 288], sizes = [64, 32], strides = [1, 1]} : vector<64x384xbf16> to vector<64x32xbf16>
      %72 = vector.shape_cast %71 : vector<64x32xbf16> to vector<8x8x32xbf16>
      "tpu.trace_start"() <{level = 10 : i32, message = "bqd,bkd->bqk"}> : () -> ()
      %cst_39 = arith.constant dense<0.000000e+00> : vector<8x8x8xf32>
      %73 = tpu.matmul %68, %70, %cst_39 {dimension_numbers = #tpu.dot_dimension_numbers<[2], [2], [1], [1], [0, 0, 0, 1, 1, 1], [0], [0]>} : vector<8x8x32xbf16>, vector<8x8x32xbf16>, vector<8x8x8xf32> -> vector<8x8x8xf32>
      "tpu.trace_stop"() : () -> ()
      %cst_40 = arith.constant 0.176776692 : f32
      %74 = vector.broadcast %cst_40 : f32 to vector<8x8x8xf32>
      %75 = arith.mulf %73, %74 : vector<8x8x8xf32>
      %cst_41 = arith.constant dense<0xFF800000> : vector<8x8xf32>
      %76 = vector.multi_reduction <maximumf>, %75, %cst_41 [2] : vector<8x8x8xf32> to vector<8x8xf32>
      %77 = vector.shape_cast %76 : vector<8x8xf32> to vector<8x8x1xf32>
      %78 = vector.broadcast %77 : vector<8x8x1xf32> to vector<8x8x8xf32>
      %79 = arith.subf %75, %78 : vector<8x8x8xf32>
      %80 = math.exp %79 : vector<8x8x8xf32>
      %cst_42 = arith.constant dense<0.000000e+00> : vector<8x8xf32>
      %81 = vector.multi_reduction <add>, %80, %cst_42 [2] : vector<8x8x8xf32> to vector<8x8xf32>
      %82 = vector.shape_cast %81 : vector<8x8xf32> to vector<8x8x1xf32>
      %83 = tpu.reciprocal %82 {approx = true} : vector<8x8x1xf32> -> vector<8x8x1xf32>
      %84 = vector.broadcast %83 : vector<8x8x1xf32> to vector<8x8x8xf32>
      %85 = arith.mulf %80, %84 : vector<8x8x8xf32>
      %86 = arith.truncf %85 : vector<8x8x8xf32> to vector<8x8x8xbf16>
      "tpu.trace_start"() <{level = 10 : i32, message = "bqk,bkd->bqd"}> : () -> ()
      %cst_43 = arith.constant dense<0.000000e+00> : vector<8x8x32xf32>
      %87 = tpu.matmul %86, %72, %cst_43 {dimension_numbers = #tpu.dot_dimension_numbers<[2], [1], [1], [2], [0, 0, 0, 1, 1, 2], [0], [0]>} : vector<8x8x8xbf16>, vector<8x8x32xbf16>, vector<8x8x32xf32> -> vector<8x8x32xf32>
      "tpu.trace_stop"() : () -> ()
      %88 = vector.shape_cast %87 : vector<8x8x32xf32> to vector<64x32xf32>
      %c0_44 = arith.constant 0 : index
      %c32 = arith.constant 32 : index
      %89 = vector.load %arg29[%c0_44, %c32] : memref<64x128xf32, #tpu.memory_space<vmem>>, vector<64x32xf32>
      tpu.vector_store %arg29[%c0_44, %c32], %88 {strides = array<i32>} : memref<64x128xf32, #tpu.memory_space<vmem>>, vector<64x32xf32>,
      %90 = vector.extract_strided_slice %43 {offsets = [0, 64], sizes = [64, 32], strides = [1, 1]} : vector<64x384xbf16> to vector<64x32xbf16>
      %91 = vector.shape_cast %90 : vector<64x32xbf16> to vector<8x8x32xbf16>
      %92 = vector.extract_strided_slice %43 {offsets = [0, 192], sizes = [64, 32], strides = [1, 1]} : vector<64x384xbf16> to vector<64x32xbf16>
      %93 = vector.shape_cast %92 : vector<64x32xbf16> to vector<8x8x32xbf16>
      %94 = vector.extract_strided_slice %43 {offsets = [0, 320], sizes = [64, 32], strides = [1, 1]} : vector<64x384xbf16> to vector<64x32xbf16>
      %95 = vector.shape_cast %94 : vector<64x32xbf16> to vector<8x8x32xbf16>
      "tpu.trace_start"() <{level = 10 : i32, message = "bqd,bkd->bqk"}> : () -> ()
      %cst_45 = arith.constant dense<0.000000e+00> : vector<8x8x8xf32>
      %96 = tpu.matmul %91, %93, %cst_45 {dimension_numbers = #tpu.dot_dimension_numbers<[2], [2], [1], [1], [0, 0, 0, 1, 1, 1], [0], [0]>} : vector<8x8x32xbf16>, vector<8x8x32xbf16>, vector<8x8x8xf32> -> vector<8x8x8xf32>
      "tpu.trace_stop"() : () -> ()
      %cst_46 = arith.constant 0.176776692 : f32
      %97 = vector.broadcast %cst_46 : f32 to vector<8x8x8xf32>
      %98 = arith.mulf %96, %97 : vector<8x8x8xf32>
      %cst_47 = arith.constant dense<0xFF800000> : vector<8x8xf32>
      %99 = vector.multi_reduction <maximumf>, %98, %cst_47 [2] : vector<8x8x8xf32> to vector<8x8xf32>
      %100 = vector.shape_cast %99 : vector<8x8xf32> to vector<8x8x1xf32>
      %101 = vector.broadcast %100 : vector<8x8x1xf32> to vector<8x8x8xf32>
      %102 = arith.subf %98, %101 : vector<8x8x8xf32>
      %103 = math.exp %102 : vector<8x8x8xf32>
      %cst_48 = arith.constant dense<0.000000e+00> : vector<8x8xf32>
      %104 = vector.multi_reduction <add>, %103, %cst_48 [2] : vector<8x8x8xf32> to vector<8x8xf32>
      %105 = vector.shape_cast %104 : vector<8x8xf32> to vector<8x8x1xf32>
      %106 = tpu.reciprocal %105 {approx = true} : vector<8x8x1xf32> -> vector<8x8x1xf32>
      %107 = vector.broadcast %106 : vector<8x8x1xf32> to vector<8x8x8xf32>
      %108 = arith.mulf %103, %107 : vector<8x8x8xf32>
      %109 = arith.truncf %108 : vector<8x8x8xf32> to vector<8x8x8xbf16>
      "tpu.trace_start"() <{level = 10 : i32, message = "bqk,bkd->bqd"}> : () -> ()
      %cst_49 = arith.constant dense<0.000000e+00> : vector<8x8x32xf32>
      %110 = tpu.matmul %109, %95, %cst_49 {dimension_numbers = #tpu.dot_dimension_numbers<[2], [1], [1], [2], [0, 0, 0, 1, 1, 2], [0], [0]>} : vector<8x8x8xbf16>, vector<8x8x32xbf16>, vector<8x8x32xf32> -> vector<8x8x32xf32>
      "tpu.trace_stop"() : () -> ()
      %111 = vector.shape_cast %110 : vector<8x8x32xf32> to vector<64x32xf32>
      %c0_50 = arith.constant 0 : index
      %c64 = arith.constant 64 : index
      %112 = vector.load %arg29[%c0_50, %c64] : memref<64x128xf32, #tpu.memory_space<vmem>>, vector<64x32xf32>
      tpu.vector_store %arg29[%c0_50, %c64], %111 {strides = array<i32>} : memref<64x128xf32, #tpu.memory_space<vmem>>, vector<64x32xf32>,
      %113 = vector.extract_strided_slice %43 {offsets = [0, 96], sizes = [64, 32], strides = [1, 1]} : vector<64x384xbf16> to vector<64x32xbf16>
      %114 = vector.shape_cast %113 : vector<64x32xbf16> to vector<8x8x32xbf16>
      %115 = vector.extract_strided_slice %43 {offsets = [0, 224], sizes = [64, 32], strides = [1, 1]} : vector<64x384xbf16> to vector<64x32xbf16>
      %116 = vector.shape_cast %115 : vector<64x32xbf16> to vector<8x8x32xbf16>
      %117 = vector.extract_strided_slice %43 {offsets = [0, 352], sizes = [64, 32], strides = [1, 1]} : vector<64x384xbf16> to vector<64x32xbf16>
      %118 = vector.shape_cast %117 : vector<64x32xbf16> to vector<8x8x32xbf16>
      "tpu.trace_start"() <{level = 10 : i32, message = "bqd,bkd->bqk"}> : () -> ()
      %cst_51 = arith.constant dense<0.000000e+00> : vector<8x8x8xf32>
      %119 = tpu.matmul %114, %116, %cst_51 {dimension_numbers = #tpu.dot_dimension_numbers<[2], [2], [1], [1], [0, 0, 0, 1, 1, 1], [0], [0]>} : vector<8x8x32xbf16>, vector<8x8x32xbf16>, vector<8x8x8xf32> -> vector<8x8x8xf32>
      "tpu.trace_stop"() : () -> ()
      %cst_52 = arith.constant 0.176776692 : f32
      %120 = vector.broadcast %cst_52 : f32 to vector<8x8x8xf32>
      %121 = arith.mulf %119, %120 : vector<8x8x8xf32>
      %cst_53 = arith.constant dense<0xFF800000> : vector<8x8xf32>
      %122 = vector.multi_reduction <maximumf>, %121, %cst_53 [2] : vector<8x8x8xf32> to vector<8x8xf32>
      %123 = vector.shape_cast %122 : vector<8x8xf32> to vector<8x8x1xf32>
      %124 = vector.broadcast %123 : vector<8x8x1xf32> to vector<8x8x8xf32>
      %125 = arith.subf %121, %124 : vector<8x8x8xf32>
      %126 = math.exp %125 : vector<8x8x8xf32>
      %cst_54 = arith.constant dense<0.000000e+00> : vector<8x8xf32>
      %127 = vector.multi_reduction <add>, %126, %cst_54 [2] : vector<8x8x8xf32> to vector<8x8xf32>
      %128 = vector.shape_cast %127 : vector<8x8xf32> to vector<8x8x1xf32>
      %129 = tpu.reciprocal %128 {approx = true} : vector<8x8x1xf32> -> vector<8x8x1xf32>
      %130 = vector.broadcast %129 : vector<8x8x1xf32> to vector<8x8x8xf32>
      %131 = arith.mulf %126, %130 : vector<8x8x8xf32>
      %132 = arith.truncf %131 : vector<8x8x8xf32> to vector<8x8x8xbf16>
      "tpu.trace_start"() <{level = 10 : i32, message = "bqk,bkd->bqd"}> : () -> ()
      %cst_55 = arith.constant dense<0.000000e+00> : vector<8x8x32xf32>
      %133 = tpu.matmul %132, %118, %cst_55 {dimension_numbers = #tpu.dot_dimension_numbers<[2], [1], [1], [2], [0, 0, 0, 1, 1, 2], [0], [0]>} : vector<8x8x8xbf16>, vector<8x8x32xbf16>, vector<8x8x32xf32> -> vector<8x8x32xf32>
      "tpu.trace_stop"() : () -> ()
      %134 = vector.shape_cast %133 : vector<8x8x32xf32> to vector<64x32xf32>
      %c0_56 = arith.constant 0 : index
      %c96 = arith.constant 96 : index
      %135 = vector.load %arg29[%c0_56, %c96] : memref<64x128xf32, #tpu.memory_space<vmem>>, vector<64x32xf32>
      tpu.vector_store %arg29[%c0_56, %c96], %134 {strides = array<i32>} : memref<64x128xf32, #tpu.memory_space<vmem>>, vector<64x32xf32>,
      %c0_57 = arith.constant 0 : index
      %c0_58 = arith.constant 0 : index
      %136 = vector.load %arg29[%c0_57, %c0_58] : memref<64x128xf32, #tpu.memory_space<vmem>>, vector<64x128xf32>
      %137 = arith.truncf %136 : vector<64x128xf32> to vector<64x128xbf16>
      %c0_59 = arith.constant 0 : index
      %c0_60 = arith.constant 0 : index
      %c0_61 = arith.constant 0 : index
      %138 = vector.load %arg7[%c0_59, %c0_60, %c0_61] : memref<1x128x128xbf16, #tpu.memory_space<vmem>>, vector<1x128x128xbf16>
      %139 = vector.shape_cast %138 : vector<1x128x128xbf16> to vector<128x128xbf16>
      %cst_62 = arith.constant dense<0.000000e+00> : vector<64x128xf32>
      %140 = tpu.matmul %137, %139, %cst_62 {dimension_numbers = #tpu.dot_dimension_numbers<[1], [0], [0], [1], [0, 0, 1, 1], [], []>} : vector<64x128xbf16>, vector<128x128xbf16>, vector<64x128xf32> -> vector<64x128xf32>
      %c0_63 = arith.constant 0 : index
      %c0_64 = arith.constant 0 : index
      %c0_65 = arith.constant 0 : index
      %141 = vector.load %arg8[%c0_63, %c0_64, %c0_65] : memref<1x1x128xf32, #tpu.memory_space<vmem>>, vector<1x1x128xf32>
      %142 = vector.shape_cast %141 : vector<1x1x128xf32> to vector<1x128xf32>
      %143 = vector.broadcast %142 : vector<1x128xf32> to vector<64x128xf32>
      %144 = arith.addf %140, %143 : vector<64x128xf32>
      %145 = arith.addf %34, %144 : vector<64x128xf32>
      %c0_66 = arith.constant 0 : index
      %c0_67 = arith.constant 0 : index
      %c0_68 = arith.constant 0 : index
      %146 = vector.load %arg9[%c0_66, %c0_67, %c0_68] : memref<1x1x128xf32, #tpu.memory_space<vmem>>, vector<1x1x128xf32>
      %147 = vector.shape_cast %146 : vector<1x1x128xf32> to vector<1x128xf32>
      %c0_69 = arith.constant 0 : index
      %c0_70 = arith.constant 0 : index
      %c0_71 = arith.constant 0 : index
      %148 = vector.load %arg10[%c0_69, %c0_70, %c0_71] : memref<1x1x128xf32, #tpu.memory_space<vmem>>, vector<1x1x128xf32>
      %149 = vector.shape_cast %148 : vector<1x1x128xf32> to vector<1x128xf32>
      %cst_72 = arith.constant dense<0.000000e+00> : vector<64xf32>
      %150 = vector.multi_reduction <add>, %145, %cst_72 [1] : vector<64x128xf32> to vector<64xf32>
      %151 = vector.shape_cast %150 : vector<64xf32> to vector<64x1xf32>
      %cst_73 = arith.constant 1.280000e+02 : f32
      %152 = vector.broadcast %cst_73 : f32 to vector<64x1xf32>
      %153 = arith.divf %151, %152 : vector<64x1xf32>
      %154 = vector.broadcast %153 : vector<64x1xf32> to vector<64x128xf32>
      %155 = arith.subf %145, %154 : vector<64x128xf32>
      %156 = arith.mulf %155, %155 : vector<64x128xf32>
      %cst_74 = arith.constant dense<0.000000e+00> : vector<64xf32>
      %157 = vector.multi_reduction <add>, %156, %cst_74 [1] : vector<64x128xf32> to vector<64xf32>
      %158 = vector.shape_cast %157 : vector<64xf32> to vector<64x1xf32>
      %cst_75 = arith.constant 1.280000e+02 : f32
      %159 = vector.broadcast %cst_75 : f32 to vector<64x1xf32>
      %160 = arith.divf %158, %159 : vector<64x1xf32>
      %161 = vector.broadcast %153 : vector<64x1xf32> to vector<64x128xf32>
      %162 = arith.subf %145, %161 : vector<64x128xf32>
      %cst_76 = arith.constant 9.99999974E-6 : f32
      %163 = vector.broadcast %cst_76 : f32 to vector<64x1xf32>
      %164 = arith.addf %160, %163 : vector<64x1xf32>
      %165 = math.rsqrt %164 : vector<64x1xf32>
      %166 = vector.broadcast %165 : vector<64x1xf32> to vector<64x128xf32>
      %167 = arith.mulf %162, %166 : vector<64x128xf32>
      %168 = vector.broadcast %147 : vector<1x128xf32> to vector<64x128xf32>
      %169 = arith.mulf %167, %168 : vector<64x128xf32>
      %170 = vector.broadcast %149 : vector<1x128xf32> to vector<64x128xf32>
      %171 = arith.addf %169, %170 : vector<64x128xf32>
      %c0_77 = arith.constant 0 : index
      %c0_78 = arith.constant 0 : index
      %172 = vector.load %arg28[%c0_77, %c0_78] : memref<64x128xf32, #tpu.memory_space<vmem>>, vector<64x128xf32>
      tpu.vector_store %arg28[%c0_77, %c0_78], %171 {strides = array<i32>} : memref<64x128xf32, #tpu.memory_space<vmem>>, vector<64x128xf32>,
      %cst_79 = arith.constant 0.000000e+00 : f32
      %173 = vector.broadcast %cst_79 : f32 to vector<64x128xf32>
      %c0_80 = arith.constant 0 : index
      %c0_81 = arith.constant 0 : index
      %174 = vector.load %arg29[%c0_80, %c0_81] : memref<64x128xf32, #tpu.memory_space<vmem>>, vector<64x128xf32>
      tpu.vector_store %arg29[%c0_80, %c0_81], %173 {strides = array<i32>} : memref<64x128xf32, #tpu.memory_space<vmem>>, vector<64x128xf32>,
    } else {
    }
    %c0 = arith.constant 0 : index
    %c0_4 = arith.constant 0 : index
    %8 = vector.load %arg28[%c0, %c0_4] : memref<64x128xf32, #tpu.memory_space<vmem>>, vector<64x128xf32>
    %9 = arith.truncf %8 : vector<64x128xf32> to vector<64x128xbf16>
    %c0_5 = arith.constant 0 : index
    %c0_6 = arith.constant 0 : index
    %c0_7 = arith.constant 0 : index
    %10 = vector.load %arg11[%c0_5, %c0_6, %c0_7] : memref<1x128x512xbf16, #tpu.memory_space<vmem>>, vector<1x128x512xbf16>
    %11 = vector.shape_cast %10 : vector<1x128x512xbf16> to vector<128x512xbf16>
    %cst = arith.constant dense<0.000000e+00> : vector<64x512xf32>
    %12 = tpu.matmul %9, %11, %cst {dimension_numbers = #tpu.dot_dimension_numbers<[1], [0], [0], [1], [0, 0, 1, 1], [], []>} : vector<64x128xbf16>, vector<128x512xbf16>, vector<64x512xf32> -> vector<64x512xf32>
    %c0_8 = arith.constant 0 : index
    %c0_9 = arith.constant 0 : index
    %c0_10 = arith.constant 0 : index
    %13 = vector.load %arg12[%c0_8, %c0_9, %c0_10] : memref<1x1x512xf32, #tpu.memory_space<vmem>>, vector<1x1x512xf32>
    %14 = vector.shape_cast %13 : vector<1x1x512xf32> to vector<1x512xf32>
    %15 = vector.broadcast %14 : vector<1x512xf32> to vector<64x512xf32>
    %16 = arith.addf %12, %15 : vector<64x512xf32>
    %cst_11 = arith.constant 0.000000e+00 : f32
    %17 = vector.broadcast %cst_11 : f32 to vector<64x512xf32>
    %18 = arith.maximumf %16, %17 : vector<64x512xf32>
    %c0_12 = arith.constant 0 : index
    %c0_13 = arith.constant 0 : index
    %19 = vector.load %arg29[%c0_12, %c0_13] : memref<64x128xf32, #tpu.memory_space<vmem>>, vector<64x128xf32>
    %20 = arith.truncf %18 : vector<64x512xf32> to vector<64x512xbf16>
    %c0_14 = arith.constant 0 : index
    %c0_15 = arith.constant 0 : index
    %c0_16 = arith.constant 0 : index
    %21 = vector.load %arg13[%c0_14, %c0_15, %c0_16] : memref<1x512x128xbf16, #tpu.memory_space<vmem>>, vector<1x512x128xbf16>
    %22 = vector.shape_cast %21 : vector<1x512x128xbf16> to vector<512x128xbf16>
    %cst_17 = arith.constant dense<0.000000e+00> : vector<64x128xf32>
    %23 = tpu.matmul %20, %22, %cst_17 {dimension_numbers = #tpu.dot_dimension_numbers<[1], [0], [0], [1], [0, 0, 1, 1], [], []>} : vector<64x512xbf16>, vector<512x128xbf16>, vector<64x128xf32> -> vector<64x128xf32>
    %24 = arith.addf %19, %23 : vector<64x128xf32>
    %c0_18 = arith.constant 0 : index
    %c0_19 = arith.constant 0 : index
    %25 = vector.load %arg29[%c0_18, %c0_19] : memref<64x128xf32, #tpu.memory_space<vmem>>, vector<64x128xf32>
    tpu.vector_store %arg29[%c0_18, %c0_19], %24 {strides = array<i32>} : memref<64x128xf32, #tpu.memory_space<vmem>>, vector<64x128xf32>,
    %c3_i32 = arith.constant 3 : i32
    %26 = arith.cmpi eq, %arg1, %c3_i32 : i32
    %27 = arith.extui %26 : i1 to i32
    %c0_i32_20 = arith.constant 0 : i32
    %28 = arith.cmpi ne, %27, %c0_i32_20 : i32
    scf.if %28 {
      %c0_23 = arith.constant 0 : index
      %c0_24 = arith.constant 0 : index
      %34 = vector.load %arg28[%c0_23, %c0_24] : memref<64x128xf32, #tpu.memory_space<vmem>>, vector<64x128xf32>
      %c0_25 = arith.constant 0 : index
      %c0_26 = arith.constant 0 : index
      %35 = vector.load %arg29[%c0_25, %c0_26] : memref<64x128xf32, #tpu.memory_space<vmem>>, vector<64x128xf32>
      %36 = arith.addf %34, %35 : vector<64x128xf32>
      %c0_27 = arith.constant 0 : index
      %c0_28 = arith.constant 0 : index
      %c0_29 = arith.constant 0 : index
      %37 = vector.load %arg14[%c0_27, %c0_28, %c0_29] : memref<1x1x128xf32, #tpu.memory_space<vmem>>, vector<1x1x128xf32>
      %38 = vector.shape_cast %37 : vector<1x1x128xf32> to vector<1x128xf32>
      %39 = vector.broadcast %38 : vector<1x128xf32> to vector<64x128xf32>
      %40 = arith.addf %36, %39 : vector<64x128xf32>
      %c0_30 = arith.constant 0 : index
      %c0_31 = arith.constant 0 : index
      %c0_32 = arith.constant 0 : index
      %41 = vector.load %arg15[%c0_30, %c0_31, %c0_32] : memref<1x1x128xf32, #tpu.memory_space<vmem>>, vector<1x1x128xf32>
      %42 = vector.shape_cast %41 : vector<1x1x128xf32> to vector<1x128xf32>
      %c0_33 = arith.constant 0 : index
      %c0_34 = arith.constant 0 : index
      %c0_35 = arith.constant 0 : index
      %43 = vector.load %arg16[%c0_33, %c0_34, %c0_35] : memref<1x1x128xf32, #tpu.memory_space<vmem>>, vector<1x1x128xf32>
      %44 = vector.shape_cast %43 : vector<1x1x128xf32> to vector<1x128xf32>
      %cst_36 = arith.constant dense<0.000000e+00> : vector<64xf32>
      %45 = vector.multi_reduction <add>, %40, %cst_36 [1] : vector<64x128xf32> to vector<64xf32>
      %46 = vector.shape_cast %45 : vector<64xf32> to vector<64x1xf32>
      %cst_37 = arith.constant 1.280000e+02 : f32
      %47 = vector.broadcast %cst_37 : f32 to vector<64x1xf32>
      %48 = arith.divf %46, %47 : vector<64x1xf32>
      %49 = vector.broadcast %48 : vector<64x1xf32> to vector<64x128xf32>
      %50 = arith.subf %40, %49 : vector<64x128xf32>
      %51 = arith.mulf %50, %50 : vector<64x128xf32>
      %cst_38 = arith.constant dense<0.000000e+00> : vector<64xf32>
      %52 = vector.multi_reduction <add>, %51, %cst_38 [1] : vector<64x128xf32> to vector<64xf32>
      %53 = vector.shape_cast %52 : vector<64xf32> to vector<64x1xf32>
      %cst_39 = arith.constant 1.280000e+02 : f32
      %54 = vector.broadcast %cst_39 : f32 to vector<64x1xf32>
      %55 = arith.divf %53, %54 : vector<64x1xf32>
      %56 = vector.broadcast %48 : vector<64x1xf32> to vector<64x128xf32>
      %57 = arith.subf %40, %56 : vector<64x128xf32>
      %cst_40 = arith.constant 9.99999974E-6 : f32
      %58 = vector.broadcast %cst_40 : f32 to vector<64x1xf32>
      %59 = arith.addf %55, %58 : vector<64x1xf32>
      %60 = math.rsqrt %59 : vector<64x1xf32>
      %61 = vector.broadcast %60 : vector<64x1xf32> to vector<64x128xf32>
      %62 = arith.mulf %57, %61 : vector<64x128xf32>
      %63 = vector.broadcast %42 : vector<1x128xf32> to vector<64x128xf32>
      %64 = arith.mulf %62, %63 : vector<64x128xf32>
      %65 = vector.broadcast %44 : vector<1x128xf32> to vector<64x128xf32>
      %66 = arith.addf %64, %65 : vector<64x128xf32>
      %c0_41 = arith.constant 0 : index
      %c0_42 = arith.constant 0 : index
      %67 = vector.load %arg27[%c0_41, %c0_42] : memref<64x128xf32, #tpu.memory_space<vmem>>, vector<64x128xf32>
      tpu.vector_store %arg27[%c0_41, %c0_42], %66 {strides = array<i32>} : memref<64x128xf32, #tpu.memory_space<vmem>>, vector<64x128xf32>,
    } else {
    }
    %c1_i32 = arith.constant 1 : i32
    %29 = arith.cmpi eq, %arg0, %c1_i32 : i32
    %c3_i32_21 = arith.constant 3 : i32
    %30 = arith.cmpi eq, %arg1, %c3_i32_21 : i32
    %31 = arith.andi %29, %30 : i1
    %32 = arith.extui %31 : i1 to i32
    %c0_i32_22 = arith.constant 0 : i32
    %33 = arith.cmpi ne, %32, %c0_i32_22 : i32
    scf.if %33 {
      %c0_23 = arith.constant 0 : index
      %c0_24 = arith.constant 0 : index
      %34 = vector.load %arg27[%c0_23, %c0_24] : memref<64x128xf32, #tpu.memory_space<vmem>>, vector<64x128xf32>
      %35 = vector.shape_cast %34 : vector<64x128xf32> to vector<8x8x128xf32>
      %36 = vector.extract_strided_slice %35 {offsets = [0, 7, 0], sizes = [8, 1, 128], strides = [1, 1, 1]} : vector<8x8x128xf32> to vector<8x1x128xf32>
      %37 = vector.shape_cast %36 : vector<8x1x128xf32> to vector<8x128xf32>
      %c0_25 = arith.constant 0 : index
      %c0_26 = arith.constant 0 : index
      %38 = vector.load %arg17[%c0_25, %c0_26] : memref<1x128xf32, #tpu.memory_space<vmem>>, vector<1x128xf32>
      %c0_27 = arith.constant 0 : index
      %c0_28 = arith.constant 0 : index
      %39 = vector.load %arg18[%c0_27, %c0_28] : memref<1x128xf32, #tpu.memory_space<vmem>>, vector<1x128xf32>
      %cst_29 = arith.constant dense<0.000000e+00> : vector<8xf32>
      %40 = vector.multi_reduction <add>, %37, %cst_29 [1] : vector<8x128xf32> to vector<8xf32>
      %41 = vector.shape_cast %40 : vector<8xf32> to vector<8x1xf32>
      %cst_30 = arith.constant 1.280000e+02 : f32
      %42 = vector.broadcast %cst_30 : f32 to vector<8x1xf32>
      %43 = arith.divf %41, %42 : vector<8x1xf32>
      %44 = vector.broadcast %43 : vector<8x1xf32> to vector<8x128xf32>
      %45 = arith.subf %37, %44 : vector<8x128xf32>
      %46 = arith.mulf %45, %45 : vector<8x128xf32>
      %cst_31 = arith.constant dense<0.000000e+00> : vector<8xf32>
      %47 = vector.multi_reduction <add>, %46, %cst_31 [1] : vector<8x128xf32> to vector<8xf32>
      %48 = vector.shape_cast %47 : vector<8xf32> to vector<8x1xf32>
      %cst_32 = arith.constant 1.280000e+02 : f32
      %49 = vector.broadcast %cst_32 : f32 to vector<8x1xf32>
      %50 = arith.divf %48, %49 : vector<8x1xf32>
      %51 = vector.broadcast %43 : vector<8x1xf32> to vector<8x128xf32>
      %52 = arith.subf %37, %51 : vector<8x128xf32>
      %cst_33 = arith.constant 9.99999974E-6 : f32
      %53 = vector.broadcast %cst_33 : f32 to vector<8x1xf32>
      %54 = arith.addf %50, %53 : vector<8x1xf32>
      %55 = math.rsqrt %54 : vector<8x1xf32>
      %56 = vector.broadcast %55 : vector<8x1xf32> to vector<8x128xf32>
      %57 = arith.mulf %52, %56 : vector<8x128xf32>
      %58 = vector.broadcast %38 : vector<1x128xf32> to vector<8x128xf32>
      %59 = arith.mulf %57, %58 : vector<8x128xf32>
      %60 = vector.broadcast %39 : vector<1x128xf32> to vector<8x128xf32>
      %61 = arith.addf %59, %60 : vector<8x128xf32>
      %c0_34 = arith.constant 0 : index
      %c0_35 = arith.constant 0 : index
      %62 = vector.load %arg19[%c0_34, %c0_35] : memref<8x128xf32, #tpu.memory_space<vmem>>, vector<8x128xf32>
      %c0_36 = arith.constant 0 : index
      %c0_37 = arith.constant 0 : index
      %63 = vector.load %arg20[%c0_36, %c0_37] : memref<256x128xbf16, #tpu.memory_space<vmem>>, vector<256x128xbf16>
      %64 = arith.truncf %62 : vector<8x128xf32> to vector<8x128xbf16>
      %65 = vector.extract_strided_slice %63 {offsets = [0, 0], sizes = [128, 128], strides = [1, 1]} : vector<256x128xbf16> to vector<128x128xbf16>
      %cst_38 = arith.constant dense<0.000000e+00> : vector<8x128xf32>
      %66 = tpu.matmul %64, %65, %cst_38 {dimension_numbers = #tpu.dot_dimension_numbers<[1], [0], [0], [1], [0, 0, 1, 1], [], []>} : vector<8x128xbf16>, vector<128x128xbf16>, vector<8x128xf32> -> vector<8x128xf32>
      %67 = arith.truncf %61 : vector<8x128xf32> to vector<8x128xbf16>
      %68 = vector.extract_strided_slice %63 {offsets = [128, 0], sizes = [128, 128], strides = [1, 1]} : vector<256x128xbf16> to vector<128x128xbf16>
      %cst_39 = arith.constant dense<0.000000e+00> : vector<8x128xf32>
      %69 = tpu.matmul %67, %68, %cst_39 {dimension_numbers = #tpu.dot_dimension_numbers<[1], [0], [0], [1], [0, 0, 1, 1], [], []>} : vector<8x128xbf16>, vector<128x128xbf16>, vector<8x128xf32> -> vector<8x128xf32>
      %70 = arith.addf %66, %69 : vector<8x128xf32>
      %c0_40 = arith.constant 0 : index
      %c0_41 = arith.constant 0 : index
      %71 = vector.load %arg21[%c0_40, %c0_41] : memref<1x128xf32, #tpu.memory_space<vmem>>, vector<1x128xf32>
      %72 = vector.broadcast %71 : vector<1x128xf32> to vector<8x128xf32>
      %73 = arith.addf %70, %72 : vector<8x128xf32>
      %cst_42 = arith.constant 0.000000e+00 : f32
      %74 = vector.broadcast %cst_42 : f32 to vector<8x128xf32>
      %75 = arith.maximumf %73, %74 : vector<8x128xf32>
      %76 = arith.truncf %75 : vector<8x128xf32> to vector<8x128xbf16>
      %c0_43 = arith.constant 0 : index
      %c0_44 = arith.constant 0 : index
      %77 = vector.load %arg22[%c0_43, %c0_44] : memref<128x128xbf16, #tpu.memory_space<vmem>>, vector<128x128xbf16>
      %cst_45 = arith.constant dense<0.000000e+00> : vector<8x128xf32>
      %78 = tpu.matmul %76, %77, %cst_45 {dimension_numbers = #tpu.dot_dimension_numbers<[1], [0], [0], [1], [0, 0, 1, 1], [], []>} : vector<8x128xbf16>, vector<128x128xbf16>, vector<8x128xf32> -> vector<8x128xf32>
      %c0_46 = arith.constant 0 : index
      %c0_47 = arith.constant 0 : index
      %79 = vector.load %arg23[%c0_46, %c0_47] : memref<1x128xf32, #tpu.memory_space<vmem>>, vector<1x128xf32>
      %80 = vector.broadcast %79 : vector<1x128xf32> to vector<8x128xf32>
      %81 = arith.addf %78, %80 : vector<8x128xf32>
      %cst_48 = arith.constant 0.000000e+00 : f32
      %82 = vector.broadcast %cst_48 : f32 to vector<8x128xf32>
      %83 = arith.maximumf %81, %82 : vector<8x128xf32>
      %84 = arith.truncf %83 : vector<8x128xf32> to vector<8x128xbf16>
      %c0_49 = arith.constant 0 : index
      %c0_50 = arith.constant 0 : index
      %85 = vector.load %arg24[%c0_49, %c0_50] : memref<128x128xbf16, #tpu.memory_space<vmem>>, vector<128x128xbf16>
      %cst_51 = arith.constant dense<0.000000e+00> : vector<8x128xf32>
      %86 = tpu.matmul %84, %85, %cst_51 {dimension_numbers = #tpu.dot_dimension_numbers<[1], [0], [0], [1], [0, 0, 1, 1], [], []>} : vector<8x128xbf16>, vector<128x128xbf16>, vector<8x128xf32> -> vector<8x128xf32>
      %c0_52 = arith.constant 0 : index
      %c0_53 = arith.constant 0 : index
      %87 = vector.load %arg25[%c0_52, %c0_53] : memref<1x128xf32, #tpu.memory_space<vmem>>, vector<1x128xf32>
      %88 = vector.broadcast %87 : vector<1x128xf32> to vector<8x128xf32>
      %89 = arith.addf %86, %88 : vector<8x128xf32>
      %c0_54 = arith.constant 0 : index
      %c0_55 = arith.constant 0 : index
      %90 = vector.load %arg26[%c0_54, %c0_55] : memref<8x128xf32, #tpu.memory_space<vmem>>, vector<8x128xf32>
      tpu.vector_store %arg26[%c0_54, %c0_55], %89 {strides = array<i32>} : memref<8x128xf32, #tpu.memory_space<vmem>>, vector<8x128xf32>,
    } else {
    }
    return
  }
  func.func @transform_0(%arg0: i32, %arg1: i32) -> (i32, i32) {
    %c0_i32 = arith.constant 0 : i32
    %c0_i32_0 = arith.constant 0 : i32
    %c0_i32_1 = arith.constant 0 : i32
    return %c0_i32, %c0_i32_0 : i32, i32
  }
  func.func @transform_1(%arg0: i32, %arg1: i32) -> (i32, i32) {
    %c0_i32 = arith.constant 0 : i32
    %c0_i32_0 = arith.constant 0 : i32
    %c0_i32_1 = arith.constant 0 : i32
    return %c0_i32, %c0_i32_0 : i32, i32
  }
  func.func @transform_2(%arg0: i32, %arg1: i32) -> (i32, i32) {
    %c0_i32 = arith.constant 0 : i32
    %c0_i32_0 = arith.constant 0 : i32
    %c0_i32_1 = arith.constant 0 : i32
    return %c0_i32, %c0_i32_0 : i32, i32
  }
  func.func @transform_3(%arg0: i32, %arg1: i32) -> (i32, i32, i32) {
    %c0_i32 = arith.constant 0 : i32
    %c0_i32_0 = arith.constant 0 : i32
    %c0_i32_1 = arith.constant 0 : i32
    return %arg0, %c0_i32, %c0_i32_0 : i32, i32, i32
  }
  func.func @transform_4(%arg0: i32, %arg1: i32) -> (i32, i32, i32) {
    %c0_i32 = arith.constant 0 : i32
    %c0_i32_0 = arith.constant 0 : i32
    %c0_i32_1 = arith.constant 0 : i32
    return %arg0, %c0_i32, %c0_i32_0 : i32, i32, i32
  }
  func.func @transform_5(%arg0: i32, %arg1: i32) -> (i32, i32, i32) {
    %c0_i32 = arith.constant 0 : i32
    %c0_i32_0 = arith.constant 0 : i32
    %c0_i32_1 = arith.constant 0 : i32
    return %arg0, %c0_i32, %c0_i32_0 : i32, i32, i32
  }
  func.func @transform_6(%arg0: i32, %arg1: i32) -> (i32, i32, i32) {
    %c0_i32 = arith.constant 0 : i32
    %c0_i32_0 = arith.constant 0 : i32
    %c0_i32_1 = arith.constant 0 : i32
    return %arg0, %c0_i32, %c0_i32_0 : i32, i32, i32
  }
  func.func @transform_7(%arg0: i32, %arg1: i32) -> (i32, i32, i32) {
    %c0_i32 = arith.constant 0 : i32
    %c0_i32_0 = arith.constant 0 : i32
    %c0_i32_1 = arith.constant 0 : i32
    return %arg0, %c0_i32, %c0_i32_0 : i32, i32, i32
  }
  func.func @transform_8(%arg0: i32, %arg1: i32) -> (i32, i32, i32) {
    %c0_i32 = arith.constant 0 : i32
    %c0_i32_0 = arith.constant 0 : i32
    %c0_i32_1 = arith.constant 0 : i32
    return %arg0, %c0_i32, %c0_i32_0 : i32, i32, i32
  }
  func.func @transform_9(%arg0: i32, %arg1: i32) -> (i32, i32, i32) {
    %c0_i32 = arith.constant 0 : i32
    %c0_i32_0 = arith.constant 0 : i32
    return %arg0, %c0_i32, %arg1 : i32, i32, i32
  }
  func.func @transform_10(%arg0: i32, %arg1: i32) -> (i32, i32, i32) {
    %c0_i32 = arith.constant 0 : i32
    %c0_i32_0 = arith.constant 0 : i32
    return %arg0, %c0_i32, %arg1 : i32, i32, i32
  }
  func.func @transform_11(%arg0: i32, %arg1: i32) -> (i32, i32, i32) {
    %c0_i32 = arith.constant 0 : i32
    %c0_i32_0 = arith.constant 0 : i32
    return %arg0, %arg1, %c0_i32 : i32, i32, i32
  }
  func.func @transform_12(%arg0: i32, %arg1: i32) -> (i32, i32, i32) {
    %c0_i32 = arith.constant 0 : i32
    %c0_i32_0 = arith.constant 0 : i32
    %c0_i32_1 = arith.constant 0 : i32
    return %arg0, %c0_i32, %c0_i32_0 : i32, i32, i32
  }
  func.func @transform_13(%arg0: i32, %arg1: i32) -> (i32, i32, i32) {
    %c0_i32 = arith.constant 0 : i32
    %c0_i32_0 = arith.constant 0 : i32
    %c0_i32_1 = arith.constant 0 : i32
    return %arg0, %c0_i32, %c0_i32_0 : i32, i32, i32
  }
  func.func @transform_14(%arg0: i32, %arg1: i32) -> (i32, i32, i32) {
    %c0_i32 = arith.constant 0 : i32
    %c0_i32_0 = arith.constant 0 : i32
    %c0_i32_1 = arith.constant 0 : i32
    return %arg0, %c0_i32, %c0_i32_0 : i32, i32, i32
  }
  func.func @transform_15(%arg0: i32, %arg1: i32) -> (i32, i32) {
    %c0_i32 = arith.constant 0 : i32
    %c0_i32_0 = arith.constant 0 : i32
    %c0_i32_1 = arith.constant 0 : i32
    return %c0_i32, %c0_i32_0 : i32, i32
  }
  func.func @transform_16(%arg0: i32, %arg1: i32) -> (i32, i32) {
    %c0_i32 = arith.constant 0 : i32
    %c0_i32_0 = arith.constant 0 : i32
    %c0_i32_1 = arith.constant 0 : i32
    return %c0_i32, %c0_i32_0 : i32, i32
  }
  func.func @transform_17(%arg0: i32, %arg1: i32) -> (i32, i32) {
    %c0_i32 = arith.constant 0 : i32
    %c0_i32_0 = arith.constant 0 : i32
    %c0_i32_1 = arith.constant 0 : i32
    return %c0_i32, %c0_i32_0 : i32, i32
  }
  func.func @transform_18(%arg0: i32, %arg1: i32) -> (i32, i32) {
    %c0_i32 = arith.constant 0 : i32
    %c0_i32_0 = arith.constant 0 : i32
    %c0_i32_1 = arith.constant 0 : i32
    return %c0_i32, %c0_i32_0 : i32, i32
  }
  func.func @transform_19(%arg0: i32, %arg1: i32) -> (i32, i32) {
    %c0_i32 = arith.constant 0 : i32
    %c0_i32_0 = arith.constant 0 : i32
    %c0_i32_1 = arith.constant 0 : i32
    return %c0_i32, %c0_i32_0 : i32, i32
  }
  func.func @transform_20(%arg0: i32, %arg1: i32) -> (i32, i32) {
    %c0_i32 = arith.constant 0 : i32
    %c0_i32_0 = arith.constant 0 : i32
    %c0_i32_1 = arith.constant 0 : i32
    return %c0_i32, %c0_i32_0 : i32, i32
  }
  func.func @transform_21(%arg0: i32, %arg1: i32) -> (i32, i32) {
    %c0_i32 = arith.constant 0 : i32
    %c0_i32_0 = arith.constant 0 : i32
    %c0_i32_1 = arith.constant 0 : i32
    return %c0_i32, %c0_i32_0 : i32, i32
  }
  func.func @transform_22(%arg0: i32, %arg1: i32) -> (i32, i32) {
    %c0_i32 = arith.constant 0 : i32
    %c0_i32_0 = arith.constant 0 : i32
    %c0_i32_1 = arith.constant 0 : i32
    return %c0_i32, %c0_i32_0 : i32, i32
  }
  func.func @transform_23(%arg0: i32, %arg1: i32) -> (i32, i32) {
    %c0_i32 = arith.constant 0 : i32
    %c0_i32_0 = arith.constant 0 : i32
    %c0_i32_1 = arith.constant 0 : i32
    return %c0_i32, %c0_i32_0 : i32, i32
  }
  func.func @transform_24(%arg0: i32, %arg1: i32) -> (i32, i32) {
    %c0_i32 = arith.constant 0 : i32
    %c0_i32_0 = arith.constant 0 : i32
    %c0_i32_1 = arith.constant 0 : i32
    return %c0_i32, %c0_i32_0 : i32, i32
  }
}

</mosaic_0001>

<bundles_post_ra>
// kernel: hstc_gtnn_forward.2
= control target key start
LH: loop header
LB: loop body
LE: loop exit
PB: predicated region body
PF: predicated region fallthrough
CT: control target
= control target key end

     0   :  { %12 = vsyncpa [#allocation3], 0  ;;  %s1946_s0 = inlined_call_operand.hbm [shape: f32[8,16], index: 0, kind: input, shape index: {}]   ;;  %s1947_s1 = inlined_call_operand.vmem [shape: f32[8,8], index: 1, kind: input, shape index: {}]   ;;  %s1948_s2 = inlined_call_operand.vmem [shape: f32[8,8], index: 2, kind: input, shape index: {}]   ;;  %s1949_s3 = inlined_call_operand.hbm [shape: bf16[16,128], index: 3, kind: input, shape index: {}]   ;;  %s1950_s4 = inlined_call_operand.vmem [shape: f32[1,128], index: 4, kind: input, shape index: {}]   ;;  %s1951_s5 = inlined_call_operand.hbm [shape: bf16[128,1664], index: 5, kind: input, shape index: {}]   ;;  %s1952_s6 = inlined_call_operand.vmem [shape: f32[1,1664], index: 6, kind: input, shape index: {}]   ;;  %s1953_s7 = inlined_call_operand.vmem [shape: f32[8,128], index: 7, kind: output, shape index: {}]  }
   0x1   :  { %13 = vsyncpa [#allocation5], 0  ;;  %s33_s26 = sshll.u32 %s1949_s3, 4  ;;  %s1832_s27 = smov [#allocation4]   ;;  %s34_s26 = int_to_ptr.hbm [resolvable:$true] %s33_s26 }
   0x2   :  { %s35_s28 = sshll.u32 %s1832_s27, 4  ;;  %s19_s8 = sshll.u32 %s1946_s0, 4  ;;  %s36_s28 = int_to_ptr.vmem [resolvable:$true] %s35_s28  ;;  %s20_s8 = int_to_ptr.hbm [resolvable:$true] %s19_s8 }
   0x3   :  { %s1833_s9 = smov 64   ;;  %s1834_s10 = smov 4  }
   0x4   :  { %41 = dma.hbm_to_vmem [thread:$0]  %s34_s26, 128, %s36_s28, [#allocation5], %s1833_s9, %s1833_s9, %s1834_s10  }
   0x5   :  { %s1835_s11 = smov [#allocation2]   ;;  %s48_s15 = sshll.u32 %s1951_s5, 4  ;;  %s49_s15 = int_to_ptr.hbm [resolvable:$true] %s48_s15 }
   0x6   :  { %s21_s12 = sshll.u32 %s1835_s11, 4  ;;  %s1836_s3 = smov [#allocation6]   ;;  %s22_s12 = int_to_ptr.vmem [resolvable:$true] %s21_s12 }
   0x7   :  { %24 = dma.hbm_to_vmem [thread:$0]  %s20_s8, 128, %s22_s12, [#allocation3]  }
   0x8   :  { %s50_s16 = sshll.u32 %s1836_s3, 4  ;;  %s1837_s17 = smov 832   ;;  %s51_s16 = int_to_ptr.vmem [resolvable:$true] %s50_s16 }
   0x9   :  { %s1838_s18 = smov 52  }
   0xa   :  { %56 = dma.hbm_to_vmem [thread:$0]  %s49_s15, 13312, %s51_s16, [#allocation5], %s1837_s17, %s1837_s17, %s1838_s18  }
   0xb   :  { %1828 = dma.done.wait [#allocation3], 128  }
   0xc   :  { %1829 = vsyncadd [#allocation3], 4294967168 }
   0xd   :  { %1830 = dma.done.wait [#allocation5], 13440  }
   0xe   :  { %1831 = vsyncadd [#allocation5], 4294953856  ;;  %v1627_v0 = vld [vmem:[#allocation4] sm:$0xff]  ;;  %v72_v1 = vld [vmem:[#allocation2] sm:$0xff]  ;;  %vm82_vm0 = vcmask 130048   ;;  %vm110_vm1 = vcmask 1043456  }
   0xf   :  { %v73_v2 = vpack.c.bf16 %v72_v1, %v72_v1  ;;  %93 = vmatpush.bf16.msra.mxu0 %v1627_v0  ;;  %v1573_v3 = vld [vmem:[#allocation6 + $0x2d8] sm:$0xf]  ;;  %v1725_v4 = vld [vmem:[#allocation6 + $0x308] sm:$0xf0]  ;;  %v1719_v5 = vld [vmem:[#allocation6 + $0x2dc] sm:$0xf] }
  0x10   :  { %v1574_v6 = vor.u32 %v1725_v4, %v1573_v3  ;;  %v1575_v7 = vld [vmem:[#allocation6 + $0x30c] sm:$0xf0]  ;;  %v1581_v8 = vld [vmem:[#allocation6 + $0x2e0] sm:$0xf]  ;;  %v1726_v9 = vld [vmem:[#allocation6 + $0x310] sm:$0xf0] }
  0x11   :  { %v1578_v10 = vor.u32 %v1719_v5, %v1575_v7  ;;  %v1582_v11 = vor.u32 %v1726_v9, %v1581_v8  ;;  %v1521_v12 = vld [vmem:[#allocation6 + $0x270] sm:$0xf]  ;;  %v1712_v13 = vld [vmem:[#allocation6 + $0x2a0] sm:$0xf0]  ;;  %v1706_v14 = vld [vmem:[#allocation6 + $0x274] sm:$0xf] }
  0x12   :  { %1205 = vmatmul.msk.bf16.vlgmr.msra.gmra.mxu0 %vm82_vm0, %v73_v2  ;;  %799 = vmatpush.bf16.msra.mxu2 %v1574_v6  ;;  %v1523_v15 = vld [vmem:[#allocation6 + $0x2a4] sm:$0xf0]  ;;  %v1522_v16 = vor.u32 %v1712_v13, %v1521_v12  ;;  %v1529_v18 = vld [vmem:[#allocation6 + $0x278] sm:$0xf]  ;;  %v1713_v19 = vld [vmem:[#allocation6 + $0x2a8] sm:$0xf0] }
  0x13   :  { %812 = vmatpush.bf16.msra.mxu3 %v1578_v10  ;;  %825 = vmatpush.bf16.msrb.mxu0 %v1582_v11  ;;  %v1526_v17 = vor.u32 %v1706_v14, %v1523_v15  ;;  %v1530_v20 = vor.u32 %v1713_v19, %v1529_v18  ;;  %v1469_v21 = vld [vmem:[#allocation6 + $0x208] sm:$0xf]  ;;  %v1699_v22 = vld [vmem:[#allocation6 + $0x238] sm:$0xf0]  ;;  %v1693_v23 = vld [vmem:[#allocation6 + $0x20c] sm:$0xf] }
  0x14   :  { %v1471_v24 = vld [vmem:[#allocation6 + $0x23c] sm:$0xf0]  ;;  %v1477_v25 = vld [vmem:[#allocation6 + $0x210] sm:$0xf]  ;;  %v1470_v26 = vor.u32 %v1699_v22, %v1469_v21  ;;  %v1700_v27 = vld [vmem:[#allocation6 + $0x240] sm:$0xf0] }
  0x15   :  { %v1474_v28 = vor.u32 %v1693_v23, %v1471_v24  ;;  %v1478_v29 = vor.u32 %v1700_v27, %v1477_v25  ;;  %v1417_v30 = vld [vmem:[#allocation6 + $0x1a0] sm:$0xf]  ;;  %v1686_v31 = vld [vmem:[#allocation6 + $0x1d0] sm:$0xf0]  ;;  %v1680_v32 = vld [vmem:[#allocation6 + $0x1a4] sm:$0xf] }
  0x16   :  { %800 = vmatpush.bf16.msra.mxu2 %v1522_v16  ;;  %v1419_v33 = vld [vmem:[#allocation6 + $0x1d4] sm:$0xf0]  ;;  %v1425_v34 = vld [vmem:[#allocation6 + $0x1a8] sm:$0xf]  ;;  %v1687_v35 = vld [vmem:[#allocation6 + $0x1d8] sm:$0xf0]  ;;  %v1418_v36 = vor.u32 %v1686_v31, %v1417_v30 }
  0x17   :  { %813 = vmatpush.bf16.msra.mxu3 %v1526_v17  ;;  %826 = vmatpush.bf16.msrb.mxu0 %v1530_v20  ;;  %v1422_v37 = vor.u32 %v1680_v32, %v1419_v33  ;;  %v1426_v38 = vor.u32 %v1687_v35, %v1425_v34  ;;  %v1365_v39 = vld [vmem:[#allocation6 + $0x138] sm:$0xf]  ;;  %v1673_v40 = vld [vmem:[#allocation6 + $0x168] sm:$0xf0]  ;;  %v1667_v41 = vld [vmem:[#allocation6 + $0x13c] sm:$0xf] }
  0x18   :  { %v1367_v42 = vld [vmem:[#allocation6 + $0x16c] sm:$0xf0]  ;;  %v1373_v43 = vld [vmem:[#allocation6 + $0x140] sm:$0xf]  ;;  %v1674_v44 = vld [vmem:[#allocation6 + $0x170] sm:$0xf0]  ;;  %v1366_v45 = vor.u32 %v1673_v40, %v1365_v39 }
  0x19   :  { %v1370_v46 = vor.u32 %v1667_v41, %v1367_v42  ;;  %v1374_v47 = vor.u32 %v1674_v44, %v1373_v43  ;;  %v1313_v48 = vld [vmem:[#allocation6 + $0xd0] sm:$0xf]  ;;  %v1660_v49 = vld [vmem:[#allocation6 + $0x100] sm:$0xf0]  ;;  %v1654_v50 = vld [vmem:[#allocation6 + $0xd4] sm:$0xf] }
  0x1a   :  { %801 = vmatpush.bf16.msra.mxu2 %v1470_v26  ;;  %v1315_v51 = vld [vmem:[#allocation6 + $0x104] sm:$0xf0]  ;;  %v1321_v52 = vld [vmem:[#allocation6 + $0xd8] sm:$0xf]  ;;  %v1661_v53 = vld [vmem:[#allocation6 + $0x108] sm:$0xf0]  ;;  %v1314_v54 = vor.u32 %v1660_v49, %v1313_v48 }
  0x1b   :  { %814 = vmatpush.bf16.msra.mxu3 %v1474_v28  ;;  %827 = vmatpush.bf16.msrb.mxu0 %v1478_v29  ;;  %v1318_v55 = vor.u32 %v1654_v50, %v1315_v51  ;;  %v1322_v56 = vor.u32 %v1661_v53, %v1321_v52  ;;  %v1261_v57 = vld [vmem:[#allocation6 + $0x68] sm:$0xf]  ;;  %v1647_v58 = vld [vmem:[#allocation6 + $0x98] sm:$0xf0]  ;;  %v1720_v59 = vld [vmem:[#allocation6 + $0x2e4] sm:$0xf] }
  0x1c   :  { %v1641_v60 = vld [vmem:[#allocation6 + $0x6c] sm:$0xf]  ;;  %v1263_v61 = vld [vmem:[#allocation6 + $0x9c] sm:$0xf0]  ;;  %v1583_v62 = vld [vmem:[#allocation6 + $0x314] sm:$0xf0]  ;;  %v1262_v2 = vor.u32 %v1647_v58, %v1261_v57 }
  0x1d   :  { %v1269_v63 = vld [vmem:[#allocation6 + $0x70] sm:$0xf]  ;;  %v1648_v0 = vld [vmem:[#allocation6 + $0xa0] sm:$0xf0]  ;;  %v1209_v3 = vld [vmem:[#allocation6] sm:$0xf]  ;;  %v1266_v7 = vor.u32 %v1641_v60, %v1263_v61  ;;  %v1586_v12 = vor.u32 %v1720_v59, %v1583_v62 }
  0x1e   :  { %802 = vmatpush.bf16.msra.mxu2 %v1418_v36  ;;  %v99_v1 = vld [vmem:[%s1947_s1] sm:$0xff]  ;;  %v1707_v5 = vld [vmem:[#allocation6 + $0x27c] sm:$0xf]  ;;  %v1628_v9 = vld [vmem:[#allocation6 + $0x4] sm:$0xf]  ;;  %v1270_v13 = vor.u32 %v1648_v0, %v1269_v63  ;;  %vm106_vm2 = vcmask 64512  }
  0x1f   :  { %815 = vmatpush.bf16.msra.mxu3 %v1422_v37  ;;  %828 = vmatpush.bf16.msrb.mxu0 %v1426_v38  ;;  %v1531_v6 = vld [vmem:[#allocation6 + $0x2ac] sm:$0xf0]  ;;  %v1634_v8 = vld [vmem:[#allocation6 + $0x30] sm:$0xf0]  ;;  %v1211_v10 = vld [vmem:[#allocation6 + $0x34] sm:$0xf0]  ;;  %v100_v21 = vpack.c.bf16 %v99_v1, %v99_v1 }
  0x20   :  { %v1217_v14 = vld [vmem:[#allocation6 + $0x8] sm:$0xf]  ;;  %v1727_v16 = vld [vmem:[#allocation6 + $0x318] sm:$0xf0]  ;;  %v1721_v18 = vld [vmem:[#allocation6 + $0x2ec] sm:$0xf]  ;;  %v1210_v22 = vor.u32 %v1634_v8, %v1209_v3  ;;  %v1214_v25 = vor.u32 %v1628_v9, %v1211_v10  ;;  %v1534_v27 = vor.u32 %v1707_v5, %v1531_v6 }
  0x21   :  { %v1589_v15 = vld [vmem:[#allocation6 + $0x2e8] sm:$0xf]  ;;  %v1635_v17 = vld [vmem:[#allocation6 + $0x38] sm:$0xf0]  ;;  %v1591_v19 = vld [vmem:[#allocation6 + $0x31c] sm:$0xf0] }
  0x22   :  { %803 = vmatpush.bf16.msra.mxu2 %v1366_v45  ;;  %v1597_v23 = vld [vmem:[#allocation6 + $0x2f0] sm:$0xf]  ;;  %v1728_v24 = vld [vmem:[#allocation6 + $0x320] sm:$0xf0]  ;;  %v1590_v26 = vor.u32 %v1727_v16, %v1589_v15  ;;  %v1218_v28 = vor.u32 %v1635_v17, %v1217_v14  ;;  %v1537_v29 = vld [vmem:[#allocation6 + $0x280] sm:$0xf]  ;;  %v1594_v33 = vor.u32 %v1721_v18, %v1591_v19 }
  0x23   :  { %816 = vmatpush.bf16.msra.mxu3 %v1370_v46  ;;  %829 = vmatpush.bf16.msrb.mxu0 %v1374_v47  ;;  %v1714_v30 = vld [vmem:[#allocation6 + $0x2b0] sm:$0xf0]  ;;  %v1479_v32 = vld [vmem:[#allocation6 + $0x244] sm:$0xf0]  ;;  %v1598_v34 = vor.u32 %v1728_v24, %v1597_v23  ;;  %v1708_v35 = vld [vmem:[#allocation6 + $0x284] sm:$0xf] }
  0x24   :  { %v1694_v31 = vld [vmem:[#allocation6 + $0x214] sm:$0xf]  ;;  %v1539_v36 = vld [vmem:[#allocation6 + $0x2b4] sm:$0xf0]  ;;  %v1545_v37 = vld [vmem:[#allocation6 + $0x288] sm:$0xf]  ;;  %v1538_v40 = vor.u32 %v1714_v30, %v1537_v29 }
  0x25   :  { %v1715_v38 = vld [vmem:[#allocation6 + $0x2b8] sm:$0xf0]  ;;  %v1482_v41 = vor.u32 %v1694_v31, %v1479_v32  ;;  %v1485_v42 = vld [vmem:[#allocation6 + $0x218] sm:$0xf]  ;;  %v1701_v43 = vld [vmem:[#allocation6 + $0x248] sm:$0xf0]  ;;  %v1542_v46 = vor.u32 %v1708_v35, %v1539_v36 }
  0x26   :  { %804 = vmatpush.bf16.msra.mxu2 %v1314_v54  ;;  %v1681_v44 = vld [vmem:[#allocation6 + $0x1ac] sm:$0xf]  ;;  %v1427_v45 = vld [vmem:[#allocation6 + $0x1dc] sm:$0xf0]  ;;  %v1546_v47 = vor.u32 %v1715_v38, %v1545_v37  ;;  %v1695_v48 = vld [vmem:[#allocation6 + $0x21c] sm:$0xf]  ;;  %v1486_v52 = vor.u32 %v1701_v43, %v1485_v42 }
  0x27   :  { %817 = vmatpush.bf16.msra.mxu3 %v1318_v55  ;;  %830 = vmatpush.bf16.msrb.mxu0 %v1322_v56  ;;  %v1487_v49 = vld [vmem:[#allocation6 + $0x24c] sm:$0xf0]  ;;  %v1493_v50 = vld [vmem:[#allocation6 + $0x220] sm:$0xf]  ;;  %v1702_v51 = vld [vmem:[#allocation6 + $0x250] sm:$0xf0]  ;;  %v1430_v53 = vor.u32 %v1681_v44, %v1427_v45 }
  0x28   :  { %v1433_v54 = vld [vmem:[#allocation6 + $0x1b0] sm:$0xf]  ;;  %v1688_v55 = vld [vmem:[#allocation6 + $0x1e0] sm:$0xf0]  ;;  %v1375_v57 = vld [vmem:[#allocation6 + $0x174] sm:$0xf0]  ;;  %v1490_v58 = vor.u32 %v1695_v48, %v1487_v49  ;;  %v1494_v59 = vor.u32 %v1702_v51, %v1493_v50 }
  0x29   :  { %v1668_v56 = vld [vmem:[#allocation6 + $0x144] sm:$0xf]  ;;  %v1682_v60 = vld [vmem:[#allocation6 + $0x1b4] sm:$0xf]  ;;  %v1435_v61 = vld [vmem:[#allocation6 + $0x1e4] sm:$0xf0]  ;;  %v1434_v0 = vor.u32 %v1688_v55, %v1433_v54 }
  0x2a   :  { %805 = vmatpush.bf16.msra.mxu2 %v1262_v2  ;;  %v1441_v62 = vld [vmem:[#allocation6 + $0x1b8] sm:$0xf]  ;;  %v1689_v63 = vld [vmem:[#allocation6 + $0x1e8] sm:$0xf0]  ;;  %v1378_v1 = vor.u32 %v1668_v56, %v1375_v57  ;;  %v1381_v2 = vld [vmem:[#allocation6 + $0x148] sm:$0xf]  ;;  %v1438_v6 = vor.u32 %v1682_v60, %v1435_v61 }
  0x2b   :  { %818 = vmatpush.bf16.msra.mxu3 %v1266_v7  ;;  %831 = vmatpush.bf16.msrb.mxu0 %v1270_v13  ;;  %v1675_v3 = vld [vmem:[#allocation6 + $0x178] sm:$0xf0]  ;;  %v1323_v5 = vld [vmem:[#allocation6 + $0x10c] sm:$0xf0]  ;;  %v1442_v7 = vor.u32 %v1689_v63, %v1441_v62  ;;  %v1669_v8 = vld [vmem:[#allocation6 + $0x14c] sm:$0xf] }
  0x2c   :  { %v1383_v9 = vld [vmem:[#allocation6 + $0x17c] sm:$0xf0]  ;;  %v1389_v10 = vld [vmem:[#allocation6 + $0x150] sm:$0xf]  ;;  %v1662_v15 = vld [vmem:[#allocation6 + $0x110] sm:$0xf0] }
  0x2d   :  { %v1329_v14 = vld [vmem:[#allocation6 + $0xe0] sm:$0xf]  ;;  %v1642_v16 = vld [vmem:[#allocation6 + $0x74] sm:$0xf]  ;;  %v1271_v17 = vld [vmem:[#allocation6 + $0xa4] sm:$0xf0]  ;;  %v1386_v18 = vor.u32 %v1669_v8, %v1383_v9 }
  0x2e   :  { %806 = vmatpush.bf16.msra.mxu2 %v1210_v22  ;;  %v1337_v22 = vld [vmem:[#allocation6 + $0xe8] sm:$0xf]  ;;  %v1663_v23 = vld [vmem:[#allocation6 + $0x118] sm:$0xf0]  ;;  %v1330_v24 = vor.u32 %v1662_v15, %v1329_v14  ;;  %v1722_v30 = vld [vmem:[#allocation6 + $0x2f4] sm:$0xf] }
  0x2f   :  { %819 = vmatpush.bf16.msra.mxu3 %v1214_v25  ;;  %832 = vmatpush.bf16.msrb.mxu0 %v1218_v28  ;;  %v1274_v25 = vor.u32 %v1642_v16, %v1271_v17  ;;  %v1338_v29 = vor.u32 %v1663_v23, %v1337_v22  ;;  %v1599_v31 = vld [vmem:[#allocation6 + $0x324] sm:$0xf0]  ;;  %v1547_v35 = vld [vmem:[#allocation6 + $0x2bc] sm:$0xf0]  ;;  %v1696_v37 = vld [vmem:[#allocation6 + $0x224] sm:$0xf] }
  0x30   :  { %v1495_v38 = vld [vmem:[#allocation6 + $0x254] sm:$0xf0]  ;;  %v1670_v43 = vld [vmem:[#allocation6 + $0x154] sm:$0xf]  ;;  %v1391_v44 = vld [vmem:[#allocation6 + $0x184] sm:$0xf0] }
  0x31   :  { %v1394_v45 = vor.u32 %v1670_v43, %v1391_v44  ;;  %v1277_v49 = vld [vmem:[#allocation6 + $0x78] sm:$0xf]  ;;  %v1649_v50 = vld [vmem:[#allocation6 + $0xa8] sm:$0xf0]  ;;  %v1285_v54 = vld [vmem:[#allocation6 + $0x80] sm:$0xf] }
  0x32   :  { %851 = vmatpush.bf16.msrb.mxu2 %v1590_v26  ;;  %v1629_v26 = vld [vmem:[#allocation6 + $0xc] sm:$0xf]  ;;  %v1278_v51 = vor.u32 %v1649_v50, %v1277_v49  ;;  %v1650_v56 = vld [vmem:[#allocation6 + $0xb0] sm:$0xf0]  ;;  %v1644_v57 = vld [vmem:[#allocation6 + $0x84] sm:$0xf] }
  0x33   :  { %864 = vmatpush.bf16.msrb.mxu3 %v1594_v33  ;;  %877 = vmatpush.bf16.msra.mxu0 %v1598_v34  ;;  %v1602_v33 = vor.u32 %v1722_v30, %v1599_v31  ;;  %v1709_v34 = vld [vmem:[#allocation6 + $0x28c] sm:$0xf]  ;;  %v1225_v61 = vld [vmem:[#allocation6 + $0x10] sm:$0xf]  ;;  %v1636_v62 = vld [vmem:[#allocation6 + $0x40] sm:$0xf0] }
  0x34   :  { %v1550_v36 = vor.u32 %v1709_v34, %v1547_v35  ;;  %v1226_v63 = vor.u32 %v1636_v62, %v1225_v61  ;;  %v1739_v9 = vld [vmem:[%s1950_s4] ss:$0 sm:$0xff]  ;;  %v1723_v14 = vld [vmem:[#allocation6 + $0x2fc] sm:$0xf]  ;;  %v1613_v16 = vld [vmem:[#allocation6 + $0x300] sm:$0xf] }
  0x35   :  { %v1607_v15 = vld [vmem:[#allocation6 + $0x32c] sm:$0xf0]  ;;  %v1730_v17 = vld [vmem:[#allocation6 + $0x330] sm:$0xf0]  ;;  %v1561_v30 = vld [vmem:[#allocation6 + $0x298] sm:$0xf] }
  0x36   :  { %852 = vmatpush.bf16.msrb.mxu2 %v1538_v40  ;;  %v1683_v40 = vld [vmem:[#allocation6 + $0x1bc] sm:$0xf]  ;;  %v1610_v23 = vor.u32 %v1723_v14, %v1607_v15  ;;  %v1717_v31 = vld [vmem:[#allocation6 + $0x2c8] sm:$0xf0]  ;;  %v1509_v43 = vld [vmem:[#allocation6 + $0x230] sm:$0xf] }
  0x37   :  { %865 = vmatpush.bf16.msrb.mxu3 %v1542_v46  ;;  %878 = vmatpush.bf16.msra.mxu0 %v1546_v47  ;;  %v1657_v46 = vld [vmem:[#allocation6 + $0xec] sm:$0xf]  ;;  %v1339_v47 = vld [vmem:[#allocation6 + $0x11c] sm:$0xf0]  ;;  %v1704_v44 = vld [vmem:[#allocation6 + $0x260] sm:$0xf0] }
  0x38   :  { %v1342_v48 = vor.u32 %v1657_v46, %v1339_v47  ;;  %v1511_v46 = vld [vmem:[#allocation6 + $0x264] sm:$0xf0]  ;;  %v1449_v49 = vld [vmem:[#allocation6 + $0x1c0] sm:$0xf]  ;;  %v1690_v50 = vld [vmem:[#allocation6 + $0x1f0] sm:$0xf0] }
  0x39   :  { %v1397_v61 = vld [vmem:[#allocation6 + $0x158] sm:$0xf]  ;;  %v1677_v62 = vld [vmem:[#allocation6 + $0x188] sm:$0xf0]  ;;  %v1347_v14 = vld [vmem:[#allocation6 + $0x124] sm:$0xf0] }
  0x3a   :  { %853 = vmatpush.bf16.msrb.mxu2 %v1486_v52  ;;  %v1643_v52 = vld [vmem:[#allocation6 + $0x7c] sm:$0xf]  ;;  %v1353_v15 = vld [vmem:[#allocation6 + $0xf8] sm:$0xf] }
  0x3b   :  { %866 = vmatpush.bf16.msrb.mxu3 %v1490_v58  ;;  %879 = vmatpush.bf16.msra.mxu0 %v1494_v59  ;;  %v1287_v58 = vld [vmem:[#allocation6 + $0xb4] sm:$0xf0]  ;;  %v1286_v59 = vor.u32 %v1650_v56, %v1285_v54  ;;  %v1691_v56 = vld [vmem:[#allocation6 + $0x1f8] sm:$0xf0] }
  0x3c   :  { %v1290_v60 = vor.u32 %v1644_v57, %v1287_v58  ;;  %v1451_v54 = vld [vmem:[#allocation6 + $0x1f4] sm:$0xf0]  ;;  %v1685_v57 = vld [vmem:[#allocation6 + $0x1cc] sm:$0xf]  ;;  %v1459_v58 = vld [vmem:[#allocation6 + $0x1fc] sm:$0xf0] }
  0x3e   :  { %854 = vmatpush.bf16.msrb.mxu2 %v1434_v0  ;;  %v1630_v0 = vld [vmem:[#allocation6 + $0x14] sm:$0xf] }
  0x3f   :  { %867 = vmatpush.bf16.msrb.mxu3 %v1438_v6  ;;  %880 = vmatpush.bf16.msra.mxu0 %v1442_v7  ;;  %v1235_v6 = vld [vmem:[#allocation6 + $0x4c] sm:$0xf0] }
  0x43   :  { %868 = vmatpush.bf16.msrb.mxu3 %v1386_v18 }
  0x8f   :  { %v95_v4 = vpop.f32.mrf.mxu0 }
  0x90   :  { %v101_v11 = vpack.c.bf16 %v95_v4, %v95_v4  ;;  %v1655_v4 = vld [vmem:[#allocation6 + $0xdc] sm:$0xf] }
  0x91   :  { %v1326_v13 = vor.u32 %v1655_v4, %v1323_v5  ;;  %v1637_v4 = vld [vmem:[#allocation6 + $0x48] sm:$0xf0]  ;;  %v1631_v5 = vld [vmem:[#allocation6 + $0x1c] sm:$0xf] }
  0x92   :  { %v112_v20 = vsel %vm110_vm1, %v101_v11, 0  ;;  %v1676_v11 = vld [vmem:[#allocation6 + $0x180] sm:$0xf0]  ;;  %v1238_v8 = vor.u32 %v1631_v5, %v1235_v6  ;;  %v1407_v6 = vld [vmem:[#allocation6 + $0x194] sm:$0xf0] }
  0x93   :  { %121 = vmatpush.bf16.msra.mxu1 %v112_v20  ;;  %v1390_v19 = vor.u32 %v1676_v11, %v1389_v10  ;;  %v1656_v20 = vld [vmem:[#allocation6 + $0xe4] sm:$0xf] }
  0x94   :  { %v1672_v5 = vld [vmem:[#allocation6 + $0x164] sm:$0xf] }
  0x95   :  { %881 = vmatpush.bf16.msra.mxu0 %v1390_v19  ;;  %v1724_v19 = vld [vmem:[#allocation6 + $0x304] sm:$0xf] }
  0x96   :  { %1206 = vmatmul.msk.bf16.vlgmr.msra.gmra.mxu1 %vm106_vm2, %v100_v21  ;;  %v1331_v21 = vld [vmem:[#allocation6 + $0x114] sm:$0xf0] }
  0x97   :  { %838 = vmatpush.bf16.msrb.mxu1 %v1586_v12  ;;  %v97_v39 = vpop.f32.mrf.mxu0  ;;  %v1382_v12 = vor.u32 %v1675_v3, %v1381_v2  ;;  %v1334_v28 = vor.u32 %v1656_v20, %v1331_v21  ;;  %v1233_v2 = vld [vmem:[#allocation6 + $0x18] sm:$0xf] }
  0x98   :  { %v1498_v39 = vor.u32 %v1696_v37, %v1495_v38  ;;  %v1234_v7 = vor.u32 %v1637_v4, %v1233_v2  ;;  %v1615_v20 = vld [vmem:[#allocation6 + $0x334] sm:$0xf0]  ;;  %v1501_v37 = vld [vmem:[#allocation6 + $0x228] sm:$0xf]  ;;  %v1703_v38 = vld [vmem:[#allocation6 + $0x258] sm:$0xf0] }
  0x99   :  { %855 = vmatpush.bf16.msrb.mxu2 %v1382_v12  ;;  %869 = vmatpush.bf16.msrb.mxu3 %v1334_v28  ;;  %v1605_v12 = vld [vmem:[#allocation6 + $0x2f8] sm:$0xf]  ;;  %v1710_v28 = vld [vmem:[#allocation6 + $0x294] sm:$0xf]  ;;  %v1502_v47 = vor.u32 %v1703_v38, %v1501_v37  ;;  %v1399_v2 = vld [vmem:[#allocation6 + $0x18c] sm:$0xf0] }
  0x9a   :  { %882 = vmatpush.bf16.msra.mxu0 %v1338_v29  ;;  %v1555_v29 = vld [vmem:[#allocation6 + $0x2c4] sm:$0xf0]  ;;  %v1678_v4 = vld [vmem:[#allocation6 + $0x190] sm:$0xf0]  ;;  %v1632_v38 = vld [vmem:[#allocation6 + $0x24] sm:$0xf] }
  0x9b   :  { %839 = vmatpush.bf16.msrb.mxu1 %v1534_v27  ;;  %v1219_v27 = vld [vmem:[#allocation6 + $0x3c] sm:$0xf0] }
  0x9c   :  { %v1222_v32 = vor.u32 %v1629_v26, %v1219_v27  ;;  %v1614_v26 = vor.u32 %v1730_v17, %v1613_v16  ;;  %v1618_v27 = vor.u32 %v1724_v19, %v1615_v20  ;;  %v1665_v16 = vld [vmem:[#allocation6 + $0x128] sm:$0xf0]  ;;  %v1659_v17 = vld [vmem:[#allocation6 + $0xfc] sm:$0xf] }
  0x9d   :  { %856 = vmatpush.bf16.msrb.mxu2 %v1330_v24  ;;  %v1553_v24 = vld [vmem:[#allocation6 + $0x290] sm:$0xf] }
  0x9e   :  { %883 = vmatpush.bf16.msra.mxu0 %v1286_v59  ;;  %v1450_v59 = vor.u32 %v1690_v50, %v1449_v49 }
  0x9f   :  { %840 = vmatpush.bf16.msrb.mxu1 %v1482_v41  ;;  %v1443_v41 = vld [vmem:[#allocation6 + $0x1ec] sm:$0xf0] }
  0xa0   :  { %v1446_v42 = vor.u32 %v1683_v40, %v1443_v41  ;;  %v1697_v41 = vld [vmem:[#allocation6 + $0x22c] sm:$0xf] }
  0xa1   :  { %857 = vmatpush.bf16.msrb.mxu2 %v1278_v51  ;;  %v1510_v51 = vor.u32 %v1704_v44, %v1509_v43  ;;  %v1251_v43 = vld [vmem:[#allocation6 + $0x5c] sm:$0xf0]  ;;  %v1621_v44 = vld [vmem:[#allocation6 + $0x308] sm:$0xf] }
  0xa2   :  { %884 = vmatpush.bf16.msra.mxu0 %v1234_v7  ;;  %v1398_v7 = vor.u32 %v1677_v62, %v1397_v61  ;;  %v1679_v61 = vld [vmem:[#allocation6 + $0x198] sm:$0xf0] }
  0xa3   :  { %841 = vmatpush.bf16.msrb.mxu1 %v1430_v53  ;;  %v1279_v53 = vld [vmem:[#allocation6 + $0xac] sm:$0xf0] }
  0xa4   :  { %v1282_v55 = vor.u32 %v1643_v52, %v1279_v53  ;;  %v1684_v53 = vld [vmem:[#allocation6 + $0x1c4] sm:$0xf] }
  0xa5   :  { %858 = vmatpush.bf16.msrb.mxu2 %v1226_v63 }
  0xa6   :  { %870 = vmatpush.bf16.msrb.mxu3 %v1282_v55  ;;  %v1457_v55 = vld [vmem:[#allocation6 + $0x1c8] sm:$0xf] }
  0xa7   :  { %842 = vmatpush.bf16.msrb.mxu1 %v1378_v1  ;;  %v1227_v1 = vld [vmem:[#allocation6 + $0x44] sm:$0xf0]  ;;  %v1458_v63 = vor.u32 %v1691_v56, %v1457_v55  ;;  %v1705_v55 = vld [vmem:[#allocation6 + $0x268] sm:$0xf0] }
  0xa8   :  { %v1230_v3 = vor.u32 %v1630_v0, %v1227_v1  ;;  %v1462_v0 = vor.u32 %v1685_v57, %v1459_v58  ;;  %v1671_v1 = vld [vmem:[#allocation6 + $0x15c] sm:$0xf]  ;;  %v1465_v57 = vld [vmem:[#allocation6 + $0x1d0] sm:$0xf]  ;;  %v1692_v58 = vld [vmem:[#allocation6 + $0x200] sm:$0xf0] }
  0xaa   :  { %871 = vmatpush.bf16.msrb.mxu3 %v1230_v3  ;;  %v1405_v3 = vld [vmem:[#allocation6 + $0x160] sm:$0xf] }
  0xab   :  { %843 = vmatpush.bf16.msrb.mxu1 %v1326_v13  ;;  %v1729_v13 = vld [vmem:[#allocation6 + $0x328] sm:$0xf0] }
  0xac   :  { %v1606_v22 = vor.u32 %v1729_v13, %v1605_v12  ;;  %v1410_v12 = vor.u32 %v1672_v5, %v1407_v6  ;;  %v1658_v13 = vld [vmem:[#allocation6 + $0xf4] sm:$0xf]  ;;  %v1257_v5 = vld [vmem:[#allocation6 + $0x30] sm:$0xf]  ;;  %v1640_v6 = vld [vmem:[#allocation6 + $0x60] sm:$0xf0] }
  0xad   :  { %v1350_v20 = vor.u32 %v1658_v13, %v1347_v14  ;;  %v241_v14 = vld [vmem:[%s1952_s6] sm:$0xff] }
  0xaf   :  { %844 = vmatpush.bf16.msrb.mxu1 %v1274_v25  ;;  %v1716_v25 = vld [vmem:[#allocation6 + $0x2c0] sm:$0xf0] }
  0xb0   :  { %v1554_v35 = vor.u32 %v1716_v25, %v1553_v24  ;;  %v1354_v24 = vor.u32 %v1665_v16, %v1353_v15 }
  0xb3   :  { %845 = vmatpush.bf16.msrb.mxu1 %v1222_v32  ;;  %v1711_v32 = vld [vmem:[#allocation6 + $0x29c] sm:$0xf] }
  0xb7   :  { %890 = vmatpush.bf16.msra.mxu1 %v1602_v33  ;;  %v1563_v33 = vld [vmem:[#allocation6 + $0x2cc] sm:$0xf0] }
  0xb8   :  { %v1566_v40 = vor.u32 %v1711_v32, %v1563_v33 }
  0xbb   :  { %891 = vmatpush.bf16.msra.mxu1 %v1550_v36  ;;  %v1558_v36 = vor.u32 %v1710_v28, %v1555_v29  ;;  %v1301_v28 = vld [vmem:[#allocation6 + $0x90] sm:$0xf]  ;;  %v1652_v29 = vld [vmem:[#allocation6 + $0xc0] sm:$0xf0] }
  0xbf   :  { %892 = vmatpush.bf16.msra.mxu1 %v1498_v39  ;;  %v1562_v39 = vor.u32 %v1717_v31, %v1561_v30  ;;  %v1646_v30 = vld [vmem:[#allocation6 + $0x94] sm:$0xf]  ;;  %v1303_v31 = vld [vmem:[#allocation6 + $0xc4] sm:$0xf0] }
  0xc0   :  { %v1306_v37 = vor.u32 %v1646_v30, %v1303_v31  ;;  %v246_v30 = vperm.slane %v241_v14, 1 }
  0xc3   :  { %893 = vmatpush.bf16.msra.mxu1 %v1446_v42  ;;  %v1503_v42 = vld [vmem:[#allocation6 + $0x25c] sm:$0xf0] }
  0xc7   :  { %894 = vmatpush.bf16.msra.mxu1 %v1394_v45  ;;  %v1698_v45 = vld [vmem:[#allocation6 + $0x234] sm:$0xf] }
  0xc8   :  { %v1514_v52 = vor.u32 %v1698_v45, %v1511_v46  ;;  %v1731_v45 = vld [vmem:[#allocation6 + $0x338] sm:$0xf0] }
  0xc9   :  { %v1622_v50 = vor.u32 %v1731_v45, %v1621_v44 }
  0xcb   :  { %895 = vmatpush.bf16.msra.mxu1 %v1342_v48  ;;  %v1506_v48 = vor.u32 %v1697_v41, %v1503_v42  ;;  %v1639_v41 = vld [vmem:[#allocation6 + $0x58] sm:$0xf0]  ;;  %v1633_v42 = vld [vmem:[#allocation6 + $0x2c] sm:$0xf] }
  0xcc   :  { %v1254_v49 = vor.u32 %v1633_v42, %v1251_v43 }
  0xcf   :  { %896 = vmatpush.bf16.msra.mxu1 %v1290_v60  ;;  %v1454_v60 = vor.u32 %v1684_v53, %v1451_v54  ;;  %v1517_v54 = vld [vmem:[#allocation6 + $0x238] sm:$0xf] }
  0xd0   :  { %v1518_v56 = vor.u32 %v1705_v55, %v1517_v54 }
  0xd3   :  { %897 = vmatpush.bf16.msra.mxu1 %v1238_v8  ;;  %v1402_v8 = vor.u32 %v1671_v1, %v1399_v2  ;;  %v1309_v2 = vld [vmem:[#allocation6 + $0x98] sm:$0xf] }
 0x113   :  { %v123_v10 = vpop.f32.mrf.mxu1 }
 0x114   :  { %v124_v11 = vadd.f32 %v1739_v9, %v123_v10  ;;  %v1345_v9 = vld [vmem:[#allocation6 + $0xf0] sm:$0xf]  ;;  %v1664_v10 = vld [vmem:[#allocation6 + $0x120] sm:$0xf0] }
 0x115   :  { %v1346_v19 = vor.u32 %v1664_v10, %v1345_v9 }
 0x116   :  { %v127_v18 = vmax.f32 %v124_v11, 0.0  ;;  %v1406_v11 = vor.u32 %v1678_v4, %v1405_v3  ;;  %v1653_v3 = vld [vmem:[#allocation6 + $0xc8] sm:$0xf0] }
 0x117   :  { %v1310_v4 = vor.u32 %v1653_v3, %v1309_v2 }
 0x118   :  { %v1896_v21 = vpack.c.bf16 %v127_v18, %v127_v18  ;;  %v1355_v18 = vld [vmem:[#allocation6 + $0x12c] sm:$0xf0] }
 0x119   :  { %v1358_v25 = vor.u32 %v1659_v17, %v1355_v18  ;;  %v251_v17 = vperm.slane %v241_v14, 6  ;;  %v252_v18 = vperm.slane %v241_v14, 7 }
 0x11a   :  { %807 = vmatmul.bf16.vlgmr.msra.gmra.mxu2 %v1896_v21  ;;  %820 = vmatmul.bf16.vlgmr.msra.gmra.mxu3 %v1896_v21 }
 0x11b   :  { %833 = vmatmul.bf16.vlgmr.msrb.gmra.mxu0 %v1896_v21  ;;  %846 = vmatmul.bf16.vlgmr.msrb.gmra.mxu1 %v1896_v21  ;;  %v125_v34 = vpop.f32.mrf.mxu1 }
 0x11c   :  { %903 = vmatpush.bf16.msra.mxu2 %v1606_v22  ;;  %916 = vmatpush.bf16.msra.mxu3 %v1610_v23  ;;  %v1293_v22 = vld [vmem:[#allocation6 + $0x88] sm:$0xf]  ;;  %v1651_v23 = vld [vmem:[#allocation6 + $0xb8] sm:$0xf0]  ;;  %v1241_v34 = vld [vmem:[#allocation6 + $0x20] sm:$0xf] }
 0x11d   :  { %929 = vmatpush.bf16.msrb.mxu0 %v1614_v26  ;;  %942 = vmatpush.bf16.msrb.mxu1 %v1618_v27  ;;  %v1645_v26 = vld [vmem:[#allocation6 + $0x8c] sm:$0xf]  ;;  %v1295_v27 = vld [vmem:[#allocation6 + $0xbc] sm:$0xf0]  ;;  %v1294_v32 = vor.u32 %v1651_v23, %v1293_v22 }
 0x11e   :  { %v1298_v33 = vor.u32 %v1645_v26, %v1295_v27  ;;  %v249_v27 = vperm.slane %v241_v14, 4 }
 0x120   :  { %904 = vmatpush.bf16.msra.mxu2 %v1554_v35  ;;  %917 = vmatpush.bf16.msra.mxu3 %v1558_v36  ;;  %v1638_v35 = vld [vmem:[#allocation6 + $0x50] sm:$0xf0]  ;;  %v1302_v36 = vor.u32 %v1652_v29, %v1301_v28  ;;  %v250_v28 = vperm.slane %v241_v14, 5  ;;  %v245_v29 = vperm.slane %v241_v14, 0 }
 0x121   :  { %930 = vmatpush.bf16.msrb.mxu0 %v1562_v39  ;;  %943 = vmatpush.bf16.msrb.mxu1 %v1566_v40  ;;  %v1243_v39 = vld [vmem:[#allocation6 + $0x54] sm:$0xf0]  ;;  %v1249_v40 = vld [vmem:[#allocation6 + $0x28] sm:$0xf]  ;;  %v1242_v46 = vor.u32 %v1638_v35, %v1241_v34 }
 0x124   :  { %905 = vmatpush.bf16.msra.mxu2 %v1502_v47  ;;  %918 = vmatpush.bf16.msra.mxu3 %v1506_v48  ;;  %v1246_v47 = vor.u32 %v1632_v38, %v1243_v39  ;;  %v1250_v48 = vor.u32 %v1639_v41, %v1249_v40 }
 0x125   :  { %931 = vmatpush.bf16.msrb.mxu0 %v1510_v51  ;;  %944 = vmatpush.bf16.msrb.mxu1 %v1514_v52  ;;  %v1569_v51 = vld [vmem:[#allocation6 + $0x2a0] sm:$0xf]  ;;  %v1718_v52 = vld [vmem:[#allocation6 + $0x2d0] sm:$0xf0] }
 0x126   :  { %v1570_v53 = vor.u32 %v1718_v52, %v1569_v51 }
 0x128   :  { %906 = vmatpush.bf16.msra.mxu2 %v1450_v59  ;;  %919 = vmatpush.bf16.msra.mxu3 %v1454_v60  ;;  %v1466_v59 = vor.u32 %v1692_v58, %v1465_v57  ;;  %v1413_v60 = vld [vmem:[#allocation6 + $0x168] sm:$0xf] }
 0x129   :  { %932 = vmatpush.bf16.msrb.mxu0 %v1458_v63  ;;  %945 = vmatpush.bf16.msrb.mxu1 %v1462_v0  ;;  %v1414_v62 = vor.u32 %v1679_v61, %v1413_v60  ;;  %v1361_v63 = vld [vmem:[#allocation6 + $0x100] sm:$0xf]  ;;  %v1666_v0 = vld [vmem:[#allocation6 + $0x130] sm:$0xf0] }
 0x12a   :  { %859 = vmatmul.bf16.vlgmr.msrb.gmra.mxu2 %v1896_v21  ;;  %872 = vmatmul.bf16.vlgmr.msrb.gmra.mxu3 %v1896_v21  ;;  %v1362_v1 = vor.u32 %v1666_v0, %v1361_v63 }
 0x12b   :  { %885 = vmatmul.bf16.vlgmr.msra.gmra.mxu0 %v1896_v21  ;;  %898 = vmatmul.bf16.vlgmr.msra.gmra.mxu1 %v1896_v21 }
 0x12c   :  { %907 = vmatpush.bf16.msra.mxu2 %v1398_v7  ;;  %920 = vmatpush.bf16.msra.mxu3 %v1402_v8  ;;  %v1258_v7 = vor.u32 %v1640_v6, %v1257_v5 }
 0x12d   :  { %933 = vmatpush.bf16.msrb.mxu0 %v1406_v11  ;;  %946 = vmatpush.bf16.msrb.mxu1 %v1410_v12 }
 0x130   :  { %908 = vmatpush.bf16.msra.mxu2 %v1346_v19  ;;  %921 = vmatpush.bf16.msra.mxu3 %v1350_v20  ;;  %v247_v19 = vperm.slane %v241_v14, 2  ;;  %v248_v20 = vperm.slane %v241_v14, 3 }
 0x131   :  { %934 = vmatpush.bf16.msrb.mxu0 %v1354_v24  ;;  %947 = vmatpush.bf16.msrb.mxu1 %v1358_v25 }
 0x134   :  { %909 = vmatpush.bf16.msra.mxu2 %v1294_v32  ;;  %922 = vmatpush.bf16.msra.mxu3 %v1298_v33 }
 0x135   :  { %935 = vmatpush.bf16.msrb.mxu0 %v1302_v36  ;;  %948 = vmatpush.bf16.msrb.mxu1 %v1306_v37 }
 0x138   :  { %910 = vmatpush.bf16.msra.mxu2 %v1242_v46  ;;  %923 = vmatpush.bf16.msra.mxu3 %v1246_v47  ;;  %v242_v47 = vld [vmem:[%s1952_s6 + $0x8] sm:$0x1f] }
 0x139   :  { %936 = vmatpush.bf16.msrb.mxu0 %v1250_v48  ;;  %949 = vmatpush.bf16.msrb.mxu1 %v1254_v49  ;;  %v255_v52 = vperm.slane %v242_v47, 2  ;;  %v253_v60 = vperm.slane %v242_v47, 0  ;;  %v254_v61 = vperm.slane %v242_v47, 1 }
 0x13b   :  { %911 = vmatmul.bf16.vlgmr.msra.gmra.mxu2 %v1896_v21  ;;  %924 = vmatmul.bf16.vlgmr.msra.gmra.mxu3 %v1896_v21 }
 0x13c   :  { %955 = vmatpush.bf16.msrb.mxu2 %v1622_v50  ;;  %937 = vmatmul.bf16.vlgmr.msrb.gmra.mxu0 %v1896_v21 }
 0x13d   :  { %950 = vmatmul.bf16.vlgmr.msrb.gmra.mxu1 %v1896_v21 }
 0x140   :  { %956 = vmatpush.bf16.msrb.mxu2 %v1570_v53  ;;  %v256_v53 = vperm.slane %v242_v47, 3 }
 0x144   :  { %957 = vmatpush.bf16.msrb.mxu2 %v1518_v56 }
 0x148   :  { %958 = vmatpush.bf16.msrb.mxu2 %v1466_v59 }
 0x14c   :  { %959 = vmatpush.bf16.msrb.mxu2 %v1414_v62 }
 0x150   :  { %960 = vmatpush.bf16.msrb.mxu2 %v1362_v1 }
 0x154   :  { %961 = vmatpush.bf16.msrb.mxu2 %v1310_v4 }
 0x158   :  { %962 = vmatpush.bf16.msrb.mxu2 %v1258_v7 }
 0x15b   :  { %963 = vmatmul.bf16.vlgmr.msrb.gmra.mxu2 %v1896_v21 }
 0x198   :  { %v834_v8 = vpop.f32.mrf.mxu0  ;;  %v847_v9 = vpop.f32.mrf.mxu1 }
 0x199   :  { %v835_v25 = vadd.f32 %v834_v8, %v247_v19  ;;  %v848_v26 = vadd.f32 %v847_v9, %v248_v20  ;;  %v974_v20 = vld [vmem:[%s1948_s2] sm:$0xff] }
 0x19a   :  { %vm989_vm3 = vcmp.gt.f32.partialorder %v974_v20, 0.0 }
 0x19b   :  { %v969_v35 = vpack.c.bf16 %v848_v26, %v835_v25 }
 0x19d   :  { %v808_v10 = vpop.f32.mrf.mxu2  ;;  %v821_v11 = vpop.f32.mrf.mxu3  ;;  %v1133_v44 = vunpack.c.h.b16 %v969_v35 }
 0x19e   :  { %v809_v38 = vadd.f32 %v808_v10, %v245_v29  ;;  %v822_v39 = vadd.f32 %v821_v11, %v246_v30 }
 0x19f   :  { %v1134_v51 = vpack.c.b16 %v1133_v44, %v1133_v44 }
 0x1a0   :  { %v836_v12 = vpop.f32.mrf.mxu0  ;;  %v849_v13 = vpop.f32.mrf.mxu1  ;;  %v968_v46 = vpack.c.bf16 %v822_v39, %v809_v38 }
 0x1a2   :  { %v1006_v54 = vunpack.c.h.b16 %v968_v46 }
 0x1a4   :  { %v1007_v59 = vpack.c.b16 %v1006_v54, %v1006_v54 }
 0x1a5   :  { %v810_v15 = vpop.f32.mrf.mxu2  ;;  %v823_v16 = vpop.f32.mrf.mxu3 }
 0x1a6   :  { %v257_v16 = vperm.slane %v242_v47, 4 }
 0x1a8   :  { %v886_v22 = vpop.f32.mrf.mxu0  ;;  %v899_v23 = vpop.f32.mrf.mxu1 }
 0x1a9   :  { %v887_v24 = vadd.f32 %v886_v22, %v251_v17  ;;  %v900_v21 = vadd.f32 %v899_v23, %v252_v18 }
 0x1ab   :  { %v971_v31 = vpack.c.bf16 %v900_v21, %v887_v24 }
 0x1ad   :  { %v1137_v32 = vunpack.c.h.b16 %v971_v31  ;;  %v860_v33 = vpop.f32.mrf.mxu2  ;;  %v873_v34 = vpop.f32.mrf.mxu3 }
 0x1ae   :  { %v861_v36 = vadd.f32 %v860_v33, %v249_v27  ;;  %v874_v37 = vadd.f32 %v873_v34, %v250_v28 }
 0x1af   :  { %v1138_v40 = vpack.c.b16 %v1137_v32, %v1137_v32 }
 0x1b0   :  { %v970_v41 = vpack.c.bf16 %v874_v37, %v861_v36  ;;  %v888_v42 = vpop.f32.mrf.mxu0  ;;  %v901_v43 = vpop.f32.mrf.mxu1 }
 0x1b1   :  { %1147 = vmatpush.bf16.xpose.msra.mxu2 %v1138_v40 }
 0x1b2   :  { %v1010_v45 = vunpack.c.h.b16 %v970_v41  ;;  %982 = vmatpush.bf16.xpose.msrb.mxu3 %v970_v41 }
 0x1b4   :  { %v1011_v48 = vpack.c.b16 %v1010_v45, %v1010_v45 }
 0x1b5   :  { %v862_v49 = vpop.f32.mrf.mxu2  ;;  %v875_v50 = vpop.f32.mrf.mxu3 }
 0x1b6   :  { %1020 = vmatpush.bf16.xpose.msra.mxu0 %v1011_v48 }
 0x1b8   :  { %1148 = vmatmul.bf16.vlgmr.msra.gmra.mxu2 %v1134_v51 }
 0x1b9   :  { %v938_v55 = vpop.f32.mrf.mxu0  ;;  %983 = vmatmul.bf16.vlgmr.msrb.gmra.mxu3 %v968_v46 }
 0x1ba   :  { %v951_v56 = vpop.f32.mrf.mxu1  ;;  %v939_v57 = vadd.f32 %v938_v55, %v255_v52 }
 0x1bb   :  { %v952_v58 = vadd.f32 %v951_v56, %v256_v53 }
 0x1bd   :  { %v973_v62 = vpack.c.bf16 %v952_v58, %v939_v57  ;;  %1021 = vmatmul.bf16.vlgmr.msra.gmra.mxu0 %v1007_v59 }
 0x1be   :  { %1090 = vmatpush.bf16.xpose.msrb.mxu0 %v971_v31  ;;  %v912_v0 = vpop.f32.mrf.mxu2  ;;  %v925_v1 = vpop.f32.mrf.mxu3 }
 0x1bf   :  { %v1170_v63 = vunpack.c.h.b16 %v973_v62  ;;  %v913_v2 = vadd.f32 %v912_v0, %v253_v60  ;;  %v926_v3 = vadd.f32 %v925_v1, %v254_v61  ;;  %v1116_v15 = vsel %vm110_vm1, %v973_v62, 0 }
 0x1c1   :  { %v1171_v4 = vpack.c.b16 %v1170_v63, %v1170_v63  ;;  %v972_v5 = vpack.c.bf16 %v926_v3, %v913_v2  ;;  %v940_v6 = vpop.f32.mrf.mxu0 }
 0x1c2   :  { %v953_v7 = vpop.f32.mrf.mxu1 }
 0x1c3   :  { %v1043_v8 = vunpack.c.h.b16 %v972_v5  ;;  %v1068_v9 = vsel %vm110_vm1, %v972_v5, 0  ;;  %v1176_v10 = vsel %vm110_vm1, %v1171_v4, 0 }
 0x1c4   :  { %1077 = vmatpush.bf16.msra.mxu3 %v1068_v9 }
 0x1c5   :  { %v1044_v11 = vpack.c.b16 %v1043_v8, %v1043_v8 }
 0x1c6   :  { %v914_v12 = vpop.f32.mrf.mxu2  ;;  %v927_v13 = vpop.f32.mrf.mxu3 }
 0x1c7   :  { %v1049_v14 = vsel %vm110_vm1, %v1044_v11, 0 }
 0x1c8   :  { %1185 = vmatpush.bf16.msrb.mxu3 %v1176_v10  ;;  %1058 = vmatpush.bf16.msra.mxu1 %v1049_v14 }
 0x1cc   :  { %1125 = vmatpush.bf16.msrb.mxu1 %v1116_v15 }
 0x1cd   :  { %1091 = vmatmul.bf16.vlgmr.msrb.gmra.mxu0 %v969_v35 }
 0x1de   :  { %v964_v17 = vpop.f32.mrf.mxu2 }
 0x1df   :  { %v1921_v18 = vadd.f32 %v964_v17, %v257_v16 }
 0x1e6   :  { %v966_v19 = vpop.f32.mrf.mxu2 }
 0x23a   :  { %v1022_v22 = vpop.f32.mrf.mxu0 }
 0x23b   :  { %v1149_v23 = vpop.f32.mrf.mxu2  ;;  %v1026_v30 = vmul.f32 0.088388346, %v1022_v22 }
 0x23c   :  { %v1153_v24 = vmul.f32 0.088388346, %v1149_v23  ;;  %v984_v21 = vpop.f32.mrf.mxu3 }
 0x23d   :  { %v988_v25 = vmul.f32 0.088388346, %v984_v21  ;;  %v1027_v34 = vsel %vm989_vm3, %v1026_v30, -1e+30 }
 0x23e   :  { %v1154_v26 = vsel %vm989_vm3, %v1153_v24, -1e+30  ;;  %v1028_v35 = vsel %vm106_vm2, %v1027_v34, -inf }
 0x23f   :  { %v1155_v27 = vsel %vm106_vm2, %v1154_v26, -inf  ;;  %v990_v28 = vsel %vm989_vm3, %v988_v25, -1e+30 }
 0x240   :  { %1156 = vmax.xlane.f32.xlu1 %v1155_v27  ;;  %v991_v29 = vsel %vm106_vm2, %v990_v28, -inf }
 0x241   :  { %992 = vmax.xlane.f32.xlu0 %v991_v29 }
 0x242   :  { %v1024_v31 = vpop.f32.mrf.mxu0 }
 0x243   :  { %v1151_v32 = vpop.f32.mrf.mxu2 }
 0x244   :  { %v986_v33 = vpop.f32.mrf.mxu3 }
 0x249   :  { %1029 = vmax.xlane.f32.xlu0 %v1028_v35 }
 0x24a   :  { %v1092_v36 = vpop.f32.mrf.mxu0 }
 0x24b   :  { %v1096_v37 = vmul.f32 0.088388346, %v1092_v36 }
 0x24d   :  { %v1097_v38 = vsel %vm989_vm3, %v1096_v37, -1e+30 }
 0x24e   :  { %v1098_v39 = vsel %vm106_vm2, %v1097_v38, -inf }
 0x24f   :  { %1099 = vmax.xlane.f32.xlu1 %v1098_v39 }
 0x252   :  { %v1094_v40 = vpop.f32.mrf.mxu0 }
 0x2b3   :  { %v1157_v41 = vpop.xlane.xlu1 %1156 }
 0x2b4   :  { %v1158_v42 = vsub.f32 %v1154_v26, %v1157_v41  ;;  %v993_v43 = vpop.xlane.xlu0 %992 }
 0x2b5   :  { %v994_v44 = vsub.f32 %v990_v28, %v993_v43 }
 0x2b6   :  { %v1159_v45 = vmul.f32 1.442695, %v1158_v42 }
 0x2b7   :  { %v995_v46 = vmul.f32 1.442695, %v994_v44 }
 0x2b8   :  { %1740 = vpow2.f32 %v1159_v45 }
 0x2b9   :  { %1742 = vpow2.f32 %v995_v46 }
 0x2bc   :  { %v1030_v47 = vpop.xlane.xlu0 %1029 }
 0x2bd   :  { %v1031_v48 = vsub.f32 %v1027_v34, %v1030_v47 }
 0x2be   :  { %v1741_v49 = vpop.eup %1740 }
 0x2bf   :  { %v1743_v50 = vpop.eup %1742  ;;  %v1032_v51 = vmul.f32 1.442695, %v1031_v48  ;;  %v1161_v52 = vmul.f32 %v1741_v49, %v974_v20 }
 0x2c0   :  { %v997_v53 = vmul.f32 %v1743_v50, %v974_v20 }
 0x2c1   :  { %1744 = vpow2.f32 %v1032_v51  ;;  %v1162_v54 = vsel %vm106_vm2, %v1161_v52, 0.0 }
 0x2c2   :  { %1163 = vadd.xlane.f32.xlu0 %v1162_v54  ;;  %v1100_v55 = vpop.xlane.xlu1 %1099  ;;  %v998_v56 = vsel %vm106_vm2, %v997_v53, 0.0 }
 0x2c3   :  { %v1101_v57 = vsub.f32 %v1097_v38, %v1100_v55  ;;  %999 = vadd.xlane.f32.xlu2 %v998_v56 }
 0x2c5   :  { %v1102_v58 = vmul.f32 1.442695, %v1101_v57 }
 0x2c7   :  { %v1745_v59 = vpop.eup %1744  ;;  %1746 = vpow2.f32 %v1102_v58 }
 0x2c8   :  { %v1034_v60 = vmul.f32 %v1745_v59, %v974_v20 }
 0x2ca   :  { %v1035_v61 = vsel %vm106_vm2, %v1034_v60, 0.0 }
 0x2cb   :  { %1036 = vadd.xlane.f32.xlu2 %v1035_v61 }
 0x2cd   :  { %v1747_v62 = vpop.eup %1746 }
 0x2ce   :  { %v1104_v63 = vmul.f32 %v1747_v62, %v974_v20 }
 0x2d0   :  { %v1105_v0 = vsel %vm106_vm2, %v1104_v63, 0.0 }
 0x2d1   :  { %1106 = vadd.xlane.f32.xlu1 %v1105_v0 }
 0x335   :  { %v1164_v3 = vpop.xlane.xlu0 %1163 }
 0x336   :  { %v1000_v1 = vpop.xlane.xlu2 %999  ;;  %v1165_v8 = vmax.f32 %v1164_v3, 1e-20 }
 0x337   :  { %v1001_v2 = vmax.f32 %v1000_v1, 1e-20 }
 0x339   :  { %1748 = vrcp.f32 %v1001_v2 }
 0x33e   :  { %v1037_v4 = vpop.xlane.xlu2 %1036 }
 0x33f   :  { %v1749_v5 = vpop.eup %1748  ;;  %v1038_v6 = vmax.f32 %v1037_v4, 1e-20 }
 0x340   :  { %v1003_v7 = vmul.f32 %v1749_v5, %v997_v53 }
 0x341   :  { %1750 = vrcp.f32 %v1038_v6 }
 0x342   :  { %v1004_v9 = vpack.c.bf16 %v1003_v7, %v1003_v7  ;;  %1752 = vrcp.f32 %v1165_v8 }
 0x344   :  { %1624 = vmatmul.msk.bf16.vlgmr.msra.gmra.mxu3 %vm106_vm2, %v1004_v9  ;;  %v1107_v10 = vpop.xlane.xlu1 %1106 }
 0x345   :  { %v1108_v13 = vmax.f32 %v1107_v10, 1e-20 }
 0x347   :  { %v1751_v11 = vpop.eup %1750  ;;  %1754 = vrcp.f32 %v1108_v13 }
 0x348   :  { %v1040_v12 = vmul.f32 %v1751_v11, %v1034_v60  ;;  %v1753_v15 = vpop.eup %1752 }
 0x349   :  { %v1167_v16 = vmul.f32 %v1753_v15, %v1161_v52 }
 0x34a   :  { %v1041_v14 = vpack.c.bf16 %v1040_v12, %v1040_v12 }
 0x34b   :  { %v1168_v17 = vpack.c.bf16 %v1167_v16, %v1167_v16 }
 0x34c   :  { %1623 = vmatmul.msk.bf16.vlgmr.msra.gmra.mxu1 %vm106_vm2, %v1041_v14 }
 0x34d   :  { %v1755_v19 = vpop.eup %1754 }
 0x34e   :  { %v1110_v20 = vmul.f32 %v1755_v19, %v1104_v63 }
 0x350   :  { %v1111_v22 = vpack.c.bf16 %v1110_v20, %v1110_v20 }
 0x354   :  { %1626 = vmatmul.msk.bf16.vlgmr.msrb.gmra.mxu3 %vm106_vm2, %v1168_v17 }
 0x35c   :  { %1625 = vmatmul.msk.bf16.vlgmr.msrb.gmra.mxu1 %vm106_vm2, %v1111_v22 }
 0x3c7   :  { %v1079_v23 = vpop.f32.mrf.mxu3 }
 0x3c9   :  { %v1060_v24 = vpop.f32.mrf.mxu1 }
 0x3ca   :  { %v1080_v27 = vadd.f32 %v1079_v23, %v1060_v24 }
 0x3cf   :  { %v1081_v21 = vpop.f32.mrf.mxu3 }
 0x3d1   :  { %v1062_v25 = vpop.f32.mrf.mxu1 }
 0x3d7   :  { %v1187_v26 = vpop.f32.mrf.mxu3 }
 0x3d9   :  { %v1127_v28 = vpop.f32.mrf.mxu1 }
 0x3da   :  { %v1131_v29 = vadd.f32 %v1127_v28, %v1080_v27 }
 0x3dc   :  { %v1191_v30 = vadd.f32 %v1187_v26, %v1131_v29 }
 0x3de   :  { %v1192_v31 = vmul.f32 0.25, %v1191_v30 }
 0x3df   :  { %v1189_v32 = vpop.f32.mrf.mxu3 }
 0x3e0   :  { %v1193_v33 = vadd.f32 %v1192_v31, %v1921_v18 }
 0x3e1   :  { %v1129_v34 = vpop.f32.mrf.mxu1 }
 0x3e2   :  { %1194 = vst [vmem:[%s1953_s7] sm:$0xff] %v1193_v33 }
 0x3e3   :  { %1199 = vsyncpa [#allocation3], 1 }
 0x3e4   :  { %1200 = vsyncpa [#allocation5], 1 }

// kernel: hstc_gtnn_forward.3
= control target key start
LH: loop header
LB: loop body
LE: loop exit
PB: predicated region body
PF: predicated region fallthrough
CT: control target
= control target key end

     0   :  { %s9451_s0 = inlined_call_operand.vmem [shape: f32[64,48], index: 0, kind: input, shape index: {}]   ;;  %s9452_s1 = inlined_call_operand.vmem [shape: bf16[48,128], index: 1, kind: input, shape index: {}]   ;;  %s9453_s2 = inlined_call_operand.hbm [shape: f32[1,128], index: 2, kind: input, shape index: {}]   ;;  %s9454_s3 = inlined_call_operand.hbm [shape: bf16[2,128,384], index: 3, kind: input, shape index: {}]   ;;  %s9455_s4 = inlined_call_operand.vmem [shape: f32[2,1,384], index: 4, kind: input, shape index: {}]   ;;  %s9456_s5 = inlined_call_operand.vmem [shape: bf16[2,128,128], index: 5, kind: input, shape index: {}]   ;;  %s9457_s6 = inlined_call_operand.hbm [shape: f32[2,1,128], index: 6, kind: input, shape index: {}]   ;;  %s9458_s7 = inlined_call_operand.hbm [shape: f32[2,1,128], index: 7, kind: input, shape index: {}]   ;;  %s9459_s8 = inlined_call_operand.hbm [shape: f32[2,1,128], index: 8, kind: input, shape index: {}]   ;;  %s9460_s9 = inlined_call_operand.vmem [shape: bf16[2,128,2048], index: 9, kind: input, shape index: {}]   ;;  %s9461_s10 = inlined_call_operand.vmem [shape: f32[2,1,2048], index: 10, kind: input, shape index: {}]   ;;  %s9462_s11 = inlined_call_operand.hbm [shape: bf16[2,2048,128], index: 11, kind: input, shape index: {}]   ;;  %s9463_s12 = inlined_call_operand.hbm [shape: f32[2,1,128], index: 12, kind: input, shape index: {}]   ;;  %s9464_s13 = inlined_call_operand.hbm [shape: f32[2,1,128], index: 13, kind: input, shape index: {}]   ;;  %s9465_s14 = inlined_call_operand.hbm [shape: f32[2,1,128], index: 14, kind: input, shape index: {}]   ;;  %s9466_s15 = inlined_call_operand.hbm [shape: f32[1,128], index: 15, kind: input, shape index: {}]   ;;  %s9467_s16 = inlined_call_operand.hbm [shape: f32[1,128], index: 16, kind: input, shape index: {}]   ;;  %s9468_s17 = inlined_call_operand.vmem [shape: f32[8,128], index: 17, kind: input, shape index: {}]   ;;  %s9469_s18 = inlined_call_operand.vmem [shape: bf16[256,128], index: 18, kind: input, shape index: {}]   ;;  %s9470_s19 = inlined_call_operand.hbm [shape: f32[1,128], index: 19, kind: input, shape index: {}]   ;;  %s9471_s20 = inlined_call_operand.vmem [shape: bf16[128,128], index: 20, kind: input, shape index: {}]   ;;  %s9472_s21 = inlined_call_operand.hbm [shape: f32[1,128], index: 21, kind: input, shape index: {}]   ;;  %s9473_s22 = inlined_call_operand.vmem [shape: bf16[128,128], index: 22, kind: input, shape index: {}]   ;;  %s9474_s23 = inlined_call_operand.hbm [shape: f32[1,128], index: 23, kind: input, shape index: {}]   ;;  %s9475_s24 = inlined_call_operand.vmem [shape: f32[8,128], index: 24, kind: output, shape index: {}]  }
   0x1   :  { %9497 = sst [smem:[#allocation50_spill]] %s9451_s0 }
   0x2   :  { %9498 = sst [smem:[#allocation51_spill]] %s9452_s1 }
   0x3   :  { %9499 = sst [smem:[#allocation52_spill]] %s9453_s2 }
   0x4   :  { %9500 = sst [smem:[#allocation53_spill]] %s9454_s3 }
   0x5   :  { %9501 = sst [smem:[#allocation54_spill]] %s9455_s4 }
   0x6   :  { %9502 = sst [smem:[#allocation55_spill]] %s9456_s5 }
   0x7   :  { %9503 = sst [smem:[#allocation56_spill]] %s9457_s6 }
   0x8   :  { %9504 = sst [smem:[#allocation57_spill]] %s9458_s7 }
   0x9   :  { %9505 = sst [smem:[#allocation58_spill]] %s9459_s8 }
   0xa   :  { %9506 = sst [smem:[#allocation59_spill]] %s9460_s9 }
   0xb   :  { %9507 = sst [smem:[#allocation60_spill]] %s9461_s10 }
   0xc   :  { %9508 = sst [smem:[#allocation61_spill]] %s9466_s15 }
   0xd   :  { %9509 = sst [smem:[#allocation62_spill]] %s9467_s16 }
   0xe   :  { %9510 = sst [smem:[#allocation63_spill]] %s9468_s17 }
   0xf   :  { %9511 = sst [smem:[#allocation64_spill]] %s9469_s18 }
  0x10   :  { %9512 = sst [smem:[#allocation65_spill]] %s9470_s19 }
  0x11   :  { %9513 = sst [smem:[#allocation66_spill]] %s9471_s20 }
  0x12   :  { %9514 = sst [smem:[#allocation67_spill]] %s9472_s21 }
  0x13   :  { %9515 = sst [smem:[#allocation68_spill]] %s9473_s22 }
  0x14   :  { %9516 = sst [smem:[#allocation69_spill]] %s9474_s23 }
  0x15   :  { %9517 = sst [smem:[#allocation70_spill]] %s9475_s24 }
  0x16   :  { %29 = vsyncpa [#allocation6], 0 }
  0x17   :  { %30 = vsyncpa [#allocation8], 0 }
  0x18   :  { %32 = vsyncpa [#allocation8 + $0x1], 0 }
  0x19   :  { %33 = vsyncpa [#allocation11], 0 }
  0x1a   :  { %35 = vsyncpa [#allocation11 + $0x1], 0 }
  0x1b   :  { %36 = vsyncpa [#allocation15], 0 }
  0x1c   :  { %38 = vsyncpa [#allocation15 + $0x1], 0 }
  0x1d   :  { %39 = vsyncpa [#allocation18], 0 }
  0x1e   :  { %41 = vsyncpa [#allocation18 + $0x1], 0 }
  0x1f   :  { %42 = vsyncpa [#allocation21], 0 }
  0x20   :  { %43 = vsyncpa [#allocation24], 0 }
  0x21   :  { %44 = vsyncpa [#allocation27], 0  ;;  %s7662_s5 = smov 0   ;;  %s7664_s26 = smov 0  }
  0x22   :  { %s7666_s27 = smov 0   ;;  %s7668_s28 = smov 0  }
  0x23   :  { %s7670_s6 = smov 0   ;;  %s7672_s2 = smov 0  }
  0x24   :  { %s7674_s29 = smov 0   ;;  %s7676_s0 = smov 0  }
  0x25   :  { %s7678_s7 = smov 0   ;;  %s7680_s30 = smov 0  }
  0x26   :  { %s7682_s3 = smov 0  }
  0x27 LB: > { %9518 = sst [smem:[#allocation37_spill]] %s7482_s26  ;;  %s9480_s25 = sadd.s32 4294967295, %s7518_s3   ;;  %s7518_s3 = sphi %s7682_s3, %s50_s3   ;;  %s7514_s30 = sphi %s7680_s30, %s9596_s30   ;;  %s7510_s7 = sphi %s7678_s7, %s9595_s7   ;;  %s7506_s0 = sphi %s7676_s0, %s9594_s0   ;;  %s7502_s29 = sphi %s7674_s29, %s9593_s29   ;;  %s7498_s2 = sphi %s7672_s2, %s9587_s2   ;;  %s7494_s6 = sphi %s7670_s6, %s9592_s6   ;;  %s7490_s28 = sphi %s7668_s28, %s9585_s28   ;;  %s7486_s27 = sphi %s7666_s27, %s9591_s27   ;;  %s7482_s26 = sphi %s7664_s26, %s9590_s26   ;;  %s7478_s5 = sphi %s7662_s5, %s9583_s5  }
  0x28   : > { %9519 = sst [smem:[#allocation38_spill]] %s7494_s6  ;;  %s59_s8 = sadd.s32 1, %s7510_s7 }
  0x29   : > { %9520 = sst [smem:[#allocation39_spill]] %s7498_s2  ;;  %p60_p0 = scmp.ge.s32.totalorder %s59_s8, 4 }
  0x2a   : > { %9521 = sst [smem:[#allocation40_spill]] %s7502_s29  ;;  %s62_s4 = sadd.s32 1, %s7514_s30 }
  0x2b   : > { %9522 = sst [smem:[#allocation41_spill]] %s7506_s0  ;;  %s132_s1 = sadd.s32 1, %s7498_s2 }
  0x2c   : > { %9523 = sst [smem:[#allocation42_spill]] %s7518_s3  ;;  %p139_p1 = scmp.ne.s32.totalorder %s7498_s2, %s7494_s6 }
  0x2d   : > { %s9598_s8 = smov (%p60_p0, %s59_s8), 0  ;;  %s9600_s4 = smov (!%p60_p0, %s62_s4), %s7514_s30 }
  0x2e   : > { %9524 = sst [smem:[#allocation43_spill]] %s9598_s8  ;;  %p140_p2 = scmp.eq.s32.totalorder %s7518_s3, 0 }
  0x2f   : > { %p145_p3 = scmp.ne.s32.totalorder %s7494_s6, %s7490_s28  ;;  %p64_p4 = scmp.ge.s32.totalorder %s9600_s4, 2 }
  0x30   : > { %p7728_p5 = scmp.eq.s32.totalorder %s9480_s25, 0  ;;  %p7734_p6 = por %p140_p2, %p139_p1 }
  0x31   : > { %s286_s20 = ssub.s32 %s7510_s7, %s9598_s8  ;;  %s9602_s4 = smov (%p64_p4, %s9600_s4), 0 }
  0x32   : > { %s9525_s24 = scalar_select %p7728_p5, 1, 0 }
  0x33   : > { %9528 = sst [smem:[#allocation45_spill]] %s9602_s4  ;;  %p7744_p7 = por %p7728_p5, %p145_p3 }
  0x34   : > { %9526 = sst [smem:[#allocation44_spill]] %s9525_s24  ;;  %s290_s25 = sadd.s32 1, %s7486_s27 }
  0x35   : > { %s9529_s28 = scalar_select %p7744_p7, 1, 0 }
  0x36   : > { %s129_s17 = ssub.s32 %s7514_s30, %s9602_s4  ;;  %p297_p8 = scmp.ne.s32.totalorder %s7486_s27, %s7482_s26 }
  0x37   : > { %9530 = sst [smem:[#allocation46_spill]] %s9529_s28  ;;  %p130_p9 = scmp.eq.s32.totalorder %s129_s17, 0 }
  0x38   : > { %s287_s18 = sor.u32 %s286_s20, %s129_s17  ;;  %p7755_p11 = por %p297_p8, %p140_p2 }
  0x39   : > { %p288_p10 = scmp.eq.s32.totalorder %s287_s18, 0  ;;  %p359_p12 = scmp.ne.s32.totalorder %s7482_s26, %s7478_s5 }
  0x3a   : > { %s7760_s8 = scalar_select %p130_p9, %s7498_s2, %s132_s1  }
  0x3b   : > { %s7763_s29 = scalar_select %p288_p10, %s7486_s27, %s290_s25  }
  0x3c   : > { %9532 = sst [smem:[#allocation47_spill]] %s7760_s8  ;;  %p5847_p13 = scmp.ge.s32.totalorder %s7518_s3, 1 }
  0x3d   : > { %9533 = sst [smem:[#allocation48_spill]] %s7763_s29  ;;  %p658_p0 = scmp.lt.s32.totalorder %s7518_s3, 9 }
  0x3e   : > { %p7771_p1 = por %p359_p12, %p7728_p5  ;;  %s9536_s15 = sld [smem:[#allocation61_spill]] }
  0x3f   : > { %p7778_p2 = pnand %p5847_p13, %p658_p0  ;;  %s9538_s19 = sld [smem:[#allocation65_spill]] }
  0x40   : > { %s9534_s4 = scalar_select %p7771_p1, 1, 0 }
  0x41   : > { %p6666_p3 = pneg %p7778_p2  ;;  %s7520_s8 = smov [#allocation20]  }
  0x42   : > { %9535 = sst [smem:[#allocation49_spill]] %s9534_s4  ;;  %s690_s29 = sshll.u32 %s7520_s8, 4  ;;  %s691_s29 = int_to_ptr.vmem [resolvable:$true] %s690_s29 }
  0x43   : > { %p7789_p4 = pnand %p6666_p3, %p7728_p5  ;;  %s7521_s18 = smov [#allocation23]  }
  0x44   : > { %s688_s20 = sshll.u32 %s9536_s15, 4  ;;  %s720_s15 = sshll.u32 %s7521_s18, 4  ;;  %s689_s20 = int_to_ptr.hbm [resolvable:$true] %s688_s20  ;;  %s721_s15 = int_to_ptr.vmem [resolvable:$true] %s720_s15 }
  0x45   : > { %s718_s5 = sshll.u32 %s9538_s19, 4  ;;  %s9540_s1 = sld [smem:[#allocation52_spill]]  ;;  %s719_s5 = int_to_ptr.hbm [resolvable:$true] %s718_s5 }
  0x46   : > { %6672 = dma.hbm_to_vmem [thread:$0]  (!%p7789_p4), %s689_s20, 16, %s691_s29, [#allocation21]  }
  0x47   : > { %6678 = dma.hbm_to_vmem [thread:$0]  (!%p7789_p4), %s719_s5, 16, %s721_s15, [#allocation24]  }
  0x48   : > { %s7522_s4 = smov [#allocation5]   ;;  %s9541_s16 = sld [smem:[#allocation62_spill]] }
  0x49   : > { %s678_s26 = sshll.u32 %s7522_s4, 4  ;;  %s9542_s21 = sld [smem:[#allocation67_spill]]  ;;  %s679_s26 = int_to_ptr.vmem [resolvable:$true] %s678_s26 }
  0x4a   : > { %s7523_s20 = smov [#allocation22]   ;;  %s7524_s4 = smov [#allocation25]  }
  0x4b   : > { %s676_s19 = sshll.u32 %s9540_s1, 4  ;;  %s702_s5 = sshll.u32 %s7523_s20, 4  ;;  %s677_s19 = int_to_ptr.hbm [resolvable:$true] %s676_s19  ;;  %s703_s5 = int_to_ptr.vmem [resolvable:$true] %s702_s5 }
  0x4c   : > { %6669 = dma.hbm_to_vmem [thread:$0]  (!%p7789_p4), %s677_s19, 16, %s679_s26, [#allocation6]  }
  0x4d   : > { %s735_s25 = sshll.u32 %s7524_s4, 4  ;;  %s9543_s23 = sld [smem:[#allocation69_spill]]  ;;  %s736_s25 = int_to_ptr.vmem [resolvable:$true] %s735_s25 }
  0x4e   : > { %s700_s24 = sshll.u32 %s9541_s16, 4  ;;  %s7525_s19 = smov [#allocation26]   ;;  %s701_s24 = int_to_ptr.hbm [resolvable:$true] %s700_s24 }
  0x4f   : > { %s733_s15 = sshll.u32 %s9542_s21, 4  ;;  %s750_s26 = sshll.u32 %s7525_s19, 4  ;;  %s734_s15 = int_to_ptr.hbm [resolvable:$true] %s733_s15  ;;  %s751_s26 = int_to_ptr.vmem [resolvable:$true] %s750_s26 }
  0x50   : > { %6675 = dma.hbm_to_vmem [thread:$0]  (!%p7789_p4), %s701_s24, 16, %s703_s5, [#allocation21]  }
  0x51   : > { %6681 = dma.hbm_to_vmem [thread:$0]  (!%p7789_p4), %s734_s15, 16, %s736_s25, [#allocation24]  }
  0x52   : > { %p5854_p8 = scmp.ge.s32.totalorder %s7518_s3, 8 }
  0x53   : > { %s748_s28 = sshll.u32 %s9543_s23, 4  ;;  %s7819_s24 = sand.u32 (!%p5854_p8), 1, %s7518_s3   ;;  %s749_s28 = int_to_ptr.hbm [resolvable:$true] %s748_s28 }
  0x54   : > { %6684 = dma.hbm_to_vmem [thread:$0]  (!%p7789_p4), %s749_s28, 16, %s751_s26, [#allocation27]  }
  0x55   : > { %757 = sbr.rel (%p5854_p8) target bundleno = 162 (0xa2), region = 64  ;;  %s7822_s1 = sand.u32 (!%p5854_p8), 1, %s7498_s2  }
  0x56   : > { %s6622_s18 = smul.u32 (!%p5854_p8), 192, %s7822_s1  ;;  %s9544_s20 = sld [smem:[#allocation53_spill]] (!%p5854_p8) }
  0x57   : > { %s6623_s29 = smul.u32 (!%p5854_p8), 192, %s7514_s30  ;;  %s762_s6 = scalar_lea.sflag (!%p5854_p8), [#allocation8], %s7819_s24 }
  0x58   : > { %s765_s4 = scalar_lea.vmem (!%p5854_p8), [#allocation7], %s6622_s18  ;;  %s7526_s28 = smov (!%p5854_p8), 192  }
  0x59   : > { %s773_s25 = sshll.u32 (!%p5854_p8), %s765_s4, 4  ;;  %s7527_s19 = smov (!%p5854_p8), 12   ;;  %s774_s25 = int_to_ptr.vmem [resolvable:$true] %s773_s25 }
  0x5a   : > { %s9545_s21 = sld [smem:[#allocation57_spill]]  ;;  %s818_s18 = scalar_lea.vmem [#allocation10], %s7822_s1 }
  0x5b   : > { %s825_s17 = sshll.u32 %s818_s18, 4  ;;  %s9546_s23 = sld [smem:[#allocation56_spill]]  ;;  %s826_s17 = int_to_ptr.vmem [resolvable:$true] %s825_s17 }
  0x5c   : > { %s770_s5 = scalar_lea.hbm %s9544_s20, %s6623_s29  ;;  %s816_s20 = scalar_lea.sflag [#allocation11], %s7819_s24 }
  0x5d   : > { %s771_s8 = sshll.u32 %s770_s5, 4  ;;  %s835_s18 = scalar_lea.vmem [#allocation12], %s7822_s1  ;;  %s772_s8 = int_to_ptr.hbm [resolvable:$true] %s771_s8 }
  0x5e   : > { %6638 = dma.hbm_to_vmem [thread:$0]  (%p7734_p6), %s772_s8, 3072, %s774_s25, %s762_s6, %s7526_s28, %s7526_s28, %s7527_s19  }
  0x5f   : > { %s801_s8 = scalar_lea.vmem [#allocation9], %s7822_s1  ;;  %s9547_s19 = sld [smem:[#allocation58_spill]] }
  0x60   : > { %s821_s29 = scalar_lea.hbm %s9545_s21, %s7514_s30  ;;  %s808_s28 = sshll.u32 %s801_s8, 4  ;;  %s809_s28 = int_to_ptr.vmem [resolvable:$true] %s808_s28 }
  0x61   : > { %s823_s15 = sshll.u32 %s821_s29, 4  ;;  %s804_s2 = scalar_lea.hbm %s9546_s23, %s7514_s30  ;;  %s824_s15 = int_to_ptr.hbm [resolvable:$true] %s823_s15 }
  0x62   : > { %6640 = dma.hbm_to_vmem [thread:$0]  (%p7734_p6), %s824_s15, 16, %s826_s17, %s816_s20  }
  0x63   : > { %s806_s25 = sshll.u32 %s804_s2, 4  ;;  %s842_s3 = sshll.u32 %s835_s18, 4  ;;  %s807_s25 = int_to_ptr.hbm [resolvable:$true] %s806_s25  ;;  %s843_s3 = int_to_ptr.vmem [resolvable:$true] %s842_s3 }
  0x64   : > { %6639 = dma.hbm_to_vmem [thread:$0]  (%p7734_p6), %s807_s25, 16, %s809_s28, %s762_s6  }
  0x65   : > { %s838_s26 = scalar_lea.hbm %s9547_s19, %s7514_s30  ;;  %848 = sbr.rel (!%p7755_p11) target bundleno = 145 (0x91), region = 92 }
  0x66   : > { %s840_s29 = sshll.u32 %s838_s26, 4  ;;  %s850_s23 = sand.u32 (%p7755_p11), 1, %s7486_s27   ;;  %s841_s29 = int_to_ptr.hbm [resolvable:$true] %s840_s29 }
  0x67   : > { %6641 = dma.hbm_to_vmem [thread:$0]  (%p7734_p6), %s841_s29, 16, %s843_s3, %s816_s20  }
  0x68   : > { %s5857_s2 = sshll.u32 (%p7755_p11), %s7510_s7, 2  ;;  %s5856_s6 = sshll.u32 (%p7755_p11), %s850_s23, 8 }
  0x69   : > { %s5858_s15 = sshll.u32 (%p7755_p11), %s7514_s30, 8  ;;  %s9548_s9 = sld [smem:[#allocation59_spill]] (%p7755_p11) }
  0x6a   : > { %s855_s17 = sadd.s32 %s5858_s15, %s5857_s2  ;;  %s7867_s3 = scalar_lea.vmem [#allocation13], %s5856_s6 }
  0x6b   : > { %s5859_s5 = sshll.u32 %s855_s17, 2 }
  0x6f   : > { %s7862_s8 = scalar_lea.vmem %s9548_s9, %s5859_s5 }
  0x70   : > { %v870_v0 = vld [vmem:[%s7862_s8] sm:$0xff]  ;;  %v872_v1 = vld [vmem:[%s7862_s8 + $0x8] sm:$0xff] }
  0x71   : > { %v874_v2 = vld [vmem:[%s7862_s8 + $0x40] sm:$0xff]  ;;  %871 = vst [vmem:[%s7867_s3] sm:$0xff] %v870_v0  ;;  %v876_v3 = vld [vmem:[%s7862_s8 + $0x48] sm:$0xff] }
  0x72   : > { %873 = vst [vmem:[%s7867_s3 + $0x8] sm:$0xff] %v872_v1  ;;  %v878_v4 = vld [vmem:[%s7862_s8 + $0x80] sm:$0xff]  ;;  %v880_v5 = vld [vmem:[%s7862_s8 + $0x88] sm:$0xff] }
  0x73   : > { %875 = vst [vmem:[%s7867_s3 + $0x10] sm:$0xff] %v874_v2  ;;  %v882_v6 = vld [vmem:[%s7862_s8 + $0xc0] sm:$0xff]  ;;  %v884_v7 = vld [vmem:[%s7862_s8 + $0xc8] sm:$0xff] }
  0x74   : > { %877 = vst [vmem:[%s7867_s3 + $0x18] sm:$0xff] %v876_v3  ;;  %v886_v8 = vld [vmem:[%s7862_s8 + $0x100] sm:$0xff]  ;;  %v888_v9 = vld [vmem:[%s7862_s8 + $0x108] sm:$0xff] }
  0x75   : > { %879 = vst [vmem:[%s7867_s3 + $0x20] sm:$0xff] %v878_v4  ;;  %v890_v10 = vld [vmem:[%s7862_s8 + $0x140] sm:$0xff]  ;;  %v892_v11 = vld [vmem:[%s7862_s8 + $0x148] sm:$0xff] }
  0x76   : > { %881 = vst [vmem:[%s7867_s3 + $0x28] sm:$0xff] %v880_v5  ;;  %v894_v12 = vld [vmem:[%s7862_s8 + $0x180] sm:$0xff]  ;;  %v896_v13 = vld [vmem:[%s7862_s8 + $0x188] sm:$0xff] }
  0x77   : > { %883 = vst [vmem:[%s7867_s3 + $0x30] sm:$0xff] %v882_v6  ;;  %v898_v14 = vld [vmem:[%s7862_s8 + $0x1c0] sm:$0xff]  ;;  %v900_v15 = vld [vmem:[%s7862_s8 + $0x1c8] sm:$0xff] }
  0x78   : > { %885 = vst [vmem:[%s7867_s3 + $0x38] sm:$0xff] %v884_v7  ;;  %v902_v16 = vld [vmem:[%s7862_s8 + $0x200] sm:$0xff]  ;;  %v904_v17 = vld [vmem:[%s7862_s8 + $0x208] sm:$0xff] }
  0x79   : > { %887 = vst [vmem:[%s7867_s3 + $0x40] sm:$0xff] %v886_v8  ;;  %v906_v18 = vld [vmem:[%s7862_s8 + $0x240] sm:$0xff]  ;;  %v908_v19 = vld [vmem:[%s7862_s8 + $0x248] sm:$0xff] }
  0x7a   : > { %889 = vst [vmem:[%s7867_s3 + $0x48] sm:$0xff] %v888_v9  ;;  %v910_v20 = vld [vmem:[%s7862_s8 + $0x280] sm:$0xff]  ;;  %v912_v21 = vld [vmem:[%s7862_s8 + $0x288] sm:$0xff] }
  0x7b   : > { %891 = vst [vmem:[%s7867_s3 + $0x50] sm:$0xff] %v890_v10  ;;  %v914_v22 = vld [vmem:[%s7862_s8 + $0x2c0] sm:$0xff]  ;;  %v916_v23 = vld [vmem:[%s7862_s8 + $0x2c8] sm:$0xff] }
  0x7c   : > { %893 = vst [vmem:[%s7867_s3 + $0x58] sm:$0xff] %v892_v11  ;;  %v918_v24 = vld [vmem:[%s7862_s8 + $0x300] sm:$0xff]  ;;  %v920_v25 = vld [vmem:[%s7862_s8 + $0x308] sm:$0xff] }
  0x7d   : > { %895 = vst [vmem:[%s7867_s3 + $0x60] sm:$0xff] %v894_v12  ;;  %v922_v26 = vld [vmem:[%s7862_s8 + $0x340] sm:$0xff]  ;;  %v924_v27 = vld [vmem:[%s7862_s8 + $0x348] sm:$0xff] }
  0x7e   : > { %897 = vst [vmem:[%s7867_s3 + $0x68] sm:$0xff] %v896_v13  ;;  %v926_v28 = vld [vmem:[%s7862_s8 + $0x380] sm:$0xff]  ;;  %v928_v29 = vld [vmem:[%s7862_s8 + $0x388] sm:$0xff] }
  0x7f   : > { %899 = vst [vmem:[%s7867_s3 + $0x70] sm:$0xff] %v898_v14  ;;  %v930_v30 = vld [vmem:[%s7862_s8 + $0x3c0] sm:$0xff]  ;;  %v932_v31 = vld [vmem:[%s7862_s8 + $0x3c8] sm:$0xff] }
  0x80   : > { %901 = vst [vmem:[%s7867_s3 + $0x78] sm:$0xff] %v900_v15 }
  0x81   : > { %903 = vst [vmem:[%s7867_s3 + $0x80] sm:$0xff] %v902_v16 }
  0x82   : > { %905 = vst [vmem:[%s7867_s3 + $0x88] sm:$0xff] %v904_v17 }
  0x83   : > { %907 = vst [vmem:[%s7867_s3 + $0x90] sm:$0xff] %v906_v18 }
  0x84   : > { %909 = vst [vmem:[%s7867_s3 + $0x98] sm:$0xff] %v908_v19 }
  0x85   : > { %911 = vst [vmem:[%s7867_s3 + $0xa0] sm:$0xff] %v910_v20 }
  0x86   : > { %913 = vst [vmem:[%s7867_s3 + $0xa8] sm:$0xff] %v912_v21 }
  0x87   : > { %915 = vst [vmem:[%s7867_s3 + $0xb0] sm:$0xff] %v914_v22 }
  0x88   : > { %917 = vst [vmem:[%s7867_s3 + $0xb8] sm:$0xff] %v916_v23 }
  0x89   : > { %919 = vst [vmem:[%s7867_s3 + $0xc0] sm:$0xff] %v918_v24 }
  0x8a   : > { %921 = vst [vmem:[%s7867_s3 + $0xc8] sm:$0xff] %v920_v25 }
  0x8b   : > { %923 = vst [vmem:[%s7867_s3 + $0xd0] sm:$0xff] %v922_v26 }
  0x8c   : > { %925 = vst [vmem:[%s7867_s3 + $0xd8] sm:$0xff] %v924_v27 }
  0x8d   : > { %927 = vst [vmem:[%s7867_s3 + $0xe0] sm:$0xff] %v926_v28 }
  0x8e   : > { %929 = vst [vmem:[%s7867_s3 + $0xe8] sm:$0xff] %v928_v29 }
  0x8f   : > { %931 = vst [vmem:[%s7867_s3 + $0xf0] sm:$0xff] %v930_v30 }
  0x90   : > { %933 = vst [vmem:[%s7867_s3 + $0xf8] sm:$0xff] %v932_v31 }
  0x91 PF: > { %s954_s20 = sand.u32 1, %s7486_s27   ;;  %s5861_s16 = sshll.u32 %s7510_s7, 6 }
  0x92   : > { %s5860_s28 = sshll.u32 %s954_s20, 8  ;;  %s5862_s21 = sshll.u32 %s7514_s30, 8 }
  0x93   : > { %s961_s19 = sadd.s32 %s5862_s21, %s5861_s16  ;;  %s956_s26 = scalar_lea.vmem [#allocation14], %s5860_s28 }
  0x94   : > { %s966_s29 = sshll.u32 %s956_s26, 4  ;;  %s5863_s18 = sshll.u32 %s961_s19, 2  ;;  %s967_s29 = int_to_ptr.vmem [resolvable:$true] %s966_s29 }
  0x95   : > { %s963_s6 = scalar_lea.hbm %s9462_s11, %s5863_s18  ;;  %s953_s17 = scalar_lea.sflag [#allocation15], %s7819_s24 }
  0x96   : > { %s964_s15 = sshll.u32 %s963_s6, 4  ;;  %s7528_s5 = smov 64   ;;  %s965_s15 = int_to_ptr.hbm [resolvable:$true] %s964_s15 }
  0x97   : > { %s7529_s4 = smov 4   ;;  %s999_s3 = scalar_lea.hbm %s9464_s13, %s7514_s30 }
  0x98   : > { %6642 = dma.hbm_to_vmem [thread:$0]  (%p7755_p11), %s965_s15, 4096, %s967_s29, %s953_s17, %s7528_s5, %s7528_s5, %s7529_s4  }
  0x99   : > { %s1001_s20 = sshll.u32 %s999_s3, 4  ;;  %s996_s28 = scalar_lea.vmem [#allocation17], %s7822_s1  ;;  %s1002_s20 = int_to_ptr.hbm [resolvable:$true] %s1001_s20 }
  0x9a   : > { %s1003_s16 = sshll.u32 %s996_s28, 4  ;;  %s994_s21 = scalar_lea.sflag [#allocation18], %s7819_s24  ;;  %s1004_s16 = int_to_ptr.vmem [resolvable:$true] %s1003_s16 }
  0x9b   : > { %6644 = dma.hbm_to_vmem [thread:$0]  (%p7734_p6), %s1002_s20, 16, %s1004_s16, %s994_s21  }
  0x9c   : > { %s982_s10 = scalar_lea.hbm %s9463_s12, %s7514_s30  ;;  %s979_s18 = scalar_lea.vmem [#allocation16], %s7822_s1 }
  0x9d   : > { %s984_s29 = sshll.u32 %s982_s10, 4  ;;  %s986_s23 = sshll.u32 %s979_s18, 4  ;;  %s985_s29 = int_to_ptr.hbm [resolvable:$true] %s984_s29  ;;  %s987_s23 = int_to_ptr.vmem [resolvable:$true] %s986_s23 }
  0x9e   : > { %6643 = dma.hbm_to_vmem [thread:$0]  (%p7734_p6), %s985_s29, 16, %s987_s23, %s953_s17  }
  0x9f   : > { %s1016_s15 = scalar_lea.hbm %s9465_s14, %s7514_s30  ;;  %s1013_s4 = scalar_lea.vmem [#allocation19], %s7822_s1 }
  0xa0   : > { %s1018_s5 = sshll.u32 %s1016_s15, 4  ;;  %s1020_s24 = sshll.u32 %s1013_s4, 4  ;;  %s1019_s5 = int_to_ptr.hbm [resolvable:$true] %s1018_s5  ;;  %s1021_s24 = int_to_ptr.vmem [resolvable:$true] %s1020_s24 }
  0xa1   : > { %6645 = dma.hbm_to_vmem [thread:$0]  (%p7734_p6), %s1019_s5, 16, %s1021_s24, %s994_s21  }
  0xa2 PF: > { %1029 = sbr.rel (%p7778_p2) target bundleno = 4738 (0x1282), region = 135 }
  0xa7   : > { %7441 = dma.done.wait (%p7728_p5), [#allocation6], 16  }
  0xa8   : > { %7443 = vsyncadd (%p7728_p5), [#allocation6], 4294967280  ;;  %s9550_s17 = sld [smem:[#allocation42_spill]] }
  0xa9   : > { %s9552_s3 = sld [smem:[#allocation38_spill]] }
  0xae   : > { %s9551_s8 = sadd.s32 4294967295, %s9550_s17  }
  0xaf   : > { %s1036_s1 = sand.u32 1, %s9551_s8   ;;  %s7970_s28 = sand.u32 1, %s9552_s3  }
  0xb0   : > { %s6624_s22 = smul.u32 192, %s7970_s28  ;;  %s1037_s16 = scalar_lea.sflag [#allocation8], %s1036_s1 }
  0xb2   : > { %s7973_s21 = scalar_lea.vmem [#allocation7], %s6624_s22 }
  0xb3   : > { %7445 = dma.done.wait (%p7744_p7), %s1037_s16, 3088  }
  0xb4   : > { %7447 = vsyncadd (%p7744_p7), %s1037_s16, 4294964208  ;;  %s1056_s19 = scalar_lea.sflag [#allocation11], %s1036_s1 }
  0xb5   : > { %7449 = dma.done.wait (%p7744_p7), %s1056_s19, 32  }
  0xb6   : > { %7451 = vsyncadd (%p7744_p7), %s1056_s19, 4294967264  ;;  %s9554_s10 = sld [smem:[#allocation37_spill]]  ;;  %s1081_s15 = scalar_lea.sflag [#allocation15], %s1036_s1 }
  0xbc   : > { %s1074_s18 = sand.u32 1, %s9554_s10  }
  0xbd   : > { %s5866_s23 = sshll.u32 %s1074_s18, 8 }
  0xbe   : > { %s7987_s6 = scalar_lea.vmem [#allocation13], %s5866_s23  ;;  %s7989_s5 = scalar_lea.vmem [#allocation14], %s5866_s23 }
  0xbf   : > { %7453 = dma.done.wait (%p7771_p1), %s1081_s15, 4096  }
  0xc0   : > { %7455 = vsyncadd (%p7771_p1), %s1081_s15, 4294963200 }
  0xc1   : > { %7457 = dma.done.wait (%p7744_p7), %s1081_s15, 16  }
  0xc2   : > { %7459 = vsyncadd (%p7744_p7), %s1081_s15, 4294967280  ;;  %s1100_s24 = scalar_lea.sflag [#allocation18], %s1036_s1 }
  0xc3   : > { %7461 = dma.done.wait (%p7744_p7), %s1100_s24, 32  }
  0xc4   : > { %7463 = vsyncadd (%p7744_p7), %s1100_s24, 4294967264 }
  0xc5   : > { %7465 = dma.done.wait (%p7728_p5), [#allocation21], 32  }
  0xc6   : > { %7467 = vsyncadd (%p7728_p5), [#allocation21], 4294967264 }
  0xc7   : > { %7469 = dma.done.wait (%p7728_p5), [#allocation24], 32  }
  0xc8   : > { %7471 = vsyncadd (%p7728_p5), [#allocation24], 4294967264 }
  0xc9   : > { %7473 = dma.done.wait (%p7728_p5), [#allocation27], 16  }
  0xca   : > { %7475 = vsyncadd (%p7728_p5), [#allocation27], 4294967280  ;;  %s9556_s3 = sld [smem:[#allocation41_spill]] }
  0xcb   : > { %s9557_s20 = sld [smem:[#allocation40_spill]] }
  0xcc   : > { %s9558_s29 = sld [smem:[#allocation55_spill]] }
  0xcd   : > { %s9559_s24 = sld [smem:[#allocation54_spill]] }
  0xce   : > { %s9560_s26 = sld [smem:[#allocation60_spill]] }
  0xd0   : > { %p1247_p6 = scmp.lt.s32.totalorder %s9556_s3, 1  ;;  %p1268_p9 = scmp.eq.s32.totalorder %s9556_s3, 0 }
  0xd1   : > { %s5875_s1 = sshll.u32 %s9557_s20, 2  ;;  %p1269_p5 = scmp.eq.s32.totalorder %s9557_s20, 0 }
  0xd2   : > { %p1260_p7 = scmp.lt.s32.totalorder %s5875_s1, 15  ;;  %s9604_s3 = smov (!%p1247_p6, %s9556_s3), 1 }
  0xd3   : > { %s6625_s22 = smul.u32 3, %s9604_s3  ;;  %s6473_s16 = sshll.u32 %s9604_s3, 6 }
  0xd4   : > { %s9606_s1 = smov (!%p1260_p7, %s5875_s1), 15  ;;  %s8025_s18 = scalar_lea.vmem %s9558_s29, %s6473_s16 }
  0xd5   : > { %s5876_s25 = sshll.u32 %s9604_s3, 4  ;;  %s8030_s8 = scalar_lea.vmem %s9559_s24, %s6625_s22 }
  0xd6   : > { %s8032_s17 = sadd.s32 %s5876_s25, %s9606_s1  ;;  %p1270_p10 = pnand %p1269_p5, %p1268_p9 }
  0xd7   : > { %s1264_s0 = scalar_lea.vmem %s9560_s26, %s8032_s17  ;;  %s9561_s16 = sld [smem:[#allocation51_spill]] (!%p1270_p10) }
  0xd8   : > { %1273 = sbr.rel (%p1270_p10) target bundleno = 380 (0x17c), region = 199  ;;  %s9562_s4 = sld [smem:[#allocation50_spill]] (!%p1270_p10) }
  0xdd   : > { %v6476_v32 = vld [vmem:[%s9561_s16 + $0x10] sm:$0xff]  ;;  %v6475_v33 = vld [vmem:[%s9561_s16 + $0x8] sm:$0xff]  ;;  %v6474_v34 = vld [vmem:[%s9561_s16] sm:$0xff]  ;;  %vm1314_vm0 = vcmask 392192  }
  0xde   : > { %1332 = vmatpush.bf16.msra.mxu0 %v6476_v32  ;;  %6605 = vmatpush.bf16.msra.mxu1 %v6476_v32  ;;  %v1274_v35 = vld [vmem:[%s9562_s4] sm:$0xff]  ;;  %v1275_v36 = vld [vmem:[%s9562_s4 + $0x8] sm:$0xff]  ;;  %v1276_v37 = vld [vmem:[%s9562_s4 + $0x10] sm:$0xff] }
  0xdf   : > { %6606 = vmatpush.bf16.msra.mxu2 %v6476_v32  ;;  %6607 = vmatpush.bf16.msra.mxu3 %v6476_v32  ;;  %v1277_v38 = vld [vmem:[%s9562_s4 + $0x18] sm:$0xff]  ;;  %v1278_v39 = vld [vmem:[%s9562_s4 + $0x20] sm:$0xff]  ;;  %v1279_v40 = vld [vmem:[%s9562_s4 + $0x28] sm:$0xff]  ;;  %v1282_v43 = vpack.c.bf16 %v1275_v36, %v1274_v35 }
  0xe0   : > { %v1280_v41 = vld [vmem:[%s9562_s4 + $0x30] sm:$0xff]  ;;  %v1281_v42 = vld [vmem:[%s9562_s4 + $0x38] sm:$0xff]  ;;  %v1283_v44 = vpack.c.bf16 %v1277_v38, %v1276_v37  ;;  %v1284_v45 = vpack.c.bf16 %v1279_v40, %v1278_v39  ;;  %v6802_v47 = vld [vmem:[#allocation5] ss:$0 sm:$0xff] }
  0xe1   : > { %v1285_v46 = vpack.c.bf16 %v1281_v42, %v1280_v41 }
  0xe2   : > { %1333 = vmatpush.bf16.msra.mxu0 %v6475_v33  ;;  %6608 = vmatpush.bf16.msra.mxu1 %v6475_v33 }
  0xe3   : > { %6609 = vmatpush.bf16.msra.mxu2 %v6475_v33  ;;  %6610 = vmatpush.bf16.msra.mxu3 %v6475_v33 }
  0xe6   : > { %1334 = vmatpush.bf16.msra.mxu0 %v6474_v34  ;;  %6611 = vmatpush.bf16.msra.mxu1 %v6474_v34 }
  0xe7   : > { %6612 = vmatpush.bf16.msra.mxu2 %v6474_v34  ;;  %6613 = vmatpush.bf16.msra.mxu3 %v6474_v34 }
  0xe9   : > { %5889 = vmatmul.msk.bf16.vlgmr.msra.gmra.mxu0 %vm1314_vm0, %v1282_v43  ;;  %5890 = vmatmul.msk.bf16.vlgmr.msra.gmra.mxu1 %vm1314_vm0, %v1283_v44 }
  0xea   : > { %5891 = vmatmul.msk.bf16.vlgmr.msra.gmra.mxu2 %vm1314_vm0, %v1284_v45  ;;  %5892 = vmatmul.msk.bf16.vlgmr.msra.gmra.mxu3 %vm1314_vm0, %v1285_v46 }
 0x166   : > { %v1336_v48 = vpop.f32.mrf.mxu0  ;;  %v1341_v49 = vpop.f32.mrf.mxu1 }
 0x167   : > { %v1337_v50 = vadd.f32 %v6802_v47, %v1336_v48  ;;  %v1342_v51 = vadd.f32 %v6802_v47, %v1341_v49 }
 0x169   : > { %v1356_v52 = vmax.f32 %v1337_v50, 0.0  ;;  %v1358_v53 = vmax.f32 %v1342_v51, 0.0 }
 0x16b   : > { %1364 = vst [vmem:[#allocation2 + $0x30] sm:$0xff] %v1356_v52 }
 0x16c   : > { %1366 = vst [vmem:[#allocation2 + $0x18] sm:$0xff] %v1358_v53 }
 0x16d   : > { %v1346_v54 = vpop.f32.mrf.mxu2  ;;  %v1351_v55 = vpop.f32.mrf.mxu3 }
 0x16e   : > { %v1347_v56 = vadd.f32 %v6802_v47, %v1346_v54  ;;  %v1352_v57 = vadd.f32 %v6802_v47, %v1351_v55  ;;  %v1338_v58 = vpop.f32.mrf.mxu0  ;;  %v1343_v59 = vpop.f32.mrf.mxu1 }
 0x16f   : > { %v1339_v60 = vadd.f32 %v6802_v47, %v1338_v58  ;;  %v1344_v61 = vadd.f32 %v6802_v47, %v1343_v59 }
 0x170   : > { %v1360_v62 = vmax.f32 %v1347_v56, 0.0  ;;  %v1362_v63 = vmax.f32 %v1352_v57, 0.0 }
 0x171   : > { %v1357_v0 = vmax.f32 %v1339_v60, 0.0  ;;  %v1359_v1 = vmax.f32 %v1344_v61, 0.0 }
 0x172   : > { %1368 = vst [vmem:[#allocation2 + $0x8] sm:$0xff] %v1360_v62 }
 0x173   : > { %1370 = vst [vmem:[#allocation2 + $0x28] sm:$0xff] %v1362_v63 }
 0x174   : > { %1365 = vst [vmem:[#allocation2] sm:$0xff] %v1357_v0 }
 0x175   : > { %1367 = vst [vmem:[#allocation2 + $0x10] sm:$0xff] %v1359_v1  ;;  %v1348_v2 = vpop.f32.mrf.mxu2  ;;  %v1353_v3 = vpop.f32.mrf.mxu3 }
 0x176   : > { %v1349_v4 = vadd.f32 %v6802_v47, %v1348_v2  ;;  %v1354_v5 = vadd.f32 %v6802_v47, %v1353_v3 }
 0x178   : > { %v1361_v6 = vmax.f32 %v1349_v4, 0.0  ;;  %v1363_v7 = vmax.f32 %v1354_v5, 0.0 }
 0x17a   : > { %1369 = vst [vmem:[#allocation2 + $0x20] sm:$0xff] %v1361_v6 }
 0x17b   : > { %1371 = vst [vmem:[#allocation2 + $0x38] sm:$0xff] %v1363_v7 }
 0x17c PF: > { %s9563_s20 = sld [smem:[#allocation40_spill]] }
 0x182   : > { %p5893_p11 = scmp.ne.s32.totalorder %s9563_s20, 0 }
 0x183   : > { %s7532_s29 = smov (!%p5893_p11), 32   ;;  %s9565_s9 = scalar_lea.vmem (!%p5893_p11), [#allocation10], %s7970_s28 }
 0x184   : > { %1374 = sbr.rel (%p5893_p11) target bundleno = 3326 (0xcfe), region = 203  ;;  %s9566_s25 = scalar_lea.vmem (!%p5893_p11), [#allocation12], %s7970_s28 }
 0x189   : > { %v5980_v8 = vld [vmem:[%s7973_s21 + $0xa8] sm:$0xf]  ;;  %v6499_v9 = vld [vmem:[%s7973_s21 + $0xb0] sm:$0xf0]  ;;  %v6498_v10 = vld [vmem:[%s7973_s21 + $0xac] sm:$0xf] }
 0x18a   : > { %v5981_v11 = vor.u32 %v6499_v9, %v5980_v8  ;;  %v5982_v12 = vld [vmem:[%s7973_s21 + $0xb4] sm:$0xf0]  ;;  %v5968_v13 = vld [vmem:[%s7973_s21 + $0x90] sm:$0xf]  ;;  %v6496_v14 = vld [vmem:[%s7973_s21 + $0x98] sm:$0xf0] }
 0x18b   : > { %v5985_v15 = vor.u32 %v6498_v10, %v5982_v12  ;;  %v6495_v16 = vld [vmem:[%s7973_s21 + $0x94] sm:$0xf]  ;;  %v5970_v17 = vld [vmem:[%s7973_s21 + $0x9c] sm:$0xf0]  ;;  %v5969_v18 = vor.u32 %v6496_v14, %v5968_v13  ;;  %v5956_v20 = vld [vmem:[%s7973_s21 + $0x78] sm:$0xf] }
 0x18c   : > { %1555 = vmatpush.bf16.msra.mxu0 %v5981_v11  ;;  %v5973_v19 = vor.u32 %v6495_v16, %v5970_v17  ;;  %v6493_v21 = vld [vmem:[%s7973_s21 + $0x80] sm:$0xf0]  ;;  %v6492_v22 = vld [vmem:[%s7973_s21 + $0x7c] sm:$0xf]  ;;  %v5958_v23 = vld [vmem:[%s7973_s21 + $0x84] sm:$0xf0] }
 0x18d   : > { %1584 = vmatpush.bf16.msra.mxu1 %v5985_v15  ;;  %v5957_v24 = vor.u32 %v6493_v21, %v5956_v20  ;;  %v5961_v25 = vor.u32 %v6492_v22, %v5958_v23  ;;  %v5944_v26 = vld [vmem:[%s7973_s21 + $0x60] sm:$0xf]  ;;  %v6490_v27 = vld [vmem:[%s7973_s21 + $0x68] sm:$0xf0]  ;;  %v6489_v28 = vld [vmem:[%s7973_s21 + $0x64] sm:$0xf] }
 0x18e   : > { %v5946_v29 = vld [vmem:[%s7973_s21 + $0x6c] sm:$0xf0]  ;;  %v5945_v30 = vor.u32 %v6490_v27, %v5944_v26  ;;  %v5932_v31 = vld [vmem:[%s7973_s21 + $0x48] sm:$0xf]  ;;  %v6487_v32 = vld [vmem:[%s7973_s21 + $0x50] sm:$0xf0] }
 0x18f   : > { %v5949_v33 = vor.u32 %v6489_v28, %v5946_v29  ;;  %v6486_v34 = vld [vmem:[%s7973_s21 + $0x4c] sm:$0xf]  ;;  %v5934_v35 = vld [vmem:[%s7973_s21 + $0x54] sm:$0xf0]  ;;  %v5933_v36 = vor.u32 %v6487_v32, %v5932_v31  ;;  %v5920_v38 = vld [vmem:[%s7973_s21 + $0x30] sm:$0xf] }
 0x190   : > { %1556 = vmatpush.bf16.msra.mxu0 %v5969_v18  ;;  %v5937_v37 = vor.u32 %v6486_v34, %v5934_v35  ;;  %v6484_v39 = vld [vmem:[%s7973_s21 + $0x38] sm:$0xf0]  ;;  %v6483_v40 = vld [vmem:[%s7973_s21 + $0x34] sm:$0xf]  ;;  %v5922_v41 = vld [vmem:[%s7973_s21 + $0x3c] sm:$0xf0] }
 0x191   : > { %1585 = vmatpush.bf16.msra.mxu1 %v5973_v19  ;;  %v5921_v42 = vor.u32 %v6484_v39, %v5920_v38  ;;  %v5925_v43 = vor.u32 %v6483_v40, %v5922_v41  ;;  %v5908_v44 = vld [vmem:[%s7973_s21 + $0x18] sm:$0xf]  ;;  %v6481_v45 = vld [vmem:[%s7973_s21 + $0x20] sm:$0xf0]  ;;  %v6480_v46 = vld [vmem:[%s7973_s21 + $0x1c] sm:$0xf] }
 0x192   : > { %v5910_v47 = vld [vmem:[%s7973_s21 + $0x24] sm:$0xf0]  ;;  %v5909_v48 = vor.u32 %v6481_v45, %v5908_v44  ;;  %v5896_v50 = vld [vmem:[%s7973_s21] sm:$0xf]  ;;  %v6478_v51 = vld [vmem:[%s7973_s21 + $0x8] sm:$0xf0] }
 0x193   : > { %v5913_v49 = vor.u32 %v6480_v46, %v5910_v47  ;;  %v6477_v52 = vld [vmem:[%s7973_s21 + $0x4] sm:$0xf]  ;;  %v5898_v53 = vld [vmem:[%s7973_s21 + $0xc] sm:$0xf0]  ;;  %v5897_v54 = vor.u32 %v6478_v51, %v5896_v50  ;;  %v6500_v60 = vld [vmem:[%s7973_s21 + $0xb8] sm:$0xf0] }
 0x194   : > { %1557 = vmatpush.bf16.msra.mxu0 %v5957_v24  ;;  %v1375_v55 = vld [vmem:[#allocation2 + $0x30] sm:$0xff]  ;;  %v1376_v56 = vld [vmem:[#allocation2] sm:$0xff]  ;;  %v5901_v57 = vor.u32 %v6477_v52, %v5898_v53  ;;  %v1377_v62 = vld [vmem:[#allocation2 + $0x18] sm:$0xff]  ;;  %vm1674_vm1 = vcmask 261120   ;;  %vm1935_vm2 = vcmask 1043456   ;;  %vm1835_vm3 = vcmask 64512  }
 0x195   : > { %1586 = vmatpush.bf16.msra.mxu1 %v5961_v25  ;;  %v1383_v58 = vpack.c.bf16 %v1376_v56, %v1375_v55  ;;  %v5988_v59 = vld [vmem:[%s7973_s21 + $0xb0] sm:$0xf]  ;;  %v5976_v1 = vld [vmem:[%s7973_s21 + $0x98] sm:$0xf]  ;;  %v6497_v2 = vld [vmem:[%s7973_s21 + $0xa0] sm:$0xf0] }
 0x196   : > { %v5989_v61 = vor.u32 %v6500_v60, %v5988_v59  ;;  %v1378_v63 = vld [vmem:[#allocation2 + $0x10] sm:$0xff]  ;;  %v5964_v3 = vld [vmem:[%s7973_s21 + $0x80] sm:$0xf]  ;;  %v5977_v4 = vor.u32 %v6497_v2, %v5976_v1  ;;  %v5952_v7 = vld [vmem:[%s7973_s21 + $0x68] sm:$0xf]  ;;  %vm2629_vm4 = vcmask 523520  }
 0x197   : > { %v1384_v0 = vpack.c.bf16 %v1378_v63, %v1377_v62  ;;  %v6494_v5 = vld [vmem:[%s7973_s21 + $0x88] sm:$0xf0]  ;;  %v6491_v8 = vld [vmem:[%s7973_s21 + $0x70] sm:$0xf0]  ;;  %v1380_v11 = vld [vmem:[#allocation2 + $0x20] sm:$0xff]  ;;  %vm3134_vm5 = vcmask 785920  }
 0x198   : > { %1558 = vmatpush.bf16.msra.mxu0 %v5945_v30  ;;  %1613 = vmatpush.bf16.msra.mxu2 %v5989_v61  ;;  %v5965_v6 = vor.u32 %v6494_v5, %v5964_v3  ;;  %v1379_v9 = vld [vmem:[#allocation2 + $0x8] sm:$0xff]  ;;  %v5953_v10 = vor.u32 %v6491_v8, %v5952_v7  ;;  %v5940_v12 = vld [vmem:[%s7973_s21 + $0x50] sm:$0xf]  ;;  %v6488_v13 = vld [vmem:[%s7973_s21 + $0x58] sm:$0xf0]  ;;  %vm3639_vm6 = vcmask 1048320  }
 0x199   : > { %1587 = vmatpush.bf16.msra.mxu1 %v5949_v33  ;;  %v1385_v14 = vpack.c.bf16 %v1380_v11, %v1379_v9  ;;  %v5941_v15 = vor.u32 %v6488_v13, %v5940_v12  ;;  %v5928_v16 = vld [vmem:[%s7973_s21 + $0x38] sm:$0xf]  ;;  %v6485_v17 = vld [vmem:[%s7973_s21 + $0x40] sm:$0xf0]  ;;  %v5916_v19 = vld [vmem:[%s7973_s21 + $0x20] sm:$0xf] }
 0x19a   : > { %v5929_v18 = vor.u32 %v6485_v17, %v5928_v16  ;;  %v6482_v20 = vld [vmem:[%s7973_s21 + $0x28] sm:$0xf0]  ;;  %v5904_v22 = vld [vmem:[%s7973_s21 + $0x8] sm:$0xf]  ;;  %v6479_v23 = vld [vmem:[%s7973_s21 + $0x10] sm:$0xf0] }
 0x19b   : > { %v5917_v21 = vor.u32 %v6482_v20, %v5916_v19  ;;  %v5905_v24 = vor.u32 %v6479_v23, %v5904_v22  ;;  %v1381_v25 = vld [vmem:[#allocation2 + $0x28] sm:$0xff]  ;;  %v1382_v26 = vld [vmem:[#allocation2 + $0x38] sm:$0xff]  ;;  %v1419_v28 = vld [vmem:[%s8030_s8] sm:$0x7]  ;;  %s7530_s21 = smov 96   ;;  %s7531_s8 = smov 64  }
 0x19c   : > { %1559 = vmatpush.bf16.msra.mxu0 %v5933_v36  ;;  %1614 = vmatpush.bf16.msra.mxu2 %v5977_v4  ;;  %v1386_v27 = vpack.c.bf16 %v1382_v26, %v1381_v25  ;;  %v8122_v29 = vperm.slane %v1419_v28, 0  ;;  %v8124_v30 = vperm.slane %v1419_v28, 1  ;;  %v8173_v13 = vperm.slane %v1419_v28, 2 }
 0x19d   : > { %1588 = vmatpush.bf16.msra.mxu1 %v5937_v37 }
 0x1a0   : > { %1560 = vmatpush.bf16.msra.mxu0 %v5921_v42  ;;  %1615 = vmatpush.bf16.msra.mxu2 %v5965_v6 }
 0x1a1   : > { %1589 = vmatpush.bf16.msra.mxu1 %v5925_v43 }
 0x1a4   : > { %1561 = vmatpush.bf16.msra.mxu0 %v5909_v48  ;;  %1616 = vmatpush.bf16.msra.mxu2 %v5953_v10 }
 0x1a5   : > { %1590 = vmatpush.bf16.msra.mxu1 %v5913_v49 }
 0x1a8   : > { %1562 = vmatpush.bf16.msra.mxu0 %v5897_v54  ;;  %1617 = vmatpush.bf16.msra.mxu2 %v5941_v15 }
 0x1a9   : > { %1591 = vmatpush.bf16.msra.mxu1 %v5901_v57 }
 0x1ab   : > { %1563 = vmatmul.bf16.vlgmr.msra.gmra.mxu0 %v1383_v58 }
 0x1ac   : > { %1592 = vmatmul.bf16.vlgmr.msra.gmra.mxu1 %v1383_v58  ;;  %1618 = vmatpush.bf16.msra.mxu2 %v5929_v18 }
 0x1b0   : > { %1619 = vmatpush.bf16.msra.mxu2 %v5917_v21 }
 0x1b4   : > { %1620 = vmatpush.bf16.msra.mxu2 %v5905_v24 }
 0x1b7   : > { %1621 = vmatmul.bf16.vlgmr.msra.gmra.mxu2 %v1383_v58 }
 0x1bb   : > { %1568 = vmatmul.bf16.gmra.mxu0 %v1384_v0 }
 0x1bc   : > { %1597 = vmatmul.bf16.gmra.mxu1 %v1384_v0 }
 0x1c7   : > { %1626 = vmatmul.bf16.gmra.mxu2 %v1384_v0 }
 0x1cb   : > { %1573 = vmatmul.bf16.gmra.mxu0 %v1385_v14 }
 0x1cc   : > { %1602 = vmatmul.bf16.gmra.mxu1 %v1385_v14 }
 0x1d7   : > { %1631 = vmatmul.bf16.gmra.mxu2 %v1385_v14 }
 0x1db   : > { %1578 = vmatmul.bf16.gmra.mxu0 %v1386_v27 }
 0x1dc   : > { %1607 = vmatmul.bf16.gmra.mxu1 %v1386_v27 }
 0x1e7   : > { %1636 = vmatmul.bf16.gmra.mxu2 %v1386_v27 }
 0x228   : > { %v1564_v31 = vpop.f32.mrf.mxu0 }
 0x229   : > { %v1565_v32 = vadd.f32 %v1564_v31, %v8122_v29  ;;  %v1593_v33 = vpop.f32.mrf.mxu1 }
 0x22a   : > { %v1594_v34 = vadd.f32 %v1593_v33, %v8124_v30 }
 0x22c   : > { %v8128_v35 = vpack.c.bf16 %v1594_v34, %v1565_v32 }
 0x22e   : > { %2093 = vrot.lane.b32.xlu0 %v8128_v35, %s7530_s21  ;;  %v1666_v36 = vrot.slane %v8128_v35, 4 }
 0x230   : > { %v1566_v37 = vpop.f32.mrf.mxu0  ;;  %v1679_v38 = vsel %vm1674_vm1, %v1666_v36, 0 }
 0x231   : > { %v1567_v39 = vadd.f32 %v1566_v37, %v8122_v29  ;;  %v1595_v40 = vpop.f32.mrf.mxu1  ;;  %1688 = vmatpush.bf16.xpose.msrb.mxu0 %v1679_v38 }
 0x232   : > { %v1596_v41 = vadd.f32 %v1595_v40, %v8124_v30 }
 0x234   : > { %v8136_v42 = vpack.c.bf16 %v1596_v41, %v1567_v39 }
 0x236   : > { %v1667_v43 = vrot.slane %v8136_v42, 4 }
 0x238   : > { %5990 = vmatmul.msk.bf16.vlgmr.msrb.gmra.mxu0 %vm1674_vm1, %v8128_v35  ;;  %v1569_v44 = vpop.f32.mrf.mxu0  ;;  %v1698_v45 = vsel %vm1674_vm1, %v1667_v43, 0 }
 0x239   : > { %v1570_v46 = vadd.f32 %v1569_v44, %v8122_v29  ;;  %v1598_v47 = vpop.f32.mrf.mxu1  ;;  %1707 = vmatpush.bf16.xpose.msra.mxu3 %v1698_v45 }
 0x23a   : > { %v1599_v48 = vadd.f32 %v1598_v47, %v8124_v30  ;;  %v1622_v14 = vpop.f32.mrf.mxu2 }
 0x23b   : > { %v1623_v17 = vadd.f32 %v1622_v14, %v8173_v13  ;;  %v2117_v14 = vunpack.c.l.b16 %v8128_v35 }
 0x23c   : > { %v8144_v49 = vpack.c.bf16 %v1599_v48, %v1570_v46 }
 0x23d   : > { %v8183_v23 = vpack.c.bf16 %v1623_v17, %v1623_v17 }
 0x23e   : > { %v1668_v50 = vrot.slane %v8144_v49, 4 }
 0x23f   : > { %v1937_v27 = vsel %vm1935_vm2, %v8183_v23, 0 }
 0x240   : > { %5991 = vmatmul.msk.bf16.vlgmr.msra.gmra.mxu3 %vm1674_vm1, %v8136_v42  ;;  %v1571_v51 = vpop.f32.mrf.mxu0  ;;  %v1717_v52 = vsel %vm1674_vm1, %v1668_v50, 0 }
 0x241   : > { %v1572_v53 = vadd.f32 %v1571_v51, %v8122_v29  ;;  %v1600_v54 = vpop.f32.mrf.mxu1  ;;  %1726 = vmatpush.bf16.xpose.msrb.mxu3 %v1717_v52 }
 0x242   : > { %v1601_v55 = vadd.f32 %v1600_v54, %v8124_v30  ;;  %v8187_v25 = vpop.f32.mrf.mxu2 }
 0x244   : > { %v8152_v56 = vpack.c.bf16 %v1601_v55, %v1572_v53 }
 0x246   : > { %v1669_v57 = vrot.slane %v8152_v56, 4 }
 0x248   : > { %v1574_v58 = vpop.f32.mrf.mxu0  ;;  %v1736_v59 = vsel %vm1674_vm1, %v1669_v57, 0 }
 0x249   : > { %v1575_v60 = vadd.f32 %v1574_v58, %v8122_v29  ;;  %v1603_v61 = vpop.f32.mrf.mxu1  ;;  %1745 = vmatpush.bf16.xpose.msra.mxu3 %v1736_v59 }
 0x24a   : > { %v1604_v62 = vadd.f32 %v1603_v61, %v8124_v30 }
 0x24c   : > { %v8158_v63 = vpack.c.bf16 %v1604_v62, %v1575_v60 }
 0x24e   : > { %v1670_v0 = vrot.slane %v8158_v63, 4 }
 0x250   : > { %5992 = vmatmul.msk.bf16.vlgmr.msrb.gmra.mxu3 %vm1674_vm1, %v8144_v49  ;;  %v1576_v1 = vpop.f32.mrf.mxu0  ;;  %v1755_v2 = vsel %vm1674_vm1, %v1670_v0, 0 }
 0x251   : > { %v1605_v3 = vpop.f32.mrf.mxu1  ;;  %1764 = vmatpush.bf16.xpose.msrb.mxu3 %v1755_v2  ;;  %v1577_v4 = vadd.f32 %v1576_v1, %v8122_v29 }
 0x252   : > { %v1606_v5 = vadd.f32 %v1605_v3, %v8124_v30 }
 0x254   : > { %v8166_v6 = vpack.c.bf16 %v1606_v5, %v1577_v4 }
 0x256   : > { %v1671_v11 = vrot.slane %v8166_v6, 4 }
 0x258   : > { %v1579_v7 = vpop.f32.mrf.mxu0  ;;  %v1774_v16 = vsel %vm1674_vm1, %v1671_v11, 0 }
 0x259   : > { %v1580_v8 = vadd.f32 %v1579_v7, %v8122_v29  ;;  %v1608_v9 = vpop.f32.mrf.mxu1 }
 0x25a   : > { %v1609_v10 = vadd.f32 %v1608_v9, %v8124_v30 }
 0x25c   : > { %v8171_v12 = vpack.c.bf16 %v1609_v10, %v1580_v8 }
 0x25e   : > { %v1672_v15 = vrot.slane %v8171_v12, 4 }
 0x260   : > { %5993 = vmatmul.msk.bf16.vlgmr.msra.gmra.mxu3 %vm1674_vm1, %v8152_v56  ;;  %v1581_v18 = vpop.f32.mrf.mxu0  ;;  %v1793_v19 = vsel %vm1674_vm1, %v1672_v15, 0 }
 0x261   : > { %v1582_v20 = vadd.f32 %v1581_v18, %v8122_v29  ;;  %v1610_v21 = vpop.f32.mrf.mxu1  ;;  %1802 = vmatpush.bf16.xpose.msra.mxu0 %v1793_v19  ;;  %1783 = vmatpush.bf16.xpose.msra.mxu3 %v1774_v16  ;;  %v1627_v29 = vpop.f32.mrf.mxu2  ;;  %v2140_v16 = vunpack.c.l.b16 %v8136_v42  ;;  %v8230_v18 = vpack.c.b16 %v2117_v14, %v2117_v14 }
 0x262   : > { %v1611_v22 = vadd.f32 %v1610_v21, %v8124_v30  ;;  %v1628_v30 = vadd.f32 %v1627_v29, %v8173_v13 }
 0x263   : > { %v8234_v19 = vpack.c.b16 %v2140_v16, %v2140_v16 }
 0x264   : > { %v8185_v24 = vpack.c.bf16 %v1611_v22, %v1582_v20  ;;  %v8200_v31 = vpack.c.bf16 %v1628_v30, %v1628_v30 }
 0x266   : > { %v1673_v26 = vrot.slane %v8185_v24, 4  ;;  %v1975_v32 = vsel %vm1935_vm2, %v8200_v31, 0 }
 0x268   : > { %5996 = vmatmul.msk.bf16.vlgmr.msra.gmra.mxu0 %vm1674_vm1, %v8171_v12  ;;  %v1812_v28 = vsel %vm1674_vm1, %v1673_v26, 0 }
 0x269   : > { %1821 = vmatpush.bf16.xpose.msrb.mxu1 %v1812_v28  ;;  %1984 = vmatpush.bf16.msrb.mxu0 %v1975_v32  ;;  %v8204_v33 = vpop.f32.mrf.mxu2 }
 0x270   : > { %5994 = vmatmul.msk.bf16.vlgmr.msrb.gmra.mxu3 %vm1674_vm1, %v8158_v63  ;;  %5997 = vmatmul.msk.bf16.vlgmr.msrb.gmra.mxu1 %vm1674_vm1, %v8185_v24 }
 0x271   : > { %1946 = vmatpush.bf16.msra.mxu1 %v1937_v27  ;;  %v1632_v34 = vpop.f32.mrf.mxu2 }
 0x272   : > { %v1633_v36 = vadd.f32 %v1632_v34, %v8173_v13 }
 0x274   : > { %v8209_v37 = vpack.c.bf16 %v1633_v36, %v1633_v36 }
 0x276   : > { %v2013_v38 = vsel %vm1935_vm2, %v8209_v37, 0 }
 0x277   : > { %2022 = vmatpush.bf16.msrb.mxu2 %v2013_v38 }
 0x280   : > { %5995 = vmatmul.msk.bf16.vlgmr.msra.gmra.mxu3 %vm1674_vm1, %v8166_v6 }
 0x2a0   : > { %v2094_v39 = vpop.permute.xlu0 %2093 }
 0x2a1   : > { %v2109_v40 = vrot.slane %v2094_v39, 4 }
 0x2a3   : > { %v2125_v41 = vsel %vm1674_vm1, %v2109_v40, 0 }
 0x2a4   : > { %2134 = vmatpush.bf16.xpose.msra.mxu2 %v2125_v41 }
 0x2b5   : > { %v1690_v43 = vpop.f32.mrf.mxu0 }
 0x2b6   : > { %v1827_v44 = vmul.f32 0.17677669, %v1690_v43 }
 0x2b8   : > { %v1836_v45 = vsel %vm1835_vm3, %v1827_v44, -inf }
 0x2b9   : > { %1837 = vmax.xlane.f32.xlu1 %v1836_v45 }
 0x2bd   : > { %v1692_v46 = vpop.f32.mrf.mxu0 }
 0x2c3   : > { %v1709_v47 = vpop.f32.mrf.mxu3 }
 0x2c4   : > { %v1828_v48 = vmul.f32 0.17677669, %v1709_v47 }
 0x2c6   : > { %v1839_v50 = vsel %vm1835_vm3, %v1828_v48, -inf }
 0x2c7   : > { %1840 = vmax.xlane.f32.xlu0 %v1839_v50 }
 0x2cb   : > { %v1711_v51 = vpop.f32.mrf.mxu3 }
 0x2d3   : > { %v1728_v52 = vpop.f32.mrf.mxu3 }
 0x2d4   : > { %v1829_v53 = vmul.f32 0.17677669, %v1728_v52 }
 0x2d6   : > { %v1842_v54 = vsel %vm1835_vm3, %v1829_v53, -inf }
 0x2d7   : > { %1843 = vmax.xlane.f32.xlu2 %v1842_v54 }
 0x2db   : > { %v1730_v55 = vpop.f32.mrf.mxu3 }
 0x2e3   : > { %v1747_v57 = vpop.f32.mrf.mxu3 }
 0x2e4   : > { %v1830_v58 = vmul.f32 0.17677669, %v1747_v57  ;;  %v2209_v57 = vunpack.c.l.b16 %v8158_v63 }
 0x2e5   : > { %v1804_v59 = vpop.f32.mrf.mxu0 }
 0x2e6   : > { %v8217_v60 = vmul.f32 0.17677669, %v1804_v59  ;;  %v1845_v61 = vsel %vm1835_vm3, %v1830_v58, -inf }
 0x2e7   : > { %1846 = vmax.xlane.f32.xlu2 %v1845_v61 }
 0x2e8   : > { %v1854_v62 = vsel %vm1835_vm3, %v8217_v60, -inf }
 0x2e9   : > { %1855 = vmax.xlane.f32.xlu1 %v1854_v62  ;;  %v8261_v62 = vpack.c.b16 %v2209_v57, %v2209_v57 }
 0x2eb   : > { %v1749_v0 = vpop.f32.mrf.mxu3 }
 0x2ec   : > { %v2232_v0 = vunpack.c.l.b16 %v8166_v6 }
 0x2ed   : > { %v1823_v1 = vpop.f32.mrf.mxu1  ;;  %v1806_v2 = vpop.f32.mrf.mxu0 }
 0x2ee   : > { %v8222_v3 = vmul.f32 0.17677669, %v1823_v1  ;;  %v8268_v2 = vpack.c.b16 %v2232_v0, %v2232_v0 }
 0x2f0   : > { %v1857_v4 = vsel %vm1835_vm3, %v8222_v3, -inf }
 0x2f1   : > { %1858 = vmax.xlane.f32.xlu2 %v1857_v4 }
 0x2f3   : > { %v1766_v5 = vpop.f32.mrf.mxu3 }
 0x2f4   : > { %v1831_v7 = vmul.f32 0.17677669, %v1766_v5  ;;  %v1625_v5 = vadd.f32 %v8187_v25, %v8173_v13 }
 0x2f5   : > { %v1825_v8 = vpop.f32.mrf.mxu1 }
 0x2f6   : > { %v1848_v9 = vsel %vm1835_vm3, %v1831_v7, -inf }
 0x2f7   : > { %1849 = vmax.xlane.f32.xlu0 %v1848_v9  ;;  %v8283_v9 = vpack.c.bf16 %v1625_v5, %v1625_v5 }
 0x2fb   : > { %v1768_v10 = vpop.f32.mrf.mxu3 }
 0x303   : > { %v1785_v11 = vpop.f32.mrf.mxu3 }
 0x304   : > { %v1832_v15 = vmul.f32 0.17677669, %v1785_v11  ;;  %v1634_v11 = vpop.f32.mrf.mxu2 }
 0x305   : > { %v1635_v14 = vadd.f32 %v1634_v11, %v8173_v13 }
 0x306   : > { %v1851_v17 = vsel %vm1835_vm3, %v1832_v15, -inf }
 0x307   : > { %1852 = vmax.xlane.f32.xlu1 %v1851_v17  ;;  %v8294_v25 = vpack.c.bf16 %v1635_v14, %v1635_v14 }
 0x309   : > { %2119 = vrot.lane.b32.xlu2 %v8230_v18, %s7530_s21 }
 0x30b   : > { %v1787_v20 = vpop.f32.mrf.mxu3  ;;  %2142 = vrot.lane.b32.xlu0 %v8234_v19, %s7530_s21 }
 0x30c   : > { %v2032_v20 = vsel %vm1935_vm2, %v8294_v25, 0 }
 0x320   : > { %2095 = vrot.lane.b32.xlu1 %v8136_v42, %s7530_s21 }
 0x32c   : > { %v1838_v21 = vpop.xlane.xlu1 %1837 }
 0x32d   : > { %v1860_v22 = vsub.f32 %v1827_v44, %v1838_v21 }
 0x32f   : > { %v1868_v26 = vmul.f32 1.442695, %v1860_v22  ;;  %v2255_v22 = vunpack.c.l.b16 %v8171_v12 }
 0x331   : > { %6806 = vpow2.f32 %v1868_v26 }
 0x337   : > { %v8240_v27 = vpop.eup %6806 }
 0x338   : > { %v1884_v28 = vsel %vm1835_vm3, %v8240_v27, 0.0 }
 0x339   : > { %1885 = vadd.xlane.f32.xlu2 %v1884_v28  ;;  %v8304_v28 = vpack.c.b16 %v2255_v22, %v2255_v22 }
 0x33a   : > { %v1841_v29 = vpop.xlane.xlu0 %1840 }
 0x33b   : > { %v1861_v30 = vsub.f32 %v1828_v48, %v1841_v29  ;;  %v2278_v29 = vunpack.c.l.b16 %v8185_v24 }
 0x33d   : > { %v1870_v32 = vmul.f32 1.442695, %v1861_v30 }
 0x33f   : > { %6808 = vpow2.f32 %v1870_v32 }
 0x345   : > { %v8244_v34 = vpop.eup %6808 }
 0x346   : > { %v1887_v36 = vsel %vm1835_vm3, %v8244_v34, 0.0 }
 0x347   : > { %1888 = vadd.xlane.f32.xlu0 %v1887_v36 }
 0x34a   : > { %v1844_v38 = vpop.xlane.xlu2 %1843 }
 0x34b   : > { %v1862_v39 = vsub.f32 %v1829_v53, %v1844_v38 }
 0x34d   : > { %v1872_v40 = vmul.f32 1.442695, %v1862_v39  ;;  %v8316_v39 = vpack.c.b16 %v2278_v29, %v2278_v29  ;;  %v2406_v29 = vunpack.c.l.b16 %v8183_v23 }
 0x34f   : > { %6810 = vpow2.f32 %v1872_v40 }
 0x355   : > { %v8248_v41 = vpop.eup %6810 }
 0x356   : > { %v1890_v43 = vsel %vm1835_vm3, %v8248_v41, 0.0 }
 0x357   : > { %1891 = vadd.xlane.f32.xlu2 %v1890_v43 }
 0x35a   : > { %v1847_v44 = vpop.xlane.xlu2 %1846 }
 0x35b   : > { %v1863_v45 = vsub.f32 %v1830_v58, %v1847_v44 }
 0x35c   : > { %v1856_v53 = vpop.xlane.xlu1 %1855 }
 0x35d   : > { %v1874_v46 = vmul.f32 1.442695, %v1863_v45  ;;  %v1866_v43 = vsub.f32 %v8217_v60, %v1856_v53  ;;  %v1630_v45 = vadd.f32 %v8204_v33, %v8173_v13 }
 0x35f   : > { %6812 = vpow2.f32 %v1874_v46  ;;  %v8324_v46 = vpack.c.bf16 %v1630_v45, %v1630_v45 }
 0x364   : > { %v1859_v8 = vpop.xlane.xlu2 %1858 }
 0x365   : > { %v8252_v47 = vpop.eup %6812  ;;  %v1867_v16 = vsub.f32 %v8222_v3, %v1859_v8 }
 0x366   : > { %v1893_v48 = vsel %vm1835_vm3, %v8252_v47, 0.0 }
 0x367   : > { %1894 = vadd.xlane.f32.xlu2 %v1893_v48  ;;  %v1882_v21 = vmul.f32 1.442695, %v1867_v16  ;;  %v2186_v16 = vunpack.c.l.b16 %v8152_v56 }
 0x369   : > { %v8350_v22 = vpack.c.b16 %v2186_v16, %v2186_v16 }
 0x36a   : > { %v1850_v50 = vpop.xlane.xlu0 %1849 }
 0x36b   : > { %v1864_v51 = vsub.f32 %v1831_v7, %v1850_v50  ;;  %v2163_v7 = vunpack.c.l.b16 %v8144_v49 }
 0x36c   : > { %v8297_v17 = vpop.permute.xlu2 %2119 }
 0x36d   : > { %v1876_v52 = vmul.f32 1.442695, %v1864_v51  ;;  %v8285_v10 = vpack.c.b16 %v2163_v7, %v2163_v7 }
 0x36f   : > { %6814 = vpow2.f32 %v1876_v52 }
 0x375   : > { %v8256_v54 = vpop.eup %6814 }
 0x376   : > { %v1896_v55 = vsel %vm1835_vm3, %v8256_v54, 0.0 }
 0x377   : > { %1897 = vadd.xlane.f32.xlu0 %v1896_v55  ;;  %v1994_v55 = vsel %vm1935_vm2, %v8324_v46, 0 }
 0x378   : > { %2003 = vmatpush.bf16.msrb.mxu1 %v1994_v55 }
 0x37a   : > { %v1853_v58 = vpop.xlane.xlu1 %1852 }
 0x37b   : > { %v1865_v59 = vsub.f32 %v1832_v15, %v1853_v58  ;;  %v1956_v15 = vsel %vm1935_vm2, %v8283_v9, 0 }
 0x37c   : > { %1965 = vmatpush.bf16.msrb.mxu3 %v1956_v15 }
 0x37d   : > { %v1878_v61 = vmul.f32 1.442695, %v1865_v59  ;;  %v8311_v30 = vpop.permute.xlu0 %2142 }
 0x37f   : > { %6816 = vpow2.f32 %v1878_v61  ;;  %2211 = vrot.lane.b32.xlu2 %v8261_v62, %s7530_s21 }
 0x380   : > { %2041 = vmatpush.bf16.msra.mxu3 %v2032_v20  ;;  %6818 = vpow2.f32 %v1882_v21 }
 0x385   : > { %v8266_v1 = vpop.eup %6816 }
 0x386   : > { %v1899_v4 = vsel %vm1835_vm3, %v8266_v1, 0.0  ;;  %v8308_v3 = vpop.eup %6818 }
 0x387   : > { %2234 = vrot.lane.b32.xlu2 %v8268_v2, %s7530_s21  ;;  %1900 = vadd.xlane.f32.xlu1 %v1899_v4  ;;  %v1905_v38 = vsel %vm1835_vm3, %v8308_v3, 0.0 }
 0x38b   : > { %2103 = vrot.lane.b32.xlu0 %v8166_v6, %s7530_s21 }
 0x38f   : > { %2097 = vrot.lane.b32.xlu2 %v8144_v49, %s7530_s21 }
 0x392   : > { %v2096_v48 = vpop.permute.xlu1 %2095 }
 0x393   : > { %v2110_v51 = vrot.slane %v2096_v48, 4 }
 0x395   : > { %v2148_v33 = vsel %vm1674_vm1, %v2110_v51, 0 }
 0x397   : > { %2099 = vrot.lane.b32.xlu2 %v8152_v56, %s7530_s21 }
 0x39f   : > { %2165 = vrot.lane.b32.xlu2 %v8285_v10, %s7530_s21 }
 0x3a0   : > { %2101 = vrot.lane.b32.xlu1 %v8158_v63, %s7530_s21 }
 0x3a7   : > { %2107 = vrot.lane.b32.xlu2 %v8185_v24, %s7530_s21 }
 0x3ac   : > { %v1886_v26 = vpop.xlane.xlu2 %1885 }
 0x3ad   : > { %6820 = vrcp.f32 %v1886_v26 }
 0x3af   : > { %2257 = vrot.lane.b32.xlu2 %v8304_v28, %s7530_s21 }
 0x3b3   : > { %v6821_v32 = vpop.eup %6820 }
 0x3b4   : > { %v1916_v36 = vmul.f32 %v6821_v32, %v8240_v27  ;;  %v1880_v27 = vmul.f32 1.442695, %v1866_v43  ;;  %v8357_v32 = vpack.c.b16 %v2406_v29, %v2406_v29 }
 0x3b5   : > { %1906 = vadd.xlane.f32.xlu0 %v1905_v38 }
 0x3b6   : > { %v1924_v40 = vpack.c.bf16 %v1916_v36, %v1916_v36 }
 0x3b7   : > { %2280 = vrot.lane.b32.xlu2 %v8316_v39, %s7530_s21 }
 0x3b8   : > { %5998 = vmatmul.msk.bf16.vlgmr.msra.gmra.mxu1 %vm1835_vm3, %v1924_v40 }
 0x3ba   : > { %v1889_v44 = vpop.xlane.xlu0 %1888 }
 0x3bb   : > { %6822 = vrcp.f32 %v1889_v44 }
 0x3bc   : > { %6824 = vpow2.f32 %v1880_v27 }
 0x3c1   : > { %v6823_v50 = vpop.eup %6822 }
 0x3c2   : > { %v1917_v52 = vmul.f32 %v6823_v50, %v8244_v34  ;;  %v8329_v53 = vpop.eup %6824  ;;  %v1637_v34 = vpop.f32.mrf.mxu2 }
 0x3c3   : > { %v1902_v57 = vsel %vm1835_vm3, %v8329_v53, 0.0  ;;  %v1638_v59 = vadd.f32 %v1637_v34, %v8173_v13 }
 0x3c4   : > { %v1925_v60 = vpack.c.bf16 %v1917_v52, %v1917_v52 }
 0x3c5   : > { %v8338_v61 = vpack.c.bf16 %v1638_v59, %v1638_v59 }
 0x3c6   : > { %5999 = vmatmul.msk.bf16.vlgmr.msrb.gmra.mxu3 %vm1835_vm3, %v1925_v60 }
 0x3c7   : > { %2157 = vmatpush.bf16.xpose.msrb.mxu3 %v2148_v33  ;;  %v2051_v0 = vsel %vm1935_vm2, %v8338_v61, 0 }
 0x3c8   : > { %2060 = vmatpush.bf16.msra.mxu0 %v2051_v0 }
 0x3c9   : > { %2105 = vrot.lane.b32.xlu0 %v8171_v12, %s7530_s21 }
 0x3ca   : > { %v1892_v58 = vpop.xlane.xlu2 %1891  ;;  %1903 = vadd.xlane.f32.xlu1 %v1902_v57  ;;  %v1639_v8 = vpop.f32.mrf.mxu2 }
 0x3cb   : > { %6826 = vrcp.f32 %v1892_v58  ;;  %v1640_v11 = vadd.f32 %v1639_v8, %v8173_v13 }
 0x3cd   : > { %v8345_v14 = vpack.c.bf16 %v1640_v11, %v1640_v11 }
 0x3cf   : > { %v2070_v20 = vsel %vm1935_vm2, %v8345_v14, 0 }
 0x3d0   : > { %2079 = vmatpush.bf16.msra.mxu1 %v2070_v20 }
 0x3d1   : > { %v6827_v4 = vpop.eup %6826 }
 0x3d2   : > { %v1918_v5 = vmul.f32 %v6827_v4, %v8248_v41 }
 0x3d4   : > { %v1926_v7 = vpack.c.bf16 %v1918_v5, %v1918_v5 }
 0x3d6   : > { %6000 = vmatmul.msk.bf16.vlgmr.msrb.gmra.mxu0 %vm1835_vm3, %v1926_v7 }
 0x3da   : > { %v1895_v15 = vpop.xlane.xlu2 %1894 }
 0x3db   : > { %6828 = vrcp.f32 %v1895_v15 }
 0x3e1   : > { %v6829_v21 = vpop.eup %6828 }
 0x3e2   : > { %v1919_v41 = vmul.f32 %v6829_v21, %v8252_v47  ;;  %v2212_v26 = vpop.permute.xlu2 %2211 }
 0x3e3   : > { %2188 = vrot.lane.b32.xlu1 %v8350_v22, %s7530_s21 }
 0x3e4   : > { %v1927_v13 = vpack.c.bf16 %v1919_v41, %v1919_v41 }
 0x3e6   : > { %6001 = vmatmul.msk.bf16.vlgmr.msrb.gmra.mxu1 %vm1835_vm3, %v1927_v13 }
 0x3ea   : > { %v1898_v36 = vpop.xlane.xlu0 %1897  ;;  %v2235_v38 = vpop.permute.xlu2 %2234 }
 0x3eb   : > { %6830 = vrcp.f32 %v1898_v36  ;;  %2408 = vrot.lane.b32.xlu1 %v8357_v32, %s7530_s21 }
 0x3f1   : > { %v6831_v40 = vpop.eup %6830 }
 0x3f2   : > { %v2098_v43 = vpop.permute.xlu2 %2097  ;;  %v1920_v47 = vmul.f32 %v6831_v40, %v8256_v54 }
 0x3f3   : > { %v2111_v44 = vrot.slane %v2098_v43, 4 }
 0x3f4   : > { %v1928_v23 = vpack.c.bf16 %v1920_v47, %v1920_v47 }
 0x3f5   : > { %v2171_v45 = vsel %vm1674_vm1, %v2111_v44, 0 }
 0x3f6   : > { %6002 = vmatmul.msk.bf16.vlgmr.msrb.gmra.mxu2 %vm1835_vm3, %v1928_v23  ;;  %2180 = vmatpush.bf16.xpose.msrb.mxu0 %v2171_v45 }
 0x3fa   : > { %v2100_v27 = vpop.permute.xlu2 %2099  ;;  %v1901_v48 = vpop.xlane.xlu1 %1900 }
 0x3fb   : > { %v2112_v50 = vrot.slane %v2100_v27, 4  ;;  %6832 = vrcp.f32 %v1901_v48 }
 0x3fd   : > { %v2194_v51 = vsel %vm1674_vm1, %v2112_v50, 0  ;;  %v2104_v52 = vpop.permute.xlu0 %2103 }
 0x3fe   : > { %2203 = vmatpush.bf16.xpose.msrb.mxu1 %v2194_v51  ;;  %v2114_v33 = vrot.slane %v2104_v52, 4 }
 0x400   : > { %v2240_v57 = vsel %vm1674_vm1, %v2114_v33, 0 }
 0x401   : > { %v6833_v55 = vpop.eup %6832 }
 0x402   : > { %v1921_v60 = vmul.f32 %v6833_v55, %v8266_v1  ;;  %v2166_v1 = vpop.permute.xlu2 %2165 }
 0x404   : > { %v1929_v54 = vpack.c.bf16 %v1921_v60, %v1921_v60 }
 0x406   : > { %6003 = vmatmul.msk.bf16.vlgmr.msra.gmra.mxu3 %vm1835_vm3, %v1929_v54  ;;  %6006 = vmatmul.msk.bf16.vlgmr.msra.gmra.mxu2 %vm1674_vm1, %v8297_v17 }
 0x407   : > { %2249 = vmatpush.bf16.xpose.msra.mxu3 %v2240_v57 }
 0x40a   : > { %v2108_v4 = vpop.permute.xlu2 %2107 }
 0x40b   : > { %v2116_v5 = vrot.slane %v2108_v4, 4 }
 0x40d   : > { %v2286_v11 = vsel %vm1674_vm1, %v2116_v5, 0 }
 0x412   : > { %v2102_v58 = vpop.permute.xlu1 %2101  ;;  %v2258_v43 = vpop.permute.xlu2 %2257 }
 0x413   : > { %v2113_v34 = vrot.slane %v2102_v58, 4 }
 0x415   : > { %v2217_v59 = vsel %vm1674_vm1, %v2113_v34, 0 }
 0x416   : > { %6007 = vmatmul.msk.bf16.vlgmr.msrb.gmra.mxu3 %vm1674_vm1, %v8311_v30  ;;  %2226 = vmatpush.bf16.xpose.msrb.mxu2 %v2217_v59 }
 0x41a   : > { %v2281_v45 = vpop.permute.xlu2 %2280 }
 0x41d   : > { %6010 = vmatmul.msk.bf16.vlgmr.msrb.gmra.mxu2 %vm1674_vm1, %v2212_v26 }
 0x426   : > { %6011 = vmatmul.msk.bf16.vlgmr.msra.gmra.mxu3 %vm1674_vm1, %v2235_v38 }
 0x428   : > { %v1907_v0 = vpop.xlane.xlu0 %1906 }
 0x429   : > { %6834 = vrcp.f32 %v1907_v0 }
 0x42f   : > { %v6835_v17 = vpop.eup %6834 }
 0x430   : > { %v1923_v7 = vmul.f32 %v6835_v17, %v8308_v3 }
 0x432   : > { %v1931_v8 = vpack.c.bf16 %v1923_v7, %v1923_v7 }
 0x434   : > { %6005 = vmatmul.msk.bf16.vlgmr.msra.gmra.mxu1 %vm1835_vm3, %v1931_v8 }
 0x435   : > { %2295 = vmatpush.bf16.xpose.msra.mxu1 %v2286_v11  ;;  %v1948_v30 = vpop.f32.mrf.mxu1 }
 0x436   : > { %2085 = vst.msk [vmem:[#allocation4] sm:$0xff] %vm1674_vm1, %v1948_v30 }
 0x43b   : > { %v2106_v20 = vpop.permute.xlu0 %2105 }
 0x43c   : > { %v2115_v41 = vrot.slane %v2106_v20, 4 }
 0x43d   : > { %v1950_v15 = vpop.f32.mrf.mxu1  ;;  %v1904_v16 = vpop.xlane.xlu1 %1903 }
 0x43e   : > { %6836 = vrcp.f32 %v1904_v16  ;;  %v2263_v3 = vsel %vm1674_vm1, %v2115_v41, 0 }
 0x444   : > { %v6837_v21 = vpop.eup %6836 }
 0x445   : > { %v1922_v26 = vmul.f32 %v6837_v21, %v8329_v53 }
 0x447   : > { %v1930_v29 = vpack.c.bf16 %v1922_v26, %v1922_v26 }
 0x449   : > { %v1967_v13 = vpop.f32.mrf.mxu3  ;;  %6004 = vmatmul.msk.bf16.vlgmr.msra.gmra.mxu0 %vm1835_vm3, %v1930_v29 }
 0x44a   : > { %2086 = vst.msk [vmem:[#allocation4 + $0x8] sm:$0xff] %vm1674_vm1, %v1967_v13  ;;  %2272 = vmatpush.bf16.xpose.msra.mxu0 %v2263_v3 }
 0x451   : > { %v1969_v36 = vpop.f32.mrf.mxu3 }
 0x453   : > { %v1986_v38 = vpop.f32.mrf.mxu0 }
 0x454   : > { %2087 = vst.msk [vmem:[#allocation4 + $0x10] sm:$0xff] %vm1674_vm1, %v1986_v38 }
 0x455   : > { %v2189_v40 = vpop.permute.xlu1 %2188 }
 0x456   : > { %6009 = vmatmul.msk.bf16.vlgmr.msrb.gmra.mxu1 %vm1674_vm1, %v2189_v40 }
 0x459   : > { %6008 = vmatmul.msk.bf16.vlgmr.msrb.gmra.mxu0 %vm1674_vm1, %v2166_v1 }
 0x45b   : > { %v1988_v53 = vpop.f32.mrf.mxu0 }
 0x45d   : > { %v2409_v47 = vpop.permute.xlu1 %2408 }
 0x45e   : > { %v2414_v44 = vsel %vm1935_vm2, %v2409_v47, 0 }
 0x45f   : > { %2423 = vmatpush.bf16.msra.mxu2 %v2414_v44 }
 0x463   : > { %v2005_v23 = vpop.f32.mrf.mxu1 }
 0x464   : > { %2088 = vst.msk [vmem:[#allocation4 + $0x18] sm:$0xff] %vm1674_vm1, %v2005_v23  ;;  %v2430_v23 = vunpack.c.l.b16 %v8283_v9 }
 0x466   : > { %6013 = vmatmul.msk.bf16.vlgmr.msra.gmra.mxu1 %vm1674_vm1, %v2281_v45 }
 0x469   : > { %6012 = vmatmul.msk.bf16.vlgmr.msra.gmra.mxu0 %vm1674_vm1, %v2258_v43 }
 0x46b   : > { %v2007_v27 = vpop.f32.mrf.mxu1 }
 0x46c   : > { %v8408_v27 = vpack.c.b16 %v2430_v23, %v2430_v23 }
 0x479   : > { %v2024_v48 = vpop.f32.mrf.mxu2 }
 0x47a   : > { %2089 = vst.msk [vmem:[#allocation4 + $0x20] sm:$0xff] %vm1674_vm1, %v2024_v48  ;;  %v2502_v48 = vunpack.c.l.b16 %v8209_v37  ;;  %v2454_v37 = vunpack.c.l.b16 %v8200_v31 }
 0x47c   : > { %v8427_v9 = vpack.c.b16 %v2454_v37, %v2454_v37 }
 0x481   : > { %v2026_v50 = vpop.f32.mrf.mxu2 }
 0x482   : > { %v2526_v50 = vunpack.c.l.b16 %v8294_v25  ;;  %v2478_v25 = vunpack.c.l.b16 %v8324_v46 }
 0x489   : > { %v2043_v51 = vpop.f32.mrf.mxu3  ;;  %v2136_v52 = vpop.f32.mrf.mxu2 }
 0x48a   : > { %2090 = vst.msk [vmem:[#allocation4 + $0x28] sm:$0xff] %vm1674_vm1, %v2043_v51  ;;  %v2301_v53 = vmul.f32 0.17677669, %v2136_v52  ;;  %v8414_v51 = vpack.c.b16 %v2502_v48, %v2502_v48  ;;  %v8418_v52 = vpack.c.b16 %v2526_v50, %v2526_v50 }
 0x48c   : > { %v2309_v45 = vsel %vm1835_vm3, %v2301_v53, -inf }
 0x491   : > { %v2045_v55 = vpop.f32.mrf.mxu3  ;;  %v2138_v60 = vpop.f32.mrf.mxu2 }
 0x492   : > { %v8432_v55 = vpack.c.b16 %v2478_v25, %v2478_v25 }
 0x499   : > { %v2159_v33 = vpop.f32.mrf.mxu3 }
 0x49a   : > { %v2302_v40 = vmul.f32 0.17677669, %v2159_v33 }
 0x49c   : > { %v2312_v44 = vsel %vm1835_vm3, %v2302_v40, -inf }
 0x4a0   : > { %v2228_v54 = vpop.f32.mrf.mxu2 }
 0x4a1   : > { %v2161_v57 = vpop.f32.mrf.mxu3  ;;  %v8396_v16 = vmul.f32 0.17677669, %v2228_v54 }
 0x4a3   : > { %v2321_v41 = vsel %vm1835_vm3, %v8396_v16, -inf }
 0x4a8   : > { %v2230_v58 = vpop.f32.mrf.mxu2 }
 0x4a9   : > { %v2251_v34 = vpop.f32.mrf.mxu3 }
 0x4aa   : > { %v8436_v33 = vmul.f32 0.17677669, %v2251_v34 }
 0x4ac   : > { %v2324_v31 = vsel %vm1835_vm3, %v8436_v33, -inf }
 0x4b1   : > { %v2081_v59 = vpop.f32.mrf.mxu1  ;;  %v2253_v1 = vpop.f32.mrf.mxu3 }
 0x4b2   : > { %2092 = vst.msk [vmem:[#allocation4 + $0x38] sm:$0xff] %vm1674_vm1, %v2081_v59 }
 0x4b9   : > { %v2083_v0 = vpop.f32.mrf.mxu1 }
 0x4c6   : > { %v2062_v4 = vpop.f32.mrf.mxu0 }
 0x4c7   : > { %2091 = vst.msk [vmem:[#allocation4 + $0x30] sm:$0xff] %vm1674_vm1, %v2062_v4 }
 0x4ce   : > { %v2064_v17 = vpop.f32.mrf.mxu0 }
 0x4d3   : > { %v2205_v5 = vpop.f32.mrf.mxu1 }
 0x4d4   : > { %v2304_v7 = vmul.f32 0.17677669, %v2205_v5 }
 0x4d6   : > { %v2182_v8 = vpop.f32.mrf.mxu0  ;;  %v2318_v11 = vsel %vm1835_vm3, %v2304_v7, -inf }
 0x4d7   : > { %v2303_v30 = vmul.f32 0.17677669, %v2182_v8  ;;  %2319 = vmax.xlane.f32.xlu2 %v2318_v11 }
 0x4d9   : > { %v2315_v15 = vsel %vm1835_vm3, %v2303_v30, -inf }
 0x4da   : > { %2316 = vmax.xlane.f32.xlu1 %v2315_v15 }
 0x4db   : > { %v2207_v20 = vpop.f32.mrf.mxu1 }
 0x4de   : > { %v2184_v21 = vpop.f32.mrf.mxu0 }
 0x4df   : > { %2322 = vmax.xlane.f32.xlu2 %v2321_v41 }
 0x4e3   : > { %v2297_v26 = vpop.f32.mrf.mxu1 }
 0x4e4   : > { %v8400_v29 = vmul.f32 0.17677669, %v2297_v26 }
 0x4e6   : > { %v2274_v13 = vpop.f32.mrf.mxu0  ;;  %v2330_v3 = vsel %vm1835_vm3, %v8400_v29, -inf }
 0x4e7   : > { %v2307_v36 = vmul.f32 0.17677669, %v2274_v13  ;;  %2331 = vmax.xlane.f32.xlu1 %v2330_v3 }
 0x4e9   : > { %v2327_v38 = vsel %vm1835_vm3, %v2307_v36, -inf }
 0x4ea   : > { %2328 = vmax.xlane.f32.xlu0 %v2327_v38 }
 0x4eb   : > { %v2299_v43 = vpop.f32.mrf.mxu1 }
 0x4ee   : > { %v2276_v47 = vpop.f32.mrf.mxu0 }
 0x4ef   : > { %2313 = vmax.xlane.f32.xlu1 %v2312_v44 }
 0x4f2   : > { %2310 = vmax.xlane.f32.xlu0 %v2309_v45 }
 0x4f7   : > { %2432 = vrot.lane.b32.xlu2 %v8408_v27, %s7530_s21 }
 0x506   : > { %2504 = vrot.lane.b32.xlu0 %v8414_v51, %s7530_s21 }
 0x508   : > { %2528 = vrot.lane.b32.xlu1 %v8418_v52, %s7530_s21 }
 0x50e   : > { %2638 = vrot.lane.b32.xlu0 %v8128_v35, %s7531_s8 }
 0x516   : > { %2640 = vrot.lane.b32.xlu0 %v8136_v42, %s7531_s8 }
 0x51e   : > { %2456 = vrot.lane.b32.xlu0 %v8427_v9, %s7530_s21 }
 0x526   : > { %2480 = vrot.lane.b32.xlu0 %v8432_v55, %s7530_s21 }
 0x54a   : > { %v2320_v60 = vpop.xlane.xlu2 %2319 }
 0x54b   : > { %v2336_v54 = vsub.f32 %v2304_v7, %v2320_v60 }
 0x54d   : > { %v2347_v57 = vmul.f32 1.442695, %v2336_v54  ;;  %v2317_v58 = vpop.xlane.xlu1 %2316  ;;  %v2574_v54 = vunpack.c.l.b16 %v8345_v14  ;;  %v2550_v14 = vunpack.c.l.b16 %v8338_v61 }
 0x54e   : > { %v2335_v59 = vsub.f32 %v2303_v30, %v2317_v58 }
 0x54f   : > { %6838 = vpow2.f32 %v2347_v57  ;;  %v8475_v58 = vpack.c.b16 %v2574_v54, %v2574_v54 }
 0x550   : > { %v2345_v1 = vmul.f32 1.442695, %v2335_v59  ;;  %2325 = vmax.xlane.f32.xlu0 %v2324_v31 }
 0x552   : > { %6840 = vpow2.f32 %v2345_v1  ;;  %v2323_v46 = vpop.xlane.xlu2 %2322  ;;  %v8487_v1 = vpack.c.b16 %v2550_v14, %v2550_v14 }
 0x553   : > { %v2337_v41 = vsub.f32 %v8396_v16, %v2323_v46 }
 0x555   : > { %v8440_v0 = vpop.eup %6838  ;;  %v2349_v47 = vmul.f32 1.442695, %v2337_v41 }
 0x556   : > { %v2366_v4 = vsel %vm1835_vm3, %v8440_v0, 0.0 }
 0x557   : > { %2367 = vadd.xlane.f32.xlu1 %v2366_v4 }
 0x558   : > { %v8444_v34 = vpop.eup %6840 }
 0x559   : > { %v2363_v17 = vsel %vm1835_vm3, %v8444_v34, 0.0 }
 0x55a   : > { %v2433_v5 = vpop.permute.xlu2 %2432  ;;  %2364 = vadd.xlane.f32.xlu2 %v2363_v17  ;;  %v8448_v7 = vpop.xlane.xlu1 %2331 }
 0x55b   : > { %v2438_v8 = vsel %vm1935_vm2, %v2433_v5, 0  ;;  %v2340_v14 = vsub.f32 %v8400_v29, %v8448_v7 }
 0x55c   : > { %2447 = vmatpush.bf16.msrb.mxu3 %v2438_v8 }
 0x55d   : > { %v2329_v11 = vpop.xlane.xlu0 %2328 }
 0x55e   : > { %v2339_v30 = vsub.f32 %v2307_v36, %v2329_v11 }
 0x560   : > { %v2353_v15 = vmul.f32 1.442695, %v2339_v30 }
 0x562   : > { %6842 = vpow2.f32 %v2353_v15  ;;  %v2314_v20 = vpop.xlane.xlu1 %2313 }
 0x563   : > { %v2334_v21 = vsub.f32 %v2302_v40, %v2314_v20 }
 0x565   : > { %v2343_v26 = vmul.f32 1.442695, %v2334_v21  ;;  %v2311_v13 = vpop.xlane.xlu0 %2310 }
 0x566   : > { %v2333_v3 = vsub.f32 %v2301_v53, %v2311_v13 }
 0x567   : > { %6844 = vpow2.f32 %v2343_v26 }
 0x568   : > { %v8452_v38 = vpop.eup %6842  ;;  %v2341_v43 = vmul.f32 1.442695, %v2333_v3 }
 0x569   : > { %v2375_v44 = vsel %vm1835_vm3, %v8452_v38, 0.0 }
 0x56a   : > { %6846 = vpow2.f32 %v2341_v43  ;;  %2376 = vadd.xlane.f32.xlu1 %v2375_v44 }
 0x56b   : > { %6848 = vpow2.f32 %v2349_v47 }
 0x56d   : > { %v8456_v36 = vpop.eup %6844 }
 0x56e   : > { %v2360_v40 = vsel %vm1835_vm3, %v8456_v36, 0.0 }
 0x56f   : > { %2361 = vadd.xlane.f32.xlu0 %v2360_v40 }
 0x570   : > { %v8460_v16 = vpop.eup %6846 }
 0x571   : > { %v2357_v53 = vsel %vm1835_vm3, %v8460_v16, 0.0  ;;  %v8464_v23 = vpop.eup %6848 }
 0x572   : > { %2358 = vadd.xlane.f32.xlu2 %v2357_v53  ;;  %v2369_v45 = vsel %vm1835_vm3, %v8464_v23, 0.0 }
 0x577   : > { %2370 = vadd.xlane.f32.xlu0 %v2369_v45 }
 0x578   : > { %v2505_v48 = vpop.permute.xlu0 %2504 }
 0x579   : > { %v2510_v50 = vsel %vm1935_vm2, %v2505_v48, 0 }
 0x57a   : > { %v2529_v37 = vpop.permute.xlu1 %2528  ;;  %2519 = vmatpush.bf16.msrb.mxu2 %v2510_v50 }
 0x57b   : > { %v2534_v25 = vsel %vm1935_vm2, %v2529_v37, 0 }
 0x57c   : > { %2543 = vmatpush.bf16.msra.mxu3 %v2534_v25 }
 0x580   : > { %v8470_v60 = vpop.permute.xlu0 %2638 }
 0x583   : > { %2646 = vrot.lane.b32.xlu1 %v8158_v63, %s7531_s8 }
 0x588   : > { %v2641_v57 = vpop.permute.xlu0 %2640 }
 0x589   : > { %v2655_v44 = vrot.slane %v2641_v57, 4 }
 0x58a   : > { %2662 = vrot.lane.b32.xlu2 %v8230_v18, %s7531_s8 }
 0x58b   : > { %2576 = vrot.lane.b32.xlu1 %v8475_v58, %s7530_s21  ;;  %v2689_v37 = vsel %vm1674_vm1, %v2655_v44, 0 }
 0x590   : > { %v2457_v59 = vpop.permute.xlu0 %2456 }
 0x591   : > { %v2462_v31 = vsel %vm1935_vm2, %v2457_v59, 0 }
 0x592   : > { %2648 = vrot.lane.b32.xlu2 %v8166_v6, %s7531_s8  ;;  %2471 = vmatpush.bf16.msrb.mxu0 %v2462_v31 }
 0x593   : > { %2767 = vrot.lane.b32.xlu1 %v8268_v2, %s7531_s8 }
 0x598   : > { %v2481_v46 = vpop.permute.xlu0 %2480 }
 0x599   : > { %v2486_v4 = vsel %vm1935_vm2, %v2481_v46, 0 }
 0x59a   : > { %2552 = vrot.lane.b32.xlu2 %v8487_v1, %s7530_s21  ;;  %2495 = vmatpush.bf16.msrb.mxu1 %v2486_v4 }
 0x59b   : > { %2704 = vrot.lane.b32.xlu1 %v8285_v10, %s7531_s8 }
 0x5a2   : > { %2746 = vrot.lane.b32.xlu2 %v8261_v62, %s7531_s8 }
 0x5a3   : > { %2650 = vrot.lane.b32.xlu1 %v8171_v12, %s7531_s8 }
 0x5aa   : > { %2642 = vrot.lane.b32.xlu2 %v8144_v49, %s7531_s8 }
 0x5ab   : > { %2788 = vrot.lane.b32.xlu1 %v8304_v28, %s7531_s8 }
 0x5b2   : > { %2725 = vrot.lane.b32.xlu2 %v8350_v22, %s7531_s8 }
 0x5ba   : > { %2652 = vrot.lane.b32.xlu2 %v8185_v24, %s7531_s8 }
 0x5c2   : > { %2809 = vrot.lane.b32.xlu2 %v8316_v39, %s7531_s8 }
 0x5c3   : > { %v2326_v61 = vpop.xlane.xlu0 %2325 }
 0x5c4   : > { %v2338_v17 = vsub.f32 %v8436_v33, %v2326_v61 }
 0x5c6   : > { %v2351_v5 = vmul.f32 1.442695, %v2338_v17 }
 0x5c8   : > { %6850 = vpow2.f32 %v2351_v5 }
 0x5ca   : > { %v2368_v8 = vpop.xlane.xlu1 %2367  ;;  %2934 = vrot.lane.b32.xlu2 %v8357_v32, %s7531_s8 }
 0x5cb   : > { %6852 = vrcp.f32 %v2368_v8 }
 0x5cd   : > { %v2365_v11 = vpop.xlane.xlu2 %2364 }
 0x5ce   : > { %v8511_v30 = vpop.eup %6850  ;;  %6854 = vrcp.f32 %v2365_v11 }
 0x5cf   : > { %v2372_v15 = vsel %vm1835_vm3, %v8511_v30, 0.0 }
 0x5d0   : > { %2373 = vadd.xlane.f32.xlu0 %v2372_v15  ;;  %v2355_v15 = vmul.f32 1.442695, %v2340_v14 }
 0x5d1   : > { %v6853_v20 = vpop.eup %6852 }
 0x5d2   : > { %v2392_v21 = vmul.f32 %v6853_v20, %v8440_v0 }
 0x5d4   : > { %v6855_v41 = vpop.eup %6854  ;;  %v2400_v33 = vpack.c.bf16 %v2392_v21, %v2392_v21 }
 0x5d5   : > { %v2391_v26 = vmul.f32 %v6855_v41, %v8444_v34  ;;  %v2654_v34 = vrot.slane %v8470_v60, 4 }
 0x5d6   : > { %6017 = vmatmul.msk.bf16.vlgmr.msrb.gmra.mxu1 %vm1835_vm3, %v2400_v33 }
 0x5d7   : > { %v2399_v13 = vpack.c.bf16 %v2391_v26, %v2391_v26  ;;  %v2668_v59 = vsel %vm1674_vm1, %v2654_v34, 0 }
 0x5d9   : > { %6016 = vmatmul.msk.bf16.vlgmr.msrb.gmra.mxu0 %vm1835_vm3, %v2399_v13 }
 0x5dd   : > { %v2377_v45 = vpop.xlane.xlu1 %2376 }
 0x5e2   : > { %v2362_v3 = vpop.xlane.xlu0 %2361 }
 0x5e3   : > { %6856 = vrcp.f32 %v2362_v3 }
 0x5e4   : > { %2683 = vrot.lane.b32.xlu0 %v8234_v19, %s7531_s8 }
 0x5e5   : > { %v2359_v43 = vpop.xlane.xlu2 %2358 }
 0x5e6   : > { %6858 = vrcp.f32 %v2359_v43 }
 0x5e9   : > { %v6857_v47 = vpop.eup %6856 }
 0x5ea   : > { %v2390_v0 = vmul.f32 %v6857_v47, %v8456_v36  ;;  %v2371_v54 = vpop.xlane.xlu0 %2370 }
 0x5eb   : > { %6860 = vrcp.f32 %v2371_v54 }
 0x5ec   : > { %v6859_v40 = vpop.eup %6858  ;;  %v2398_v53 = vpack.c.bf16 %v2390_v0, %v2390_v0  ;;  %6862 = vrcp.f32 %v2377_v45 }
 0x5ed   : > { %v2389_v48 = vmul.f32 %v6859_v40, %v8460_v16  ;;  %v2663_v50 = vpop.permute.xlu2 %2662  ;;  %6864 = vpow2.f32 %v2355_v15 }
 0x5ee   : > { %6015 = vmatmul.msk.bf16.vlgmr.msrb.gmra.mxu3 %vm1835_vm3, %v2398_v53 }
 0x5ef   : > { %v2397_v25 = vpack.c.bf16 %v2389_v48, %v2389_v48  ;;  %2698 = vmatpush.bf16.xpose.msrb.mxu3 %v2689_v37 }
 0x5f1   : > { %6014 = vmatmul.msk.bf16.vlgmr.msra.gmra.mxu2 %vm1835_vm3, %v2397_v25  ;;  %v6861_v57 = vpop.eup %6860 }
 0x5f2   : > { %2677 = vmatpush.bf16.xpose.msra.mxu2 %v2668_v59  ;;  %v6863_v31 = vpop.eup %6862  ;;  %v2393_v16 = vmul.f32 %v6861_v57, %v8464_v23 }
 0x5f3   : > { %v2395_v46 = vmul.f32 %v6863_v31, %v8452_v38  ;;  %v6865_v38 = vpop.eup %6864 }
 0x5f4   : > { %v2401_v11 = vpack.c.bf16 %v2393_v16, %v2393_v16  ;;  %v2378_v33 = vsel %vm1835_vm3, %v6865_v38, 0.0 }
 0x5f5   : > { %v2647_v36 = vpop.permute.xlu1 %2646  ;;  %v2649_v60 = vpop.permute.xlu2 %2648  ;;  %v2403_v20 = vpack.c.bf16 %v2395_v46, %v2395_v46 }
 0x5f6   : > { %v2658_v4 = vrot.slane %v2647_v36, 4  ;;  %v2659_v37 = vrot.slane %v2649_v60, 4 }
 0x5f8   : > { %v2752_v21 = vsel %vm1674_vm1, %v2658_v4, 0  ;;  %v2773_v59 = vsel %vm1674_vm1, %v2659_v37, 0 }
 0x5fd   : > { %v2577_v61 = vpop.permute.xlu1 %2576  ;;  %v2553_v17 = vpop.permute.xlu2 %2552 }
 0x5fe   : > { %v2582_v5 = vsel %vm1935_vm2, %v2577_v61, 0  ;;  %v2558_v8 = vsel %vm1935_vm2, %v2553_v17, 0 }
 0x5ff   : > { %2567 = vmatpush.bf16.msra.mxu0 %v2558_v8  ;;  %2591 = vmatpush.bf16.msra.mxu1 %v2582_v5 }
 0x601   : > { %6018 = vmatmul.msk.bf16.vlgmr.msrb.gmra.mxu2 %vm1835_vm3, %v2401_v11 }
 0x602   : > { %2761 = vmatpush.bf16.xpose.msrb.mxu2 %v2752_v21  ;;  %6020 = vmatmul.msk.bf16.vlgmr.msra.gmra.mxu0 %vm1835_vm3, %v2403_v20 }
 0x605   : > { %v2768_v29 = vpop.permute.xlu1 %2767  ;;  %v2747_v7 = vpop.permute.xlu2 %2746 }
 0x60d   : > { %v2705_v23 = vpop.permute.xlu1 %2704  ;;  %v2643_v41 = vpop.permute.xlu2 %2642 }
 0x60e   : > { %v2656_v26 = vrot.slane %v2643_v41, 4  ;;  %2379 = vadd.xlane.f32.xlu0 %v2378_v33 }
 0x610   : > { %v2710_v13 = vsel %vm1674_vm1, %v2656_v26, 0 }
 0x611   : > { %6022 = vmatmul.msk.bf16.vlgmr.msra.gmra.mxu2 %vm1674_vm1, %v2663_v50  ;;  %2719 = vmatpush.bf16.xpose.msrb.mxu0 %v2710_v13 }
 0x615   : > { %v2651_v3 = vpop.permute.xlu1 %2650  ;;  %v2726_v43 = vpop.permute.xlu2 %2725 }
 0x616   : > { %v2660_v47 = vrot.slane %v2651_v3, 4 }
 0x618   : > { %v2794_v44 = vsel %vm1674_vm1, %v2660_v47, 0  ;;  %6024 = vmatmul.msk.bf16.vlgmr.msrb.gmra.mxu0 %vm1674_vm1, %v2705_v23 }
 0x619   : > { %2803 = vmatpush.bf16.xpose.msra.mxu0 %v2794_v44 }
 0x61d   : > { %v2653_v0 = vpop.permute.xlu2 %2652  ;;  %v2789_v53 = vpop.permute.xlu1 %2788 }
 0x621   : > { %6026 = vmatmul.msk.bf16.vlgmr.msrb.gmra.mxu2 %vm1674_vm1, %v2747_v7 }
 0x622   : > { %2644 = vrot.lane.b32.xlu0 %v8152_v56, %s7531_s8 }
 0x625   : > { %v2810_v40 = vpop.permute.xlu2 %2809 }
 0x628   : > { %6028 = vmatmul.msk.bf16.vlgmr.msra.gmra.mxu0 %vm1674_vm1, %v2789_v53 }
 0x62d   : > { %v2935_v34 = vpop.permute.xlu2 %2934 }
 0x62e   : > { %v2940_v45 = vsel %vm1935_vm2, %v2935_v34, 0 }
 0x62f   : > { %2949 = vmatpush.bf16.msra.mxu2 %v2940_v45 }
 0x643   : > { %v2374_v48 = vpop.xlane.xlu0 %2373 }
 0x644   : > { %6866 = vrcp.f32 %v2374_v48 }
 0x64a   : > { %v6867_v50 = vpop.eup %6866 }
 0x64b   : > { %v2394_v25 = vmul.f32 %v6867_v50, %v8511_v30 }
 0x64d   : > { %v2402_v54 = vpack.c.bf16 %v2394_v25, %v2394_v25 }
 0x64f   : > { %6019 = vmatmul.msk.bf16.vlgmr.msra.gmra.mxu3 %vm1835_vm3, %v2402_v54 }
 0x650   : > { %2782 = vmatpush.bf16.xpose.msra.mxu3 %v2773_v59 }
 0x653   : > { %v8550_v36 = vpop.f32.mrf.mxu1 }
 0x656   : > { %v8552_v57 = vpop.f32.mrf.mxu0  ;;  %v2684_v16 = vpop.permute.xlu0 %2683 }
 0x65b   : > { %v2499_v31 = vpop.f32.mrf.mxu1 }
 0x65e   : > { %v2475_v14 = vpop.f32.mrf.mxu0 }
 0x65f   : > { %6023 = vmatmul.msk.bf16.vlgmr.msrb.gmra.mxu3 %vm1674_vm1, %v2684_v16 }
 0x66f   : > { %6027 = vmatmul.msk.bf16.vlgmr.msra.gmra.mxu3 %vm1674_vm1, %v2768_v29  ;;  %v2661_v29 = vrot.slane %v2653_v0, 4 }
 0x671   : > { %v8556_v60 = vpop.f32.mrf.mxu3  ;;  %v2815_v3 = vsel %vm1674_vm1, %v2661_v29, 0 }
 0x674   : > { %v8558_v30 = vpop.f32.mrf.mxu2 }
 0x679   : > { %v2451_v46 = vpop.f32.mrf.mxu3 }
 0x67c   : > { %v2427_v4 = vpop.f32.mrf.mxu2 }
 0x67f   : > { %v8560_v61 = vpop.f32.mrf.mxu0 }
 0x681   : > { %v2380_v17 = vpop.xlane.xlu0 %2379 }
 0x682   : > { %6868 = vrcp.f32 %v2380_v17 }
 0x684   : > { %v8562_v5 = vpop.f32.mrf.mxu2 }
 0x687   : > { %v2571_v8 = vpop.f32.mrf.mxu0 }
 0x688   : > { %v6869_v11 = vpop.eup %6868 }
 0x689   : > { %v2396_v15 = vmul.f32 %v6869_v11, %v6865_v38 }
 0x68b   : > { %v2404_v20 = vpack.c.bf16 %v2396_v15, %v2396_v15 }
 0x68c   : > { %v2523_v21 = vpop.f32.mrf.mxu2 }
 0x68d   : > { %6021 = vmatmul.msk.bf16.vlgmr.msra.gmra.mxu1 %vm1835_vm3, %v2404_v20 }
 0x694   : > { %v2679_v7 = vpop.f32.mrf.mxu2  ;;  %v2645_v23 = vpop.permute.xlu0 %2644 }
 0x695   : > { %v2657_v41 = vrot.slane %v2645_v23, 4  ;;  %v2721_v33 = vpop.f32.mrf.mxu0  ;;  %v2830_v48 = vmul.f32 0.17677669, %v2679_v7 }
 0x696   : > { %v8565_v26 = vmul.f32 0.17677669, %v2721_v33 }
 0x697   : > { %v2731_v13 = vsel %vm1674_vm1, %v2657_v41, 0  ;;  %v2838_v25 = vsel %vm1835_vm3, %v2830_v48, -inf }
 0x698   : > { %2740 = vmatpush.bf16.xpose.msrb.mxu1 %v2731_v13  ;;  %v2844_v47 = vsel %vm1835_vm3, %v8565_v26, -inf }
 0x699   : > { %2845 = vmax.xlane.f32.xlu2 %v2844_v47 }
 0x69c   : > { %v2681_v38 = vpop.f32.mrf.mxu2 }
 0x69d   : > { %v2723_v44 = vpop.f32.mrf.mxu0 }
 0x69f   : > { %6025 = vmatmul.msk.bf16.vlgmr.msrb.gmra.mxu1 %vm1674_vm1, %v2726_v43 }
 0x6a0   : > { %2824 = vmatpush.bf16.xpose.msra.mxu1 %v2815_v3 }
 0x6a4   : > { %v2763_v0 = vpop.f32.mrf.mxu2 }
 0x6a5   : > { %v2805_v53 = vpop.f32.mrf.mxu0  ;;  %v2834_v33 = vmul.f32 0.17677669, %v2763_v0 }
 0x6a6   : > { %v2836_v34 = vmul.f32 0.17677669, %v2805_v53 }
 0x6a7   : > { %v2850_v47 = vsel %vm1835_vm3, %v2834_v33, -inf }
 0x6a8   : > { %v2856_v45 = vsel %vm1835_vm3, %v2836_v34, -inf }
 0x6a9   : > { %2857 = vmax.xlane.f32.xlu0 %v2856_v45 }
 0x6ac   : > { %v2765_v50 = vpop.f32.mrf.mxu2 }
 0x6ad   : > { %v2807_v37 = vpop.f32.mrf.mxu0 }
 0x6af   : > { %6029 = vmatmul.msk.bf16.vlgmr.msra.gmra.mxu1 %vm1674_vm1, %v2810_v40 }
 0x6b1   : > { %2839 = vmax.xlane.f32.xlu0 %v2838_v25 }
 0x6c5   : > { %3018 = vrot.lane.b32.xlu0 %v8414_v51, %s7531_s8 }
 0x6cd   : > { %3143 = vrot.lane.b32.xlu0 %v8128_v35, %s7532_s29 }
 0x6d2   : > { %v8579_v43 = vpop.f32.mrf.mxu3 }
 0x6d5   : > { %3145 = vrot.lane.b32.xlu0 %v8136_v42, %s7532_s29 }
 0x6da   : > { %v2547_v54 = vpop.f32.mrf.mxu3 }
 0x6dd   : > { %2976 = vrot.lane.b32.xlu0 %v8427_v9, %s7531_s8 }
 0x6e2   : > { %v2700_v40 = vpop.f32.mrf.mxu3 }
 0x6e3   : > { %v2831_v11 = vmul.f32 0.17677669, %v2700_v40 }
 0x6e5   : > { %v2841_v21 = vsel %vm1835_vm3, %v2831_v11, -inf }
 0x6ea   : > { %v2702_v59 = vpop.f32.mrf.mxu3 }
 0x6f2   : > { %v2784_v31 = vpop.f32.mrf.mxu3 }
 0x6f3   : > { %v8585_v14 = vmul.f32 0.17677669, %v2784_v31 }
 0x6f5   : > { %v2853_v46 = vsel %vm1835_vm3, %v8585_v14, -inf }
 0x6fa   : > { %v2786_v16 = vpop.f32.mrf.mxu3 }
 0x707   : > { %2854 = vmax.xlane.f32.xlu0 %v2853_v46 }
 0x70a   : > { %v8589_v35 = vpop.f32.mrf.mxu1 }
 0x70c   : > { %v2846_v0 = vpop.xlane.xlu2 %2845 }
 0x70d   : > { %v2864_v37 = vsub.f32 %v8565_v26, %v2846_v0 }
 0x70f   : > { %v2874_v25 = vmul.f32 1.442695, %v2864_v37 }
 0x711   : > { %6870 = vpow2.f32 %v2874_v25 }
 0x712   : > { %v2595_v4 = vpop.f32.mrf.mxu1 }
 0x717   : > { %v8611_v59 = vpop.eup %6870 }
 0x718   : > { %v2892_v16 = vsel %vm1835_vm3, %v8611_v59, 0.0 }
 0x71b   : > { %2997 = vrot.lane.b32.xlu0 %v8432_v55, %s7531_s8 }
 0x71c   : > { %v2742_v42 = vpop.f32.mrf.mxu1  ;;  %v2858_v20 = vpop.xlane.xlu0 %2857 }
 0x71d   : > { %v2833_v17 = vmul.f32 0.17677669, %v2742_v42  ;;  %v2868_v54 = vsub.f32 %v2836_v34, %v2858_v20 }
 0x71f   : > { %v2847_v8 = vsel %vm1835_vm3, %v2833_v17, -inf  ;;  %v2882_v40 = vmul.f32 1.442695, %v2868_v54 }
 0x720   : > { %2848 = vmax.xlane.f32.xlu1 %v2847_v8 }
 0x721   : > { %6872 = vpow2.f32 %v2882_v40 }
 0x724   : > { %v2744_v15 = vpop.f32.mrf.mxu1  ;;  %v2840_v23 = vpop.xlane.xlu0 %2839 }
 0x725   : > { %v2862_v31 = vsub.f32 %v2830_v48, %v2840_v23 }
 0x727   : > { %v2870_v46 = vmul.f32 1.442695, %v2862_v31  ;;  %v8615_v4 = vpop.eup %6872 }
 0x728   : > { %2842 = vmax.xlane.f32.xlu1 %v2841_v21  ;;  %v2904_v42 = vsel %vm1835_vm3, %v8615_v4, 0.0 }
 0x729   : > { %6874 = vpow2.f32 %v2870_v46 }
 0x72c   : > { %v2826_v29 = vpop.f32.mrf.mxu1 }
 0x72d   : > { %v8595_v7 = vmul.f32 0.17677669, %v2826_v29 }
 0x72f   : > { %v2859_v41 = vsel %vm1835_vm3, %v8595_v7, -inf  ;;  %v8619_v26 = vpop.eup %6874 }
 0x730   : > { %2860 = vmax.xlane.f32.xlu2 %v2859_v41  ;;  %v2886_v34 = vsel %vm1835_vm3, %v8619_v26, 0.0 }
 0x734   : > { %v2828_v13 = vpop.f32.mrf.mxu1 }
 0x737   : > { %v3019_v3 = vpop.permute.xlu0 %3018 }
 0x738   : > { %v3024_v38 = vsel %vm1935_vm2, %v3019_v3, 0  ;;  %2851 = vmax.xlane.f32.xlu2 %v2850_v47 }
 0x739   : > { %3033 = vmatpush.bf16.msrb.mxu2 %v3024_v38 }
 0x73f   : > { %v8601_v44 = vpop.permute.xlu0 %3143 }
 0x741   : > { %2955 = vrot.lane.b32.xlu1 %v8408_v27, %s7531_s8 }
 0x747   : > { %v8605_v53 = vpop.permute.xlu0 %3145 }
 0x74f   : > { %v2977_v45 = vpop.permute.xlu0 %2976 }
 0x750   : > { %v2982_v50 = vsel %vm1935_vm2, %v2977_v45, 0  ;;  %3039 = vrot.lane.b32.xlu2 %v8418_v52, %s7531_s8 }
 0x751   : > { %2991 = vmatpush.bf16.msrb.mxu0 %v2982_v50 }
 0x76b   : > { %2893 = vadd.xlane.f32.xlu1 %v2892_v16 }
 0x773   : > { %2905 = vadd.xlane.f32.xlu1 %v2904_v42 }
 0x77a   : > { %v2855_v8 = vpop.xlane.xlu0 %2854 }
 0x77b   : > { %2887 = vadd.xlane.f32.xlu1 %v2886_v34  ;;  %v2867_v45 = vsub.f32 %v8585_v14, %v2855_v8 }
 0x77d   : > { %v2880_v0 = vmul.f32 1.442695, %v2867_v45 }
 0x78d   : > { %v2998_v48 = vpop.permute.xlu0 %2997 }
 0x78e   : > { %v3003_v15 = vsel %vm1935_vm2, %v2998_v48, 0 }
 0x78f   : > { %3012 = vmatpush.bf16.msrb.mxu1 %v3003_v15 }
 0x793   : > { %v2849_v20 = vpop.xlane.xlu1 %2848 }
 0x794   : > { %v2865_v21 = vsub.f32 %v2833_v17, %v2849_v20  ;;  %3188 = vrot.lane.b32.xlu1 %v8234_v19, %s7532_s29 }
 0x796   : > { %v2876_v29 = vmul.f32 1.442695, %v2865_v21 }
 0x798   : > { %6876 = vpow2.f32 %v2876_v29 }
 0x79b   : > { %v2843_v23 = vpop.xlane.xlu1 %2842 }
 0x79c   : > { %v2863_v41 = vsub.f32 %v2831_v11, %v2843_v23  ;;  %3153 = vrot.lane.b32.xlu1 %v8166_v6, %s7532_s29 }
 0x79e   : > { %v8628_v13 = vpop.eup %6876  ;;  %v2872_v3 = vmul.f32 1.442695, %v2863_v41 }
 0x79f   : > { %v2895_v47 = vsel %vm1835_vm3, %v8628_v13, 0.0 }
 0x7a0   : > { %6878 = vpow2.f32 %v2872_v3  ;;  %2896 = vadd.xlane.f32.xlu2 %v2895_v47  ;;  %v3160_v3 = vrot.slane %v8605_v53, 4 }
 0x7a2   : > { %v3194_v45 = vsel %vm1674_vm1, %v3160_v3, 0 }
 0x7a3   : > { %v2861_v38 = vpop.xlane.xlu2 %2860 }
 0x7a4   : > { %3081 = vrot.lane.b32.xlu1 %v8475_v58, %s7531_s8 }
 0x7a6   : > { %v8634_v19 = vpop.eup %6878 }
 0x7a7   : > { %v2889_v17 = vsel %vm1835_vm3, %v8634_v19, 0.0 }
 0x7a8   : > { %2890 = vadd.xlane.f32.xlu0 %v2889_v17 }
 0x7ab   : > { %v2852_v11 = vpop.xlane.xlu2 %2851 }
 0x7ac   : > { %v2866_v6 = vsub.f32 %v2834_v33, %v2852_v11  ;;  %3147 = vrot.lane.b32.xlu1 %v8144_v49, %s7532_s29  ;;  %v2869_v49 = vsub.f32 %v8595_v7, %v2861_v38 }
 0x7ae   : > { %v2878_v50 = vmul.f32 1.442695, %v2866_v6  ;;  %v2884_v33 = vmul.f32 1.442695, %v2869_v49 }
 0x7b0   : > { %6880 = vpow2.f32 %v2878_v50 }
 0x7b1   : > { %6882 = vpow2.f32 %v2880_v0 }
 0x7b2   : > { %6884 = vpow2.f32 %v2884_v33 }
 0x7b3   : > { %v2956_v37 = vpop.permute.xlu1 %2955  ;;  %v3040_v25 = vpop.permute.xlu2 %3039 }
 0x7b4   : > { %v2961_v54 = vsel %vm1935_vm2, %v2956_v37, 0  ;;  %v3045_v40 = vsel %vm1935_vm2, %v3040_v25, 0  ;;  %3209 = vrot.lane.b32.xlu1 %v8285_v10, %s7532_s29 }
 0x7b5   : > { %2970 = vmatpush.bf16.msrb.mxu3 %v2961_v54 }
 0x7b6   : > { %v8645_v31 = vpop.eup %6880 }
 0x7b7   : > { %v2898_v14 = vsel %vm1835_vm3, %v8645_v31, 0.0  ;;  %v8652_v16 = vpop.eup %6882 }
 0x7b8   : > { %3167 = vrot.lane.b32.xlu2 %v8230_v18, %s7532_s29  ;;  %2899 = vadd.xlane.f32.xlu0 %v2898_v14  ;;  %v2901_v10 = vsel %vm1835_vm3, %v8652_v16, 0.0  ;;  %v8660_v7 = vpop.eup %6884 }
 0x7b9   : > { %3054 = vmatpush.bf16.msra.mxu3 %v3045_v40  ;;  %v2907_v18 = vsel %vm1835_vm3, %v8660_v7, 0.0 }
 0x7bc   : > { %3155 = vrot.lane.b32.xlu1 %v8171_v12, %s7532_s29 }
 0x7c0   : > { %3151 = vrot.lane.b32.xlu2 %v8158_v63, %s7532_s29  ;;  %2902 = vadd.xlane.f32.xlu0 %v2901_v10 }
 0x7c4   : > { %3314 = vrot.lane.b32.xlu1 %v8316_v39, %s7532_s29 }
 0x7c8   : > { %3060 = vrot.lane.b32.xlu2 %v8487_v1, %s7531_s8  ;;  %2908 = vadd.xlane.f32.xlu0 %v2907_v18 }
 0x7d0   : > { %3251 = vrot.lane.b32.xlu2 %v8261_v62, %s7532_s29 }
 0x7d8   : > { %3149 = vrot.lane.b32.xlu2 %v8152_v56, %s7532_s29 }
 0x7dc   : > { %3272 = vrot.lane.b32.xlu0 %v8268_v2, %s7532_s29  ;;  %v3159_v2 = vrot.slane %v8601_v44, 4 }
 0x7de   : > { %v2894_v63 = vpop.xlane.xlu1 %2893 }
 0x7df   : > { %6886 = vrcp.f32 %v2894_v63 }
 0x7e0   : > { %3230 = vrot.lane.b32.xlu2 %v8350_v22, %s7532_s29 }
 0x7e4   : > { %3157 = vrot.lane.b32.xlu0 %v8185_v24, %s7532_s29  ;;  %v3173_v24 = vsel %vm1674_vm1, %v3159_v2, 0 }
 0x7e5   : > { %v6887_v12 = vpop.eup %6886 }
 0x7e6   : > { %v2920_v39 = vmul.f32 %v6887_v12, %v8611_v59  ;;  %v2906_v46 = vpop.xlane.xlu1 %2905 }
 0x7e8   : > { %v2928_v42 = vpack.c.bf16 %v2920_v39, %v2920_v39  ;;  %3293 = vrot.lane.b32.xlu2 %v8304_v28, %s7532_s29 }
 0x7ea   : > { %6032 = vmatmul.msk.bf16.vlgmr.msrb.gmra.mxu0 %vm1835_vm3, %v2928_v42 }
 0x7ee   : > { %v2888_v56 = vpop.xlane.xlu1 %2887 }
 0x7ef   : > { %6888 = vrcp.f32 %v2888_v56 }
 0x7f5   : > { %v6889_v62 = vpop.eup %6888 }
 0x7f6   : > { %v2918_v22 = vmul.f32 %v6889_v62, %v8619_v26 }
 0x7f8   : > { %v2926_v34 = vpack.c.bf16 %v2918_v22, %v2918_v22 }
 0x7fa   : > { %6030 = vmatmul.msk.bf16.vlgmr.msra.gmra.mxu2 %vm1835_vm3, %v2926_v34 }
 0x7fb   : > { %3182 = vmatpush.bf16.xpose.msra.mxu2 %v3173_v24 }
 0x806   : > { %v8686_v59 = vpop.permute.xlu1 %3188 }
 0x80e   : > { %v3154_v8 = vpop.permute.xlu1 %3153 }
 0x813   : > { %v2897_v48 = vpop.xlane.xlu2 %2896 }
 0x814   : > { %6890 = vrcp.f32 %v2897_v48 }
 0x816   : > { %v3082_v28 = vpop.permute.xlu1 %3081 }
 0x817   : > { %v3087_v15 = vsel %vm1935_vm2, %v3082_v28, 0 }
 0x818   : > { %3096 = vmatpush.bf16.msra.mxu1 %v3087_v15 }
 0x81a   : > { %v6891_v20 = vpop.eup %6890 }
 0x81b   : > { %v2921_v44 = vmul.f32 %v6891_v20, %v8628_v13  ;;  %v3168_v21 = vpop.permute.xlu2 %3167  ;;  %v2891_v26 = vpop.xlane.xlu0 %2890 }
 0x81c   : > { %6892 = vrcp.f32 %v2891_v26 }
 0x81d   : > { %v2929_v29 = vpack.c.bf16 %v2921_v44, %v2921_v44  ;;  %6894 = vrcp.f32 %v2906_v46  ;;  %v3164_v46 = vrot.slane %v3154_v8, 4 }
 0x81e   : > { %v3148_v23 = vpop.permute.xlu1 %3147 }
 0x81f   : > { %6033 = vmatmul.msk.bf16.vlgmr.msrb.gmra.mxu1 %vm1835_vm3, %v2929_v29  ;;  %v3161_v13 = vrot.slane %v3148_v23, 4  ;;  %v3278_v34 = vsel %vm1674_vm1, %v3164_v46, 0 }
 0x821   : > { %v3215_v53 = vsel %vm1674_vm1, %v3161_v13, 0 }
 0x822   : > { %v6893_v41 = vpop.eup %6892 }
 0x823   : > { %v2919_v47 = vmul.f32 %v6893_v41, %v8634_v19  ;;  %v3152_v38 = vpop.permute.xlu2 %3151  ;;  %v6895_v6 = vpop.eup %6894 }
 0x824   : > { %v2924_v50 = vmul.f32 %v6895_v6, %v8615_v4  ;;  %v3163_v33 = vrot.slane %v3152_v38, 4 }
 0x825   : > { %v2927_v17 = vpack.c.bf16 %v2919_v47, %v2919_v47 }
 0x826   : > { %v3210_v11 = vpop.permute.xlu1 %3209  ;;  %v2932_v19 = vpack.c.bf16 %v2924_v50, %v2924_v50  ;;  %v3257_v12 = vsel %vm1674_vm1, %v3163_v33, 0 }
 0x827   : > { %6031 = vmatmul.msk.bf16.vlgmr.msrb.gmra.mxu3 %vm1835_vm3, %v2927_v17 }
 0x828   : > { %3203 = vmatpush.bf16.xpose.msrb.mxu3 %v3194_v45 }
 0x82b   : > { %v3061_v0 = vpop.permute.xlu2 %3060  ;;  %v2900_v37 = vpop.xlane.xlu0 %2899 }
 0x82c   : > { %v3066_v25 = vsel %vm1935_vm2, %v3061_v0, 0  ;;  %6896 = vrcp.f32 %v2900_v37 }
 0x82d   : > { %3075 = vmatpush.bf16.msra.mxu0 %v3066_v25 }
 0x82e   : > { %v3156_v54 = vpop.permute.xlu1 %3155 }
 0x82f   : > { %v3165_v40 = vrot.slane %v3156_v54, 4 }
 0x830   : > { %6036 = vmatmul.msk.bf16.vlgmr.msra.gmra.mxu0 %vm1835_vm3, %v2932_v19 }
 0x831   : > { %3224 = vmatpush.bf16.xpose.msrb.mxu0 %v3215_v53  ;;  %v3299_v49 = vsel %vm1674_vm1, %v3165_v40, 0 }
 0x832   : > { %v6897_v14 = vpop.eup %6896 }
 0x833   : > { %v2922_v4 = vmul.f32 %v6897_v14, %v8645_v31  ;;  %v3252_v10 = vpop.permute.xlu2 %3251  ;;  %v2903_v18 = vpop.xlane.xlu0 %2902 }
 0x834   : > { %6898 = vrcp.f32 %v2903_v18 }
 0x835   : > { %v2930_v63 = vpack.c.bf16 %v2922_v4, %v2922_v4 }
 0x836   : > { %v3315_v26 = vpop.permute.xlu1 %3314 }
 0x837   : > { %6034 = vmatmul.msk.bf16.vlgmr.msrb.gmra.mxu2 %vm1835_vm3, %v2930_v63 }
 0x838   : > { %3266 = vmatpush.bf16.xpose.msrb.mxu2 %v3257_v12 }
 0x839   : > { %3308 = vmatpush.bf16.xpose.msra.mxu0 %v3299_v49 }
 0x83a   : > { %v6899_v39 = vpop.eup %6898 }
 0x83b   : > { %v2923_v42 = vmul.f32 %v6899_v39, %v8652_v16  ;;  %v3150_v56 = vpop.permute.xlu2 %3149  ;;  %v2909_v62 = vpop.xlane.xlu0 %2908 }
 0x83c   : > { %v3162_v2 = vrot.slane %v3150_v56, 4  ;;  %6900 = vrcp.f32 %v2909_v62 }
 0x83d   : > { %v2931_v22 = vpack.c.bf16 %v2923_v42, %v2923_v42 }
 0x83e   : > { %v3236_v31 = vsel %vm1674_vm1, %v3162_v2, 0 }
 0x83f   : > { %6035 = vmatmul.msk.bf16.vlgmr.msra.gmra.mxu3 %vm1835_vm3, %v2931_v22  ;;  %3245 = vmatpush.bf16.xpose.msrb.mxu1 %v3236_v31 }
 0x840   : > { %3287 = vmatpush.bf16.xpose.msra.mxu3 %v3278_v34  ;;  %6040 = vmatmul.msk.bf16.vlgmr.msrb.gmra.mxu0 %vm1674_vm1, %v3210_v11 }
 0x842   : > { %v6901_v24 = vpop.eup %6900 }
 0x843   : > { %v2925_v8 = vmul.f32 %v6901_v24, %v8660_v7  ;;  %v3231_v16 = vpop.permute.xlu2 %3230 }
 0x845   : > { %v2933_v48 = vpack.c.bf16 %v2925_v8, %v2925_v8 }
 0x847   : > { %6037 = vmatmul.msk.bf16.vlgmr.msra.gmra.mxu1 %vm1835_vm3, %v2933_v48  ;;  %6038 = vmatmul.msk.bf16.vlgmr.msra.gmra.mxu2 %vm1674_vm1, %v3168_v21 }
 0x84b   : > { %v3294_v15 = vpop.permute.xlu2 %3293 }
 0x84e   : > { %v3273_v28 = vpop.permute.xlu0 %3272 }
 0x84f   : > { %6039 = vmatmul.msk.bf16.vlgmr.msrb.gmra.mxu3 %vm1674_vm1, %v8686_v59 }
 0x850   : > { %6044 = vmatmul.msk.bf16.vlgmr.msra.gmra.mxu0 %vm1674_vm1, %v3294_v15 }
 0x856   : > { %v3158_v20 = vpop.permute.xlu0 %3157 }
 0x857   : > { %v3166_v44 = vrot.slane %v3158_v20, 4  ;;  %6041 = vmatmul.msk.bf16.vlgmr.msrb.gmra.mxu1 %vm1674_vm1, %v3231_v16  ;;  %6042 = vmatmul.msk.bf16.vlgmr.msrb.gmra.mxu2 %vm1674_vm1, %v3252_v10 }
 0x859   : > { %v3320_v7 = vsel %vm1674_vm1, %v3166_v44, 0 }
 0x85a   : > { %3329 = vmatpush.bf16.xpose.msra.mxu1 %v3320_v7 }
 0x85f   : > { %6043 = vmatmul.msk.bf16.vlgmr.msra.gmra.mxu3 %vm1674_vm1, %v3273_v28 }
 0x867   : > { %v8718_v21 = vpop.f32.mrf.mxu0  ;;  %6045 = vmatmul.msk.bf16.vlgmr.msra.gmra.mxu1 %vm1674_vm1, %v3315_v26 }
 0x86f   : > { %v2995_v29 = vpop.f32.mrf.mxu0 }
 0x87d   : > { %v8721_v59 = vpop.f32.mrf.mxu2 }
 0x885   : > { %v2953_v23 = vpop.f32.mrf.mxu2 }
 0x89c   : > { %v8723_v41 = vpop.f32.mrf.mxu1 }
 0x8a4   : > { %v3016_v3 = vpop.f32.mrf.mxu1 }
 0x8aa   : > { %v8725_v47 = vpop.f32.mrf.mxu3 }
 0x8ad   : > { %v8727_v38 = vpop.f32.mrf.mxu0 }
 0x8b2   : > { %v2974_v17 = vpop.f32.mrf.mxu3 }
 0x8b5   : > { %v3079_v11 = vpop.f32.mrf.mxu0 }
 0x8ba   : > { %v8729_v6 = vpop.f32.mrf.mxu2 }
 0x8bd   : > { %v3226_v45 = vpop.f32.mrf.mxu0 }
 0x8be   : > { %v3337_v13 = vmul.f32 0.17677669, %v3226_v45 }
 0x8c0   : > { %v3349_v50 = vsel %vm1835_vm3, %v3337_v13, -inf }
 0x8c1   : > { %3350 = vmax.xlane.f32.xlu2 %v3349_v50 }
 0x8c2   : > { %v3037_v0 = vpop.f32.mrf.mxu2  ;;  %v8732_v37 = vpop.f32.mrf.mxu3 }
 0x8c4   : > { %v8734_v25 = vpop.f32.mrf.mxu1 }
 0x8c5   : > { %v3228_v53 = vpop.f32.mrf.mxu0 }
 0x8ca   : > { %v3058_v19 = vpop.f32.mrf.mxu3  ;;  %v3184_v54 = vpop.f32.mrf.mxu2 }
 0x8cb   : > { %v3335_v18 = vmul.f32 0.17677669, %v3184_v54 }
 0x8cc   : > { %v3100_v40 = vpop.f32.mrf.mxu1 }
 0x8cd   : > { %v3310_v49 = vpop.f32.mrf.mxu0  ;;  %v3343_v42 = vsel %vm1835_vm3, %v3335_v18, -inf }
 0x8ce   : > { %v8736_v14 = vmul.f32 0.17677669, %v3310_v49 }
 0x8d0   : > { %v3361_v33 = vsel %vm1835_vm3, %v8736_v14, -inf }
 0x8d1   : > { %3362 = vmax.xlane.f32.xlu0 %v3361_v33 }
 0x8d2   : > { %v3186_v4 = vpop.f32.mrf.mxu2  ;;  %v3205_v10 = vpop.f32.mrf.mxu3 }
 0x8d3   : > { %v3336_v15 = vmul.f32 0.17677669, %v3205_v10 }
 0x8d4   : > { %v3247_v63 = vpop.f32.mrf.mxu1 }
 0x8d5   : > { %v3338_v12 = vmul.f32 0.17677669, %v3247_v63  ;;  %v3312_v39 = vpop.f32.mrf.mxu0  ;;  %v3346_v44 = vsel %vm1835_vm3, %v3336_v15, -inf }
 0x8d7   : > { %v3352_v46 = vsel %vm1835_vm3, %v3338_v12, -inf }
 0x8d8   : > { %3353 = vmax.xlane.f32.xlu1 %v3352_v46 }
 0x8d9   : > { %3344 = vmax.xlane.f32.xlu0 %v3343_v42 }
 0x8da   : > { %v3207_v56 = vpop.f32.mrf.mxu3  ;;  %v3268_v62 = vpop.f32.mrf.mxu2 }
 0x8db   : > { %v3339_v7 = vmul.f32 0.17677669, %v3268_v62 }
 0x8dc   : > { %v3249_v2 = vpop.f32.mrf.mxu1 }
 0x8dd   : > { %v3355_v26 = vsel %vm1835_vm3, %v3339_v7, -inf }
 0x8e2   : > { %v3270_v22 = vpop.f32.mrf.mxu2  ;;  %v3289_v31 = vpop.f32.mrf.mxu3 }
 0x8e3   : > { %v8742_v34 = vmul.f32 0.17677669, %v3289_v31 }
 0x8e4   : > { %v3331_v24 = vpop.f32.mrf.mxu1 }
 0x8e5   : > { %v8744_v8 = vmul.f32 0.17677669, %v3331_v24  ;;  %v3358_v48 = vsel %vm1835_vm3, %v8742_v34, -inf }
 0x8e6   : > { %3359 = vmax.xlane.f32.xlu0 %v3358_v48 }
 0x8e7   : > { %v3364_v16 = vsel %vm1835_vm3, %v8744_v8, -inf }
 0x8e8   : > { %3365 = vmax.xlane.f32.xlu2 %v3364_v16 }
 0x8ea   : > { %v3291_v28 = vpop.f32.mrf.mxu3 }
 0x8ec   : > { %v3333_v20 = vpop.f32.mrf.mxu1 }
 0x8f0   : > { %3347 = vmax.xlane.f32.xlu2 %v3346_v44 }
 0x8f1   : > { %3460 = vrot.lane.b32.xlu1 %v8408_v27, %s7532_s29 }
 0x8f9   : > { %3523 = vrot.lane.b32.xlu1 %v8414_v51, %s7532_s29 }
 0x908   : > { %3439 = vrot.lane.b32.xlu2 %v8357_v32, %s7532_s29 }
 0x923   : > { %3356 = vmax.xlane.f32.xlu1 %v3355_v26 }
 0x934   : > { %v3351_v29 = vpop.xlane.xlu2 %3350 }
 0x935   : > { %v3369_v23 = vsub.f32 %v3337_v13, %v3351_v29 }
 0x937   : > { %v3379_v3 = vmul.f32 1.442695, %v3369_v23 }
 0x939   : > { %6902 = vpow2.f32 %v3379_v3 }
 0x93f   : > { %v8758_v17 = vpop.eup %6902 }
 0x940   : > { %v3397_v11 = vsel %vm1835_vm3, %v8758_v17, 0.0 }
 0x941   : > { %3398 = vadd.xlane.f32.xlu0 %v3397_v11 }
 0x944   : > { %v8762_v27 = vpop.xlane.xlu0 %3362 }
 0x94b   : > { %v3354_v51 = vpop.xlane.xlu1 %3353 }
 0x94c   : > { %v3370_v45 = vsub.f32 %v3338_v12, %v3354_v51  ;;  %v3345_v50 = vpop.xlane.xlu0 %3344 }
 0x94d   : > { %v3367_v32 = vsub.f32 %v3335_v18, %v3345_v50 }
 0x94e   : > { %v3381_v0 = vmul.f32 1.442695, %v3370_v45 }
 0x94f   : > { %v3375_v53 = vmul.f32 1.442695, %v3367_v32 }
 0x950   : > { %6904 = vpow2.f32 %v3381_v0 }
 0x951   : > { %6906 = vpow2.f32 %v3375_v53 }
 0x956   : > { %v8764_v19 = vpop.eup %6904 }
 0x957   : > { %v6907_v13 = vpop.eup %6906  ;;  %v3400_v54 = vsel %vm1835_vm3, %v8764_v19, 0.0 }
 0x958   : > { %3401 = vadd.xlane.f32.xlu2 %v3400_v54  ;;  %v3391_v40 = vsel %vm1835_vm3, %v6907_v13, 0.0 }
 0x959   : > { %3392 = vadd.xlane.f32.xlu1 %v3391_v40  ;;  %v3360_v2 = vpop.xlane.xlu0 %3359 }
 0x95b   : > { %v3366_v49 = vpop.xlane.xlu2 %3365 }
 0x963   : > { %v3461_v33 = vpop.permute.xlu1 %3460  ;;  %v3348_v4 = vpop.xlane.xlu2 %3347 }
 0x964   : > { %v3466_v10 = vsel %vm1935_vm2, %v3461_v33, 0  ;;  %v3368_v18 = vsub.f32 %v3336_v15, %v3348_v4 }
 0x965   : > { %3475 = vmatpush.bf16.msrb.mxu3 %v3466_v10 }
 0x966   : > { %v3377_v63 = vmul.f32 1.442695, %v3368_v18 }
 0x968   : > { %6908 = vpow2.f32 %v3377_v63 }
 0x96b   : > { %v3524_v12 = vpop.permute.xlu1 %3523  ;;  %v3440_v39 = vpop.permute.xlu2 %3439 }
 0x96c   : > { %v3529_v46 = vsel %vm1935_vm2, %v3524_v12, 0  ;;  %v3445_v42 = vsel %vm1935_vm2, %v3440_v39, 0 }
 0x96d   : > { %3454 = vmatpush.bf16.msra.mxu2 %v3445_v42 }
 0x96e   : > { %v8772_v56 = vpop.eup %6908 }
 0x96f   : > { %v3394_v62 = vsel %vm1835_vm3, %v8772_v56, 0.0 }
 0x970   : > { %3565 = vrot.lane.b32.xlu2 %v8487_v1, %s7532_s29  ;;  %3395 = vadd.xlane.f32.xlu0 %v3394_v62  ;;  %v3374_v1 = vsub.f32 %v8744_v8, %v3366_v49 }
 0x971   : > { %3538 = vmatpush.bf16.msrb.mxu2 %v3529_v46 }
 0x972   : > { %3481 = vrot.lane.b32.xlu1 %v8427_v9, %s7532_s29  ;;  %v3389_v22 = vmul.f32 1.442695, %v3374_v1 }
 0x974   : > { %6910 = vpow2.f32 %v3389_v22 }
 0x978   : > { %3586 = vrot.lane.b32.xlu2 %v8475_v58, %s7532_s29 }
 0x97a   : > { %3502 = vrot.lane.b32.xlu1 %v8432_v55, %s7532_s29  ;;  %v3372_v55 = vsub.f32 %v8742_v34, %v3360_v2  ;;  %v8794_v24 = vpop.eup %6910 }
 0x980   : > { %2613 = vrot.lane.b32.xlu2 %v8562_v5, %s7532_s29  ;;  %v3385_v5 = vmul.f32 1.442695, %v3372_v55 }
 0x988   : > { %2615 = vrot.lane.b32.xlu2 %v8579_v43, %s7532_s29 }
 0x990   : > { %3112 = vrot.lane.b32.xlu2 %v8725_v47, %s7531_s8 }
 0x996   : > { %v3357_v9 = vpop.xlane.xlu1 %3356 }
 0x997   : > { %v3371_v31 = vsub.f32 %v3339_v7, %v3357_v9 }
 0x998   : > { %2617 = vrot.lane.b32.xlu2 %v8560_v61, %s7532_s29  ;;  %v3412_v61 = vsel %vm1835_vm3, %v8794_v24, 0.0 }
 0x999   : > { %v3383_v58 = vmul.f32 1.442695, %v3371_v31 }
 0x99b   : > { %6912 = vpow2.f32 %v3383_v58 }
 0x99c   : > { %6914 = vpow2.f32 %v3385_v5 }
 0x9a0   : > { %3116 = vrot.lane.b32.xlu2 %v8723_v41, %s7531_s8 }
 0x9a1   : > { %v8798_v43 = vpop.eup %6912 }
 0x9a2   : > { %v3403_v47 = vsel %vm1835_vm3, %v8798_v43, 0.0  ;;  %v8804_v34 = vpop.eup %6914 }
 0x9a3   : > { %3404 = vadd.xlane.f32.xlu0 %v3403_v47  ;;  %v3406_v8 = vsel %vm1835_vm3, %v8804_v34, 0.0 }
 0x9a4   : > { %3413 = vadd.xlane.f32.xlu1 %v3412_v61 }
 0x9ab   : > { %3407 = vadd.xlane.f32.xlu0 %v3406_v8 }
 0x9bd   : > { %2607 = vrot.lane.b32.xlu1 %v8556_v60, %s7532_s29  ;;  %v3373_v60 = vsub.f32 %v8736_v14, %v8762_v27 }
 0x9bf   : > { %3544 = vrot.lane.b32.xlu0 %v8418_v52, %s7532_s29  ;;  %v3399_v52 = vpop.xlane.xlu0 %3398 }
 0x9c5   : > { %3120 = vrot.lane.b32.xlu1 %v8732_v37, %s7531_s8  ;;  %v3387_v37 = vmul.f32 1.442695, %v3373_v60 }
 0x9cb   : > { %v3402_v41 = vpop.xlane.xlu2 %3401 }
 0x9cc   : > { %v3393_v48 = vpop.xlane.xlu1 %3392 }
 0x9cd   : > { %6916 = vrcp.f32 %v3393_v48  ;;  %2611 = vrot.lane.b32.xlu1 %v8550_v36, %s7532_s29 }
 0x9ce   : > { %6918 = vrcp.f32 %v3399_v52 }
 0x9cf   : > { %6920 = vpow2.f32 %v3387_v37  ;;  %v6508_v37 = vld [vmem:[%s8025_s18 + $0x38] sm:$0xff] }
 0x9d0   : > { %6922 = vrcp.f32 %v3402_v41 }
 0x9d3   : > { %v6917_v16 = vpop.eup %6916  ;;  %v3566_v28 = vpop.permute.xlu2 %3565 }
 0x9d4   : > { %v3423_v15 = vmul.f32 %v6917_v16, %v6907_v13  ;;  %v6919_v7 = vpop.eup %6918  ;;  %v3571_v3 = vsel %vm1935_vm2, %v3566_v28, 0 }
 0x9d5   : > { %3114 = vrot.lane.b32.xlu1 %v8718_v21, %s7531_s8  ;;  %v3425_v36 = vmul.f32 %v6919_v7, %v8758_v17  ;;  %v8823_v23 = vpop.eup %6920 }
 0x9d6   : > { %v3431_v20 = vpack.c.bf16 %v3423_v15, %v3423_v15  ;;  %v6923_v27 = vpop.eup %6922  ;;  %v3409_v51 = vsel %vm1835_vm3, %v8823_v23, 0.0 }
 0x9d7   : > { %v3433_v11 = vpack.c.bf16 %v3425_v36, %v3425_v36  ;;  %v3426_v45 = vmul.f32 %v6923_v27, %v8764_v19  ;;  %v6506_v36 = vld [vmem:[%s8025_s18 + $0x28] sm:$0xff] }
 0x9d8   : > { %6046 = vmatmul.msk.bf16.vlgmr.msra.gmra.mxu2 %vm1835_vm3, %v3431_v20  ;;  %v6502_v27 = vld [vmem:[%s8025_s18 + $0x8] sm:$0xff] }
 0x9d9   : > { %v3434_v40 = vpack.c.bf16 %v3426_v45, %v3426_v45  ;;  %3728 = vmatpush.bf16.msra.mxu2 %v6508_v37 }
 0x9db   : > { %v3587_v44 = vpop.permute.xlu2 %3586 }
 0x9dc   : > { %v3592_v54 = vsel %vm1935_vm2, %v3587_v44, 0  ;;  %v6507_v44 = vld [vmem:[%s8025_s18 + $0x30] sm:$0xff] }
 0x9dd   : > { %3729 = vmatpush.bf16.msra.mxu2 %v6507_v44 }
 0x9e1   : > { %3730 = vmatpush.bf16.msra.mxu2 %v6506_v36 }
 0x9e3   : > { %v2614_v26 = vpop.permute.xlu2 %2613  ;;  %v3396_v29 = vpop.xlane.xlu0 %3395 }
 0x9e4   : > { %2634 = vst.msk [vmem:[#allocation4 + $0x20] sm:$0xff] %vm2629_vm4, %v2614_v26  ;;  %6924 = vrcp.f32 %v3396_v29  ;;  %v3482_v21 = vpop.permute.xlu1 %3481  ;;  %v6505_v26 = vld [vmem:[%s8025_s18 + $0x20] sm:$0xff] }
 0x9e5   : > { %v3487_v14 = vsel %vm1935_vm2, %v3482_v21, 0  ;;  %3731 = vmatpush.bf16.msra.mxu2 %v6505_v26  ;;  %v6504_v21 = vld [vmem:[%s8025_s18 + $0x18] sm:$0xff] }
 0x9e6   : > { %3496 = vmatpush.bf16.msrb.mxu0 %v3487_v14 }
 0x9e9   : > { %3410 = vadd.xlane.f32.xlu0 %v3409_v51  ;;  %6048 = vmatmul.msk.bf16.vlgmr.msrb.gmra.mxu0 %vm1835_vm3, %v3433_v11  ;;  %v6501_v51 = vld [vmem:[%s8025_s18] sm:$0xff] }
 0x9ea   : > { %3580 = vmatpush.bf16.msra.mxu0 %v3571_v3  ;;  %v6925_v17 = vpop.eup %6924  ;;  %3732 = vmatpush.bf16.msra.mxu2 %v6504_v21  ;;  %v7533_v3 = vmov 0.0  }
 0x9eb   : > { %v3424_v50 = vmul.f32 %v6925_v17, %v8772_v56  ;;  %v2616_v32 = vpop.permute.xlu2 %2615 }
 0x9ec   : > { %2635 = vst.msk [vmem:[#allocation4 + $0x28] sm:$0xff] %vm2629_vm4, %v2616_v32  ;;  %v3503_v0 = vpop.permute.xlu1 %3502 }
 0x9ed   : > { %v3432_v53 = vpack.c.bf16 %v3424_v50, %v3424_v50  ;;  %v3508_v13 = vsel %vm1935_vm2, %v3503_v0, 0 }
 0x9ee   : > { %3517 = vmatpush.bf16.msrb.mxu1 %v3508_v13 }
 0x9ef   : > { %6047 = vmatmul.msk.bf16.vlgmr.msrb.gmra.mxu3 %vm1835_vm3, %v3432_v53 }
 0x9f1   : > { %6049 = vmatmul.msk.bf16.vlgmr.msrb.gmra.mxu1 %vm1835_vm3, %v3434_v40 }
 0x9f2   : > { %3601 = vmatpush.bf16.msra.mxu1 %v3592_v54 }
 0x9f3   : > { %v3113_v49 = vpop.permute.xlu2 %3112 }
 0x9fb   : > { %v2618_v19 = vpop.permute.xlu2 %2617 }
 0x9fc   : > { %2636 = vst.msk [vmem:[#allocation4 + $0x30] sm:$0xff] %vm2629_vm4, %v2618_v19 }
 0x9fd   : > { %2605 = vrot.lane.b32.xlu0 %v8558_v30, %s7532_s29 }
 0xa03   : > { %v3117_v2 = vpop.permute.xlu2 %3116 }
 0xa05   : > { %3110 = vrot.lane.b32.xlu0 %v8721_v59, %s7531_s8 }
 0xa0d   : > { %3118 = vrot.lane.b32.xlu0 %v8729_v6, %s7531_s8 }
 0xa15   : > { %2609 = vrot.lane.b32.xlu0 %v8552_v57, %s7532_s29 }
 0xa16   : > { %v3405_v33 = vpop.xlane.xlu0 %3404 }
 0xa17   : > { %6926 = vrcp.f32 %v3405_v33  ;;  %v3414_v4 = vpop.xlane.xlu1 %3413 }
 0xa18   : > { %6928 = vrcp.f32 %v3414_v4 }
 0xa1d   : > { %v6927_v10 = vpop.eup %6926  ;;  %2619 = vrot.lane.b32.xlu0 %v8589_v35, %s7532_s29 }
 0xa1e   : > { %v6929_v18 = vpop.eup %6928  ;;  %v3427_v30 = vmul.f32 %v6927_v10, %v8798_v43  ;;  %v3408_v57 = vpop.xlane.xlu0 %3407 }
 0xa1f   : > { %v3430_v63 = vmul.f32 %v6929_v18, %v8794_v24  ;;  %6930 = vrcp.f32 %v3408_v57 }
 0xa20   : > { %v3435_v59 = vpack.c.bf16 %v3427_v30, %v3427_v30 }
 0xa21   : > { %v3438_v12 = vpack.c.bf16 %v3430_v63, %v3430_v63 }
 0xa22   : > { %6050 = vmatmul.msk.bf16.vlgmr.msrb.gmra.mxu2 %vm1835_vm3, %v3435_v59 }
 0xa23   : > { %6053 = vmatmul.msk.bf16.vlgmr.msra.gmra.mxu1 %vm1835_vm3, %v3438_v12 }
 0xa25   : > { %v6931_v6 = vpop.eup %6930 }
 0xa26   : > { %v3428_v46 = vmul.f32 %v6931_v6, %v8804_v34 }
 0xa28   : > { %v3436_v56 = vpack.c.bf16 %v3428_v46, %v3428_v46 }
 0xa2f   : > { %v2608_v39 = vpop.permute.xlu1 %2607 }
 0xa30   : > { %2631 = vst.msk [vmem:[#allocation4 + $0x8] sm:$0xff] %vm2629_vm4, %v2608_v39 }
 0xa31   : > { %v3545_v35 = vpop.permute.xlu0 %3544  ;;  %3136 = vst.msk [vmem:[#allocation4 + $0x8] sm:$0xff] %vm3134_vm5, %v3113_v49 }
 0xa32   : > { %v3550_v42 = vsel %vm1935_vm2, %v3545_v35, 0 }
 0xa33   : > { %3559 = vmatpush.bf16.msra.mxu3 %v3550_v42 }
 0xa36   : > { %6051 = vmatmul.msk.bf16.vlgmr.msra.gmra.mxu3 %vm1835_vm3, %v3436_v56  ;;  %v6952_v56 = vld [vmem:[#allocation2 + $0x30] sm:$0xff] }
 0xa37   : > { %v3121_v62 = vpop.permute.xlu1 %3120  ;;  %6614 = vmatpush.bf16.msrb.mxu3 %v6508_v37 }
 0xa38   : > { %3140 = vst.msk [vmem:[#allocation4 + $0x28] sm:$0xff] %vm3134_vm5, %v3121_v62 }
 0xa3b   : > { %6615 = vmatpush.bf16.msrb.mxu3 %v6507_v44 }
 0xa3f   : > { %v2612_v1 = vpop.permute.xlu1 %2611  ;;  %6616 = vmatpush.bf16.msrb.mxu3 %v6506_v36 }
 0xa40   : > { %2633 = vst.msk [vmem:[#allocation4 + $0x18] sm:$0xff] %vm2629_vm4, %v2612_v1 }
 0xa41   : > { %3138 = vst.msk [vmem:[#allocation4 + $0x18] sm:$0xff] %vm3134_vm5, %v3117_v2 }
 0xa43   : > { %6617 = vmatpush.bf16.msrb.mxu3 %v6505_v26 }
 0xa47   : > { %v3115_v15 = vpop.permute.xlu1 %3114  ;;  %6618 = vmatpush.bf16.msrb.mxu3 %v6504_v21 }
 0xa5b   : > { %v3456_v22 = vpop.f32.mrf.mxu2 }
 0xa5c   : > { %3615 = vrot.lane.b32.xlu2 %v3456_v22, %s7530_s21  ;;  %v3411_v9 = vpop.xlane.xlu0 %3410  ;;  %v6953_v22 = vld [vmem:[#allocation2] sm:$0xff] }
 0xa5d   : > { %6932 = vrcp.f32 %v3411_v9 }
 0xa63   : > { %v6933_v31 = vpop.eup %6932  ;;  %v3458_v55 = vpop.f32.mrf.mxu2 }
 0xa64   : > { %v3429_v58 = vmul.f32 %v6933_v31, %v8823_v23 }
 0xa66   : > { %v3437_v5 = vpack.c.bf16 %v3429_v58, %v3429_v58  ;;  %v3498_v24 = vpop.f32.mrf.mxu0  ;;  %v6954_v58 = vld [vmem:[#allocation2 + $0x8] sm:$0xff] }
 0xa68   : > { %6052 = vmatmul.msk.bf16.vlgmr.msra.gmra.mxu0 %vm1835_vm3, %v3437_v5 }
 0xa6e   : > { %v3500_v43 = vpop.f32.mrf.mxu0  ;;  %v3519_v47 = vpop.f32.mrf.mxu1 }
 0xa6f   : > { %v2606_v61 = vpop.permute.xlu0 %2605 }
 0xa70   : > { %2630 = vst.msk [vmem:[#allocation4] sm:$0xff] %vm2629_vm4, %v2606_v61 }
 0xa72   : > { %v3477_v34 = vpop.f32.mrf.mxu3 }
 0xa73   : > { %3617 = vrot.lane.b32.xlu0 %v3477_v34, %s7530_s21 }
 0xa76   : > { %v3521_v8 = vpop.f32.mrf.mxu1 }
 0xa77   : > { %v3111_v41 = vpop.permute.xlu0 %3110 }
 0xa78   : > { %3135 = vst.msk [vmem:[#allocation4] sm:$0xff] %vm3134_vm5, %v3111_v41  ;;  %v6956_v41 = vld [vmem:[#allocation2 + $0x20] sm:$0xff] }
 0xa7a   : > { %v3479_v48 = vpop.f32.mrf.mxu3 }
 0xa7b   : > { %3122 = vrot.lane.b32.xlu0 %v8727_v38, %s7531_s8 }
 0xa7f   : > { %v3119_v16 = vpop.permute.xlu0 %3118 }
 0xa80   : > { %3139 = vst.msk [vmem:[#allocation4 + $0x20] sm:$0xff] %vm3134_vm5, %v3119_v16 }
 0xa83   : > { %3621 = vrot.lane.b32.xlu0 %v3519_v47, %s7530_s21  ;;  %v6955_v47 = vld [vmem:[#allocation2 + $0x18] sm:$0xff] }
 0xa87   : > { %v2610_v28 = vpop.permute.xlu0 %2609 }
 0xa88   : > { %2632 = vst.msk [vmem:[#allocation4 + $0x10] sm:$0xff] %vm2629_vm4, %v2610_v28 }
 0xa89   : > { %3137 = vst.msk [vmem:[#allocation4 + $0x10] sm:$0xff] %vm3134_vm5, %v3115_v15  ;;  %v6957_v15 = vld [vmem:[#allocation2 + $0x10] sm:$0xff] }
 0xa8f   : > { %v2620_v20 = vpop.permute.xlu0 %2619 }
 0xa90   : > { %2637 = vst.msk [vmem:[#allocation4 + $0x38] sm:$0xff] %vm2629_vm4, %v2620_v20 }
 0xaa0   : > { %v3603_v60 = vpop.f32.mrf.mxu1 }
 0xaa5   : > { %v3540_v52 = vpop.f32.mrf.mxu2 }
 0xaa6   : > { %3623 = vrot.lane.b32.xlu1 %v3540_v52, %s7530_s21 }
 0xaa8   : > { %v3605_v38 = vpop.f32.mrf.mxu1 }
 0xaad   : > { %v3542_v7 = vpop.f32.mrf.mxu2 }
 0xaae   : > { %3124 = vrot.lane.b32.xlu1 %v8734_v25, %s7531_s8  ;;  %v6503_v25 = vld [vmem:[%s8025_s18 + $0x10] sm:$0xff]  ;;  %s9564_s18 = scalar_lea.vmem [#allocation9], %s7970_s28 }
 0xaaf   : > { %3733 = vmatpush.bf16.msra.mxu2 %v6503_v25  ;;  %6619 = vmatpush.bf16.msrb.mxu3 %v6503_v25  ;;  %v6803_v46 = vld [vmem:[%s9564_s18] ss:$0 sm:$0xff] }
 0xab3   : > { %3734 = vmatpush.bf16.msra.mxu2 %v6502_v27  ;;  %6620 = vmatpush.bf16.msrb.mxu3 %v6502_v27 }
 0xab6   : > { %v3616_v29 = vpop.permute.xlu2 %3615 }
 0xab7   : > { %3640 = vst.msk [vmem:[#allocation4] sm:$0xff] %vm3639_vm6, %v3616_v29  ;;  %3735 = vmatpush.bf16.msra.mxu2 %v6501_v51  ;;  %6621 = vmatpush.bf16.msrb.mxu3 %v6501_v51  ;;  %v6958_v29 = vld [vmem:[#allocation2 + $0x28] sm:$0xff] }
 0xab9   : > { %v3561_v23 = vpop.f32.mrf.mxu3 }
 0xaba   : > { %3625 = vrot.lane.b32.xlu2 %v3561_v23, %s7530_s21 }
 0xabe   : > { %v3648_v14 = vld [vmem:[#allocation4] sm:$0xff] }
 0xabf   : > { %3964 = vst [vmem:[#allocation4] sm:$0xff] %v7533_v3 }
 0xac1   : > { %v3563_v11 = vpop.f32.mrf.mxu3 }
 0xac2   : > { %3619 = vrot.lane.b32.xlu2 %v3498_v24, %s7530_s21 }
 0xaca   : > { %3629 = vrot.lane.b32.xlu2 %v3603_v60, %s7530_s21  ;;  %v7534_v60 = vmov 128.0  }
 0xacb   : > { %6934 = vrcp.f32 %v7534_v60  ;;  %v8950_v60 = vld [vmem:[%s9566_s25] ss:$0 sm:$0xff] }
 0xad1   : > { %v6935_v52 = vpop.eup %6934 }
 0xad2   : > { %v3784_v38 = vmul.f32 128.0, %v6935_v52  ;;  %vm3788_vm7 = vweird.f32 %v6935_v52 }
 0xad4   : > { %v3785_v37 = vsub.f32 1.0, %v3784_v38 }
 0xad6   : > { %v3786_v44 = vmul.f32 %v6935_v52, %v3785_v37 }
 0xad8   : > { %v3787_v7 = vadd.f32 %v6935_v52, %v3786_v44 }
 0xada   : > { %v8900_v23 = vsel %vm3788_vm7, %v6935_v52, %v3787_v7 }
 0xae5   : > { %v3618_v17 = vpop.permute.xlu0 %3617  ;;  %v3582_v45 = vpop.f32.mrf.mxu0 }
 0xae6   : > { %3641 = vst.msk [vmem:[#allocation4 + $0x8] sm:$0xff] %vm3639_vm6, %v3618_v17  ;;  %3627 = vrot.lane.b32.xlu1 %v3582_v45, %s7530_s21  ;;  %v6959_v17 = vld [vmem:[#allocation2 + $0x38] sm:$0xff] }
 0xaed   : > { %v3649_v50 = vld [vmem:[#allocation4 + $0x8] sm:$0xff]  ;;  %v3123_v32 = vpop.permute.xlu0 %3122  ;;  %v3584_v0 = vpop.f32.mrf.mxu0 }
 0xaee   : > { %v3656_v53 = vpack.c.bf16 %v3649_v50, %v3648_v14  ;;  %3965 = vst [vmem:[#allocation4 + $0x8] sm:$0xff] %v7533_v3 }
 0xaef   : > { %3141 = vst.msk [vmem:[#allocation4 + $0x30] sm:$0xff] %vm3134_vm5, %v3123_v32 }
 0xaf0   : > { %3736 = vmatmul.bf16.vlgmr.msra.gmra.mxu2 %v3656_v53 }
 0xaf5   : > { %v3622_v13 = vpop.permute.xlu0 %3621 }
 0xaf6   : > { %3643 = vst.msk [vmem:[#allocation4 + $0x18] sm:$0xff] %vm3639_vm6, %v3622_v13 }
 0xafd   : > { %v3651_v54 = vld [vmem:[#allocation4 + $0x18] sm:$0xff] }
 0xafe   : > { %3967 = vst [vmem:[#allocation4 + $0x18] sm:$0xff] %v7533_v3 }
 0xb14   : > { %v3626_v40 = vpop.permute.xlu2 %3625 }
 0xb15   : > { %3645 = vst.msk [vmem:[#allocation4 + $0x28] sm:$0xff] %vm3639_vm6, %v3626_v40 }
 0xb18   : > { %v3624_v49 = vpop.permute.xlu1 %3623 }
 0xb19   : > { %3644 = vst.msk [vmem:[#allocation4 + $0x20] sm:$0xff] %vm3639_vm6, %v3624_v49 }
 0xb1c   : > { %v3653_v19 = vld [vmem:[#allocation4 + $0x28] sm:$0xff]  ;;  %v3620_v33 = vpop.permute.xlu2 %3619 }
 0xb1d   : > { %3969 = vst [vmem:[#allocation4 + $0x28] sm:$0xff] %v7533_v3 }
 0xb1e   : > { %3642 = vst.msk [vmem:[#allocation4 + $0x10] sm:$0xff] %vm3639_vm6, %v3620_v33 }
 0xb20   : > { %v3652_v4 = vld [vmem:[#allocation4 + $0x20] sm:$0xff]  ;;  %v3125_v10 = vpop.permute.xlu1 %3124 }
 0xb21   : > { %v3658_v18 = vpack.c.bf16 %v3653_v19, %v3652_v4  ;;  %3968 = vst [vmem:[#allocation4 + $0x20] sm:$0xff] %v7533_v3 }
 0xb22   : > { %3142 = vst.msk [vmem:[#allocation4 + $0x38] sm:$0xff] %vm3134_vm5, %v3125_v10 }
 0xb23   : > { %3746 = vmatmul.bf16.vlgmr.msrb.gmra.mxu3 %v3658_v18 }
 0xb24   : > { %v3630_v30 = vpop.permute.xlu2 %3629 }
 0xb25   : > { %v3650_v63 = vld [vmem:[#allocation4 + $0x10] sm:$0xff]  ;;  %3647 = vst.msk [vmem:[#allocation4 + $0x38] sm:$0xff] %vm3639_vm6, %v3630_v30 }
 0xb26   : > { %3966 = vst [vmem:[#allocation4 + $0x10] sm:$0xff] %v7533_v3  ;;  %v3657_v59 = vpack.c.bf16 %v3651_v54, %v3650_v63 }
 0xb28   : > { %3741 = vmatmul.bf16.gmra.mxu2 %v3657_v59 }
 0xb2c   : > { %v3655_v12 = vld [vmem:[#allocation4 + $0x38] sm:$0xff] }
 0xb2d   : > { %3971 = vst [vmem:[#allocation4 + $0x38] sm:$0xff] %v7533_v3 }
 0xb58   : > { %v3628_v57 = vpop.permute.xlu1 %3627 }
 0xb59   : > { %3646 = vst.msk [vmem:[#allocation4 + $0x30] sm:$0xff] %vm3639_vm6, %v3628_v57 }
 0xb60   : > { %v3654_v6 = vld [vmem:[#allocation4 + $0x30] sm:$0xff] }
 0xb61   : > { %3970 = vst [vmem:[#allocation4 + $0x30] sm:$0xff] %v7533_v3  ;;  %v3659_v39 = vpack.c.bf16 %v3655_v12, %v3654_v6 }
 0xb63   : > { %3751 = vmatmul.bf16.gmra.mxu3 %v3659_v39 }
 0xb73   : > { %v3737_v35 = vpop.f32.mrf.mxu2 }
 0xb74   : > { %v3738_v42 = vadd.f32 %v6803_v46, %v3737_v35 }
 0xb76   : > { %v3757_v62 = vadd.f32 %v6952_v56, %v3738_v42 }
 0xb78   : > { %3767 = vadd.xlane.f32.xlu0 %v3757_v62 }
 0xb7b   : > { %v3739_v1 = vpop.f32.mrf.mxu2 }
 0xb7c   : > { %v3740_v2 = vadd.f32 %v6803_v46, %v3739_v1 }
 0xb7e   : > { %v3758_v9 = vadd.f32 %v6953_v22, %v3740_v2 }
 0xb80   : > { %3769 = vadd.xlane.f32.xlu1 %v3758_v9 }
 0xba6   : > { %v3747_v31 = vpop.f32.mrf.mxu3 }
 0xba7   : > { %v3748_v55 = vadd.f32 %v6803_v46, %v3747_v31 }
 0xba9   : > { %v3761_v5 = vadd.f32 %v6954_v58, %v3748_v55 }
 0xbab   : > { %v3742_v24 = vpop.f32.mrf.mxu2  ;;  %3775 = vadd.xlane.f32.xlu0 %v3761_v5 }
 0xbac   : > { %v3743_v43 = vadd.f32 %v6803_v46, %v3742_v24 }
 0xbae   : > { %v3759_v61 = vadd.f32 %v6955_v47, %v3743_v43  ;;  %v3749_v34 = vpop.f32.mrf.mxu3 }
 0xbaf   : > { %v3750_v8 = vadd.f32 %v6803_v46, %v3749_v34 }
 0xbb0   : > { %3771 = vadd.xlane.f32.xlu2 %v3759_v61 }
 0xbb1   : > { %v3762_v48 = vadd.f32 %v6956_v41, %v3750_v8 }
 0xbb3   : > { %v3744_v16 = vpop.f32.mrf.mxu2  ;;  %3777 = vadd.xlane.f32.xlu1 %v3762_v48 }
 0xbb4   : > { %v3745_v28 = vadd.f32 %v6803_v46, %v3744_v16 }
 0xbb6   : > { %v3760_v20 = vadd.f32 %v6957_v15, %v3745_v28  ;;  %v8946_v28 = vld [vmem:[%s9565_s9] ss:$0 sm:$0xff] }
 0xbb8   : > { %3773 = vadd.xlane.f32.xlu2 %v3760_v20 }
 0xbe6   : > { %v3752_v36 = vpop.f32.mrf.mxu3 }
 0xbe7   : > { %v3753_v26 = vadd.f32 %v6803_v46, %v3752_v36 }
 0xbe9   : > { %v3763_v21 = vadd.f32 %v6958_v29, %v3753_v26 }
 0xbeb   : > { %v3768_v25 = vpop.xlane.xlu0 %3767  ;;  %3779 = vadd.xlane.f32.xlu2 %v3763_v21 }
 0xbec   : > { %v3790_v14 = vmul.f32 %v8900_v23, %v3768_v25 }
 0xbee   : > { %v8903_v3 = vsub.f32 %v3757_v62, %v3790_v14  ;;  %v3754_v11 = vpop.f32.mrf.mxu3 }
 0xbef   : > { %v3755_v27 = vadd.f32 %v6803_v46, %v3754_v11 }
 0xbf0   : > { %v3806_v51 = vmul.f32 %v8903_v3, %v8903_v3 }
 0xbf1   : > { %v3764_v45 = vadd.f32 %v6959_v17, %v3755_v27 }
 0xbf2   : > { %3814 = vadd.xlane.f32.xlu1 %v3806_v51 }
 0xbf3   : > { %3781 = vadd.xlane.f32.xlu0 %v3764_v45  ;;  %v3770_v50 = vpop.xlane.xlu1 %3769 }
 0xbf4   : > { %v3791_v32 = vmul.f32 %v8900_v23, %v3770_v50 }
 0xbf6   : > { %v8908_v0 = vsub.f32 %v3758_v9, %v3791_v32 }
 0xbf8   : > { %v3807_v53 = vmul.f32 %v8908_v0, %v8908_v0 }
 0xbfa   : > { %3816 = vadd.xlane.f32.xlu2 %v3807_v53 }
 0xc1e   : > { %v3776_v13 = vpop.xlane.xlu0 %3775 }
 0xc1f   : > { %v3794_v54 = vmul.f32 %v8900_v23, %v3776_v13 }
 0xc21   : > { %v8913_v40 = vsub.f32 %v3761_v5, %v3794_v54 }
 0xc23   : > { %v3772_v49 = vpop.xlane.xlu2 %3771  ;;  %v3810_v19 = vmul.f32 %v8913_v40, %v8913_v40 }
 0xc24   : > { %v3792_v33 = vmul.f32 %v8900_v23, %v3772_v49 }
 0xc25   : > { %3822 = vadd.xlane.f32.xlu2 %v3810_v19 }
 0xc26   : > { %v8918_v4 = vsub.f32 %v3759_v61, %v3792_v33  ;;  %v3778_v10 = vpop.xlane.xlu1 %3777 }
 0xc27   : > { %v3795_v18 = vmul.f32 %v8900_v23, %v3778_v10 }
 0xc28   : > { %v3808_v30 = vmul.f32 %v8918_v4, %v8918_v4 }
 0xc29   : > { %v8923_v59 = vsub.f32 %v3762_v48, %v3795_v18 }
 0xc2a   : > { %3818 = vadd.xlane.f32.xlu0 %v3808_v30 }
 0xc2b   : > { %v3774_v63 = vpop.xlane.xlu2 %3773  ;;  %v3811_v39 = vmul.f32 %v8923_v59, %v8923_v59 }
 0xc2c   : > { %v3793_v12 = vmul.f32 %v8900_v23, %v3774_v63 }
 0xc2e   : > { %v8926_v57 = vsub.f32 %v3760_v20, %v3793_v12 }
 0xc30   : > { %v3809_v6 = vmul.f32 %v8926_v57, %v8926_v57 }
 0xc32   : > { %3820 = vadd.xlane.f32.xlu1 %v3809_v6  ;;  %3824 = vadd.xlane.f32.xlu0 %v3811_v39 }
 0xc5e   : > { %v3780_v46 = vpop.xlane.xlu2 %3779 }
 0xc5f   : > { %v3796_v35 = vmul.f32 %v8900_v23, %v3780_v46 }
 0xc61   : > { %v8933_v42 = vsub.f32 %v3763_v21, %v3796_v35 }
 0xc63   : > { %v3812_v56 = vmul.f32 %v8933_v42, %v8933_v42 }
 0xc65   : > { %3826 = vadd.xlane.f32.xlu1 %v3812_v56  ;;  %v3815_v62 = vpop.xlane.xlu1 %3814 }
 0xc66   : > { %v3830_v1 = vmul.f32 %v3815_v62, %v8900_v23  ;;  %v3782_v2 = vpop.xlane.xlu0 %3781 }
 0xc67   : > { %v3797_v22 = vmul.f32 %v8900_v23, %v3782_v2 }
 0xc68   : > { %v3838_v9 = vadd.f32 1e-05, %v3830_v1 }
 0xc69   : > { %v8939_v31 = vsub.f32 %v3764_v45, %v3797_v22 }
 0xc6a   : > { %6936 = vrsqrt.f32 %v3838_v9  ;;  %vm3852_vm9 = vweird.f32 %v3838_v9 }
 0xc6b   : > { %v3813_v55 = vmul.f32 %v8939_v31, %v8939_v31 }
 0xc6d   : > { %3828 = vadd.xlane.f32.xlu2 %v3813_v55  ;;  %v3817_v58 = vpop.xlane.xlu2 %3816 }
 0xc6e   : > { %v3831_v5 = vmul.f32 %v3817_v58, %v8900_v23 }
 0xc70   : > { %v6937_v24 = vpop.eup %6936  ;;  %v3839_v43 = vadd.f32 1e-05, %v3831_v5 }
 0xc71   : > { %v3847_v47 = vmul.f32 %v6937_v24, %v3838_v9  ;;  %vm3853_vm8 = vweird.f32 %v6937_v24 }
 0xc72   : > { %6938 = vrsqrt.f32 %v3839_v43  ;;  %vm3854_vm10 = vmor %vm3852_vm9, %vm3853_vm8  ;;  %vm3862_vm12 = vweird.f32 %v3839_v43 }
 0xc73   : > { %v3848_v61 = vmul.f32 %v6937_v24, %v3847_v47 }
 0xc75   : > { %v3849_v34 = vmul.f32 0.5, %v3848_v61 }
 0xc77   : > { %v3850_v8 = vsub.f32 1.5, %v3849_v34 }
 0xc78   : > { %v6939_v41 = vpop.eup %6938 }
 0xc79   : > { %v3851_v48 = vmul.f32 %v6937_v24, %v3850_v8  ;;  %v3857_v16 = vmul.f32 %v6939_v41, %v3839_v43  ;;  %vm3863_vm11 = vweird.f32 %v6939_v41 }
 0xc7a   : > { %vm3864_vm13 = vmor %vm3862_vm12, %vm3863_vm11 }
 0xc7b   : > { %v3855_v15 = vsel %vm3854_vm10, %v6937_v24, %v3851_v48  ;;  %v3858_v20 = vmul.f32 %v6939_v41, %v3857_v16 }
 0xc7c   : > { %v3926_v52 = vmul.f32 %v3855_v15, %v8903_v3 }
 0xc7d   : > { %v3859_v38 = vmul.f32 0.5, %v3858_v20 }
 0xc7e   : > { %v3937_v37 = vmul.f32 %v8946_v28, %v3926_v52 }
 0xc7f   : > { %v3860_v44 = vsub.f32 1.5, %v3859_v38 }
 0xc80   : > { %v3948_v7 = vadd.f32 %v8950_v60, %v3937_v37 }
 0xc81   : > { %v3861_v36 = vmul.f32 %v6939_v41, %v3860_v44 }
 0xc82   : > { %3956 = vst [vmem:[#allocation3] sm:$0xff] %v3948_v7 }
 0xc83   : > { %v3865_v26 = vsel %vm3864_vm13, %v6939_v41, %v3861_v36 }
 0xc84   : > { %v3927_v29 = vmul.f32 %v3865_v26, %v8908_v0 }
 0xc86   : > { %v3938_v21 = vmul.f32 %v8946_v28, %v3927_v29 }
 0xc88   : > { %v3949_v25 = vadd.f32 %v8950_v60, %v3938_v21 }
 0xc8a   : > { %3957 = vst [vmem:[#allocation3 + $0x18] sm:$0xff] %v3949_v25 }
 0xc98   : > { %v3823_v14 = vpop.xlane.xlu2 %3822 }
 0xc99   : > { %v3834_v3 = vmul.f32 %v3823_v14, %v8900_v23 }
 0xc9b   : > { %v3842_v11 = vadd.f32 1e-05, %v3834_v3 }
 0xc9d   : > { %6940 = vrsqrt.f32 %v3842_v11  ;;  %v3819_v27 = vpop.xlane.xlu0 %3818  ;;  %vm3892_vm15 = vweird.f32 %v3842_v11 }
 0xc9e   : > { %v3832_v51 = vmul.f32 %v3819_v27, %v8900_v23 }
 0xca0   : > { %v3840_v17 = vadd.f32 1e-05, %v3832_v51 }
 0xca2   : > { %6942 = vrsqrt.f32 %v3840_v17  ;;  %vm3872_vm2 = vweird.f32 %v3840_v17 }
 0xca3   : > { %v6941_v45 = vpop.eup %6940 }
 0xca4   : > { %v3887_v50 = vmul.f32 %v6941_v45, %v3842_v11  ;;  %vm3893_vm14 = vweird.f32 %v6941_v45 }
 0xca5   : > { %v3825_v32 = vpop.xlane.xlu0 %3824  ;;  %v3821_v53 = vpop.xlane.xlu1 %3820  ;;  %vm3894_vm0 = vmor %vm3892_vm15, %vm3893_vm14 }
 0xca6   : > { %v3888_v0 = vmul.f32 %v6941_v45, %v3887_v50  ;;  %v3835_v13 = vmul.f32 %v3825_v32, %v8900_v23  ;;  %v3833_v54 = vmul.f32 %v3821_v53, %v8900_v23 }
 0xca8   : > { %v6943_v49 = vpop.eup %6942  ;;  %v3889_v19 = vmul.f32 0.5, %v3888_v0  ;;  %v3843_v33 = vadd.f32 1e-05, %v3835_v13  ;;  %v3841_v10 = vadd.f32 1e-05, %v3833_v54 }
 0xca9   : > { %v3867_v18 = vmul.f32 %v6943_v49, %v3840_v17  ;;  %vm3873_vm1 = vweird.f32 %v6943_v49 }
 0xcaa   : > { %v3890_v30 = vsub.f32 1.5, %v3889_v19  ;;  %6944 = vrsqrt.f32 %v3843_v33  ;;  %vm3874_vm3 = vmor %vm3872_vm2, %vm3873_vm1  ;;  %vm3902_vm6 = vweird.f32 %v3843_v33  ;;  %vm3882_vm8 = vweird.f32 %v3841_v10 }
 0xcab   : > { %v3868_v63 = vmul.f32 %v6943_v49, %v3867_v18  ;;  %6946 = vrsqrt.f32 %v3841_v10 }
 0xcac   : > { %v3891_v12 = vmul.f32 %v6941_v45, %v3890_v30 }
 0xcad   : > { %v3869_v6 = vmul.f32 0.5, %v3868_v63 }
 0xcae   : > { %v3895_v39 = vsel %vm3894_vm0, %v6941_v45, %v3891_v12 }
 0xcaf   : > { %v3930_v46 = vmul.f32 %v3895_v39, %v8913_v40  ;;  %v3870_v35 = vsub.f32 1.5, %v3869_v6 }
 0xcb0   : > { %v6945_v56 = vpop.eup %6944 }
 0xcb1   : > { %v6947_v62 = vpop.eup %6946  ;;  %v3941_v1 = vmul.f32 %v8946_v28, %v3930_v46  ;;  %v3871_v2 = vmul.f32 %v6943_v49, %v3870_v35  ;;  %v3897_v22 = vmul.f32 %v6945_v56, %v3843_v33  ;;  %vm3903_vm4 = vweird.f32 %v6945_v56 }
 0xcb2   : > { %v3877_v9 = vmul.f32 %v6947_v62, %v3841_v10  ;;  %vm3883_vm5 = vweird.f32 %v6947_v62  ;;  %vm3904_vm7 = vmor %vm3902_vm6, %vm3903_vm4 }
 0xcb3   : > { %v3952_v55 = vadd.f32 %v8950_v60, %v3941_v1  ;;  %v3875_v58 = vsel %vm3874_vm3, %v6943_v49, %v3871_v2  ;;  %v3898_v5 = vmul.f32 %v6945_v56, %v3897_v22  ;;  %vm3884_vm9 = vmor %vm3882_vm8, %vm3883_vm5 }
 0xcb4   : > { %v3928_v24 = vmul.f32 %v3875_v58, %v8918_v4  ;;  %v3878_v43 = vmul.f32 %v6947_v62, %v3877_v9 }
 0xcb5   : > { %3960 = vst [vmem:[#allocation3 + $0x28] sm:$0xff] %v3952_v55  ;;  %v3899_v40 = vmul.f32 0.5, %v3898_v5 }
 0xcb6   : > { %v3939_v47 = vmul.f32 %v8946_v28, %v3928_v24  ;;  %v3879_v61 = vmul.f32 0.5, %v3878_v43 }
 0xcb7   : > { %v3900_v34 = vsub.f32 1.5, %v3899_v40 }
 0xcb8   : > { %v3950_v8 = vadd.f32 %v8950_v60, %v3939_v47  ;;  %v3880_v41 = vsub.f32 1.5, %v3879_v61 }
 0xcb9   : > { %v3901_v48 = vmul.f32 %v6945_v56, %v3900_v34 }
 0xcba   : > { %3958 = vst [vmem:[#allocation3 + $0x10] sm:$0xff] %v3950_v8  ;;  %v3881_v16 = vmul.f32 %v6947_v62, %v3880_v41 }
 0xcbb   : > { %v3905_v15 = vsel %vm3904_vm7, %v6945_v56, %v3901_v48 }
 0xcbc   : > { %v3931_v4 = vmul.f32 %v3905_v15, %v8923_v59  ;;  %v3885_v20 = vsel %vm3884_vm9, %v6947_v62, %v3881_v16 }
 0xcbd   : > { %v3929_v52 = vmul.f32 %v3885_v20, %v8926_v57 }
 0xcbe   : > { %v3942_v38 = vmul.f32 %v8946_v28, %v3931_v4 }
 0xcbf   : > { %v3940_v37 = vmul.f32 %v8946_v28, %v3929_v52 }
 0xcc0   : > { %v3953_v44 = vadd.f32 %v8950_v60, %v3942_v38 }
 0xcc1   : > { %v3951_v7 = vadd.f32 %v8950_v60, %v3940_v37 }
 0xcc2   : > { %3961 = vst [vmem:[#allocation3 + $0x8] sm:$0xff] %v3953_v44 }
 0xcc3   : > { %3959 = vst [vmem:[#allocation3 + $0x20] sm:$0xff] %v3951_v7 }
 0xcd8   : > { %v3827_v36 = vpop.xlane.xlu1 %3826 }
 0xcd9   : > { %v3836_v26 = vmul.f32 %v3827_v36, %v8900_v23 }
 0xcdb   : > { %v3844_v29 = vadd.f32 1e-05, %v3836_v26 }
 0xcdd   : > { %6948 = vrsqrt.f32 %v3844_v29  ;;  %vm3912_vm11 = vweird.f32 %v3844_v29 }
 0xce0   : > { %v3829_v21 = vpop.xlane.xlu2 %3828 }
 0xce1   : > { %v3837_v59 = vmul.f32 %v3829_v21, %v8900_v23 }
 0xce3   : > { %v6949_v25 = vpop.eup %6948  ;;  %v3845_v57 = vadd.f32 1e-05, %v3837_v59 }
 0xce4   : > { %v3907_v14 = vmul.f32 %v6949_v25, %v3844_v29  ;;  %vm3913_vm10 = vweird.f32 %v6949_v25 }
 0xce5   : > { %6950 = vrsqrt.f32 %v3845_v57  ;;  %vm3914_vm12 = vmor %vm3912_vm11, %vm3913_vm10  ;;  %vm3922_vm14 = vweird.f32 %v3845_v57 }
 0xce6   : > { %v3908_v3 = vmul.f32 %v6949_v25, %v3907_v14 }
 0xce8   : > { %v3909_v11 = vmul.f32 0.5, %v3908_v3 }
 0xcea   : > { %v3910_v27 = vsub.f32 1.5, %v3909_v11 }
 0xceb   : > { %v6951_v51 = vpop.eup %6950 }
 0xcec   : > { %v3911_v17 = vmul.f32 %v6949_v25, %v3910_v27  ;;  %v3917_v45 = vmul.f32 %v6951_v51, %v3845_v57  ;;  %vm3923_vm13 = vweird.f32 %v6951_v51 }
 0xced   : > { %vm3924_vm15 = vmor %vm3922_vm14, %vm3923_vm13 }
 0xcee   : > { %v3915_v50 = vsel %vm3914_vm12, %v6949_v25, %v3911_v17  ;;  %v3918_v32 = vmul.f32 %v6951_v51, %v3917_v45 }
 0xcef   : > { %v3932_v53 = vmul.f32 %v3915_v50, %v8933_v42 }
 0xcf0   : > { %v3919_v0 = vmul.f32 0.5, %v3918_v32 }
 0xcf1   : > { %v3943_v23 = vmul.f32 %v8946_v28, %v3932_v53 }
 0xcf2   : > { %v3920_v13 = vsub.f32 1.5, %v3919_v0 }
 0xcf3   : > { %v3954_v54 = vadd.f32 %v8950_v60, %v3943_v23 }
 0xcf4   : > { %v3921_v49 = vmul.f32 %v6951_v51, %v3920_v13 }
 0xcf5   : > { %3962 = vst [vmem:[#allocation3 + $0x30] sm:$0xff] %v3954_v54 }
 0xcf6   : > { %v3925_v19 = vsel %vm3924_vm15, %v6951_v51, %v3921_v49 }
 0xcf7   : > { %v3933_v33 = vmul.f32 %v3925_v19, %v8939_v31 }
 0xcf9   : > { %v3944_v10 = vmul.f32 %v8946_v28, %v3933_v33 }
 0xcfb   : > { %v3955_v18 = vadd.f32 %v8950_v60, %v3944_v10 }
 0xcfd   : > { %3963 = vst [vmem:[#allocation3 + $0x38] sm:$0xff] %v3955_v18 }
 0xcfe PF: > { %v6200_v42 = vld [vmem:[%s7987_s6 + $0xe0] sm:$0xf]  ;;  %v6539_v31 = vld [vmem:[%s7987_s6 + $0xec] sm:$0xf0]  ;;  %v6537_v30 = vld [vmem:[%s7987_s6 + $0xe4] sm:$0xf] }
 0xcff   : > { %v6201_v28 = vor.u32 %v6539_v31, %v6200_v42  ;;  %v6202_v63 = vld [vmem:[%s7987_s6 + $0xf0] sm:$0xf0]  ;;  %v6208_v60 = vld [vmem:[%s7987_s6 + $0xe8] sm:$0xf]  ;;  %v6540_v12 = vld [vmem:[%s7987_s6 + $0xf4] sm:$0xf0] }
 0xd00   : > { %v6205_v6 = vor.u32 %v6537_v30, %v6202_v63  ;;  %v6209_v39 = vor.u32 %v6540_v12, %v6208_v60  ;;  %v6538_v46 = vld [vmem:[%s7987_s6 + $0xec] sm:$0xf]  ;;  %v6210_v35 = vld [vmem:[%s7987_s6 + $0xf8] sm:$0xf0]  ;;  %v6184_v56 = vld [vmem:[%s7987_s6 + $0xc0] sm:$0xf] }
 0xd01   : > { %4186 = vmatpush.bf16.msra.mxu0 %v6201_v28  ;;  %v6213_v62 = vor.u32 %v6538_v46, %v6210_v35  ;;  %v6535_v1 = vld [vmem:[%s7987_s6 + $0xcc] sm:$0xf0]  ;;  %v6533_v2 = vld [vmem:[%s7987_s6 + $0xc4] sm:$0xf]  ;;  %v6186_v22 = vld [vmem:[%s7987_s6 + $0xd0] sm:$0xf0] }
 0xd02   : > { %4215 = vmatpush.bf16.msra.mxu1 %v6205_v6  ;;  %4244 = vmatpush.bf16.msra.mxu2 %v6209_v39  ;;  %v6185_v9 = vor.u32 %v6535_v1, %v6184_v56  ;;  %v6189_v55 = vor.u32 %v6533_v2, %v6186_v22  ;;  %v6192_v58 = vld [vmem:[%s7987_s6 + $0xc8] sm:$0xf]  ;;  %v6536_v5 = vld [vmem:[%s7987_s6 + $0xd4] sm:$0xf0]  ;;  %v6534_v24 = vld [vmem:[%s7987_s6 + $0xcc] sm:$0xf] }
 0xd03   : > { %4273 = vmatpush.bf16.msra.mxu3 %v6213_v62  ;;  %v6193_v43 = vor.u32 %v6536_v5, %v6192_v58  ;;  %v6194_v40 = vld [vmem:[%s7987_s6 + $0xd8] sm:$0xf0]  ;;  %v6168_v47 = vld [vmem:[%s7987_s6 + $0xa0] sm:$0xf]  ;;  %v6531_v61 = vld [vmem:[%s7987_s6 + $0xac] sm:$0xf0] }
 0xd04   : > { %v6197_v34 = vor.u32 %v6534_v24, %v6194_v40  ;;  %v6529_v8 = vld [vmem:[%s7987_s6 + $0xa4] sm:$0xf]  ;;  %v6170_v41 = vld [vmem:[%s7987_s6 + $0xb0] sm:$0xf0]  ;;  %v6176_v48 = vld [vmem:[%s7987_s6 + $0xa8] sm:$0xf]  ;;  %v6169_v16 = vor.u32 %v6531_v61, %v6168_v47 }
 0xd05   : > { %4187 = vmatpush.bf16.msra.mxu0 %v6185_v9  ;;  %v6532_v15 = vld [vmem:[%s7987_s6 + $0xb4] sm:$0xf0]  ;;  %v6530_v4 = vld [vmem:[%s7987_s6 + $0xac] sm:$0xf]  ;;  %v6178_v20 = vld [vmem:[%s7987_s6 + $0xb8] sm:$0xf0]  ;;  %v6173_v52 = vor.u32 %v6529_v8, %v6170_v41 }
 0xd06   : > { %4216 = vmatpush.bf16.msra.mxu1 %v6189_v55  ;;  %4245 = vmatpush.bf16.msra.mxu2 %v6193_v43  ;;  %v6177_v38 = vor.u32 %v6532_v15, %v6176_v48  ;;  %v6152_v37 = vld [vmem:[%s7987_s6 + $0x80] sm:$0xf]  ;;  %v6527_v44 = vld [vmem:[%s7987_s6 + $0x8c] sm:$0xf0]  ;;  %v6525_v7 = vld [vmem:[%s7987_s6 + $0x84] sm:$0xf]  ;;  %v6181_v36 = vor.u32 %v6530_v4, %v6178_v20 }
 0xd07   : > { %4274 = vmatpush.bf16.msra.mxu3 %v6197_v34  ;;  %v6154_v26 = vld [vmem:[%s7987_s6 + $0x90] sm:$0xf0]  ;;  %v6160_v29 = vld [vmem:[%s7987_s6 + $0x88] sm:$0xf]  ;;  %v6528_v21 = vld [vmem:[%s7987_s6 + $0x94] sm:$0xf0]  ;;  %v6153_v57 = vor.u32 %v6527_v44, %v6152_v37 }
 0xd08   : > { %v6526_v59 = vld [vmem:[%s7987_s6 + $0x8c] sm:$0xf]  ;;  %v6162_v25 = vld [vmem:[%s7987_s6 + $0x98] sm:$0xf0]  ;;  %v6157_v14 = vor.u32 %v6525_v7, %v6154_v26  ;;  %v6161_v3 = vor.u32 %v6528_v21, %v6160_v29  ;;  %v6136_v11 = vld [vmem:[%s7987_s6 + $0x60] sm:$0xf] }
 0xd09   : > { %4188 = vmatpush.bf16.msra.mxu0 %v6169_v16  ;;  %v6523_v27 = vld [vmem:[%s7987_s6 + $0x6c] sm:$0xf0]  ;;  %v6521_v51 = vld [vmem:[%s7987_s6 + $0x64] sm:$0xf]  ;;  %v6165_v17 = vor.u32 %v6526_v59, %v6162_v25  ;;  %v6138_v45 = vld [vmem:[%s7987_s6 + $0x70] sm:$0xf0] }
 0xd0a   : > { %4217 = vmatpush.bf16.msra.mxu1 %v6173_v52  ;;  %4246 = vmatpush.bf16.msra.mxu2 %v6177_v38  ;;  %v6144_v50 = vld [vmem:[%s7987_s6 + $0x68] sm:$0xf]  ;;  %v6524_v32 = vld [vmem:[%s7987_s6 + $0x74] sm:$0xf0]  ;;  %v6522_v53 = vld [vmem:[%s7987_s6 + $0x6c] sm:$0xf]  ;;  %v6137_v23 = vor.u32 %v6523_v27, %v6136_v11  ;;  %v6141_v13 = vor.u32 %v6521_v51, %v6138_v45 }
 0xd0b   : > { %4275 = vmatpush.bf16.msra.mxu3 %v6181_v36  ;;  %v6146_v0 = vld [vmem:[%s7987_s6 + $0x78] sm:$0xf0]  ;;  %v6145_v54 = vor.u32 %v6524_v32, %v6144_v50  ;;  %v6120_v49 = vld [vmem:[%s7987_s6 + $0x40] sm:$0xf]  ;;  %v6519_v19 = vld [vmem:[%s7987_s6 + $0x4c] sm:$0xf0] }
 0xd0c   : > { %v6517_v33 = vld [vmem:[%s7987_s6 + $0x44] sm:$0xf]  ;;  %v6149_v10 = vor.u32 %v6522_v53, %v6146_v0  ;;  %v6122_v18 = vld [vmem:[%s7987_s6 + $0x50] sm:$0xf0]  ;;  %v6128_v42 = vld [vmem:[%s7987_s6 + $0x48] sm:$0xf]  ;;  %v6121_v63 = vor.u32 %v6519_v19, %v6120_v49 }
 0xd0d   : > { %4189 = vmatpush.bf16.msra.mxu0 %v6153_v57  ;;  %v6520_v31 = vld [vmem:[%s7987_s6 + $0x54] sm:$0xf0]  ;;  %v6518_v30 = vld [vmem:[%s7987_s6 + $0x4c] sm:$0xf]  ;;  %v6130_v28 = vld [vmem:[%s7987_s6 + $0x58] sm:$0xf0]  ;;  %v6125_v60 = vor.u32 %v6517_v33, %v6122_v18 }
 0xd0e   : > { %4218 = vmatpush.bf16.msra.mxu1 %v6157_v14  ;;  %4247 = vmatpush.bf16.msra.mxu2 %v6161_v3  ;;  %v6129_v12 = vor.u32 %v6520_v31, %v6128_v42  ;;  %v6104_v6 = vld [vmem:[%s7987_s6 + $0x20] sm:$0xf]  ;;  %v6515_v39 = vld [vmem:[%s7987_s6 + $0x2c] sm:$0xf0]  ;;  %v6513_v46 = vld [vmem:[%s7987_s6 + $0x24] sm:$0xf]  ;;  %v6133_v35 = vor.u32 %v6518_v30, %v6130_v28 }
 0xd0f   : > { %4276 = vmatpush.bf16.msra.mxu3 %v6165_v17  ;;  %v6106_v56 = vld [vmem:[%s7987_s6 + $0x30] sm:$0xf0]  ;;  %v6112_v62 = vld [vmem:[%s7987_s6 + $0x28] sm:$0xf]  ;;  %v6516_v1 = vld [vmem:[%s7987_s6 + $0x34] sm:$0xf0]  ;;  %v6105_v9 = vor.u32 %v6515_v39, %v6104_v6 }
 0xd10   : > { %v6514_v2 = vld [vmem:[%s7987_s6 + $0x2c] sm:$0xf]  ;;  %v6114_v22 = vld [vmem:[%s7987_s6 + $0x38] sm:$0xf0]  ;;  %v6109_v55 = vor.u32 %v6513_v46, %v6106_v56  ;;  %v6113_v58 = vor.u32 %v6516_v1, %v6112_v62  ;;  %v6088_v5 = vld [vmem:[%s7987_s6] sm:$0xf] }
 0xd11   : > { %4190 = vmatpush.bf16.msra.mxu0 %v6137_v23  ;;  %v6511_v24 = vld [vmem:[%s7987_s6 + $0xc] sm:$0xf0]  ;;  %v6509_v43 = vld [vmem:[%s7987_s6 + $0x4] sm:$0xf]  ;;  %v6117_v40 = vor.u32 %v6514_v2, %v6114_v22  ;;  %v6090_v47 = vld [vmem:[%s7987_s6 + $0x10] sm:$0xf0] }
 0xd12   : > { %4219 = vmatpush.bf16.msra.mxu1 %v6141_v13  ;;  %4248 = vmatpush.bf16.msra.mxu2 %v6145_v54  ;;  %v6096_v61 = vld [vmem:[%s7987_s6 + $0x8] sm:$0xf]  ;;  %v6512_v34 = vld [vmem:[%s7987_s6 + $0x14] sm:$0xf0]  ;;  %v6510_v8 = vld [vmem:[%s7987_s6 + $0xc] sm:$0xf]  ;;  %v6089_v48 = vor.u32 %v6511_v24, %v6088_v5  ;;  %v6093_v4 = vor.u32 %v6509_v43, %v6090_v47 }
 0xd13   : > { %4277 = vmatpush.bf16.msra.mxu3 %v6149_v10  ;;  %v6098_v41 = vld [vmem:[%s7987_s6 + $0x18] sm:$0xf0]  ;;  %v3973_v15 = vld [vmem:[#allocation3 + $0x18] sm:$0xff]  ;;  %v6097_v20 = vor.u32 %v6512_v34, %v6096_v61  ;;  %v3974_v37 = vld [vmem:[#allocation3 + $0x10] sm:$0xff] }
 0xd14   : > { %v3972_v16 = vld [vmem:[#allocation3] sm:$0xff]  ;;  %v6101_v52 = vor.u32 %v6510_v8, %v6098_v41  ;;  %v6563_v59 = vld [vmem:[%s7989_s5 + $0xb0] sm:$0xff]  ;;  %v3976_v3 = vld [vmem:[#allocation3 + $0x28] sm:$0xff] }
 0xd15   : > { %4191 = vmatpush.bf16.msra.mxu0 %v6121_v63  ;;  %v3980_v38 = vpack.c.bf16 %v3973_v15, %v3972_v16  ;;  %v3975_v44 = vld [vmem:[#allocation3 + $0x20] sm:$0xff]  ;;  %v6571_v25 = vld [vmem:[%s7989_s5 + $0xf0] sm:$0xff]  ;;  %v6562_v11 = vld [vmem:[%s7989_s5 + $0xa8] sm:$0xff] }
 0xd16   : > { %4220 = vmatpush.bf16.msra.mxu1 %v6125_v60  ;;  %4249 = vmatpush.bf16.msra.mxu2 %v6129_v12  ;;  %v3981_v7 = vpack.c.bf16 %v3975_v44, %v3974_v37  ;;  %v6564_v36 = vld [vmem:[%s7989_s5 + $0xb8] sm:$0xff]  ;;  %v6547_v57 = vld [vmem:[%s7989_s5 + $0x30] sm:$0xff]  ;;  %v6570_v27 = vld [vmem:[%s7989_s5 + $0xe8] sm:$0xff] }
 0xd17   : > { %4278 = vmatpush.bf16.msra.mxu3 %v6133_v35  ;;  %v6572_v26 = vld [vmem:[%s7989_s5 + $0xf8] sm:$0xff]  ;;  %v6555_v14 = vld [vmem:[%s7989_s5 + $0x70] sm:$0xff]  ;;  %v3977_v51 = vld [vmem:[#allocation3 + $0x8] sm:$0xff] }
 0xd18   : > { %v6548_v29 = vld [vmem:[%s7989_s5 + $0x38] sm:$0xff]  ;;  %v6546_v17 = vld [vmem:[%s7989_s5 + $0x28] sm:$0xff]  ;;  %v3982_v50 = vpack.c.bf16 %v3977_v51, %v3976_v3  ;;  %v6561_v32 = vld [vmem:[%s7989_s5 + $0xa0] sm:$0xff] }
 0xd19   : > { %4192 = vmatpush.bf16.msra.mxu0 %v6105_v9  ;;  %v6556_v21 = vld [vmem:[%s7989_s5 + $0x78] sm:$0xff]  ;;  %v6554_v45 = vld [vmem:[%s7989_s5 + $0x68] sm:$0xff]  ;;  %v6545_v53 = vld [vmem:[%s7989_s5 + $0x20] sm:$0xff] }
 0xd1a   : > { %4221 = vmatpush.bf16.msra.mxu1 %v6109_v55  ;;  %4250 = vmatpush.bf16.msra.mxu2 %v6113_v58  ;;  %v6569_v0 = vld [vmem:[%s7989_s5 + $0xe0] sm:$0xff]  ;;  %v6560_v13 = vld [vmem:[%s7989_s5 + $0x98] sm:$0xff]  ;;  %v6559_v33 = vld [vmem:[%s7989_s5 + $0x90] sm:$0xff] }
 0xd1b   : > { %4279 = vmatpush.bf16.msra.mxu3 %v6117_v40  ;;  %v6553_v23 = vld [vmem:[%s7989_s5 + $0x60] sm:$0xff]  ;;  %v6544_v54 = vld [vmem:[%s7989_s5 + $0x18] sm:$0xff]  ;;  %v6567_v10 = vld [vmem:[%s7989_s5 + $0xd0] sm:$0xff] }
 0xd1c   : > { %v6568_v49 = vld [vmem:[%s7989_s5 + $0xd8] sm:$0xff]  ;;  %v3978_v18 = vld [vmem:[#allocation3 + $0x30] sm:$0xff]  ;;  %v3979_v42 = vld [vmem:[#allocation3 + $0x38] sm:$0xff] }
 0xd1d   : > { %4193 = vmatpush.bf16.msra.mxu0 %v6089_v48  ;;  %v6552_v19 = vld [vmem:[%s7989_s5 + $0x58] sm:$0xff]  ;;  %v3983_v31 = vpack.c.bf16 %v3979_v42, %v3978_v18  ;;  %v6543_v30 = vld [vmem:[%s7989_s5 + $0x10] sm:$0xff]  ;;  %v6558_v63 = vld [vmem:[%s7989_s5 + $0x88] sm:$0xff] }
 0xd1e   : > { %4222 = vmatpush.bf16.msra.mxu1 %v6093_v4  ;;  %4251 = vmatpush.bf16.msra.mxu2 %v6097_v20  ;;  %v6551_v28 = vld [vmem:[%s7989_s5 + $0x50] sm:$0xff]  ;;  %v6542_v60 = vld [vmem:[%s7989_s5 + $0x8] sm:$0xff]  ;;  %v6541_v39 = vld [vmem:[%s7989_s5] sm:$0xff] }
 0xd1f   : > { %4280 = vmatpush.bf16.msra.mxu3 %v6101_v52  ;;  %v6550_v12 = vld [vmem:[%s7989_s5 + $0x48] sm:$0xff]  ;;  %v6549_v46 = vld [vmem:[%s7989_s5 + $0x40] sm:$0xff]  ;;  %v4016_v62 = vld [vmem:[%s1264_s0] sm:$0xf]  ;;  %s9568_s0 = sld [smem:[#allocation40_spill]] }
 0xd20   : > { %4194 = vmatmul.bf16.vlgmr.msra.gmra.mxu0 %v3980_v38  ;;  %v6566_v6 = vld [vmem:[%s7989_s5 + $0xc8] sm:$0xff]  ;;  %v6557_v35 = vld [vmem:[%s7989_s5 + $0x80] sm:$0xff]  ;;  %v9083_v2 = vperm.slane %v4016_v62, 0  ;;  %v9085_v9 = vperm.slane %v4016_v62, 1  ;;  %v9090_v8 = vperm.slane %v4016_v62, 2  ;;  %v9093_v48 = vperm.slane %v4016_v62, 3 }
 0xd21   : > { %4223 = vmatmul.bf16.vlgmr.msra.gmra.mxu1 %v3980_v38  ;;  %4252 = vmatmul.bf16.vlgmr.msra.gmra.mxu2 %v3980_v38  ;;  %v6565_v56 = vld [vmem:[%s7989_s5 + $0xc0] sm:$0xff] }
 0xd22   : > { %4281 = vmatmul.bf16.vlgmr.msra.gmra.mxu3 %v3980_v38  ;;  %4672 = vmatpush.bf16.msrb.mxu2 %v6564_v36 }
 0xd23   : > { %4701 = vmatpush.bf16.msrb.mxu3 %v6572_v26  ;;  %4614 = vmatpush.bf16.msrb.mxu0 %v6548_v29 }
 0xd24   : > { %4643 = vmatpush.bf16.msrb.mxu1 %v6556_v21 }
 0xd25   : > { %p4746_p12 = scmp.eq.s32.totalorder %s9568_s0, 3  ;;  %p6342_p13 = scmp.ne.s32.totalorder %s9568_s0, 3 }
 0xd26   : > { %4673 = vmatpush.bf16.msrb.mxu2 %v6563_v59  ;;  %s9569_s5 = scalar_lea.vmem (!%p6342_p13), [#allocation16], %s7970_s28  ;;  %s9570_s17 = scalar_lea.vmem (!%p6342_p13), [#allocation17], %s7970_s28 }
 0xd27   : > { %4702 = vmatpush.bf16.msrb.mxu3 %v6571_v25  ;;  %4615 = vmatpush.bf16.msrb.mxu0 %v6547_v57  ;;  %s9571_s24 = scalar_lea.vmem (!%p6342_p13), [#allocation19], %s7970_s28 }
 0xd28   : > { %4644 = vmatpush.bf16.msrb.mxu1 %v6555_v14 }
 0xd2a   : > { %4674 = vmatpush.bf16.msrb.mxu2 %v6562_v11 }
 0xd2b   : > { %4703 = vmatpush.bf16.msrb.mxu3 %v6570_v27  ;;  %4616 = vmatpush.bf16.msrb.mxu0 %v6546_v17 }
 0xd2c   : > { %4645 = vmatpush.bf16.msrb.mxu1 %v6554_v45 }
 0xd2e   : > { %4675 = vmatpush.bf16.msrb.mxu2 %v6561_v32 }
 0xd2f   : > { %4617 = vmatpush.bf16.msrb.mxu0 %v6545_v53  ;;  %4704 = vmatpush.bf16.msrb.mxu3 %v6569_v0 }
 0xd30   : > { %4199 = vmatmul.bf16.gmra.mxu0 %v3981_v7  ;;  %4646 = vmatpush.bf16.msrb.mxu1 %v6553_v23 }
 0xd31   : > { %4228 = vmatmul.bf16.gmra.mxu1 %v3981_v7  ;;  %4257 = vmatmul.bf16.gmra.mxu2 %v3981_v7 }
 0xd32   : > { %4286 = vmatmul.bf16.gmra.mxu3 %v3981_v7  ;;  %4676 = vmatpush.bf16.msrb.mxu2 %v6560_v13 }
 0xd33   : > { %4618 = vmatpush.bf16.msrb.mxu0 %v6544_v54  ;;  %4705 = vmatpush.bf16.msrb.mxu3 %v6568_v49 }
 0xd34   : > { %4647 = vmatpush.bf16.msrb.mxu1 %v6552_v19 }
 0xd36   : > { %4677 = vmatpush.bf16.msrb.mxu2 %v6559_v33 }
 0xd37   : > { %4706 = vmatpush.bf16.msrb.mxu3 %v6567_v10  ;;  %4619 = vmatpush.bf16.msrb.mxu0 %v6543_v30 }
 0xd38   : > { %4648 = vmatpush.bf16.msrb.mxu1 %v6551_v28 }
 0xd3a   : > { %4678 = vmatpush.bf16.msrb.mxu2 %v6558_v63 }
 0xd3b   : > { %4620 = vmatpush.bf16.msrb.mxu0 %v6542_v60  ;;  %4707 = vmatpush.bf16.msrb.mxu3 %v6566_v6 }
 0xd3c   : > { %4649 = vmatpush.bf16.msrb.mxu1 %v6550_v12 }
 0xd3e   : > { %4679 = vmatpush.bf16.msrb.mxu2 %v6557_v35 }
 0xd3f   : > { %4621 = vmatpush.bf16.msrb.mxu0 %v6541_v39  ;;  %4708 = vmatpush.bf16.msrb.mxu3 %v6565_v56 }
 0xd40   : > { %4204 = vmatmul.bf16.gmra.mxu0 %v3982_v50  ;;  %4650 = vmatpush.bf16.msrb.mxu1 %v6549_v46 }
 0xd41   : > { %4233 = vmatmul.bf16.gmra.mxu1 %v3982_v50  ;;  %4262 = vmatmul.bf16.gmra.mxu2 %v3982_v50 }
 0xd42   : > { %4291 = vmatmul.bf16.gmra.mxu3 %v3982_v50 }
 0xd50   : > { %4209 = vmatmul.bf16.gmra.mxu0 %v3983_v31 }
 0xd51   : > { %4238 = vmatmul.bf16.gmra.mxu1 %v3983_v31  ;;  %4267 = vmatmul.bf16.gmra.mxu2 %v3983_v31 }
 0xd52   : > { %4296 = vmatmul.bf16.gmra.mxu3 %v3983_v31 }
 0xd9d   : > { %v4195_v1 = vpop.f32.mrf.mxu0 }
 0xd9e   : > { %v4224_v22 = vpop.f32.mrf.mxu1  ;;  %v4196_v55 = vadd.f32 %v4195_v1, %v9083_v2 }
 0xd9f   : > { %v4225_v58 = vadd.f32 %v4224_v22, %v9085_v9 }
 0xda0   : > { %v4302_v40 = vmax.f32 %v4196_v55, 0.0 }
 0xda1   : > { %v4303_v34 = vmax.f32 %v4225_v58, 0.0 }
 0xda4   : > { %v4253_v5 = vpop.f32.mrf.mxu2 }
 0xda5   : > { %v4282_v24 = vpop.f32.mrf.mxu3  ;;  %v4197_v43 = vpop.f32.mrf.mxu0  ;;  %v4254_v20 = vadd.f32 %v4253_v5, %v9090_v8 }
 0xda6   : > { %v4198_v47 = vadd.f32 %v4197_v43, %v9083_v2  ;;  %v4226_v61 = vpop.f32.mrf.mxu1  ;;  %v4283_v38 = vadd.f32 %v4282_v24, %v9093_v48 }
 0xda7   : > { %v4227_v41 = vadd.f32 %v4226_v61, %v9085_v9  ;;  %v4304_v21 = vmax.f32 %v4254_v20, 0.0 }
 0xda8   : > { %v4306_v16 = vmax.f32 %v4198_v47, 0.0  ;;  %v4305_v25 = vmax.f32 %v4283_v38, 0.0 }
 0xda9   : > { %v4307_v15 = vmax.f32 %v4227_v41, 0.0 }
 0xdaa   : > { %v4342_v4 = vpack.c.bf16 %v4306_v16, %v4302_v40 }
 0xdab   : > { %v4343_v52 = vpack.c.bf16 %v4307_v15, %v4303_v34 }
 0xdac   : > { %v4255_v37 = vpop.f32.mrf.mxu2  ;;  %4622 = vmatmul.bf16.vlgmr.msrb.gmra.mxu0 %v4342_v4 }
 0xdad   : > { %v4256_v44 = vadd.f32 %v4255_v37, %v9090_v8  ;;  %v4284_v7 = vpop.f32.mrf.mxu3  ;;  %4651 = vmatmul.bf16.vlgmr.msrb.gmra.mxu1 %v4343_v52  ;;  %v4200_v36 = vpop.f32.mrf.mxu0 }
 0xdae   : > { %v4285_v26 = vadd.f32 %v4284_v7, %v9093_v48  ;;  %v4229_v29 = vpop.f32.mrf.mxu1  ;;  %v4201_v11 = vadd.f32 %v4200_v36, %v9083_v2 }
 0xdaf   : > { %v4308_v59 = vmax.f32 %v4256_v44, 0.0  ;;  %v4230_v27 = vadd.f32 %v4229_v29, %v9085_v9 }
 0xdb0   : > { %v4309_v57 = vmax.f32 %v4285_v26, 0.0  ;;  %v4310_v50 = vmax.f32 %v4201_v11, 0.0 }
 0xdb1   : > { %v4344_v14 = vpack.c.bf16 %v4308_v59, %v4304_v21  ;;  %v4311_v0 = vmax.f32 %v4230_v27, 0.0 }
 0xdb2   : > { %v4345_v3 = vpack.c.bf16 %v4309_v57, %v4305_v25 }
 0xdb3   : > { %4680 = vmatmul.bf16.vlgmr.msrb.gmra.mxu2 %v4344_v14 }
 0xdb4   : > { %4709 = vmatmul.bf16.vlgmr.msrb.gmra.mxu3 %v4345_v3  ;;  %v4258_v51 = vpop.f32.mrf.mxu2 }
 0xdb5   : > { %v4287_v17 = vpop.f32.mrf.mxu3  ;;  %v4202_v45 = vpop.f32.mrf.mxu0  ;;  %v4259_v19 = vadd.f32 %v4258_v51, %v9090_v8 }
 0xdb6   : > { %v4203_v32 = vadd.f32 %v4202_v45, %v9083_v2  ;;  %v4231_v53 = vpop.f32.mrf.mxu1  ;;  %v4288_v10 = vadd.f32 %v4287_v17, %v9093_v48 }
 0xdb7   : > { %v4232_v23 = vadd.f32 %v4231_v53, %v9085_v9  ;;  %v4312_v60 = vmax.f32 %v4259_v19, 0.0 }
 0xdb8   : > { %v4314_v13 = vmax.f32 %v4203_v32, 0.0  ;;  %v4313_v6 = vmax.f32 %v4288_v10, 0.0 }
 0xdb9   : > { %v4315_v54 = vmax.f32 %v4232_v23, 0.0 }
 0xdba   : > { %v4346_v49 = vpack.c.bf16 %v4314_v13, %v4310_v50 }
 0xdbb   : > { %v4347_v33 = vpack.c.bf16 %v4315_v54, %v4311_v0 }
 0xdbc   : > { %v4260_v18 = vpop.f32.mrf.mxu2  ;;  %4627 = vmatmul.bf16.gmra.mxu0 %v4346_v49 }
 0xdbd   : > { %v4261_v42 = vadd.f32 %v4260_v18, %v9090_v8  ;;  %v4289_v31 = vpop.f32.mrf.mxu3  ;;  %4656 = vmatmul.bf16.gmra.mxu1 %v4347_v33  ;;  %v4205_v30 = vpop.f32.mrf.mxu0 }
 0xdbe   : > { %v4290_v28 = vadd.f32 %v4289_v31, %v9093_v48  ;;  %v4234_v63 = vpop.f32.mrf.mxu1  ;;  %v4206_v35 = vadd.f32 %v4205_v30, %v9083_v2 }
 0xdbf   : > { %v4316_v12 = vmax.f32 %v4261_v42, 0.0  ;;  %v4235_v62 = vadd.f32 %v4234_v63, %v9085_v9 }
 0xdc0   : > { %v4317_v39 = vmax.f32 %v4290_v28, 0.0  ;;  %v4318_v58 = vmax.f32 %v4206_v35, 0.0  ;;  %v4334_v35 = vld [vmem:[#allocation4] sm:$0xff] }
 0xdc1   : > { %v4348_v46 = vpack.c.bf16 %v4316_v12, %v4312_v60  ;;  %v4319_v43 = vmax.f32 %v4235_v62, 0.0 }
 0xdc2   : > { %v4349_v56 = vpack.c.bf16 %v4317_v39, %v4313_v6 }
 0xdc3   : > { %4685 = vmatmul.bf16.gmra.mxu2 %v4348_v46 }
 0xdc4   : > { %4714 = vmatmul.bf16.gmra.mxu3 %v4349_v56  ;;  %v4263_v1 = vpop.f32.mrf.mxu2 }
 0xdc5   : > { %v4292_v22 = vpop.f32.mrf.mxu3  ;;  %v4207_v55 = vpop.f32.mrf.mxu0  ;;  %v4264_v41 = vadd.f32 %v4263_v1, %v9090_v8 }
 0xdc6   : > { %v4208_v5 = vadd.f32 %v4207_v55, %v9083_v2  ;;  %v4236_v24 = vpop.f32.mrf.mxu1  ;;  %v4293_v15 = vadd.f32 %v4292_v22, %v9093_v48 }
 0xdc7   : > { %v4237_v40 = vadd.f32 %v4236_v24, %v9085_v9  ;;  %v4320_v7 = vmax.f32 %v4264_v41, 0.0  ;;  %v4335_v24 = vld [vmem:[#allocation4 + $0x8] sm:$0xff] }
 0xdc8   : > { %v4322_v47 = vmax.f32 %v4208_v5, 0.0  ;;  %v4321_v26 = vmax.f32 %v4293_v15, 0.0 }
 0xdc9   : > { %v4323_v61 = vmax.f32 %v4237_v40, 0.0 }
 0xdca   : > { %v4350_v34 = vpack.c.bf16 %v4322_v47, %v4318_v58 }
 0xdcb   : > { %v4351_v16 = vpack.c.bf16 %v4323_v61, %v4319_v43 }
 0xdcc   : > { %v4265_v4 = vpop.f32.mrf.mxu2  ;;  %4632 = vmatmul.bf16.gmra.mxu0 %v4350_v34 }
 0xdcd   : > { %v4266_v20 = vadd.f32 %v4265_v4, %v9090_v8  ;;  %v4294_v52 = vpop.f32.mrf.mxu3  ;;  %4661 = vmatmul.bf16.gmra.mxu1 %v4351_v16  ;;  %v4210_v38 = vpop.f32.mrf.mxu0  ;;  %v4336_v4 = vld [vmem:[#allocation4 + $0x10] sm:$0xff] }
 0xdce   : > { %v4295_v37 = vadd.f32 %v4294_v52, %v9093_v48  ;;  %v4239_v44 = vpop.f32.mrf.mxu1  ;;  %v4211_v59 = vadd.f32 %v4210_v38, %v9083_v2 }
 0xdcf   : > { %v4324_v36 = vmax.f32 %v4266_v20, 0.0  ;;  %v4240_v57 = vadd.f32 %v4239_v44, %v9085_v9 }
 0xdd0   : > { %v4325_v29 = vmax.f32 %v4295_v37, 0.0  ;;  %v4326_v27 = vmax.f32 %v4211_v59, 0.0 }
 0xdd1   : > { %v4352_v21 = vpack.c.bf16 %v4324_v36, %v4320_v7  ;;  %v4327_v45 = vmax.f32 %v4240_v57, 0.0 }
 0xdd2   : > { %v4353_v25 = vpack.c.bf16 %v4325_v29, %v4321_v26  ;;  %v4337_v29 = vld [vmem:[#allocation4 + $0x18] sm:$0xff] }
 0xdd3   : > { %4690 = vmatmul.bf16.gmra.mxu2 %v4352_v21 }
 0xdd4   : > { %4719 = vmatmul.bf16.gmra.mxu3 %v4353_v25  ;;  %v4268_v14 = vpop.f32.mrf.mxu2 }
 0xdd5   : > { %v4297_v3 = vpop.f32.mrf.mxu3  ;;  %v4212_v11 = vpop.f32.mrf.mxu0  ;;  %v4269_v23 = vadd.f32 %v4268_v14, %v9090_v8 }
 0xdd6   : > { %v4213_v51 = vadd.f32 %v4212_v11, %v9083_v2  ;;  %v4241_v17 = vpop.f32.mrf.mxu1  ;;  %v4298_v54 = vadd.f32 %v4297_v3, %v9093_v48 }
 0xdd7   : > { %v4242_v50 = vadd.f32 %v4241_v17, %v9085_v9  ;;  %v4328_v10 = vmax.f32 %v4269_v23, 0.0 }
 0xdd8   : > { %v4330_v32 = vmax.f32 %v4213_v51, 0.0  ;;  %v4329_v9 = vmax.f32 %v4298_v54, 0.0  ;;  %v4338_v51 = vld [vmem:[#allocation4 + $0x20] sm:$0xff]  ;;  %v4339_v54 = vld [vmem:[#allocation4 + $0x28] sm:$0xff] }
 0xdd9   : > { %v4331_v53 = vmax.f32 %v4242_v50, 0.0 }
 0xdda   : > { %v4354_v0 = vpack.c.bf16 %v4330_v32, %v4326_v27 }
 0xddb   : > { %v4355_v13 = vpack.c.bf16 %v4331_v53, %v4327_v45 }
 0xddc   : > { %v4270_v49 = vpop.f32.mrf.mxu2  ;;  %4637 = vmatmul.bf16.gmra.mxu0 %v4354_v0 }
 0xddd   : > { %v4271_v19 = vadd.f32 %v4270_v49, %v9090_v8  ;;  %v4299_v33 = vpop.f32.mrf.mxu3  ;;  %4666 = vmatmul.bf16.gmra.mxu1 %v4355_v13 }
 0xdde   : > { %v4300_v2 = vadd.f32 %v4299_v33, %v9093_v48 }
 0xddf   : > { %v4332_v18 = vmax.f32 %v4271_v19, 0.0 }
 0xde0   : > { %v4333_v42 = vmax.f32 %v4300_v2, 0.0 }
 0xde1   : > { %v4356_v31 = vpack.c.bf16 %v4332_v18, %v4328_v10 }
 0xde2   : > { %v4357_v30 = vpack.c.bf16 %v4333_v42, %v4329_v9  ;;  %v4340_v9 = vld [vmem:[#allocation4 + $0x30] sm:$0xff] }
 0xde3   : > { %4695 = vmatmul.bf16.gmra.mxu2 %v4356_v31 }
 0xde4   : > { %4724 = vmatmul.bf16.gmra.mxu3 %v4357_v30 }
 0xe29   : > { %v4623_v28 = vpop.f32.mrf.mxu0 }
 0xe2a   : > { %v4652_v63 = vpop.f32.mrf.mxu1 }
 0xe2b   : > { %v4653_v6 = vadd.f32 %v4652_v63, %v4623_v28 }
 0xe31   : > { %v4625_v60 = vpop.f32.mrf.mxu0 }
 0xe32   : > { %v4654_v12 = vpop.f32.mrf.mxu1 }
 0xe33   : > { %v4655_v22 = vadd.f32 %v4654_v12, %v4625_v60 }
 0xe36   : > { %v4681_v39 = vpop.f32.mrf.mxu2 }
 0xe37   : > { %v4682_v8 = vadd.f32 %v4681_v39, %v4653_v6  ;;  %v4710_v46 = vpop.f32.mrf.mxu3  ;;  %v4341_v6 = vld [vmem:[#allocation4 + $0x38] sm:$0xff] }
 0xe39   : > { %v4711_v56 = vadd.f32 %v4710_v46, %v4682_v8  ;;  %v4628_v48 = vpop.f32.mrf.mxu0 }
 0xe3a   : > { %v4657_v62 = vpop.f32.mrf.mxu1 }
 0xe3b   : > { %v4730_v1 = vadd.f32 %v4711_v56, %v4334_v35  ;;  %v4658_v34 = vadd.f32 %v4657_v62, %v4628_v48 }
 0xe3d   : > { %4738 = vst [vmem:[#allocation4] sm:$0xff] %v4730_v1 }
 0xe3e   : > { %v4683_v55 = vpop.f32.mrf.mxu2 }
 0xe3f   : > { %v4684_v58 = vadd.f32 %v4683_v55, %v4655_v22  ;;  %v4712_v5 = vpop.f32.mrf.mxu3 }
 0xe41   : > { %v4713_v43 = vadd.f32 %v4712_v5, %v4684_v58  ;;  %v4630_v40 = vpop.f32.mrf.mxu0 }
 0xe42   : > { %v4659_v47 = vpop.f32.mrf.mxu1 }
 0xe43   : > { %v4731_v61 = vadd.f32 %v4713_v43, %v4335_v24  ;;  %v4660_v44 = vadd.f32 %v4659_v47, %v4630_v40 }
 0xe45   : > { %4739 = vst [vmem:[#allocation4 + $0x8] sm:$0xff] %v4731_v61 }
 0xe46   : > { %v4686_v41 = vpop.f32.mrf.mxu2 }
 0xe47   : > { %v4687_v16 = vadd.f32 %v4686_v41, %v4658_v34  ;;  %v4715_v15 = vpop.f32.mrf.mxu3 }
 0xe49   : > { %v4716_v20 = vadd.f32 %v4715_v15, %v4687_v16  ;;  %v4633_v38 = vpop.f32.mrf.mxu0 }
 0xe4a   : > { %v4662_v37 = vpop.f32.mrf.mxu1 }
 0xe4b   : > { %v4732_v52 = vadd.f32 %v4716_v20, %v4336_v4  ;;  %v4663_v25 = vadd.f32 %v4662_v37, %v4633_v38 }
 0xe4d   : > { %4740 = vst [vmem:[#allocation4 + $0x10] sm:$0xff] %v4732_v52 }
 0xe4e   : > { %v4688_v7 = vpop.f32.mrf.mxu2 }
 0xe4f   : > { %v4689_v36 = vadd.f32 %v4688_v7, %v4660_v44  ;;  %v4717_v26 = vpop.f32.mrf.mxu3 }
 0xe51   : > { %v4718_v21 = vadd.f32 %v4717_v26, %v4689_v36  ;;  %v4635_v57 = vpop.f32.mrf.mxu0 }
 0xe52   : > { %v4664_v14 = vpop.f32.mrf.mxu1 }
 0xe53   : > { %v4733_v59 = vadd.f32 %v4718_v21, %v4337_v29  ;;  %v4665_v50 = vadd.f32 %v4664_v14, %v4635_v57 }
 0xe55   : > { %4741 = vst [vmem:[#allocation4 + $0x18] sm:$0xff] %v4733_v59 }
 0xe56   : > { %v4691_v3 = vpop.f32.mrf.mxu2 }
 0xe57   : > { %v4692_v11 = vadd.f32 %v4691_v3, %v4663_v25  ;;  %v4720_v27 = vpop.f32.mrf.mxu3 }
 0xe59   : > { %v4721_v17 = vadd.f32 %v4720_v27, %v4692_v11  ;;  %v4638_v23 = vpop.f32.mrf.mxu0 }
 0xe5a   : > { %v4667_v13 = vpop.f32.mrf.mxu1 }
 0xe5b   : > { %v4734_v45 = vadd.f32 %v4721_v17, %v4338_v51  ;;  %v4668_v33 = vadd.f32 %v4667_v13, %v4638_v23 }
 0xe5d   : > { %4742 = vst [vmem:[#allocation4 + $0x20] sm:$0xff] %v4734_v45 }
 0xe5e   : > { %v4693_v32 = vpop.f32.mrf.mxu2 }
 0xe5f   : > { %v4694_v53 = vadd.f32 %v4693_v32, %v4665_v50  ;;  %v4722_v0 = vpop.f32.mrf.mxu3 }
 0xe61   : > { %v4723_v49 = vadd.f32 %v4722_v0, %v4694_v53  ;;  %v4640_v31 = vpop.f32.mrf.mxu0 }
 0xe62   : > { %v4669_v30 = vpop.f32.mrf.mxu1 }
 0xe63   : > { %v4735_v19 = vadd.f32 %v4723_v49, %v4339_v54  ;;  %v4670_v63 = vadd.f32 %v4669_v30, %v4640_v31 }
 0xe65   : > { %4743 = vst [vmem:[#allocation4 + $0x28] sm:$0xff] %v4735_v19 }
 0xe66   : > { %v4696_v2 = vpop.f32.mrf.mxu2 }
 0xe67   : > { %v4697_v10 = vadd.f32 %v4696_v2, %v4668_v33  ;;  %v4725_v18 = vpop.f32.mrf.mxu3 }
 0xe69   : > { %v4726_v42 = vadd.f32 %v4725_v18, %v4697_v10 }
 0xe6b   : > { %v4736_v28 = vadd.f32 %v4726_v42, %v4340_v9 }
 0xe6d   : > { %4744 = vst [vmem:[#allocation4 + $0x30] sm:$0xff] %v4736_v28 }
 0xe6e   : > { %v4698_v60 = vpop.f32.mrf.mxu2 }
 0xe6f   : > { %v4699_v12 = vadd.f32 %v4698_v60, %v4670_v63  ;;  %v4727_v39 = vpop.f32.mrf.mxu3 }
 0xe71   : > { %v4728_v8 = vadd.f32 %v4727_v39, %v4699_v12  ;;  %4749 = sbr.rel (%p6342_p13) target bundleno = 4001 (0xfa1), region = 207 }
 0xe73   : > { %v4737_v46 = vadd.f32 %v4728_v8, %v4341_v6 }
 0xe75   : > { %4745 = vst [vmem:[#allocation4 + $0x38] sm:$0xff] %v4737_v46 }
 0xe76   : > { %v4754_v35 = vld [vmem:[#allocation3 + $0x28] sm:$0xff]  ;;  %v4762_v56 = vld [vmem:[#allocation4 + $0x20] sm:$0xff]  ;;  %v4752_v1 = vld [vmem:[#allocation3 + $0x10] sm:$0xff]  ;;  %v7535_v3 = vmov 128.0  }
 0xe77   : > { %v4770_v48 = vadd.f32 %v4762_v56, %v4754_v35  ;;  %v6960_v62 = vld [vmem:[%s9569_s5] ss:$0 sm:$0xff]  ;;  %v4760_v22 = vld [vmem:[#allocation4 + $0x10] sm:$0xff]  ;;  %v4755_v24 = vld [vmem:[#allocation3 + $0x8] sm:$0xff]  ;;  %6963 = vrcp.f32 %v7535_v3 }
 0xe78   : > { %v4768_v55 = vadd.f32 %v4760_v22, %v4752_v1  ;;  %v4750_v58 = vld [vmem:[#allocation3] sm:$0xff]  ;;  %v4763_v47 = vld [vmem:[#allocation4 + $0x28] sm:$0xff]  ;;  %v4761_v34 = vld [vmem:[#allocation4 + $0x18] sm:$0xff] }
 0xe79   : > { %v4758_v5 = vld [vmem:[#allocation4] sm:$0xff]  ;;  %v9127_v43 = vadd.f32 %v6960_v62, %v4770_v48  ;;  %v4751_v16 = vld [vmem:[#allocation3 + $0x18] sm:$0xff]  ;;  %v4759_v15 = vld [vmem:[#allocation4 + $0x8] sm:$0xff]  ;;  %v4771_v20 = vadd.f32 %v4763_v47, %v4755_v24 }
 0xe7a   : > { %v4766_v40 = vadd.f32 %v4758_v5, %v4750_v58  ;;  %v4753_v61 = vld [vmem:[#allocation3 + $0x20] sm:$0xff]  ;;  %v4780_v41 = vadd.f32 %v6960_v62, %v4768_v55  ;;  %v4767_v38 = vadd.f32 %v4759_v15, %v4751_v16  ;;  %v4757_v36 = vld [vmem:[#allocation3 + $0x38] sm:$0xff]  ;;  %v4756_v29 = vld [vmem:[#allocation3 + $0x30] sm:$0xff] }
 0xe7b   : > { %4796 = vadd.xlane.f32.xlu2 %v9127_v43  ;;  %v4769_v52 = vadd.f32 %v4761_v34, %v4753_v61  ;;  %v4783_v37 = vadd.f32 %v6960_v62, %v4771_v20  ;;  %v4764_v21 = vld [vmem:[#allocation4 + $0x30] sm:$0xff] }
 0xe7c   : > { %v4778_v4 = vadd.f32 %v6960_v62, %v4766_v40  ;;  %4792 = vadd.xlane.f32.xlu1 %v4780_v41  ;;  %v4779_v7 = vadd.f32 %v6960_v62, %v4767_v38  ;;  %v4765_v26 = vld [vmem:[#allocation4 + $0x38] sm:$0xff]  ;;  %v4772_v25 = vadd.f32 %v4764_v21, %v4756_v29 }
 0xe7d   : > { %v4781_v44 = vadd.f32 %v6960_v62, %v4769_v52  ;;  %v4773_v59 = vadd.f32 %v4765_v26, %v4757_v36  ;;  %v6964_v11 = vpop.eup %6963 }
 0xe7e   : > { %4788 = vadd.xlane.f32.xlu0 %v4778_v4  ;;  %v4784_v14 = vadd.f32 %v6960_v62, %v4772_v25  ;;  %v4805_v27 = vmul.f32 128.0, %v6964_v11  ;;  %vm4809_vm0 = vweird.f32 %v6964_v11 }
 0xe7f   : > { %v4785_v57 = vadd.f32 %v6960_v62, %v4773_v59 }
 0xe80   : > { %v4806_v51 = vsub.f32 1.0, %v4805_v27 }
 0xe82   : > { %v4807_v17 = vmul.f32 %v6964_v11, %v4806_v51 }
 0xe83   : > { %4798 = vadd.xlane.f32.xlu2 %v4783_v37 }
 0xe84   : > { %4794 = vadd.xlane.f32.xlu1 %v4781_v44  ;;  %v4808_v45 = vadd.f32 %v6964_v11, %v4807_v17 }
 0xe86   : > { %4790 = vadd.xlane.f32.xlu0 %v4779_v7  ;;  %v9130_v50 = vsel %vm4809_vm0, %v6964_v11, %v4808_v45 }
 0xe8c   : > { %4802 = vadd.xlane.f32.xlu1 %v4785_v57 }
 0xe8e   : > { %4800 = vadd.xlane.f32.xlu0 %v4784_v14 }
 0xeee   : > { %v4797_v32 = vpop.xlane.xlu2 %4796 }
 0xeef   : > { %v4793_v53 = vpop.xlane.xlu1 %4792  ;;  %v4815_v63 = vmul.f32 %v9130_v50, %v4797_v32 }
 0xef0   : > { %v4813_v0 = vmul.f32 %v9130_v50, %v4793_v53 }
 0xef1   : > { %v4789_v23 = vpop.xlane.xlu0 %4788  ;;  %v9159_v8 = vsub.f32 %v9127_v43, %v4815_v63 }
 0xef2   : > { %v4811_v13 = vmul.f32 %v9130_v50, %v4789_v23  ;;  %v9134_v54 = vsub.f32 %v4780_v41, %v4813_v0 }
 0xef3   : > { %v4831_v62 = vmul.f32 %v9159_v8, %v9159_v8 }
 0xef4   : > { %v9136_v49 = vsub.f32 %v4778_v4, %v4811_v13  ;;  %v4829_v19 = vmul.f32 %v9134_v54, %v9134_v54  ;;  %v9190_v13 = vld [vmem:[%s9570_s17] ss:$0 sm:$0xff] }
 0xef6   : > { %v4827_v33 = vmul.f32 %v9136_v49, %v9136_v49  ;;  %4839 = vadd.xlane.f32.xlu1 %v4829_v19  ;;  %v4799_v2 = vpop.xlane.xlu2 %4798 }
 0xef7   : > { %v4816_v10 = vmul.f32 %v9130_v50, %v4799_v2  ;;  %v4795_v18 = vpop.xlane.xlu1 %4794 }
 0xef8   : > { %4835 = vadd.xlane.f32.xlu2 %v4827_v33  ;;  %v4814_v9 = vmul.f32 %v9130_v50, %v4795_v18 }
 0xef9   : > { %v4791_v42 = vpop.xlane.xlu0 %4790  ;;  %v9144_v31 = vsub.f32 %v4783_v37, %v4816_v10 }
 0xefa   : > { %v4812_v30 = vmul.f32 %v9130_v50, %v4791_v42  ;;  %v9147_v28 = vsub.f32 %v4781_v44, %v4814_v9  ;;  %v9199_v42 = vld [vmem:[%s9571_s24] ss:$0 sm:$0xff] }
 0xefb   : > { %v4832_v12 = vmul.f32 %v9144_v31, %v9144_v31 }
 0xefc   : > { %v9150_v60 = vsub.f32 %v4779_v7, %v4812_v30  ;;  %v4830_v6 = vmul.f32 %v9147_v28, %v9147_v28 }
 0xefe   : > { %v4828_v39 = vmul.f32 %v9150_v60, %v9150_v60  ;;  %4845 = vadd.xlane.f32.xlu1 %v4832_v12 }
 0xeff   : > { %v4803_v35 = vpop.xlane.xlu1 %4802 }
 0xf00   : > { %4841 = vadd.xlane.f32.xlu2 %v4830_v6  ;;  %4837 = vadd.xlane.f32.xlu0 %v4828_v39  ;;  %v4818_v1 = vmul.f32 %v9130_v50, %v4803_v35 }
 0xf01   : > { %v4801_v46 = vpop.xlane.xlu0 %4800 }
 0xf02   : > { %v4817_v56 = vmul.f32 %v9130_v50, %v4801_v46  ;;  %v9169_v55 = vsub.f32 %v4785_v57, %v4818_v1 }
 0xf04   : > { %v9162_v48 = vsub.f32 %v4784_v14, %v4817_v56  ;;  %v4834_v58 = vmul.f32 %v9169_v55, %v9169_v55 }
 0xf06   : > { %v4833_v22 = vmul.f32 %v9162_v48, %v9162_v48 }
 0xf08   : > { %4843 = vadd.xlane.f32.xlu0 %v4831_v62  ;;  %4847 = vadd.xlane.f32.xlu2 %v4833_v22 }
 0xf10   : > { %4849 = vadd.xlane.f32.xlu0 %v4834_v58 }
 0xf69   : > { %v4840_v5 = vpop.xlane.xlu1 %4839 }
 0xf6a   : > { %v4853_v24 = vmul.f32 %v4840_v5, %v9130_v50 }
 0xf6b   : > { %v4836_v43 = vpop.xlane.xlu2 %4835 }
 0xf6c   : > { %v4851_v40 = vmul.f32 %v4836_v43, %v9130_v50  ;;  %v4861_v47 = vadd.f32 1e-05, %v4853_v24 }
 0xf6e   : > { %v4859_v61 = vadd.f32 1e-05, %v4851_v40  ;;  %6965 = vrsqrt.f32 %v4861_v47  ;;  %vm4893_vm1 = vweird.f32 %v4861_v47 }
 0xf70   : > { %6967 = vrsqrt.f32 %v4859_v61  ;;  %vm4873_vm5 = vweird.f32 %v4859_v61 }
 0xf71   : > { %v4846_v34 = vpop.xlane.xlu1 %4845 }
 0xf72   : > { %v4856_v41 = vmul.f32 %v4846_v34, %v9130_v50 }
 0xf73   : > { %v4842_v16 = vpop.xlane.xlu2 %4841  ;;  %v4838_v15 = vpop.xlane.xlu0 %4837 }
 0xf74   : > { %v4854_v4 = vmul.f32 %v4842_v16, %v9130_v50  ;;  %v4852_v20 = vmul.f32 %v4838_v15, %v9130_v50  ;;  %v6966_v52 = vpop.eup %6965  ;;  %v4864_v38 = vadd.f32 1e-05, %v4856_v41 }
 0xf75   : > { %v4888_v44 = vmul.f32 %v6966_v52, %v4861_v47  ;;  %vm4894_vm2 = vweird.f32 %v6966_v52 }
 0xf76   : > { %v6968_v37 = vpop.eup %6967  ;;  %v9178_v7 = vadd.f32 1e-05, %v4854_v4  ;;  %v9180_v36 = vadd.f32 1e-05, %v4852_v20  ;;  %6969 = vrsqrt.f32 %v4864_v38  ;;  %vm4895_vm4 = vmor %vm4893_vm1, %vm4894_vm2  ;;  %vm4923_vm7 = vweird.f32 %v4864_v38 }
 0xf77   : > { %v4868_v26 = vmul.f32 %v6968_v37, %v4859_v61  ;;  %v4889_v29 = vmul.f32 %v6966_v52, %v4888_v44  ;;  %vm4874_vm3 = vweird.f32 %v6968_v37 }
 0xf78   : > { %6971 = vrsqrt.f32 %v9178_v7  ;;  %vm4875_vm6 = vmor %vm4873_vm5, %vm4874_vm3  ;;  %vm4903_vm9 = vweird.f32 %v9178_v7  ;;  %vm4883_vm14 = vweird.f32 %v9180_v36 }
 0xf79   : > { %v4869_v21 = vmul.f32 %v6968_v37, %v4868_v26  ;;  %6973 = vrsqrt.f32 %v9180_v36  ;;  %v4890_v59 = vmul.f32 0.5, %v4889_v29 }
 0xf7b   : > { %v4870_v25 = vmul.f32 0.5, %v4869_v21  ;;  %v4848_v57 = vpop.xlane.xlu2 %4847  ;;  %v4844_v14 = vpop.xlane.xlu0 %4843  ;;  %v4891_v3 = vsub.f32 1.5, %v4890_v59 }
 0xf7c   : > { %v4857_v11 = vmul.f32 %v4848_v57, %v9130_v50  ;;  %v4855_v27 = vmul.f32 %v4844_v14, %v9130_v50  ;;  %v6970_v51 = vpop.eup %6969 }
 0xf7d   : > { %v4871_v17 = vsub.f32 1.5, %v4870_v25  ;;  %v4892_v32 = vmul.f32 %v6966_v52, %v4891_v3  ;;  %v4918_v53 = vmul.f32 %v6970_v51, %v4864_v38  ;;  %vm4924_vm8 = vweird.f32 %v6970_v51 }
 0xf7e   : > { %v6972_v45 = vpop.eup %6971  ;;  %v9186_v0 = vadd.f32 1e-05, %v4857_v11  ;;  %v9194_v2 = vadd.f32 1e-05, %v4855_v27  ;;  %vm9211_vm10 = vmor %vm4923_vm7, %vm4924_vm8 }
 0xf7f   : > { %v6974_v23 = vpop.eup %6973  ;;  %v4872_v19 = vmul.f32 %v6968_v37, %v4871_v17  ;;  %v4898_v33 = vmul.f32 %v6972_v45, %v9178_v7  ;;  %v4896_v10 = vsel %vm4895_vm4, %v6966_v52, %v4892_v32  ;;  %v4919_v18 = vmul.f32 %v6970_v51, %v4918_v53 }
 0xf80   : > { %v4878_v9 = vmul.f32 %v6974_v23, %v9180_v36  ;;  %v4949_v30 = vmul.f32 %v4896_v10, %v9134_v54  ;;  %6975 = vrsqrt.f32 %v9186_v0  ;;  %vm4904_vm11 = vweird.f32 %v6972_v45 }
 0xf81   : > { %v4876_v63 = vsel %vm4875_vm6, %v6968_v37, %v4872_v19  ;;  %v4899_v12 = vmul.f32 %v6972_v45, %v4898_v33  ;;  %v4920_v39 = vmul.f32 0.5, %v4919_v18  ;;  %6977 = vrsqrt.f32 %v9194_v2  ;;  %vm4905_vm13 = vmor %vm4903_vm9, %vm4904_vm11 }
 0xf82   : > { %v4947_v6 = vmul.f32 %v4876_v63, %v9136_v49  ;;  %v4879_v46 = vmul.f32 %v6974_v23, %v4878_v9  ;;  %v4960_v35 = vmul.f32 %v9190_v13, %v4949_v30  ;;  %vm4884_vm12 = vweird.f32 %v6974_v23 }
 0xf83   : > { %v4900_v56 = vmul.f32 0.5, %v4899_v12  ;;  %v4850_v62 = vpop.xlane.xlu0 %4849  ;;  %v4921_v54 = vsub.f32 1.5, %v4920_v39  ;;  %vm4885_vm15 = vmor %vm4883_vm14, %vm4884_vm12  ;;  %vm4933_vm0 = vweird.f32 %v9186_v0  ;;  %vm4913_vm4 = vweird.f32 %v9194_v2 }
 0xf84   : > { %v4958_v1 = vmul.f32 %v9190_v13, %v4947_v6  ;;  %v4880_v22 = vmul.f32 0.5, %v4879_v46  ;;  %v4858_v58 = vmul.f32 %v4850_v62, %v9130_v50  ;;  %v4971_v5 = vadd.f32 %v9199_v42, %v4960_v35 }
 0xf85   : > { %v4901_v24 = vsub.f32 1.5, %v4900_v56  ;;  %v4922_v40 = vmul.f32 %v6970_v51, %v4921_v54 }
 0xf86   : > { %v4969_v43 = vadd.f32 %v9199_v42, %v4958_v1  ;;  %v4881_v47 = vsub.f32 1.5, %v4880_v22  ;;  %v4866_v61 = vadd.f32 1e-05, %v4858_v58  ;;  %v6976_v34 = vpop.eup %6975  ;;  %4979 = vst [vmem:[#allocation2 + $0x18] sm:$0xff] %v4971_v5 }
 0xf87   : > { %v4902_v41 = vmul.f32 %v6972_v45, %v4901_v24  ;;  %v4926_v50 = vsel %vm9211_vm10, %v6970_v51, %v4922_v40  ;;  %v4928_v15 = vmul.f32 %v6976_v34, %v9186_v0  ;;  %v6978_v4 = vpop.eup %6977  ;;  %vm4934_vm1 = vweird.f32 %v6976_v34 }
 0xf88   : > { %4977 = vst [vmem:[#allocation2 + $0x30] sm:$0xff] %v4969_v43  ;;  %v4882_v16 = vmul.f32 %v6974_v23, %v4881_v47  ;;  %v4952_v20 = vmul.f32 %v4926_v50, %v9144_v31  ;;  %6979 = vrsqrt.f32 %v4866_v61  ;;  %v4908_v26 = vmul.f32 %v6978_v4, %v9194_v2  ;;  %vm4935_vm3 = vmor %vm4933_vm0, %vm4934_vm1 }
 0xf89   : > { %v4906_v52 = vsel %vm4905_vm13, %v6972_v45, %v4902_v41  ;;  %v4929_v44 = vmul.f32 %v6976_v34, %v4928_v15  ;;  %vm4914_vm2 = vweird.f32 %v6978_v4  ;;  %vm4943_vm7 = vweird.f32 %v4866_v61 }
 0xf8a   : > { %v4950_v38 = vmul.f32 %v4906_v52, %v9147_v28  ;;  %v4886_v37 = vsel %vm4885_vm15, %v6974_v23, %v4882_v16  ;;  %v4963_v7 = vmul.f32 %v9190_v13, %v4952_v20  ;;  %v4909_v59 = vmul.f32 %v6978_v4, %v4908_v26  ;;  %vm4915_vm5 = vmor %vm4913_vm4, %vm4914_vm2 }
 0xf8b   : > { %v4948_v29 = vmul.f32 %v4886_v37, %v9150_v60  ;;  %v4930_v21 = vmul.f32 0.5, %v4929_v44 }
 0xf8c   : > { %v4961_v36 = vmul.f32 %v9190_v13, %v4950_v38  ;;  %v4974_v31 = vadd.f32 %v9199_v42, %v4963_v7  ;;  %v4910_v14 = vmul.f32 0.5, %v4909_v59 }
 0xf8d   : > { %v4959_v25 = vmul.f32 %v9190_v13, %v4948_v29  ;;  %v4931_v57 = vsub.f32 1.5, %v4930_v21 }
 0xf8e   : > { %v4972_v28 = vadd.f32 %v9199_v42, %v4961_v36  ;;  %v6980_v3 = vpop.eup %6979  ;;  %4982 = vst [vmem:[#allocation2 + $0x20] sm:$0xff] %v4974_v31  ;;  %v4911_v27 = vsub.f32 1.5, %v4910_v14 }
 0xf8f   : > { %v4970_v11 = vadd.f32 %v9199_v42, %v4959_v25  ;;  %v4932_v60 = vmul.f32 %v6976_v34, %v4931_v57  ;;  %v4938_v51 = vmul.f32 %v6980_v3, %v4866_v61  ;;  %vm4944_vm6 = vweird.f32 %v6980_v3 }
 0xf90   : > { %4980 = vst [vmem:[#allocation2 + $0x10] sm:$0xff] %v4972_v28  ;;  %v4912_v45 = vmul.f32 %v6978_v4, %v4911_v27  ;;  %vm4945_vm8 = vmor %vm4943_vm7, %vm4944_vm6 }
 0xf91   : > { %4978 = vst [vmem:[#allocation2] sm:$0xff] %v4970_v11  ;;  %v4936_v17 = vsel %vm4935_vm3, %v6976_v34, %v4932_v60  ;;  %v4939_v32 = vmul.f32 %v6980_v3, %v4938_v51 }
 0xf92   : > { %v4953_v53 = vmul.f32 %v4936_v17, %v9162_v48  ;;  %v4916_v0 = vsel %vm4915_vm5, %v6978_v4, %v4912_v45 }
 0xf93   : > { %v4940_v23 = vmul.f32 0.5, %v4939_v32  ;;  %v4951_v33 = vmul.f32 %v4916_v0, %v9159_v8 }
 0xf94   : > { %v4964_v19 = vmul.f32 %v9190_v13, %v4953_v53 }
 0xf95   : > { %v4941_v10 = vsub.f32 1.5, %v4940_v23  ;;  %v4962_v9 = vmul.f32 %v9190_v13, %v4951_v33 }
 0xf96   : > { %v4975_v18 = vadd.f32 %v9199_v42, %v4964_v19 }
 0xf97   : > { %v4942_v30 = vmul.f32 %v6980_v3, %v4941_v10  ;;  %v4973_v2 = vadd.f32 %v9199_v42, %v4962_v9 }
 0xf98   : > { %4983 = vst [vmem:[#allocation2 + $0x28] sm:$0xff] %v4975_v18 }
 0xf99   : > { %v4946_v48 = vsel %vm4945_vm8, %v6980_v3, %v4942_v30  ;;  %4981 = vst [vmem:[#allocation2 + $0x8] sm:$0xff] %v4973_v2 }
 0xf9a   : > { %v4954_v63 = vmul.f32 %v4946_v48, %v9169_v55 }
 0xf9c   : > { %v4965_v12 = vmul.f32 %v9190_v13, %v4954_v63 }
 0xf9e   : > { %v4976_v8 = vadd.f32 %v9199_v42, %v4965_v12 }
 0xfa0   : > { %4984 = vst [vmem:[#allocation2 + $0x38] sm:$0xff] %v4976_v8 }
 0xfa1 PF: > { %s9574_s28 = sld [smem:[#allocation41_spill]] }
 0xfa7   : > { %p4985_p0 = scmp.eq.s32.totalorder %s9574_s28, 1 }
 0xfa9   : > { %p4986_p1 = pnand %p4985_p0, %p4746_p12 }
 0xfaa   : > { %s9576_s1 = sld [smem:[#allocation64_spill]] (!%p4986_p1) }
 0xfab   : > { %4989 = sbr.rel (%p4986_p1) target bundleno = 4738 (0x1282), region = 211  ;;  %s9577_s18 = sld [smem:[#allocation63_spill]] (!%p4986_p1) }
 0xfac   : > { %s9578_s5 = sld [smem:[#allocation66_spill]] (!%p4986_p1) }
 0xfad   : > { %s9580_s23 = sld [smem:[#allocation68_spill]] (!%p4986_p1) }
 0xfae   : > { %s9581_s9 = sld [smem:[#allocation70_spill]] (!%p4986_p1) }
 0xfb0   : > { %v4991_v6 = vld [vmem:[#allocation2] sm:$0xff]  ;;  %v4992_v39 = vld [vmem:[#allocation2 + $0x18] sm:$0xff]  ;;  %v4993_v46 = vld [vmem:[#allocation2 + $0x10] sm:$0xff]  ;;  %vm5010_vm9 = vcmask 1041409   ;;  %vm5013_vm10 = vcmask 1042434   ;;  %vm5016_vm11 = vcmask 1043459  }
 0xfb1   : > { %v4994_v35 = vld [vmem:[#allocation2 + $0x8] sm:$0xff]  ;;  %v4995_v56 = vld [vmem:[#allocation2 + $0x20] sm:$0xff]  ;;  %v5008_v62 = vrot.slane %v4991_v6, 7  ;;  %v5009_v13 = vrot.slane %v4992_v39, 6  ;;  %v5012_v1 = vrot.slane %v4993_v46, 5  ;;  %v4997_v42 = vld [vmem:[#allocation2 + $0x38] sm:$0xff] }
 0xfb2   : > { %v4996_v55 = vld [vmem:[#allocation2 + $0x28] sm:$0xff]  ;;  %v5015_v54 = vrot.slane %v4994_v35, 4  ;;  %v5018_v22 = vrot.slane %v4995_v56, 3  ;;  %vm5019_vm12 = vcmask 1044484   ;;  %vm5022_vm13 = vcmask 1045509   ;;  %v4990_v41 = vld [vmem:[#allocation2 + $0x30] sm:$0xff]  ;;  %s9579_s17 = smov %s9578_s5 }
 0xfb3   : > { %v5011_v58 = vsel %vm5010_vm9, %v5009_v13, %v5008_v62  ;;  %v5021_v5 = vrot.slane %v4996_v55, 2  ;;  %v5024_v24 = vrot.slane %v4997_v42, 1  ;;  %vm5025_vm14 = vcmask 1046534  }
 0xfb4   : > { %v5014_v49 = vsel %vm5013_vm10, %v5012_v1, %v5011_v58  ;;  %vm5033_vm15 = vcmask 1046528   ;;  %vm5029_vm0 = vcmask 1047559   ;;  %v7536_v16 = vmov 128.0   ;;  %v6580_v1 = vld [vmem:[%s9576_s1 + $0x38] sm:$0xff]  ;;  %v6587_v58 = vld [vmem:[%s9576_s1 + $0x70] sm:$0xff] }
 0xfb5   : > { %v5017_v43 = vsel %vm5016_vm11, %v5015_v54, %v5014_v49  ;;  %v5030_v50 = vsel %vm5029_vm0, %v4990_v41, 0.0  ;;  %6986 = vrcp.f32 %v7536_v16  ;;  %5362 = vmatpush.bf16.msra.mxu1 %v6580_v1  ;;  %v6588_v54 = vld [vmem:[%s9576_s1 + $0x78] sm:$0xff]  ;;  %v6586_v49 = vld [vmem:[%s9576_s1 + $0x68] sm:$0xff] }
 0xfb6   : > { %v5020_v40 = vsel %vm5019_vm12, %v5018_v22, %v5017_v43  ;;  %v6578_v22 = vld [vmem:[%s9576_s1 + $0x28] sm:$0xff]  ;;  %5301 = vmatpush.bf16.msra.mxu0 %v6588_v54 }
 0xfb7   : > { %v5023_v47 = vsel %vm5022_vm13, %v5021_v5, %v5020_v40  ;;  %v6577_v5 = vld [vmem:[%s9576_s1 + $0x20] sm:$0xff] }
 0xfb8   : > { %v5026_v61 = vsel %vm5025_vm14, %v5024_v24, %v5023_v47  ;;  %v6576_v24 = vld [vmem:[%s9576_s1 + $0x18] sm:$0xff]  ;;  %v6585_v40 = vld [vmem:[%s9576_s1 + $0x60] sm:$0xff]  ;;  %v6575_v47 = vld [vmem:[%s9576_s1 + $0x10] sm:$0xff] }
 0xfb9   : > { %v5034_v34 = vsel %vm5033_vm15, %v5026_v61, 0.0 }
 0xfba   : > { %5035 = vadd.xlane.f32.xlu0 %v5034_v34  ;;  %5302 = vmatpush.bf16.msra.mxu0 %v6587_v58 }
 0xfbb   : > { %v6987_v15 = vpop.eup %6986 }
 0xfbc   : > { %v5038_v4 = vmul.f32 128.0, %v6987_v15  ;;  %vm5042_vm1 = vweird.f32 %v6987_v15 }
 0xfbe   : > { %v5039_v20 = vsub.f32 1.0, %v5038_v4  ;;  %5303 = vmatpush.bf16.msra.mxu0 %v6586_v49  ;;  %v6573_v4 = vld [vmem:[%s9576_s1] sm:$0xff] }
 0xfc0   : > { %v5040_v52 = vmul.f32 %v6987_v15, %v5039_v20 }
 0xfc2   : > { %5031 = vadd.xlane.f32.xlu0 %v5030_v50  ;;  %v5041_v38 = vadd.f32 %v6987_v15, %v5040_v52  ;;  %5304 = vmatpush.bf16.msra.mxu0 %v6585_v40  ;;  %v6574_v50 = vld [vmem:[%s9576_s1 + $0x8] sm:$0xff]  ;;  %v5179_v52 = vld [vmem:[%s9577_s18] sm:$0xff] }
 0xfc4   : > { %v9255_v37 = vsel %vm5042_vm1, %v6987_v15, %v5041_v38  ;;  %v6583_v15 = vld [vmem:[%s9576_s1 + $0x50] sm:$0xff]  ;;  %v5212_v38 = vpack.c.bf16 %v5179_v52, %v5179_v52 }
0x102d   : > { %v5036_v44 = vpop.xlane.xlu0 %5035 }
0x102e   : > { %v5045_v26 = vmul.f32 %v9255_v37, %v5036_v44  ;;  %v6582_v44 = vld [vmem:[%s9576_s1 + $0x48] sm:$0xff] }
0x1030   : > { %v5048_v7 = vrot.slane %v5045_v26, 1  ;;  %v5049_v29 = vrot.slane %v5045_v26, 2  ;;  %v5050_v36 = vrot.slane %v5045_v26, 3  ;;  %v5051_v21 = vrot.slane %v5045_v26, 4 }
0x1031   : > { %v5052_v59 = vrot.slane %v5045_v26, 5  ;;  %v5053_v31 = vrot.slane %v5045_v26, 6  ;;  %v5054_v25 = vrot.slane %v5045_v26, 7 }
0x1032   : > { %v9258_v28 = vsub.f32 %v4991_v6, %v5048_v7  ;;  %v9260_v57 = vsub.f32 %v4992_v39, %v5049_v29  ;;  %v9262_v14 = vsub.f32 %v4993_v46, %v5050_v36  ;;  %v9264_v3 = vsub.f32 %v4994_v35, %v5051_v21 }
0x1033   : > { %v9266_v11 = vsub.f32 %v4995_v56, %v5052_v59  ;;  %v9268_v60 = vsub.f32 %v4996_v55, %v5053_v31  ;;  %v9270_v27 = vsub.f32 %v4997_v42, %v5054_v25  ;;  %v6579_v42 = vld [vmem:[%s9576_s1 + $0x30] sm:$0xff] }
0x1034   : > { %v5072_v51 = vmul.f32 %v9258_v28, %v9258_v28  ;;  %v5073_v17 = vmul.f32 %v9260_v57, %v9260_v57  ;;  %v5074_v45 = vmul.f32 %v9262_v14, %v9262_v14  ;;  %v5075_v32 = vmul.f32 %v9264_v3, %v9264_v3  ;;  %5363 = vmatpush.bf16.msra.mxu1 %v6579_v42 }
0x1035   : > { %v5076_v53 = vmul.f32 %v9266_v11, %v9266_v11  ;;  %v5032_v0 = vpop.xlane.xlu0 %5031  ;;  %v5077_v23 = vmul.f32 %v9268_v60, %v9268_v60  ;;  %v5078_v18 = vmul.f32 %v9270_v27, %v9270_v27 }
0x1036   : > { %v5087_v19 = vrot.slane %v5072_v51, 7  ;;  %v5088_v33 = vrot.slane %v5073_v17, 6  ;;  %v5090_v10 = vrot.slane %v5074_v45, 5  ;;  %v5092_v30 = vrot.slane %v5075_v32, 4  ;;  %v6596_v17 = vld [vmem:[%s9578_s5 + $0x38] sm:$0xff] }
0x1037   : > { %v5044_v2 = vmul.f32 %v9255_v37, %v5032_v0  ;;  %v5094_v63 = vrot.slane %v5076_v53, 3  ;;  %v5096_v8 = vrot.slane %v5077_v23, 2  ;;  %v5098_v39 = vrot.slane %v5078_v18, 1  ;;  %5450 = vmatpush.bf16.msra.mxu2 %v6596_v17  ;;  %v6595_v53 = vld [vmem:[%s9579_s17 + $0x30] sm:$0xff] }
0x1038   : > { %v5089_v9 = vsel %vm5010_vm9, %v5088_v33, %v5087_v19  ;;  %5364 = vmatpush.bf16.msra.mxu1 %v6578_v22  ;;  %v6981_v33 = vld [vmem:[#allocation20] ss:$0 sm:$0xff] }
0x1039   : > { %v5091_v48 = vsel %vm5013_vm10, %v5090_v10, %v5089_v9  ;;  %v9292_v35 = vsub.f32 %v4990_v41, %v5044_v2  ;;  %v6584_v41 = vld [vmem:[%s9576_s1 + $0x58] sm:$0xff] }
0x103a   : > { %v5093_v12 = vsel %vm5016_vm11, %v5092_v30, %v5091_v48  ;;  %5305 = vmatpush.bf16.msra.mxu0 %v6584_v41  ;;  %v6982_v48 = vld [vmem:[#allocation22] ss:$0 sm:$0xff] }
0x103b   : > { %v5095_v6 = vsel %vm5019_vm12, %v5094_v63, %v5093_v12  ;;  %v5071_v62 = vmul.f32 %v9292_v35, %v9292_v35  ;;  %5451 = vmatpush.bf16.msra.mxu2 %v6595_v53 }
0x103c   : > { %v5097_v46 = vsel %vm5022_vm13, %v5096_v8, %v5095_v6  ;;  %5365 = vmatpush.bf16.msra.mxu1 %v6577_v5 }
0x103d   : > { %v5099_v56 = vsel %vm5025_vm14, %v5098_v39, %v5097_v46  ;;  %v5102_v13 = vsel %vm5029_vm0, %v5071_v62, 0.0 }
0x103e   : > { %v5105_v55 = vsel %vm5033_vm15, %v5099_v56, 0.0  ;;  %5306 = vmatpush.bf16.msra.mxu0 %v6583_v15  ;;  %v6594_v56 = vld [vmem:[%s9579_s17 + $0x28] sm:$0xff] }
0x103f   : > { %5106 = vadd.xlane.f32.xlu1 %v5105_v55  ;;  %5452 = vmatpush.bf16.msra.mxu2 %v6594_v56  ;;  %v6600_v56 = vld [vmem:[%s9580_s23 + $0x18] sm:$0xff] }
0x1040   : > { %5366 = vmatpush.bf16.msra.mxu1 %v6576_v24 }
0x1042   : > { %5307 = vmatpush.bf16.msra.mxu0 %v6582_v44 }
0x1044   : > { %5367 = vmatpush.bf16.msra.mxu1 %v6575_v47 }
0x1047   : > { %5103 = vadd.xlane.f32.xlu1 %v5102_v13 }
0x1048   : > { %5368 = vmatpush.bf16.msra.mxu1 %v6574_v50 }
0x104c   : > { %5369 = vmatpush.bf16.msra.mxu1 %v6573_v4 }
0x104f   : > { %5370 = vmatmul.bf16.vlgmr.msra.gmra.mxu1 %v5212_v38 }
0x10b2   : > { %v5107_v43 = vpop.xlane.xlu1 %5106 }
0x10b3   : > { %v5109_v61 = vmul.f32 %v5107_v43, %v9255_v37 }
0x10b5   : > { %v5111_v34 = vadd.f32 1e-05, %v5109_v61 }
0x10b7   : > { %6988 = vrsqrt.f32 %v5111_v34  ;;  %vm5128_vm3 = vweird.f32 %v5111_v34 }
0x10ba   : > { %v5104_v16 = vpop.xlane.xlu1 %5103 }
0x10bb   : > { %v5108_v20 = vmul.f32 %v5104_v16, %v9255_v37  ;;  %v6581_v37 = vld [vmem:[%s9576_s1 + $0x40] sm:$0xff] }
0x10bc   : > { %5308 = vmatpush.bf16.msra.mxu0 %v6581_v37 }
0x10bd   : > { %v6989_v26 = vpop.eup %6988  ;;  %v5110_v7 = vadd.f32 1e-05, %v5108_v20 }
0x10be   : > { %v5123_v29 = vmul.f32 %v6989_v26, %v5111_v34  ;;  %vm5129_vm2 = vweird.f32 %v6989_v26 }
0x10bf   : > { %6990 = vrsqrt.f32 %v5110_v7  ;;  %vm5130_vm4 = vmor %vm5128_vm3, %vm5129_vm2  ;;  %vm5118_vm6 = vweird.f32 %v5110_v7 }
0x10c0   : > { %v5124_v36 = vmul.f32 %v6989_v26, %v5123_v29 }
0x10c2   : > { %v5125_v21 = vmul.f32 0.5, %v5124_v36 }
0x10c4   : > { %v5126_v59 = vsub.f32 1.5, %v5125_v21 }
0x10c5   : > { %v6991_v31 = vpop.eup %6990 }
0x10c6   : > { %v5127_v25 = vmul.f32 %v6989_v26, %v5126_v59  ;;  %v5113_v51 = vmul.f32 %v6991_v31, %v5110_v7  ;;  %vm5119_vm5 = vweird.f32 %v6991_v31 }
0x10c7   : > { %vm5120_vm7 = vmor %vm5118_vm6, %vm5119_vm5 }
0x10c8   : > { %v5131_v45 = vsel %vm5130_vm4, %v6989_v26, %v5127_v25  ;;  %v5114_v32 = vmul.f32 %v6991_v31, %v5113_v51 }
0x10c9   : > { %v5134_v0 = vrot.slane %v5131_v45, 1  ;;  %v5135_v23 = vrot.slane %v5131_v45, 2  ;;  %v5136_v19 = vrot.slane %v5131_v45, 3  ;;  %v5137_v10 = vrot.slane %v5131_v45, 4 }
0x10ca   : > { %v5115_v18 = vmul.f32 0.5, %v5114_v32  ;;  %v5138_v9 = vrot.slane %v5131_v45, 5  ;;  %v5139_v30 = vrot.slane %v5131_v45, 6  ;;  %v5140_v55 = vrot.slane %v5131_v45, 7 }
0x10cb   : > { %v5150_v2 = vmul.f32 %v5134_v0, %v9258_v28  ;;  %v5151_v63 = vmul.f32 %v5135_v23, %v9260_v57  ;;  %v5152_v12 = vmul.f32 %v5136_v19, %v9262_v14  ;;  %v5153_v8 = vmul.f32 %v5137_v10, %v9264_v3 }
0x10cc   : > { %v5116_v6 = vsub.f32 1.5, %v5115_v18  ;;  %v5154_v39 = vmul.f32 %v5138_v9, %v9266_v11  ;;  %v5155_v46 = vmul.f32 %v5139_v30, %v9268_v60  ;;  %v6593_v60 = vld [vmem:[%s9579_s17 + $0x20] sm:$0xff]  ;;  %v5156_v58 = vmul.f32 %v5140_v55, %v9270_v27  ;;  %v6592_v9 = vld [vmem:[%s9579_s17 + $0x18] sm:$0xff]  ;;  %v6591_v30 = vld [vmem:[%s9579_s17 + $0x10] sm:$0xff] }
0x10cd   : > { %v5161_v28 = vmul.f32 %v6981_v33, %v5150_v2  ;;  %v5162_v62 = vmul.f32 %v6981_v33, %v5151_v63  ;;  %v5163_v13 = vmul.f32 %v6981_v33, %v5152_v12  ;;  %v5164_v14 = vmul.f32 %v6981_v33, %v5153_v8  ;;  %5453 = vmatpush.bf16.msra.mxu2 %v6593_v60  ;;  %v5371_v2 = vpop.f32.mrf.mxu1  ;;  %v6590_v63 = vld [vmem:[%s9579_s17 + $0x8] sm:$0xff]  ;;  %v6589_v12 = vld [vmem:[%s9579_s17] sm:$0xff]  ;;  %v6604_v8 = vld [vmem:[%s9580_s23 + $0x38] sm:$0xff] }
0x10ce   : > { %v5117_v57 = vmul.f32 %v6991_v31, %v5116_v6  ;;  %v5165_v3 = vmul.f32 %v6981_v33, %v5154_v39  ;;  %v5166_v54 = vmul.f32 %v6981_v33, %v5155_v46  ;;  %v5167_v41 = vmul.f32 %v6981_v33, %v5156_v58  ;;  %5533 = vmatpush.bf16.msra.mxu3 %v6604_v8  ;;  %v6603_v6 = vld [vmem:[%s9580_s23 + $0x30] sm:$0xff]  ;;  %v6602_v39 = vld [vmem:[%s9580_s23 + $0x28] sm:$0xff]  ;;  %v6601_v46 = vld [vmem:[%s9580_s23 + $0x20] sm:$0xff] }
0x10cf   : > { %v5172_v1 = vadd.f32 %v6982_v48, %v5161_v28  ;;  %v5173_v11 = vadd.f32 %v6982_v48, %v5162_v62  ;;  %v5174_v5 = vadd.f32 %v6982_v48, %v5163_v13  ;;  %v5175_v49 = vadd.f32 %v6982_v48, %v5164_v14  ;;  %v6599_v55 = vld [vmem:[%s9580_s23 + $0x10] sm:$0xff] }
0x10d0   : > { %v5121_v42 = vsel %vm5120_vm7, %v6991_v31, %v5117_v57  ;;  %v5176_v43 = vadd.f32 %v6982_v48, %v5165_v3  ;;  %v5177_v47 = vadd.f32 %v6982_v48, %v5166_v54  ;;  %v5178_v44 = vadd.f32 %v6982_v48, %v5167_v41  ;;  %v6983_v28 = vld [vmem:[#allocation23] ss:$0 sm:$0xff]  ;;  %v6597_v54 = vld [vmem:[%s9580_s23] sm:$0xff] }
0x10d1   : > { %v5149_v22 = vmul.f32 %v5121_v42, %v9292_v35  ;;  %v5214_v40 = vpack.c.bf16 %v5172_v1, %v5172_v1  ;;  %v5215_v61 = vpack.c.bf16 %v5173_v11, %v5173_v11  ;;  %v5216_v50 = vpack.c.bf16 %v5174_v5, %v5174_v5  ;;  %5454 = vmatpush.bf16.msra.mxu2 %v6592_v9  ;;  %v6598_v42 = vld [vmem:[%s9580_s23 + $0x8] sm:$0xff]  ;;  %v6984_v11 = vld [vmem:[#allocation25] ss:$0 sm:$0xff] }
0x10d2   : > { %v5217_v16 = vpack.c.bf16 %v5175_v49, %v5175_v49  ;;  %v5218_v4 = vpack.c.bf16 %v5176_v43, %v5176_v43  ;;  %v5219_v52 = vpack.c.bf16 %v5177_v47, %v5177_v47  ;;  %v5220_v59 = vpack.c.bf16 %v5178_v44, %v5178_v44  ;;  %5534 = vmatpush.bf16.msra.mxu3 %v6603_v6 }
0x10d3   : > { %v5160_v24 = vmul.f32 %v6981_v33, %v5149_v22  ;;  %v5230_v20 = vunpack.c.l.b16 %v5214_v40  ;;  %v5231_v38 = vunpack.c.l.b16 %v5215_v61  ;;  %v5232_v27 = vunpack.c.l.b16 %v5216_v50 }
0x10d4   : > { %v5233_v26 = vunpack.c.l.b16 %v5217_v16  ;;  %v5234_v29 = vunpack.c.l.b16 %v5218_v4  ;;  %v5235_v37 = vunpack.c.l.b16 %v5219_v52  ;;  %v5236_v23 = vunpack.c.l.b16 %v5220_v59 }
0x10d5   : > { %v5171_v34 = vadd.f32 %v6982_v48, %v5160_v24  ;;  %v5238_v36 = vrot.slane %v5230_v20, 6  ;;  %v5240_v21 = vrot.slane %v5231_v38, 5  ;;  %v5242_v25 = vrot.slane %v5232_v27, 4  ;;  %5455 = vmatpush.bf16.msra.mxu2 %v6591_v30  ;;  %v5373_v48 = vpop.f32.mrf.mxu1  ;;  %v6985_v24 = vld [vmem:[#allocation26] ss:$0 sm:$0xff] }
0x10d6   : > { %v5244_v17 = vrot.slane %v5233_v26, 3  ;;  %v5246_v32 = vrot.slane %v5234_v29, 2  ;;  %v5248_v0 = vrot.slane %v5235_v37, 1  ;;  %5535 = vmatpush.bf16.msra.mxu3 %v6602_v39 }
0x10d7   : > { %v5213_v15 = vpack.c.bf16 %v5171_v34, %v5171_v34 }
0x10d9   : > { %v5229_v35 = vunpack.c.l.b16 %v5213_v15  ;;  %5456 = vmatpush.bf16.msra.mxu2 %v6590_v63 }
0x10da   : > { %5536 = vmatpush.bf16.msra.mxu3 %v6601_v46 }
0x10db   : > { %v5237_v7 = vrot.slane %v5229_v35, 7 }
0x10dd   : > { %v5239_v31 = vsel %vm5010_vm9, %v5238_v36, %v5237_v7  ;;  %5457 = vmatpush.bf16.msra.mxu2 %v6589_v12 }
0x10de   : > { %v5241_v51 = vsel %vm5013_vm10, %v5240_v21, %v5239_v31  ;;  %5537 = vmatpush.bf16.msra.mxu3 %v6600_v56 }
0x10df   : > { %v5243_v45 = vsel %vm5016_vm11, %v5242_v25, %v5241_v51 }
0x10e0   : > { %v5245_v53 = vsel %vm5019_vm12, %v5244_v17, %v5243_v45 }
0x10e1   : > { %v5247_v19 = vsel %vm5022_vm13, %v5246_v32, %v5245_v53 }
0x10e2   : > { %v5249_v33 = vsel %vm5025_vm14, %v5248_v0, %v5247_v19  ;;  %5538 = vmatpush.bf16.msra.mxu3 %v6599_v55 }
0x10e3   : > { %v5250_v10 = vsel %vm5029_vm0, %v5236_v23, %v5249_v33 }
0x10e4   : > { %v5251_v18 = vpack.c.b16 %v5250_v10, %v5250_v10 }
0x10e6   : > { %5309 = vmatmul.bf16.vlgmr.msra.gmra.mxu0 %v5251_v18  ;;  %5539 = vmatpush.bf16.msra.mxu3 %v6598_v42 }
0x10ea   : > { %5540 = vmatpush.bf16.msra.mxu3 %v6597_v54 }
0x1163   : > { %v5310_v62 = vpop.f32.mrf.mxu0 }
0x1164   : > { %v5372_v13 = vadd.f32 %v5371_v2, %v5310_v62 }
0x1166   : > { %v5379_v57 = vadd.f32 %v6983_v28, %v5372_v13 }
0x1168   : > { %v5380_v14 = vmax.f32 %v5379_v57, 0.0 }
0x116a   : > { %v5381_v3 = vpack.c.bf16 %v5380_v14, %v5380_v14 }
0x116b   : > { %v5312_v1 = vpop.f32.mrf.mxu0 }
0x116c   : > { %5458 = vmatmul.bf16.vlgmr.msra.gmra.mxu2 %v5381_v3 }
0x11ef   : > { %v5459_v60 = vpop.f32.mrf.mxu2 }
0x11f0   : > { %v5460_v22 = vadd.f32 %v6984_v11, %v5459_v60 }
0x11f2   : > { %v5463_v58 = vmax.f32 %v5460_v22, 0.0 }
0x11f4   : > { %v5464_v5 = vpack.c.bf16 %v5463_v58, %v5463_v58 }
0x11f6   : > { %5541 = vmatmul.bf16.vlgmr.msra.gmra.mxu3 %v5464_v5 }
0x11f7   : > { %v5461_v49 = vpop.f32.mrf.mxu2 }
0x1279   : > { %v5542_v43 = vpop.f32.mrf.mxu3 }
0x127a   : > { %v5543_v40 = vadd.f32 %v6985_v24, %v5542_v43 }
0x127c   : > { %5546 = vst [vmem:[%s9581_s9] sm:$0xff] %v5543_v40 }
0x1281   : > { %v5544_v47 = vpop.f32.mrf.mxu3 }
0x1282 PF: > { %s9582_s25 = sld [smem:[#allocation42_spill]]  ;;  %s9590_s26 = smov %s7486_s27 }
0x1283   : > { %s9583_s5 = sld [smem:[#allocation37_spill]]  ;;  %s9593_s29 = smov %s7510_s7 }
0x1284   : > { %s9584_s6 = sld [smem:[#allocation48_spill]]  ;;  %s9594_s0 = smov %s7514_s30 }
0x1285   : > { %s9585_s28 = sld [smem:[#allocation38_spill]] }
0x1286   : > { %s9586_s15 = sld [smem:[#allocation39_spill]] }
0x1287   : > { %s9587_s2 = sld [smem:[#allocation47_spill]] }
0x1288   : > { %s50_s3 = sadd.s32 1, %s9582_s25   ;;  %s9588_s24 = sld [smem:[#allocation43_spill]] }
0x1289   : > { %p47_p2 = scmp.ge.s32.totalorder %s50_s3, 10   ;;  %s9589_s19 = sld [smem:[#allocation45_spill]] }
0x128a   : > { %s9591_s27 = smov %s9584_s6 }
0x128b   :  { %49 = sbr.rel (!%p47_p2) target bundleno = 39 (0x27), region = 316 }
0x128c   : > { %s9592_s6 = smov %s9586_s15 }
0x128e   : > { %s9595_s7 = smov %s9588_s24 }
0x128f   : > { %s9596_s30 = smov %s9589_s19 }
0x1290   :  { %5558 = vsyncpa [#allocation6], 1 }
0x1291   :  { %5560 = vsyncpa [#allocation6 + $0x1], 1 }
0x1292   :  { %5561 = vsyncpa [#allocation8], 1 }
0x1293   :  { %5563 = vsyncpa [#allocation8 + $0x1], 1 }
0x1294   :  { %5564 = vsyncpa [#allocation11], 1 }
0x1295   :  { %5566 = vsyncpa [#allocation11 + $0x1], 1 }
0x1296   :  { %5567 = vsyncpa [#allocation15], 1 }
0x1297   :  { %5569 = vsyncpa [#allocation15 + $0x1], 1 }
0x1298   :  { %5570 = vsyncpa [#allocation18], 1 }
0x1299   :  { %5572 = vsyncpa [#allocation18 + $0x1], 1 }
0x129a   :  { %5573 = vsyncpa [#allocation21], 1 }
0x129b   :  { %5574 = vsyncpa [#allocation24], 1 }
0x129c   :  { %5575 = vsyncpa [#allocation27], 1 }

</bundles_post_ra>
